<compile_context>
chip_gen: v7x
topology: tpu7x:2x2x1
jax: 0.10.0
libtpu: 0.0.40
codegen_flags: <defaults>
</compile_context>

<pallas_src>
import functools

import numpy as np
import jax
import jax.numpy as jnp
from jax import lax
from jax.experimental import pallas as pl
from jax.experimental.pallas import tpu as pltpu

INPUT_DIM = 1280
LATENT_DIM = 150
LATENT_PAD = 256          # lane-dense padded latent width (multiple of 128)
BATCH = 8
BN_EPS = 1e-5
E1_SPLIT = 640            # K-strip boundary for the largest encoder weight (1280 -> 640+640)


# ----------------------------- Pallas kernel ---------------------------------
def autoencoder_kernel(
    beta_ref,                                   # SMEM (1,1): swish beta
    x_ref,                                      # VMEM (N, input_dim) f32
    smalls_ref,                                 # VMEM (1, total) f32: all biases + BN params
    e1a_hbm, e1b_hbm, e2_hbm, lat_hbm,          # ANY (HBM) bf16 weights (manual DMA)
    d1_hbm, d2_hbm, f3_hbm,                     # ANY (HBM) bf16 weights (manual DMA)
    lat_out, rec_out,                           # VMEM outputs (padded latent, reconstruction)
    e1a_v, e1b_v, e2_v, lat_v, d1_v, d2_v, f3_v,   # VMEM scratch: weight landing buffers
    sems,                                       # DMA semaphores (7,)
    *, dims, offs,
):
    # Issue EVERY weight DMA at t=0, ordered by first use, one semaphore each.
    # Waits are placed immediately before the consuming matmul, so the weight
    # streams overlap each other and the MXU work.
    copies = []
    for i, (src, dst) in enumerate([
        (e1a_hbm, e1a_v), (e1b_hbm, e1b_v), (e2_hbm, e2_v), (lat_hbm, lat_v),
        (d1_hbm, d1_v), (d2_hbm, d2_v), (f3_hbm, f3_v),
    ]):
        cp = pltpu.make_async_copy(src, dst, sems.at[i])
        cp.start()
        copies.append(cp)
    cp_e1a, cp_e1b, cp_e2, cp_lat, cp_d1, cp_d2, cp_f3 = copies

    # Read the SMEM scalar before any DMA wait (waits break sst->sld forwarding).
    beta = beta_ref[0, 0]

    def swish(v):
        # sigmoid = 1 / (1 + exp(-beta*v)); exp + approx reciprocal run on the EUP
        # slot.  The exp argument is clamped so it never overflows to +inf
        # (approx reciprocal of inf is then never produced -> no 0*inf NaN risk).
        z = jnp.exp(jnp.minimum(-beta * v, 80.0))
        return v * pl.reciprocal(1.0 + z, approx=True)

    def batchnorm(v, g, b):
        # training-mode BatchNorm1d: batch mean / biased batch variance.
        mean = jnp.mean(v, axis=0, keepdims=True)
        var = jnp.mean((v - mean) ** 2, axis=0, keepdims=True)
        scale = g * lax.rsqrt(var + BN_EPS)       # per-feature scale computed once
        return scale * (v - mean) + b

    def dot_bf(a, w):
        return jnp.dot(a.astype(jnp.bfloat16), w, preferred_element_type=jnp.float32)

    def resblock_post(y, off, out_dim):
        # y = one fused (in, 2*out) matmul result: columns [:out] = fc path,
        # columns [out:] = downsample path.
        fb = smalls_ref[:, off: off + out_dim]
        db = smalls_ref[:, off + out_dim: off + 2 * out_dim]
        g = smalls_ref[:, off + 2 * out_dim: off + 3 * out_dim]
        b = smalls_ref[:, off + 3 * out_dim: off + 4 * out_dim]
        h = y[:, :out_dim] + fb
        res = y[:, out_dim:] + db
        return swish(batchnorm(h, g, b)) + res

    # ---------------- encoder ----------------
    x = x_ref[...]
    split = dims["e1_split"]

    # ResBlock 1: K-strip pipelined — first partial matmul starts as soon as the
    # first half of e1_w has landed, while the second half is still streaming.
    cp_e1a.wait()
    y = dot_bf(x[:, :split], e1a_v[...])
    cp_e1b.wait()
    y = y + dot_bf(x[:, split:], e1b_v[...])
    h = resblock_post(y, offs["e1"], dims["e1"])

    cp_e2.wait()
    h = resblock_post(dot_bf(h, e2_v[...]), offs["e2"], dims["e2"])

    cp_lat.wait()
    lat_b = smalls_ref[:, offs["latb"]: offs["latb"] + dims["lat_pad"]]
    latent = dot_bf(h, lat_v[...]) + lat_b
    lat_out[...] = latent      # padded (N, 256); wrapper slices back to latent_dim

    # ---------------- decoder ----------------
    cp_d1.wait()
    z = resblock_post(dot_bf(latent, d1_v[...]), offs["d1"], dims["d1"])
    cp_d2.wait()
    z = resblock_post(dot_bf(z, d2_v[...]), offs["d2"], dims["d2"])
    cp_f3.wait()
    f3_b = smalls_ref[:, offs["f3b"]: offs["f3b"] + dims["out"]]
    rec_out[...] = dot_bf(z, f3_v[...]) + f3_b


# ------------------------- parameter setup (glue) -----------------------------
def _spectral_normalize(w, key, n_iter):
    """Mimic torch spectral_norm: w / sigma, sigma via power iteration."""
    out_dim, _ = w.shape
    u = jax.random.normal(key, (out_dim,), dtype=w.dtype)
    u = u / (jnp.linalg.norm(u) + 1e-12)
    v = None
    for _ in range(n_iter):
        v = w.T @ u
        v = v / (jnp.linalg.norm(v) + 1e-12)
        u = w @ v
        u = u / (jnp.linalg.norm(u) + 1e-12)
    sigma = u @ (w @ v)
    return w / sigma


def init_params(key, input_dim=INPUT_DIM, latent_dim=LATENT_DIM):
    """Returns the 28 'logical' f32 params (weights pre-transposed to (in, out))."""
    dims_enc = [input_dim, 512, 256]
    dims_dec = [latent_dim, 256, 512]
    keys = iter(jax.random.split(key, 64))

    def kaiming(k, out_d, in_d):
        gain = np.sqrt(2.0 / (1.0 + 0.01 ** 2))   # kaiming_normal_, leaky_relu
        std = gain / np.sqrt(in_d)
        return (std * jax.random.normal(k, (out_d, in_d))).astype(jnp.float32)

    def bias(k, out_d, in_d):
        bound = 1.0 / np.sqrt(in_d)
        return jax.random.uniform(k, (1, out_d), jnp.float32, -bound, bound)

    def resblock_params(in_d, out_d):
        fw = _spectral_normalize(kaiming(next(keys), out_d, in_d), next(keys), 3)
        fb = bias(next(keys), out_d, in_d)
        dw = _spectral_normalize(kaiming(next(keys), out_d, in_d), next(keys), 3)
        db = bias(next(keys), out_d, in_d)
        gamma = jnp.ones((1, out_d), jnp.float32)
        bbeta = jnp.zeros((1, out_d), jnp.float32)
        return [fw.T, fb, dw.T, db, gamma, bbeta]

    params = []
    params += resblock_params(dims_enc[0], dims_enc[1])
    params += resblock_params(dims_enc[1], dims_enc[2])
    lat_w = _spectral_normalize(kaiming(next(keys), latent_dim, dims_enc[-1]), next(keys), 5)
    params += [lat_w.T, bias(next(keys), latent_dim, dims_enc[-1])]
    params += resblock_params(dims_dec[0], dims_dec[1])
    params += resblock_params(dims_dec[1], dims_dec[2])
    f3_w = _spectral_normalize(kaiming(next(keys), input_dim, dims_dec[-1]), next(keys), 5)
    params += [f3_w.T, bias(next(keys), input_dim, dims_dec[-1])]
    return params


def pack_params(params, latent_dim=LATENT_DIM, latent_pad=LATENT_PAD, e1_split=E1_SPLIT):
    """Build kernel inputs: fused/split bf16 weights, padded latent path, packed smalls."""
    (e1_fw, e1_fb, e1_dw, e1_db, e1_g, e1_b,
     e2_fw, e2_fb, e2_dw, e2_db, e2_g, e2_b,
     lat_w, lat_b,
     d1_fw, d1_fb, d1_dw, d1_db, d1_g, d1_b,
     d2_fw, d2_fb, d2_dw, d2_db, d2_g, d2_b,
     f3_w, f3_b) = params

    def fuse(fw, dw):
        return jnp.concatenate([fw, dw], axis=1).astype(jnp.bfloat16)

    e1_w = fuse(e1_fw, e1_dw)                                     # (1280, 1024)
    e1a_w = e1_w[:e1_split, :]                                    # (640, 1024) K-strip 0
    e1b_w = e1_w[e1_split:, :]                                    # (640, 1024) K-strip 1
    e2_w = fuse(e2_fw, e2_dw)                                     # (512, 512)

    # pad fc_latent output width 150 -> 256 (zero columns / zero bias tail)
    lat_w_p = jnp.zeros((lat_w.shape[0], latent_pad), jnp.float32)
    lat_w_p = lat_w_p.at[:, :latent_dim].set(lat_w).astype(jnp.bfloat16)   # (256, 256)
    lat_b_p = jnp.zeros((1, latent_pad), jnp.float32).at[:, :latent_dim].set(lat_b)

    # pad decoder-RB1 input (K) dim 150 -> 256 with zero rows
    def pad_rows(w):
        return jnp.zeros((latent_pad, w.shape[1]), jnp.float32).at[:latent_dim, :].set(w)

    d1_w = jnp.concatenate([pad_rows(d1_fw), pad_rows(d1_dw)], axis=1).astype(jnp.bfloat16)  # (256, 512)
    d2_w = fuse(d2_fw, d2_dw)                                     # (256, 1024)
    f3_w_bf = f3_w.astype(jnp.bfloat16)                           # (512, 1280)

    # pack all (1, out) params into one lane-aligned f32 array
    smalls = jnp.concatenate([
        e1_fb, e1_db, e1_g, e1_b,
        e2_fb, e2_db, e2_g, e2_b,
        lat_b_p,
        d1_fb, d1_db, d1_g, d1_b,
        d2_fb, d2_db, d2_g, d2_b,
        f3_b,
    ], axis=1)                                                    # (1, 7680)

    return e1a_w, e1b_w, e2_w, lat_w_p, smalls, d1_w, d2_w, f3_w_bf


# ------------------------------- wrapper --------------------------------------
@functools.partial(jax.jit, static_argnames=("latent_dim",))
def autoencoder_forward(x, beta, e1a_w, e1b_w, e2_w, lat_w, smalls, d1_w, d2_w, f3_w,
                        *, latent_dim=LATENT_DIM):
    n, input_dim = x.shape
    d_e1 = e1a_w.shape[1] // 2
    d_e2 = e2_w.shape[1] // 2
    lat_pad = lat_w.shape[1]
    d_d1 = d1_w.shape[1] // 2
    d_d2 = d2_w.shape[1] // 2
    e1_split = e1a_w.shape[0]

    off_e1 = 0
    off_e2 = off_e1 + 4 * d_e1
    off_latb = off_e2 + 4 * d_e2
    off_d1 = off_latb + lat_pad
    off_d2 = off_d1 + 4 * d_d1
    off_f3b = off_d2 + 4 * d_d2
    assert smalls.shape[1] == off_f3b + input_dim

    dims = dict(e1=d_e1, e2=d_e2, d1=d_d1, d2=d_d2,
                lat_pad=lat_pad, out=input_dim, e1_split=e1_split)
    offs = dict(e1=off_e1, e2=off_e2, latb=off_latb, d1=off_d1, d2=off_d2, f3b=off_f3b)

    beta_arr = jnp.asarray(beta, jnp.float32).reshape(1, 1)

    weights = (e1a_w, e1b_w, e2_w, lat_w, d1_w, d2_w, f3_w)
    weight_elems = sum(int(np.prod(w.shape)) for w in weights)
    cost = pl.CostEstimate(
        flops=2 * n * weight_elems,                                     # ~4.3e7
        transcendentals=2 * n * (d_e1 + d_e2 + d_d1 + d_d2),            # exp + recip
        bytes_accessed=2 * weight_elems                                 # bf16 weights
        + 4 * (n * (2 * input_dim + lat_pad) + smalls.shape[1]),        # f32 act/IO
    )

    vmem = pltpu.MemorySpace.VMEM
    in_specs = [
        pl.BlockSpec(memory_space=pltpu.MemorySpace.SMEM),   # beta
        pl.BlockSpec(memory_space=vmem),                     # x
        pl.BlockSpec(memory_space=vmem),                     # smalls
    ] + [pl.BlockSpec(memory_space=pl.ANY)] * 7              # all weights: manual DMA
    out_specs = (pl.BlockSpec(memory_space=vmem),
                 pl.BlockSpec(memory_space=vmem))
    out_shape = (jax.ShapeDtypeStruct((n, lat_pad), jnp.float32),
                 jax.ShapeDtypeStruct((n, input_dim), jnp.float32))
    scratch_shapes = [pltpu.VMEM(w.shape, jnp.bfloat16) for w in weights] + [
        pltpu.SemaphoreType.DMA((7,)),
    ]

    kernel = functools.partial(autoencoder_kernel, dims=dims, offs=offs)
    lat_pad_out, rec = pl.pallas_call(
        kernel,
        out_shape=out_shape,
        in_specs=in_specs,
        out_specs=out_specs,
        scratch_shapes=scratch_shapes,
        cost_estimate=cost,
        compiler_params=pltpu.CompilerParams(vmem_limit_bytes=32 * 1024 * 1024),
    )(beta_arr, x, smalls, e1a_w, e1b_w, e2_w, lat_w, d1_w, d2_w, f3_w)

    return lat_pad_out[:, :latent_dim], rec


# ------------------------- pure-JAX reference ---------------------------------
def reference_forward(x, beta, params):
    """Reference with the same bf16 weight quantization / bf16 MXU inputs as the kernel
    (BN / Swish math in f32, exact sigmoid)."""
    def dot_bf(a, w):
        return jnp.dot(a.astype(jnp.bfloat16), w.astype(jnp.bfloat16),
                       preferred_element_type=jnp.float32)

    def swish(v):
        return v * jax.nn.sigmoid(beta * v)

    def bn(v, g, b):
        mean = jnp.mean(v, axis=0, keepdims=True)
        var = jnp.mean((v - mean) ** 2, axis=0, keepdims=True)
        return g * (v - mean) / jnp.sqrt(var + BN_EPS) + b

    def resblock(v, p):
        fw, fb, dw, db, g, b = p
        out = swish(bn(dot_bf(v, fw) + fb, g, b))
        return out + (dot_bf(v, dw) + db)

    h = resblock(x, params[0:6])
    h = resblock(h, params[6:12])
    lat = dot_bf(h, params[12]) + params[13]
    z = resblock(lat, params[14:20])
    z = resblock(z, params[20:26])
    rec = dot_bf(z, params[26]) + params[27]
    return lat, rec


# --------------------------------- main ----------------------------------------
if __name__ == "__main__":
    key = jax.random.PRNGKey(0)
    key_x, key_p = jax.random.split(key)
    x = jax.random.normal(key_x, (BATCH, INPUT_DIM), dtype=jnp.float32)
    params = init_params(key_p)
    kernel_params = pack_params(params)
    swish_beta = 1.0  # trainable Swish beta, initial value

    latent, reconstructed = autoencoder_forward(
        x, swish_beta, *kernel_params, latent_dim=LATENT_DIM)
    jax.block_until_ready((latent, reconstructed))

    lat_ref, rec_ref = reference_forward(x, swish_beta, params)
    # tolerance relaxed vs a pure-f32 comparison: bf16 weight storage + approximate
    # reciprocal in the Swish sigmoid (both deliberate perf choices).
    np.testing.assert_allclose(np.asarray(latent), np.asarray(lat_ref),
                               rtol=2e-2, atol=2e-2)
    np.testing.assert_allclose(np.asarray(reconstructed), np.asarray(rec_ref),
                               rtol=2e-2, atol=2e-2)

    assert latent.shape == (BATCH, LATENT_DIM)
    assert reconstructed.shape == (BATCH, INPUT_DIM)
    print("KERNEL_OK")
</pallas_src>

<mosaic_0001>
module attributes {stable_mosaic.version = 11 : i64} {
  func.func @autoencoder_kernel(%arg0: memref<1x1xf32, #tpu.memory_space<smem>>, %arg1: memref<8x1280xf32, #tpu.memory_space<vmem>>, %arg2: memref<1x7680xf32, #tpu.memory_space<vmem>>, %arg3: memref<640x1024xbf16, #tpu.memory_space<any>>, %arg4: memref<640x1024xbf16, #tpu.memory_space<any>>, %arg5: memref<512x512xbf16, #tpu.memory_space<any>>, %arg6: memref<256x256xbf16, #tpu.memory_space<any>>, %arg7: memref<256x512xbf16, #tpu.memory_space<any>>, %arg8: memref<256x1024xbf16, #tpu.memory_space<any>>, %arg9: memref<512x1280xbf16, #tpu.memory_space<any>>, %arg10: memref<8x256xf32, #tpu.memory_space<vmem>>, %arg11: memref<8x1280xf32, #tpu.memory_space<vmem>>, %arg12: memref<640x1024xbf16, #tpu.memory_space<vmem>>, %arg13: memref<640x1024xbf16, #tpu.memory_space<vmem>>, %arg14: memref<512x512xbf16, #tpu.memory_space<vmem>>, %arg15: memref<256x256xbf16, #tpu.memory_space<vmem>>, %arg16: memref<256x512xbf16, #tpu.memory_space<vmem>>, %arg17: memref<256x1024xbf16, #tpu.memory_space<vmem>>, %arg18: memref<512x1280xbf16, #tpu.memory_space<vmem>>, %arg19: memref<7x!tpu.dma_semaphore, #tpu.memory_space<semaphore_mem>>) attributes {dimension_semantics = [], scalar_prefetch = 0 : i64, scratch_operands = 8 : i64, tpu.core_type = #tpu.core_type<tc>} {
    %c0_i32 = arith.constant 0 : i32
    %0 = tpu.memref_slice %arg19[%c0_i32] : memref<7x!tpu.dma_semaphore, #tpu.memory_space<semaphore_mem>> -> memref<1x!tpu.dma_semaphore, #tpu.memory_space<semaphore_mem>>
    %1 = tpu.memref_squeeze %0 : memref<1x!tpu.dma_semaphore, #tpu.memory_space<semaphore_mem>> -> memref<!tpu.dma_semaphore, #tpu.memory_space<semaphore_mem>>
    tpu.enqueue_dma source(%arg3 : memref<640x1024xbf16, #tpu.memory_space<any>>) target(%arg12 : memref<640x1024xbf16, #tpu.memory_space<vmem>>) target_semaphore(%1 : memref<!tpu.dma_semaphore, #tpu.memory_space<semaphore_mem>>)
    %c1_i32 = arith.constant 1 : i32
    %2 = tpu.memref_slice %arg19[%c1_i32] : memref<7x!tpu.dma_semaphore, #tpu.memory_space<semaphore_mem>> -> memref<1x!tpu.dma_semaphore, #tpu.memory_space<semaphore_mem>>
    %3 = tpu.memref_squeeze %2 : memref<1x!tpu.dma_semaphore, #tpu.memory_space<semaphore_mem>> -> memref<!tpu.dma_semaphore, #tpu.memory_space<semaphore_mem>>
    tpu.enqueue_dma source(%arg4 : memref<640x1024xbf16, #tpu.memory_space<any>>) target(%arg13 : memref<640x1024xbf16, #tpu.memory_space<vmem>>) target_semaphore(%3 : memref<!tpu.dma_semaphore, #tpu.memory_space<semaphore_mem>>)
    %c2_i32 = arith.constant 2 : i32
    %4 = tpu.memref_slice %arg19[%c2_i32] : memref<7x!tpu.dma_semaphore, #tpu.memory_space<semaphore_mem>> -> memref<1x!tpu.dma_semaphore, #tpu.memory_space<semaphore_mem>>
    %5 = tpu.memref_squeeze %4 : memref<1x!tpu.dma_semaphore, #tpu.memory_space<semaphore_mem>> -> memref<!tpu.dma_semaphore, #tpu.memory_space<semaphore_mem>>
    tpu.enqueue_dma source(%arg5 : memref<512x512xbf16, #tpu.memory_space<any>>) target(%arg14 : memref<512x512xbf16, #tpu.memory_space<vmem>>) target_semaphore(%5 : memref<!tpu.dma_semaphore, #tpu.memory_space<semaphore_mem>>)
    %c3_i32 = arith.constant 3 : i32
    %6 = tpu.memref_slice %arg19[%c3_i32] : memref<7x!tpu.dma_semaphore, #tpu.memory_space<semaphore_mem>> -> memref<1x!tpu.dma_semaphore, #tpu.memory_space<semaphore_mem>>
    %7 = tpu.memref_squeeze %6 : memref<1x!tpu.dma_semaphore, #tpu.memory_space<semaphore_mem>> -> memref<!tpu.dma_semaphore, #tpu.memory_space<semaphore_mem>>
    tpu.enqueue_dma source(%arg6 : memref<256x256xbf16, #tpu.memory_space<any>>) target(%arg15 : memref<256x256xbf16, #tpu.memory_space<vmem>>) target_semaphore(%7 : memref<!tpu.dma_semaphore, #tpu.memory_space<semaphore_mem>>)
    %c4_i32 = arith.constant 4 : i32
    %8 = tpu.memref_slice %arg19[%c4_i32] : memref<7x!tpu.dma_semaphore, #tpu.memory_space<semaphore_mem>> -> memref<1x!tpu.dma_semaphore, #tpu.memory_space<semaphore_mem>>
    %9 = tpu.memref_squeeze %8 : memref<1x!tpu.dma_semaphore, #tpu.memory_space<semaphore_mem>> -> memref<!tpu.dma_semaphore, #tpu.memory_space<semaphore_mem>>
    tpu.enqueue_dma source(%arg7 : memref<256x512xbf16, #tpu.memory_space<any>>) target(%arg16 : memref<256x512xbf16, #tpu.memory_space<vmem>>) target_semaphore(%9 : memref<!tpu.dma_semaphore, #tpu.memory_space<semaphore_mem>>)
    %c5_i32 = arith.constant 5 : i32
    %10 = tpu.memref_slice %arg19[%c5_i32] : memref<7x!tpu.dma_semaphore, #tpu.memory_space<semaphore_mem>> -> memref<1x!tpu.dma_semaphore, #tpu.memory_space<semaphore_mem>>
    %11 = tpu.memref_squeeze %10 : memref<1x!tpu.dma_semaphore, #tpu.memory_space<semaphore_mem>> -> memref<!tpu.dma_semaphore, #tpu.memory_space<semaphore_mem>>
    tpu.enqueue_dma source(%arg8 : memref<256x1024xbf16, #tpu.memory_space<any>>) target(%arg17 : memref<256x1024xbf16, #tpu.memory_space<vmem>>) target_semaphore(%11 : memref<!tpu.dma_semaphore, #tpu.memory_space<semaphore_mem>>)
    %c6_i32 = arith.constant 6 : i32
    %12 = tpu.memref_slice %arg19[%c6_i32] : memref<7x!tpu.dma_semaphore, #tpu.memory_space<semaphore_mem>> -> memref<1x!tpu.dma_semaphore, #tpu.memory_space<semaphore_mem>>
    %13 = tpu.memref_squeeze %12 : memref<1x!tpu.dma_semaphore, #tpu.memory_space<semaphore_mem>> -> memref<!tpu.dma_semaphore, #tpu.memory_space<semaphore_mem>>
    tpu.enqueue_dma source(%arg9 : memref<512x1280xbf16, #tpu.memory_space<any>>) target(%arg18 : memref<512x1280xbf16, #tpu.memory_space<vmem>>) target_semaphore(%13 : memref<!tpu.dma_semaphore, #tpu.memory_space<semaphore_mem>>)
    %c0 = arith.constant 0 : index
    %c0_0 = arith.constant 0 : index
    %14 = memref.load %arg0[%c0, %c0_0] : memref<1x1xf32, #tpu.memory_space<smem>>
    %c0_1 = arith.constant 0 : index
    %c0_2 = arith.constant 0 : index
    %15 = vector.load %arg1[%c0_1, %c0_2] : memref<8x1280xf32, #tpu.memory_space<vmem>>, vector<8x1280xf32>
    %c0_i32_3 = arith.constant 0 : i32
    %16 = tpu.memref_slice %arg19[%c0_i32_3] : memref<7x!tpu.dma_semaphore, #tpu.memory_space<semaphore_mem>> -> memref<1x!tpu.dma_semaphore, #tpu.memory_space<semaphore_mem>>
    %17 = tpu.memref_squeeze %16 : memref<1x!tpu.dma_semaphore, #tpu.memory_space<semaphore_mem>> -> memref<!tpu.dma_semaphore, #tpu.memory_space<semaphore_mem>>
    tpu.wait_dma2 semaphore(%17 : memref<!tpu.dma_semaphore, #tpu.memory_space<semaphore_mem>>) src(%arg3 : memref<640x1024xbf16, #tpu.memory_space<any>>) dst(%arg12 : memref<640x1024xbf16, #tpu.memory_space<vmem>>)
    %18 = vector.extract_strided_slice %15 {offsets = [0, 0], sizes = [8, 640], strides = [1, 1]} : vector<8x1280xf32> to vector<8x640xf32>
    %c0_4 = arith.constant 0 : index
    %c0_5 = arith.constant 0 : index
    %19 = vector.load %arg12[%c0_4, %c0_5] : memref<640x1024xbf16, #tpu.memory_space<vmem>>, vector<640x1024xbf16>
    %20 = arith.truncf %18 : vector<8x640xf32> to vector<8x640xbf16>
    %cst = arith.constant dense<0.000000e+00> : vector<8x1024xf32>
    %21 = tpu.matmul %20, %19, %cst {dimension_numbers = #tpu.dot_dimension_numbers<[1], [0], [0], [1], [0, 0, 1, 1], [], []>} : vector<8x640xbf16>, vector<640x1024xbf16>, vector<8x1024xf32> -> vector<8x1024xf32>
    %c1_i32_6 = arith.constant 1 : i32
    %22 = tpu.memref_slice %arg19[%c1_i32_6] : memref<7x!tpu.dma_semaphore, #tpu.memory_space<semaphore_mem>> -> memref<1x!tpu.dma_semaphore, #tpu.memory_space<semaphore_mem>>
    %23 = tpu.memref_squeeze %22 : memref<1x!tpu.dma_semaphore, #tpu.memory_space<semaphore_mem>> -> memref<!tpu.dma_semaphore, #tpu.memory_space<semaphore_mem>>
    tpu.wait_dma2 semaphore(%23 : memref<!tpu.dma_semaphore, #tpu.memory_space<semaphore_mem>>) src(%arg4 : memref<640x1024xbf16, #tpu.memory_space<any>>) dst(%arg13 : memref<640x1024xbf16, #tpu.memory_space<vmem>>)
    %24 = vector.extract_strided_slice %15 {offsets = [0, 640], sizes = [8, 640], strides = [1, 1]} : vector<8x1280xf32> to vector<8x640xf32>
    %c0_7 = arith.constant 0 : index
    %c0_8 = arith.constant 0 : index
    %25 = vector.load %arg13[%c0_7, %c0_8] : memref<640x1024xbf16, #tpu.memory_space<vmem>>, vector<640x1024xbf16>
    %26 = arith.truncf %24 : vector<8x640xf32> to vector<8x640xbf16>
    %cst_9 = arith.constant dense<0.000000e+00> : vector<8x1024xf32>
    %27 = tpu.matmul %26, %25, %cst_9 {dimension_numbers = #tpu.dot_dimension_numbers<[1], [0], [0], [1], [0, 0, 1, 1], [], []>} : vector<8x640xbf16>, vector<640x1024xbf16>, vector<8x1024xf32> -> vector<8x1024xf32>
    %28 = arith.addf %21, %27 : vector<8x1024xf32>
    %c0_10 = arith.constant 0 : index
    %c0_11 = arith.constant 0 : index
    %29 = vector.load %arg2[%c0_10, %c0_11] : memref<1x7680xf32, #tpu.memory_space<vmem>>, vector<1x512xf32>
    %c0_12 = arith.constant 0 : index
    %c512 = arith.constant 512 : index
    %30 = vector.load %arg2[%c0_12, %c512] : memref<1x7680xf32, #tpu.memory_space<vmem>>, vector<1x512xf32>
    %c0_13 = arith.constant 0 : index
    %c1024 = arith.constant 1024 : index
    %31 = vector.load %arg2[%c0_13, %c1024] : memref<1x7680xf32, #tpu.memory_space<vmem>>, vector<1x512xf32>
    %c0_14 = arith.constant 0 : index
    %c1536 = arith.constant 1536 : index
    %32 = vector.load %arg2[%c0_14, %c1536] : memref<1x7680xf32, #tpu.memory_space<vmem>>, vector<1x512xf32>
    %33 = vector.extract_strided_slice %28 {offsets = [0, 0], sizes = [8, 512], strides = [1, 1]} : vector<8x1024xf32> to vector<8x512xf32>
    %34 = vector.broadcast %29 : vector<1x512xf32> to vector<8x512xf32>
    %35 = arith.addf %33, %34 : vector<8x512xf32>
    %36 = vector.extract_strided_slice %28 {offsets = [0, 512], sizes = [8, 512], strides = [1, 1]} : vector<8x1024xf32> to vector<8x512xf32>
    %37 = vector.broadcast %30 : vector<1x512xf32> to vector<8x512xf32>
    %38 = arith.addf %36, %37 : vector<8x512xf32>
    %cst_15 = arith.constant dense<0.000000e+00> : vector<512xf32>
    %39 = vector.multi_reduction <add>, %35, %cst_15 [0] : vector<8x512xf32> to vector<512xf32>
    %40 = vector.shape_cast %39 : vector<512xf32> to vector<1x512xf32>
    %cst_16 = arith.constant 8.000000e+00 : f32
    %41 = vector.broadcast %cst_16 : f32 to vector<1x512xf32>
    %42 = arith.divf %40, %41 : vector<1x512xf32>
    %43 = vector.broadcast %42 : vector<1x512xf32> to vector<8x512xf32>
    %44 = arith.subf %35, %43 : vector<8x512xf32>
    %45 = arith.mulf %44, %44 : vector<8x512xf32>
    %cst_17 = arith.constant dense<0.000000e+00> : vector<512xf32>
    %46 = vector.multi_reduction <add>, %45, %cst_17 [0] : vector<8x512xf32> to vector<512xf32>
    %47 = vector.shape_cast %46 : vector<512xf32> to vector<1x512xf32>
    %cst_18 = arith.constant 8.000000e+00 : f32
    %48 = vector.broadcast %cst_18 : f32 to vector<1x512xf32>
    %49 = arith.divf %47, %48 : vector<1x512xf32>
    %cst_19 = arith.constant 9.99999974E-6 : f32
    %50 = vector.broadcast %cst_19 : f32 to vector<1x512xf32>
    %51 = arith.addf %49, %50 : vector<1x512xf32>
    %52 = math.rsqrt %51 : vector<1x512xf32>
    %53 = arith.mulf %31, %52 : vector<1x512xf32>
    %54 = vector.broadcast %42 : vector<1x512xf32> to vector<8x512xf32>
    %55 = arith.subf %35, %54 : vector<8x512xf32>
    %56 = vector.broadcast %53 : vector<1x512xf32> to vector<8x512xf32>
    %57 = arith.mulf %56, %55 : vector<8x512xf32>
    %58 = vector.broadcast %32 : vector<1x512xf32> to vector<8x512xf32>
    %59 = arith.addf %57, %58 : vector<8x512xf32>
    %cst_20 = arith.constant 0.000000e+00 : f32
    %60 = arith.subf %cst_20, %14 : f32
    %61 = vector.broadcast %60 : f32 to vector<8x512xf32>
    %62 = arith.mulf %61, %59 : vector<8x512xf32>
    %cst_21 = arith.constant 8.000000e+01 : f32
    %63 = vector.broadcast %cst_21 : f32 to vector<8x512xf32>
    %64 = arith.minimumf %62, %63 : vector<8x512xf32>
    %65 = math.exp %64 : vector<8x512xf32>
    %cst_22 = arith.constant 1.000000e+00 : f32
    %66 = vector.broadcast %cst_22 : f32 to vector<8x512xf32>
    %67 = arith.addf %66, %65 : vector<8x512xf32>
    %68 = tpu.reciprocal %67 {approx = true} : vector<8x512xf32> -> vector<8x512xf32>
    %69 = arith.mulf %59, %68 : vector<8x512xf32>
    %70 = arith.addf %69, %38 : vector<8x512xf32>
    %c2_i32_23 = arith.constant 2 : i32
    %71 = tpu.memref_slice %arg19[%c2_i32_23] : memref<7x!tpu.dma_semaphore, #tpu.memory_space<semaphore_mem>> -> memref<1x!tpu.dma_semaphore, #tpu.memory_space<semaphore_mem>>
    %72 = tpu.memref_squeeze %71 : memref<1x!tpu.dma_semaphore, #tpu.memory_space<semaphore_mem>> -> memref<!tpu.dma_semaphore, #tpu.memory_space<semaphore_mem>>
    tpu.wait_dma2 semaphore(%72 : memref<!tpu.dma_semaphore, #tpu.memory_space<semaphore_mem>>) src(%arg5 : memref<512x512xbf16, #tpu.memory_space<any>>) dst(%arg14 : memref<512x512xbf16, #tpu.memory_space<vmem>>)
    %c0_24 = arith.constant 0 : index
    %c0_25 = arith.constant 0 : index
    %73 = vector.load %arg14[%c0_24, %c0_25] : memref<512x512xbf16, #tpu.memory_space<vmem>>, vector<512x512xbf16>
    %74 = arith.truncf %70 : vector<8x512xf32> to vector<8x512xbf16>
    %cst_26 = arith.constant dense<0.000000e+00> : vector<8x512xf32>
    %75 = tpu.matmul %74, %73, %cst_26 {dimension_numbers = #tpu.dot_dimension_numbers<[1], [0], [0], [1], [0, 0, 1, 1], [], []>} : vector<8x512xbf16>, vector<512x512xbf16>, vector<8x512xf32> -> vector<8x512xf32>
    %c0_27 = arith.constant 0 : index
    %c2048 = arith.constant 2048 : index
    %76 = vector.load %arg2[%c0_27, %c2048] : memref<1x7680xf32, #tpu.memory_space<vmem>>, vector<1x256xf32>
    %c0_28 = arith.constant 0 : index
    %c2304 = arith.constant 2304 : index
    %77 = vector.load %arg2[%c0_28, %c2304] : memref<1x7680xf32, #tpu.memory_space<vmem>>, vector<1x256xf32>
    %c0_29 = arith.constant 0 : index
    %c2560 = arith.constant 2560 : index
    %78 = vector.load %arg2[%c0_29, %c2560] : memref<1x7680xf32, #tpu.memory_space<vmem>>, vector<1x256xf32>
    %c0_30 = arith.constant 0 : index
    %c2816 = arith.constant 2816 : index
    %79 = vector.load %arg2[%c0_30, %c2816] : memref<1x7680xf32, #tpu.memory_space<vmem>>, vector<1x256xf32>
    %80 = vector.extract_strided_slice %75 {offsets = [0, 0], sizes = [8, 256], strides = [1, 1]} : vector<8x512xf32> to vector<8x256xf32>
    %81 = vector.broadcast %76 : vector<1x256xf32> to vector<8x256xf32>
    %82 = arith.addf %80, %81 : vector<8x256xf32>
    %83 = vector.extract_strided_slice %75 {offsets = [0, 256], sizes = [8, 256], strides = [1, 1]} : vector<8x512xf32> to vector<8x256xf32>
    %84 = vector.broadcast %77 : vector<1x256xf32> to vector<8x256xf32>
    %85 = arith.addf %83, %84 : vector<8x256xf32>
    %cst_31 = arith.constant dense<0.000000e+00> : vector<256xf32>
    %86 = vector.multi_reduction <add>, %82, %cst_31 [0] : vector<8x256xf32> to vector<256xf32>
    %87 = vector.shape_cast %86 : vector<256xf32> to vector<1x256xf32>
    %cst_32 = arith.constant 8.000000e+00 : f32
    %88 = vector.broadcast %cst_32 : f32 to vector<1x256xf32>
    %89 = arith.divf %87, %88 : vector<1x256xf32>
    %90 = vector.broadcast %89 : vector<1x256xf32> to vector<8x256xf32>
    %91 = arith.subf %82, %90 : vector<8x256xf32>
    %92 = arith.mulf %91, %91 : vector<8x256xf32>
    %cst_33 = arith.constant dense<0.000000e+00> : vector<256xf32>
    %93 = vector.multi_reduction <add>, %92, %cst_33 [0] : vector<8x256xf32> to vector<256xf32>
    %94 = vector.shape_cast %93 : vector<256xf32> to vector<1x256xf32>
    %cst_34 = arith.constant 8.000000e+00 : f32
    %95 = vector.broadcast %cst_34 : f32 to vector<1x256xf32>
    %96 = arith.divf %94, %95 : vector<1x256xf32>
    %cst_35 = arith.constant 9.99999974E-6 : f32
    %97 = vector.broadcast %cst_35 : f32 to vector<1x256xf32>
    %98 = arith.addf %96, %97 : vector<1x256xf32>
    %99 = math.rsqrt %98 : vector<1x256xf32>
    %100 = arith.mulf %78, %99 : vector<1x256xf32>
    %101 = vector.broadcast %89 : vector<1x256xf32> to vector<8x256xf32>
    %102 = arith.subf %82, %101 : vector<8x256xf32>
    %103 = vector.broadcast %100 : vector<1x256xf32> to vector<8x256xf32>
    %104 = arith.mulf %103, %102 : vector<8x256xf32>
    %105 = vector.broadcast %79 : vector<1x256xf32> to vector<8x256xf32>
    %106 = arith.addf %104, %105 : vector<8x256xf32>
    %cst_36 = arith.constant 0.000000e+00 : f32
    %107 = arith.subf %cst_36, %14 : f32
    %108 = vector.broadcast %107 : f32 to vector<8x256xf32>
    %109 = arith.mulf %108, %106 : vector<8x256xf32>
    %cst_37 = arith.constant 8.000000e+01 : f32
    %110 = vector.broadcast %cst_37 : f32 to vector<8x256xf32>
    %111 = arith.minimumf %109, %110 : vector<8x256xf32>
    %112 = math.exp %111 : vector<8x256xf32>
    %cst_38 = arith.constant 1.000000e+00 : f32
    %113 = vector.broadcast %cst_38 : f32 to vector<8x256xf32>
    %114 = arith.addf %113, %112 : vector<8x256xf32>
    %115 = tpu.reciprocal %114 {approx = true} : vector<8x256xf32> -> vector<8x256xf32>
    %116 = arith.mulf %106, %115 : vector<8x256xf32>
    %117 = arith.addf %116, %85 : vector<8x256xf32>
    %c3_i32_39 = arith.constant 3 : i32
    %118 = tpu.memref_slice %arg19[%c3_i32_39] : memref<7x!tpu.dma_semaphore, #tpu.memory_space<semaphore_mem>> -> memref<1x!tpu.dma_semaphore, #tpu.memory_space<semaphore_mem>>
    %119 = tpu.memref_squeeze %118 : memref<1x!tpu.dma_semaphore, #tpu.memory_space<semaphore_mem>> -> memref<!tpu.dma_semaphore, #tpu.memory_space<semaphore_mem>>
    tpu.wait_dma2 semaphore(%119 : memref<!tpu.dma_semaphore, #tpu.memory_space<semaphore_mem>>) src(%arg6 : memref<256x256xbf16, #tpu.memory_space<any>>) dst(%arg15 : memref<256x256xbf16, #tpu.memory_space<vmem>>)
    %c0_40 = arith.constant 0 : index
    %c3072 = arith.constant 3072 : index
    %120 = vector.load %arg2[%c0_40, %c3072] : memref<1x7680xf32, #tpu.memory_space<vmem>>, vector<1x256xf32>
    %c0_41 = arith.constant 0 : index
    %c0_42 = arith.constant 0 : index
    %121 = vector.load %arg15[%c0_41, %c0_42] : memref<256x256xbf16, #tpu.memory_space<vmem>>, vector<256x256xbf16>
    %122 = arith.truncf %117 : vector<8x256xf32> to vector<8x256xbf16>
    %cst_43 = arith.constant dense<0.000000e+00> : vector<8x256xf32>
    %123 = tpu.matmul %122, %121, %cst_43 {dimension_numbers = #tpu.dot_dimension_numbers<[1], [0], [0], [1], [0, 0, 1, 1], [], []>} : vector<8x256xbf16>, vector<256x256xbf16>, vector<8x256xf32> -> vector<8x256xf32>
    %124 = vector.broadcast %120 : vector<1x256xf32> to vector<8x256xf32>
    %125 = arith.addf %123, %124 : vector<8x256xf32>
    %c0_44 = arith.constant 0 : index
    %c0_45 = arith.constant 0 : index
    %126 = vector.load %arg10[%c0_44, %c0_45] : memref<8x256xf32, #tpu.memory_space<vmem>>, vector<8x256xf32>
    tpu.vector_store %arg10[%c0_44, %c0_45], %125 {strides = array<i32>} : memref<8x256xf32, #tpu.memory_space<vmem>>, vector<8x256xf32>,
    %c4_i32_46 = arith.constant 4 : i32
    %127 = tpu.memref_slice %arg19[%c4_i32_46] : memref<7x!tpu.dma_semaphore, #tpu.memory_space<semaphore_mem>> -> memref<1x!tpu.dma_semaphore, #tpu.memory_space<semaphore_mem>>
    %128 = tpu.memref_squeeze %127 : memref<1x!tpu.dma_semaphore, #tpu.memory_space<semaphore_mem>> -> memref<!tpu.dma_semaphore, #tpu.memory_space<semaphore_mem>>
    tpu.wait_dma2 semaphore(%128 : memref<!tpu.dma_semaphore, #tpu.memory_space<semaphore_mem>>) src(%arg7 : memref<256x512xbf16, #tpu.memory_space<any>>) dst(%arg16 : memref<256x512xbf16, #tpu.memory_space<vmem>>)
    %c0_47 = arith.constant 0 : index
    %c0_48 = arith.constant 0 : index
    %129 = vector.load %arg16[%c0_47, %c0_48] : memref<256x512xbf16, #tpu.memory_space<vmem>>, vector<256x512xbf16>
    %130 = arith.truncf %125 : vector<8x256xf32> to vector<8x256xbf16>
    %cst_49 = arith.constant dense<0.000000e+00> : vector<8x512xf32>
    %131 = tpu.matmul %130, %129, %cst_49 {dimension_numbers = #tpu.dot_dimension_numbers<[1], [0], [0], [1], [0, 0, 1, 1], [], []>} : vector<8x256xbf16>, vector<256x512xbf16>, vector<8x512xf32> -> vector<8x512xf32>
    %c0_50 = arith.constant 0 : index
    %c3328 = arith.constant 3328 : index
    %132 = vector.load %arg2[%c0_50, %c3328] : memref<1x7680xf32, #tpu.memory_space<vmem>>, vector<1x256xf32>
    %c0_51 = arith.constant 0 : index
    %c3584 = arith.constant 3584 : index
    %133 = vector.load %arg2[%c0_51, %c3584] : memref<1x7680xf32, #tpu.memory_space<vmem>>, vector<1x256xf32>
    %c0_52 = arith.constant 0 : index
    %c3840 = arith.constant 3840 : index
    %134 = vector.load %arg2[%c0_52, %c3840] : memref<1x7680xf32, #tpu.memory_space<vmem>>, vector<1x256xf32>
    %c0_53 = arith.constant 0 : index
    %c4096 = arith.constant 4096 : index
    %135 = vector.load %arg2[%c0_53, %c4096] : memref<1x7680xf32, #tpu.memory_space<vmem>>, vector<1x256xf32>
    %136 = vector.extract_strided_slice %131 {offsets = [0, 0], sizes = [8, 256], strides = [1, 1]} : vector<8x512xf32> to vector<8x256xf32>
    %137 = vector.broadcast %132 : vector<1x256xf32> to vector<8x256xf32>
    %138 = arith.addf %136, %137 : vector<8x256xf32>
    %139 = vector.extract_strided_slice %131 {offsets = [0, 256], sizes = [8, 256], strides = [1, 1]} : vector<8x512xf32> to vector<8x256xf32>
    %140 = vector.broadcast %133 : vector<1x256xf32> to vector<8x256xf32>
    %141 = arith.addf %139, %140 : vector<8x256xf32>
    %cst_54 = arith.constant dense<0.000000e+00> : vector<256xf32>
    %142 = vector.multi_reduction <add>, %138, %cst_54 [0] : vector<8x256xf32> to vector<256xf32>
    %143 = vector.shape_cast %142 : vector<256xf32> to vector<1x256xf32>
    %cst_55 = arith.constant 8.000000e+00 : f32
    %144 = vector.broadcast %cst_55 : f32 to vector<1x256xf32>
    %145 = arith.divf %143, %144 : vector<1x256xf32>
    %146 = vector.broadcast %145 : vector<1x256xf32> to vector<8x256xf32>
    %147 = arith.subf %138, %146 : vector<8x256xf32>
    %148 = arith.mulf %147, %147 : vector<8x256xf32>
    %cst_56 = arith.constant dense<0.000000e+00> : vector<256xf32>
    %149 = vector.multi_reduction <add>, %148, %cst_56 [0] : vector<8x256xf32> to vector<256xf32>
    %150 = vector.shape_cast %149 : vector<256xf32> to vector<1x256xf32>
    %cst_57 = arith.constant 8.000000e+00 : f32
    %151 = vector.broadcast %cst_57 : f32 to vector<1x256xf32>
    %152 = arith.divf %150, %151 : vector<1x256xf32>
    %cst_58 = arith.constant 9.99999974E-6 : f32
    %153 = vector.broadcast %cst_58 : f32 to vector<1x256xf32>
    %154 = arith.addf %152, %153 : vector<1x256xf32>
    %155 = math.rsqrt %154 : vector<1x256xf32>
    %156 = arith.mulf %134, %155 : vector<1x256xf32>
    %157 = vector.broadcast %145 : vector<1x256xf32> to vector<8x256xf32>
    %158 = arith.subf %138, %157 : vector<8x256xf32>
    %159 = vector.broadcast %156 : vector<1x256xf32> to vector<8x256xf32>
    %160 = arith.mulf %159, %158 : vector<8x256xf32>
    %161 = vector.broadcast %135 : vector<1x256xf32> to vector<8x256xf32>
    %162 = arith.addf %160, %161 : vector<8x256xf32>
    %cst_59 = arith.constant 0.000000e+00 : f32
    %163 = arith.subf %cst_59, %14 : f32
    %164 = vector.broadcast %163 : f32 to vector<8x256xf32>
    %165 = arith.mulf %164, %162 : vector<8x256xf32>
    %cst_60 = arith.constant 8.000000e+01 : f32
    %166 = vector.broadcast %cst_60 : f32 to vector<8x256xf32>
    %167 = arith.minimumf %165, %166 : vector<8x256xf32>
    %168 = math.exp %167 : vector<8x256xf32>
    %cst_61 = arith.constant 1.000000e+00 : f32
    %169 = vector.broadcast %cst_61 : f32 to vector<8x256xf32>
    %170 = arith.addf %169, %168 : vector<8x256xf32>
    %171 = tpu.reciprocal %170 {approx = true} : vector<8x256xf32> -> vector<8x256xf32>
    %172 = arith.mulf %162, %171 : vector<8x256xf32>
    %173 = arith.addf %172, %141 : vector<8x256xf32>
    %c5_i32_62 = arith.constant 5 : i32
    %174 = tpu.memref_slice %arg19[%c5_i32_62] : memref<7x!tpu.dma_semaphore, #tpu.memory_space<semaphore_mem>> -> memref<1x!tpu.dma_semaphore, #tpu.memory_space<semaphore_mem>>
    %175 = tpu.memref_squeeze %174 : memref<1x!tpu.dma_semaphore, #tpu.memory_space<semaphore_mem>> -> memref<!tpu.dma_semaphore, #tpu.memory_space<semaphore_mem>>
    tpu.wait_dma2 semaphore(%175 : memref<!tpu.dma_semaphore, #tpu.memory_space<semaphore_mem>>) src(%arg8 : memref<256x1024xbf16, #tpu.memory_space<any>>) dst(%arg17 : memref<256x1024xbf16, #tpu.memory_space<vmem>>)
    %c0_63 = arith.constant 0 : index
    %c0_64 = arith.constant 0 : index
    %176 = vector.load %arg17[%c0_63, %c0_64] : memref<256x1024xbf16, #tpu.memory_space<vmem>>, vector<256x1024xbf16>
    %177 = arith.truncf %173 : vector<8x256xf32> to vector<8x256xbf16>
    %cst_65 = arith.constant dense<0.000000e+00> : vector<8x1024xf32>
    %178 = tpu.matmul %177, %176, %cst_65 {dimension_numbers = #tpu.dot_dimension_numbers<[1], [0], [0], [1], [0, 0, 1, 1], [], []>} : vector<8x256xbf16>, vector<256x1024xbf16>, vector<8x1024xf32> -> vector<8x1024xf32>
    %c0_66 = arith.constant 0 : index
    %c4352 = arith.constant 4352 : index
    %179 = vector.load %arg2[%c0_66, %c4352] : memref<1x7680xf32, #tpu.memory_space<vmem>>, vector<1x512xf32>
    %c0_67 = arith.constant 0 : index
    %c4864 = arith.constant 4864 : index
    %180 = vector.load %arg2[%c0_67, %c4864] : memref<1x7680xf32, #tpu.memory_space<vmem>>, vector<1x512xf32>
    %c0_68 = arith.constant 0 : index
    %c5376 = arith.constant 5376 : index
    %181 = vector.load %arg2[%c0_68, %c5376] : memref<1x7680xf32, #tpu.memory_space<vmem>>, vector<1x512xf32>
    %c0_69 = arith.constant 0 : index
    %c5888 = arith.constant 5888 : index
    %182 = vector.load %arg2[%c0_69, %c5888] : memref<1x7680xf32, #tpu.memory_space<vmem>>, vector<1x512xf32>
    %183 = vector.extract_strided_slice %178 {offsets = [0, 0], sizes = [8, 512], strides = [1, 1]} : vector<8x1024xf32> to vector<8x512xf32>
    %184 = vector.broadcast %179 : vector<1x512xf32> to vector<8x512xf32>
    %185 = arith.addf %183, %184 : vector<8x512xf32>
    %186 = vector.extract_strided_slice %178 {offsets = [0, 512], sizes = [8, 512], strides = [1, 1]} : vector<8x1024xf32> to vector<8x512xf32>
    %187 = vector.broadcast %180 : vector<1x512xf32> to vector<8x512xf32>
    %188 = arith.addf %186, %187 : vector<8x512xf32>
    %cst_70 = arith.constant dense<0.000000e+00> : vector<512xf32>
    %189 = vector.multi_reduction <add>, %185, %cst_70 [0] : vector<8x512xf32> to vector<512xf32>
    %190 = vector.shape_cast %189 : vector<512xf32> to vector<1x512xf32>
    %cst_71 = arith.constant 8.000000e+00 : f32
    %191 = vector.broadcast %cst_71 : f32 to vector<1x512xf32>
    %192 = arith.divf %190, %191 : vector<1x512xf32>
    %193 = vector.broadcast %192 : vector<1x512xf32> to vector<8x512xf32>
    %194 = arith.subf %185, %193 : vector<8x512xf32>
    %195 = arith.mulf %194, %194 : vector<8x512xf32>
    %cst_72 = arith.constant dense<0.000000e+00> : vector<512xf32>
    %196 = vector.multi_reduction <add>, %195, %cst_72 [0] : vector<8x512xf32> to vector<512xf32>
    %197 = vector.shape_cast %196 : vector<512xf32> to vector<1x512xf32>
    %cst_73 = arith.constant 8.000000e+00 : f32
    %198 = vector.broadcast %cst_73 : f32 to vector<1x512xf32>
    %199 = arith.divf %197, %198 : vector<1x512xf32>
    %cst_74 = arith.constant 9.99999974E-6 : f32
    %200 = vector.broadcast %cst_74 : f32 to vector<1x512xf32>
    %201 = arith.addf %199, %200 : vector<1x512xf32>
    %202 = math.rsqrt %201 : vector<1x512xf32>
    %203 = arith.mulf %181, %202 : vector<1x512xf32>
    %204 = vector.broadcast %192 : vector<1x512xf32> to vector<8x512xf32>
    %205 = arith.subf %185, %204 : vector<8x512xf32>
    %206 = vector.broadcast %203 : vector<1x512xf32> to vector<8x512xf32>
    %207 = arith.mulf %206, %205 : vector<8x512xf32>
    %208 = vector.broadcast %182 : vector<1x512xf32> to vector<8x512xf32>
    %209 = arith.addf %207, %208 : vector<8x512xf32>
    %cst_75 = arith.constant 0.000000e+00 : f32
    %210 = arith.subf %cst_75, %14 : f32
    %211 = vector.broadcast %210 : f32 to vector<8x512xf32>
    %212 = arith.mulf %211, %209 : vector<8x512xf32>
    %cst_76 = arith.constant 8.000000e+01 : f32
    %213 = vector.broadcast %cst_76 : f32 to vector<8x512xf32>
    %214 = arith.minimumf %212, %213 : vector<8x512xf32>
    %215 = math.exp %214 : vector<8x512xf32>
    %cst_77 = arith.constant 1.000000e+00 : f32
    %216 = vector.broadcast %cst_77 : f32 to vector<8x512xf32>
    %217 = arith.addf %216, %215 : vector<8x512xf32>
    %218 = tpu.reciprocal %217 {approx = true} : vector<8x512xf32> -> vector<8x512xf32>
    %219 = arith.mulf %209, %218 : vector<8x512xf32>
    %220 = arith.addf %219, %188 : vector<8x512xf32>
    %c6_i32_78 = arith.constant 6 : i32
    %221 = tpu.memref_slice %arg19[%c6_i32_78] : memref<7x!tpu.dma_semaphore, #tpu.memory_space<semaphore_mem>> -> memref<1x!tpu.dma_semaphore, #tpu.memory_space<semaphore_mem>>
    %222 = tpu.memref_squeeze %221 : memref<1x!tpu.dma_semaphore, #tpu.memory_space<semaphore_mem>> -> memref<!tpu.dma_semaphore, #tpu.memory_space<semaphore_mem>>
    tpu.wait_dma2 semaphore(%222 : memref<!tpu.dma_semaphore, #tpu.memory_space<semaphore_mem>>) src(%arg9 : memref<512x1280xbf16, #tpu.memory_space<any>>) dst(%arg18 : memref<512x1280xbf16, #tpu.memory_space<vmem>>)
    %c0_79 = arith.constant 0 : index
    %c6400 = arith.constant 6400 : index
    %223 = vector.load %arg2[%c0_79, %c6400] : memref<1x7680xf32, #tpu.memory_space<vmem>>, vector<1x1280xf32>
    %c0_80 = arith.constant 0 : index
    %c0_81 = arith.constant 0 : index
    %224 = vector.load %arg18[%c0_80, %c0_81] : memref<512x1280xbf16, #tpu.memory_space<vmem>>, vector<512x1280xbf16>
    %225 = arith.truncf %220 : vector<8x512xf32> to vector<8x512xbf16>
    %cst_82 = arith.constant dense<0.000000e+00> : vector<8x1280xf32>
    %226 = tpu.matmul %225, %224, %cst_82 {dimension_numbers = #tpu.dot_dimension_numbers<[1], [0], [0], [1], [0, 0, 1, 1], [], []>} : vector<8x512xbf16>, vector<512x1280xbf16>, vector<8x1280xf32> -> vector<8x1280xf32>
    %227 = vector.broadcast %223 : vector<1x1280xf32> to vector<8x1280xf32>
    %228 = arith.addf %226, %227 : vector<8x1280xf32>
    %c0_83 = arith.constant 0 : index
    %c0_84 = arith.constant 0 : index
    %229 = vector.load %arg11[%c0_83, %c0_84] : memref<8x1280xf32, #tpu.memory_space<vmem>>, vector<8x1280xf32>
    tpu.vector_store %arg11[%c0_83, %c0_84], %228 {strides = array<i32>} : memref<8x1280xf32, #tpu.memory_space<vmem>>, vector<8x1280xf32>,
    return
  }
}

</mosaic_0001>

<bundles_post_ra>
// kernel: autoencoder_forward.1
= control target key start
LH: loop header
LB: loop body
LE: loop exit
PB: predicated region body
PF: predicated region fallthrough
CT: control target
= control target key end

     0   :  { %18 = vsyncpa [#allocation12], 0  ;;  %s6284_s0 = inlined_call_operand.<no memory space> [shape: f32[1,1], index: 0, kind: input, shape index: {}]   ;;  %s6285_s1 = inlined_call_operand.hbm [shape: f32[8,1280], index: 1, kind: input, shape index: {}]   ;;  %s6286_s2 = inlined_call_operand.hbm [shape: f32[1,7680], index: 2, kind: input, shape index: {}]   ;;  %s6287_s3 = inlined_call_operand.hbm [shape: bf16[640,1024], index: 3, kind: input, shape index: {}]   ;;  %s6288_s4 = inlined_call_operand.hbm [shape: bf16[640,1024], index: 4, kind: input, shape index: {}]   ;;  %s6289_s5 = inlined_call_operand.hbm [shape: bf16[512,512], index: 5, kind: input, shape index: {}]   ;;  %s6290_s6 = inlined_call_operand.hbm [shape: bf16[256,256], index: 6, kind: input, shape index: {}]   ;;  %s6291_s7 = inlined_call_operand.hbm [shape: bf16[256,512], index: 7, kind: input, shape index: {}]   ;;  %s6292_s8 = inlined_call_operand.hbm [shape: bf16[256,1024], index: 8, kind: input, shape index: {}]   ;;  %s6293_s9 = inlined_call_operand.hbm [shape: bf16[512,1280], index: 9, kind: input, shape index: {}]   ;;  %s6294_s10 = inlined_call_operand.hbm [shape: f32[8,256], index: 10, kind: output, shape index: {0}]   ;;  %s6295_s11 = inlined_call_operand.hbm [shape: f32[8,1280], index: 11, kind: output, shape index: {1}]  }
   0x1   :  { %19 = vsyncpa [#allocation15], 0 }
   0x2   :  { %20 = vsyncpa [#allocation13], 0 }
   0x3   :  { %21 = vsyncpa [#allocation18], 0  ;;  %s4671_s17 = smov [#allocation11]   ;;  %s4672_s19 = smov [#allocation14]  }
   0x4   :  { %s30_s18 = sshll.u32 %s4671_s17, 4  ;;  %s40_s20 = sshll.u32 %s4672_s19, 4  ;;  %s31_s18 = int_to_ptr.vmem [resolvable:$true] %s30_s18  ;;  %s41_s20 = int_to_ptr.vmem [resolvable:$true] %s40_s20 }
   0x5   :  { %s4561_s23 = scalar_lea.hbm %s6285_s1, 1280 }
   0x6   :  { %p4562_p0 = scmp.ne.s32.totalorder %s6285_s1, %s4561_s23  ;;  %p4565_p1 = scmp.lt.u32.totalorder %s4561_s23, %s6285_s1 }
   0x8   :  { %p4567_p2 = pnand %p4565_p1, %p4562_p0 }
   0xa   :  { %4570 = shalt.err (!%p4567_p2)
}
   0xb   :  { %s4571_s28 = scalar_lea.vmem %s31_s18, 1280  ;;  %p4576_p4 = scmp.lt.s32.totalorder %s31_s18, %s31_s18 }
   0xc   :  { %p4572_p3 = scmp.ne.s32.totalorder %s31_s18, %s4571_s28  ;;  %p4577_p5 = scmp.lt.s32.totalorder %s4571_s28, %s4571_s28 }
   0xe   :  { %p4578_p6 = por %p4577_p5, %p4576_p4 }
  0x10   :  { %p4579_p7 = pnand %p4578_p6, %p4572_p3 }
  0x12   :  { %4582 = shalt.err (!%p4579_p7)
}
  0x13   :  { %33 = dma.hbm_to_vmem [thread:$0]  %s6285_s1, 1280, %s31_s18, [#allocation12]  }
  0x14   :  { %s4583_s14 = scalar_lea.hbm %s6286_s2, 960 }
  0x15   :  { %p4584_p8 = scmp.ne.s32.totalorder %s6286_s2, %s4583_s14  ;;  %p4587_p9 = scmp.lt.u32.totalorder %s4583_s14, %s6286_s2 }
  0x17   :  { %p4589_p10 = pnand %p4587_p9, %p4584_p8 }
  0x19   :  { %4592 = shalt.err (!%p4589_p10)
}
  0x1a   :  { %s4593_s21 = scalar_lea.vmem %s41_s20, 960  ;;  %p4598_p12 = scmp.lt.s32.totalorder %s41_s20, %s41_s20 }
  0x1b   :  { %p4594_p11 = scmp.ne.s32.totalorder %s41_s20, %s4593_s21  ;;  %p4599_p13 = scmp.lt.s32.totalorder %s4593_s21, %s4593_s21 }
  0x1d   :  { %p4600_p0 = por %p4599_p13, %p4598_p12 }
  0x1f   :  { %p4601_p1 = pnand %p4600_p0, %p4594_p11 }
  0x21   :  { %4604 = shalt.err (!%p4601_p1)
}
  0x22   :  { %43 = dma.hbm_to_vmem [thread:$0]  %s6286_s2, 960, %s41_s20, [#allocation15]  }
  0x23   :  { %4649 = dma.done.wait [#allocation12], 1280  }
  0x24   :  { %4650 = vsyncadd [#allocation12], 4294966016 }
  0x25   :  { %4651 = dma.done.wait [#allocation15], 960  }
  0x26   :  { %4652 = vsyncadd [#allocation15], 4294966336  ;;  %s55_s22 = sld [smem:[#allocation0]]   ;;  %s4673_s23 = smov 1024  }
  0x27   :  { %67 = sst [smem:[#allocation20]] %s4673_s23  ;;  %s4674_s24 = smov 64  }
  0x28   :  { %69 = sst [smem:[#allocation20 + $0x1]] %s4673_s23  ;;  %s4675_s25 = smov 128  }
  0x29   :  { %73 = sst [smem:[#allocation20 + $0x3]] %s4674_s24  ;;  %s4676_s26 = smov 2  }
  0x2a   :  { %75 = sst [smem:[#allocation20 + $0x4]] %s4675_s25  ;;  %s4677_s2 = smov 512  }
  0x2b   :  { %77 = sst [smem:[#allocation20 + $0x5]] %s4676_s26  ;;  %s4678_s28 = smov 4  }
  0x2c   :  { %79 = sst [smem:[#allocation20 + $0x6]] %s4677_s2  ;;  %s4400_s20 = sshll.u32 %s55_s22, 26 }
  0x2d   :  { %81 = sst [smem:[#allocation20 + $0x7]] %s4674_s24  ;;  %s4800_s27 = sadd.s32 134217728, %s4400_s20 }
  0x2e   :  { %83 = sst [smem:[#allocation20 + $0x8]] %s4678_s28  ;;  %s4679_s29 = smov [#allocation2]  }
  0x2f   :  { %s63_s30 = sshll.u32 %s4679_s29, 4  ;;  %s4680_s12 = smov 8   ;;  %s64_s30 = int_to_ptr.vmem [resolvable:$true] %s63_s30 }
  0x30   :  { %71 = sst [smem:[#allocation20 + $0x2]] %s4680_s12  ;;  %s4681_s13 = smov [#allocation9]  }
  0x31   :  { %s4682_s14 = smov [#allocation19]   ;;  %s4683_s17 = smov [#allocation3]  }
  0x32   :  { %85 = dma.general %s6287_s3, 40960, %s64_s30, %s4681_s13, %s4682_s14, [#allocation20], %s4800_s27, 0  }
  0x33   :  { %102 = sst [smem:[#allocation22]] %s4673_s23  ;;  %s98_s19 = sshll.u32 %s4683_s17, 4  ;;  %s99_s19 = int_to_ptr.vmem [resolvable:$true] %s98_s19 }
  0x34   :  { %104 = sst [smem:[#allocation22 + $0x1]] %s4673_s23  ;;  %s4684_s3 = smov [#allocation9 + $0x1]  }
  0x35   :  { %106 = sst [smem:[#allocation22 + $0x2]] %s4680_s12  ;;  %s4685_s21 = smov [#allocation21]  }
  0x36   :  { %108 = sst [smem:[#allocation22 + $0x3]] %s4674_s24  ;;  %s4686_s22 = smov [#allocation4]  }
  0x37   :  { %110 = sst [smem:[#allocation22 + $0x4]] %s4675_s25  ;;  %s133_s20 = sshll.u32 %s4686_s22, 4  ;;  %s134_s20 = int_to_ptr.vmem [resolvable:$true] %s133_s20 }
  0x38   :  { %112 = sst [smem:[#allocation22 + $0x5]] %s4676_s26  ;;  %s4687_s29 = smov 256  }
  0x39   :  { %114 = sst [smem:[#allocation22 + $0x6]] %s4677_s2  ;;  %s4689_s30 = smov [#allocation23]  }
  0x3a   :  { %116 = sst [smem:[#allocation22 + $0x7]] %s4674_s24  ;;  %s4690_s15 = smov [#allocation5]  }
  0x3b   :  { %118 = sst [smem:[#allocation22 + $0x8]] %s4678_s28  ;;  %s168_s16 = sshll.u32 %s4690_s15, 4  ;;  %s169_s16 = int_to_ptr.vmem [resolvable:$true] %s168_s16 }
  0x3c   :  { %120 = dma.general %s6288_s4, 40960, %s99_s19, %s4684_s3, %s4685_s21, [#allocation22], %s4800_s27, 0  }
  0x3d   :  { %137 = sst [smem:[#allocation24]] %s4677_s2  ;;  %s4688_s4 = smov [#allocation9 + $0x2]  }
  0x3e   :  { %139 = sst [smem:[#allocation24 + $0x1]] %s4677_s2  ;;  %s4692_s17 = smov [#allocation25]  }
  0x3f   :  { %141 = sst [smem:[#allocation24 + $0x2]] %s4678_s28  ;;  %s4693_s21 = smov [#allocation6]  }
  0x40   :  { %143 = sst [smem:[#allocation24 + $0x3]] %s4674_s24  ;;  %s203_s1 = sshll.u32 %s4693_s21, 4  ;;  %s204_s1 = int_to_ptr.vmem [resolvable:$true] %s203_s1 }
  0x41   :  { %145 = sst [smem:[#allocation24 + $0x4]] %s4675_s25  ;;  %s4695_s18 = smov [#allocation27]  }
  0x42   :  { %147 = sst [smem:[#allocation24 + $0x5]] %s4676_s26 }
  0x43   :  { %149 = sst [smem:[#allocation24 + $0x6]] %s4687_s29 }
  0x44   :  { %151 = sst [smem:[#allocation24 + $0x7]] %s4674_s24 }
  0x45   :  { %153 = sst [smem:[#allocation24 + $0x8]] %s4678_s28 }
  0x46   :  { %155 = dma.general %s6289_s5, 16384, %s134_s20, %s4688_s4, %s4689_s30, [#allocation24], %s4800_s27, 0  }
  0x47   :  { %172 = sst [smem:[#allocation26]] %s4687_s29  ;;  %s4691_s5 = smov [#allocation9 + $0x3]  }
  0x48   :  { %174 = sst [smem:[#allocation26 + $0x1]] %s4687_s29  ;;  %s4696_s4 = smov [#allocation7]  }
  0x49   :  { %176 = sst [smem:[#allocation26 + $0x2]] %s4676_s26  ;;  %s238_s30 = sshll.u32 %s4696_s4, 4  ;;  %s239_s30 = int_to_ptr.vmem [resolvable:$true] %s238_s30 }
  0x4a   :  { %178 = sst [smem:[#allocation26 + $0x3]] %s4674_s24 }
  0x4b   :  { %180 = sst [smem:[#allocation26 + $0x4]] %s4675_s25 }
  0x4c   :  { %182 = sst [smem:[#allocation26 + $0x5]] %s4676_s26 }
  0x4d   :  { %184 = sst [smem:[#allocation26 + $0x6]] %s4675_s25 }
  0x4e   :  { %186 = sst [smem:[#allocation26 + $0x7]] %s4674_s24 }
  0x4f   :  { %188 = sst [smem:[#allocation26 + $0x8]] %s4678_s28 }
  0x50   :  { %190 = dma.general %s6290_s6, 4096, %s169_s16, %s4691_s5, %s4692_s17, [#allocation26], %s4800_s27, 0  }
  0x51   :  { %207 = sst [smem:[#allocation28]] %s4677_s2  ;;  %s4694_s6 = smov [#allocation9 + $0x4]  }
  0x52   :  { %209 = sst [smem:[#allocation28 + $0x1]] %s4677_s2  ;;  %s4701_s16 = smov 10  }
  0x53   :  { %211 = sst [smem:[#allocation28 + $0x2]] %s4678_s28  ;;  %s4704_s5 = smov [#allocation31]  }
  0x54   :  { %213 = sst [smem:[#allocation28 + $0x3]] %s4674_s24 }
  0x55   :  { %215 = sst [smem:[#allocation28 + $0x4]] %s4675_s25 }
  0x56   :  { %217 = sst [smem:[#allocation28 + $0x5]] %s4676_s26 }
  0x57   :  { %219 = sst [smem:[#allocation28 + $0x6]] %s4687_s29  ;;  %s4698_s29 = smov [#allocation29]  }
  0x58   :  { %221 = sst [smem:[#allocation28 + $0x7]] %s4674_s24 }
  0x59   :  { %223 = sst [smem:[#allocation28 + $0x8]] %s4678_s28 }
  0x5a   :  { %225 = dma.general %s6291_s7, 8192, %s204_s1, %s4694_s6, %s4695_s18, [#allocation28], %s4800_s27, 0  }
  0x5b   :  { %242 = sst [smem:[#allocation30]] %s4673_s23  ;;  %s4697_s7 = smov [#allocation9 + $0x5]  }
  0x5c   :  { %244 = sst [smem:[#allocation30 + $0x1]] %s4673_s23  ;;  %s4699_s23 = smov 1280  }
  0x5d   :  { %246 = sst [smem:[#allocation30 + $0x2]] %s4680_s12  ;;  %s4700_s12 = smov [#allocation8]  }
  0x5e   :  { %248 = sst [smem:[#allocation30 + $0x3]] %s4674_s24  ;;  %s273_s15 = sshll.u32 %s4700_s12, 4  ;;  %s274_s15 = int_to_ptr.vmem [resolvable:$true] %s273_s15 }
  0x5f   :  { %250 = sst [smem:[#allocation30 + $0x4]] %s4675_s25 }
  0x60   :  { %252 = sst [smem:[#allocation30 + $0x5]] %s4676_s26 }
  0x61   :  { %254 = sst [smem:[#allocation30 + $0x6]] %s4677_s2  ;;  %s4702_s2 = smov 640  }
  0x62   :  { %256 = sst [smem:[#allocation30 + $0x7]] %s4674_s24 }
  0x63   :  { %258 = sst [smem:[#allocation30 + $0x8]] %s4678_s28 }
  0x64   :  { %260 = dma.general %s6292_s8, 16384, %s239_s30, %s4697_s7, %s4698_s29, [#allocation30], %s4800_s27, 0  }
  0x65   :  { %277 = sst [smem:[#allocation32]] %s4699_s23  ;;  %s4703_s8 = smov [#allocation9 + $0x6]  }
  0x66   :  { %279 = sst [smem:[#allocation32 + $0x1]] %s4699_s23 }
  0x67   :  { %281 = sst [smem:[#allocation32 + $0x2]] %s4701_s16 }
  0x68   :  { %283 = sst [smem:[#allocation32 + $0x3]] %s4674_s24 }
  0x69   :  { %285 = sst [smem:[#allocation32 + $0x4]] %s4675_s25 }
  0x6a   :  { %287 = sst [smem:[#allocation32 + $0x5]] %s4676_s26 }
  0x6b   :  { %289 = sst [smem:[#allocation32 + $0x6]] %s4702_s2 }
  0x6c   :  { %291 = sst [smem:[#allocation32 + $0x7]] %s4674_s24 }
  0x6d   :  { %293 = sst [smem:[#allocation32 + $0x8]] %s4678_s28 }
  0x6e   :  { %295 = dma.general %s6293_s9, 40960, %s274_s15, %s4703_s8, %s4704_s5, [#allocation32], %s4800_s27, 0  }
  0x6f   :  { %v297_v0 = vld [vmem:[#allocation11] sm:$0xff]  ;;  %v298_v1 = vld [vmem:[#allocation11 + $0x8] sm:$0xff]  ;;  %v299_v2 = vld [vmem:[#allocation11 + $0x10] sm:$0xff] }
  0x70   :  { %v300_v3 = vld [vmem:[#allocation11 + $0x18] sm:$0xff]  ;;  %v301_v4 = vld [vmem:[#allocation11 + $0x20] sm:$0xff]  ;;  %v4882_v5 = vld [vmem:[#allocation11 + $0x28] sm:$0xff] }
  0x71   :  { %v4884_v6 = vld [vmem:[#allocation11 + $0x30] sm:$0xff]  ;;  %v4886_v7 = vld [vmem:[#allocation11 + $0x38] sm:$0xff]  ;;  %v4888_v8 = vld [vmem:[#allocation11 + $0x40] sm:$0xff] }
  0x72   :  { %v4890_v9 = vld [vmem:[#allocation11 + $0x48] sm:$0xff] }
  0x73   :  { %4653 = dma.done.wait [#allocation9], 40960 }
  0x74   :  { %4654 = vsyncadd [#allocation9], 4294926336  ;;  %v4892_v10 = vpack.c.bf16 %v297_v0, %v297_v0  ;;  %v4894_v11 = vpack.c.bf16 %v298_v1, %v298_v1  ;;  %v4896_v12 = vpack.c.bf16 %v299_v2, %v299_v2  ;;  %v4898_v13 = vpack.c.bf16 %v300_v3, %v300_v3  ;;  %v4902_v15 = vld [vmem:[#allocation2] sm:$0xff]  ;;  %v4904_v16 = vld [vmem:[#allocation2 + $0x8] sm:$0xff] }
  0x75   :  { %v4900_v14 = vpack.c.bf16 %v301_v4, %v301_v4  ;;  %v4906_v17 = vld [vmem:[#allocation2 + $0x10] sm:$0xff]  ;;  %v4908_v18 = vld [vmem:[#allocation2 + $0x18] sm:$0xff]  ;;  %v4910_v19 = vld [vmem:[#allocation2 + $0x20] sm:$0xff] }
  0x76   :  { %6301 = vst [vmem:[#allocation44_spill] sm:$0xff] %v4892_v10  ;;  %6303 = vst [vmem:[#allocation46_spill] sm:$0xff] %v4910_v19  ;;  %v4912_v20 = vld [vmem:[#allocation2 + $0x28] sm:$0xff]  ;;  %v4914_v21 = vld [vmem:[#allocation2 + $0x30] sm:$0xff] }
  0x77   :  { %6302 = vst [vmem:[#allocation45_spill] sm:$0xff] %v4900_v14  ;;  %6304 = vst [vmem:[#allocation47_spill] sm:$0xff] %v4912_v20  ;;  %v4916_v22 = vld [vmem:[#allocation2 + $0x38] sm:$0xff]  ;;  %v4918_v23 = vld [vmem:[#allocation2 + $0x40] sm:$0xff] }
  0x78   :  { %6305 = vst [vmem:[#allocation48_spill] sm:$0xff] %v4914_v21  ;;  %6306 = vst [vmem:[#allocation49_spill] sm:$0xff] %v4916_v22  ;;  %v4920_v24 = vld [vmem:[#allocation2 + $0x48] sm:$0xff]  ;;  %v4922_v25 = vld [vmem:[#allocation2 + $0x50] sm:$0xff] }
  0x79   :  { %v4924_v26 = vld [vmem:[#allocation2 + $0x58] sm:$0xff]  ;;  %v4926_v27 = vld [vmem:[#allocation2 + $0x60] sm:$0xff]  ;;  %v4928_v28 = vld [vmem:[#allocation2 + $0x68] sm:$0xff] }
  0x7a   :  { %6307 = vst [vmem:[#allocation50_spill] sm:$0xff] %v4926_v27  ;;  %6308 = vst [vmem:[#allocation51_spill] sm:$0xff] %v4928_v28  ;;  %v4930_v29 = vld [vmem:[#allocation2 + $0x70] sm:$0xff]  ;;  %v4932_v30 = vld [vmem:[#allocation2 + $0x78] sm:$0xff] }
  0x7b   :  { %6309 = vst [vmem:[#allocation52_spill] sm:$0xff] %v4930_v29  ;;  %6310 = vst [vmem:[#allocation53_spill] sm:$0xff] %v4932_v30  ;;  %v4934_v31 = vld [vmem:[#allocation2 + $0x80] sm:$0xff]  ;;  %v4936_v32 = vld [vmem:[#allocation2 + $0x88] sm:$0xff] }
  0x7c   :  { %6311 = vst [vmem:[#allocation54_spill] sm:$0xff] %v4934_v31  ;;  %6312 = vst [vmem:[#allocation55_spill] sm:$0xff] %v4936_v32  ;;  %v4938_v33 = vld [vmem:[#allocation2 + $0x90] sm:$0xff]  ;;  %v4940_v34 = vld [vmem:[#allocation2 + $0x98] sm:$0xff] }
  0x7d   :  { %6313 = vst [vmem:[#allocation56_spill] sm:$0xff] %v4938_v33  ;;  %6314 = vst [vmem:[#allocation57_spill] sm:$0xff] %v4940_v34  ;;  %v4942_v35 = vld [vmem:[#allocation2 + $0xa0] sm:$0xff]  ;;  %v4944_v36 = vld [vmem:[#allocation2 + $0xa8] sm:$0xff] }
  0x7e   :  { %6315 = vst [vmem:[#allocation58_spill] sm:$0xff] %v4942_v35  ;;  %6316 = vst [vmem:[#allocation59_spill] sm:$0xff] %v4944_v36  ;;  %v4946_v37 = vld [vmem:[#allocation2 + $0xb0] sm:$0xff]  ;;  %v4948_v38 = vld [vmem:[#allocation2 + $0xb8] sm:$0xff] }
  0x7f   :  { %6317 = vst [vmem:[#allocation60_spill] sm:$0xff] %v4946_v37  ;;  %6318 = vst [vmem:[#allocation61_spill] sm:$0xff] %v4948_v38  ;;  %v4950_v39 = vld [vmem:[#allocation2 + $0xc0] sm:$0xff]  ;;  %v4952_v40 = vld [vmem:[#allocation2 + $0xc8] sm:$0xff] }
  0x80   :  { %6319 = vst [vmem:[#allocation62_spill] sm:$0xff] %v4950_v39  ;;  %6320 = vst [vmem:[#allocation63_spill] sm:$0xff] %v4952_v40  ;;  %v4954_v41 = vld [vmem:[#allocation2 + $0xd0] sm:$0xff]  ;;  %v4956_v42 = vld [vmem:[#allocation2 + $0xd8] sm:$0xff] }
  0x81   :  { %6321 = vst [vmem:[#allocation64_spill] sm:$0xff] %v4954_v41  ;;  %6322 = vst [vmem:[#allocation65_spill] sm:$0xff] %v4956_v42  ;;  %v4958_v43 = vld [vmem:[#allocation2 + $0xe0] sm:$0xff]  ;;  %v4960_v44 = vld [vmem:[#allocation2 + $0xe8] sm:$0xff] }
  0x82   :  { %6323 = vst [vmem:[#allocation66_spill] sm:$0xff] %v4958_v43  ;;  %6324 = vst [vmem:[#allocation67_spill] sm:$0xff] %v4960_v44  ;;  %v4962_v45 = vld [vmem:[#allocation2 + $0xf0] sm:$0xff]  ;;  %v4964_v46 = vld [vmem:[#allocation2 + $0xf8] sm:$0xff] }
  0x83   :  { %6325 = vst [vmem:[#allocation68_spill] sm:$0xff] %v4962_v45  ;;  %6326 = vst [vmem:[#allocation69_spill] sm:$0xff] %v4964_v46  ;;  %v4966_v47 = vld [vmem:[#allocation2 + $0x100] sm:$0xff]  ;;  %v4968_v48 = vld [vmem:[#allocation2 + $0x108] sm:$0xff] }
  0x84   :  { %6327 = vst [vmem:[#allocation70_spill] sm:$0xff] %v4966_v47  ;;  %6328 = vst [vmem:[#allocation71_spill] sm:$0xff] %v4968_v48  ;;  %v4970_v49 = vld [vmem:[#allocation2 + $0x110] sm:$0xff]  ;;  %v4972_v50 = vld [vmem:[#allocation2 + $0x118] sm:$0xff] }
  0x85   :  { %6329 = vst [vmem:[#allocation72_spill] sm:$0xff] %v4970_v49  ;;  %6330 = vst [vmem:[#allocation73_spill] sm:$0xff] %v4972_v50  ;;  %v4974_v51 = vld [vmem:[#allocation2 + $0x120] sm:$0xff]  ;;  %v4976_v52 = vld [vmem:[#allocation2 + $0x128] sm:$0xff] }
  0x86   :  { %6331 = vst [vmem:[#allocation74_spill] sm:$0xff] %v4974_v51  ;;  %6332 = vst [vmem:[#allocation75_spill] sm:$0xff] %v4976_v52  ;;  %v4978_v53 = vld [vmem:[#allocation2 + $0x130] sm:$0xff]  ;;  %v4980_v54 = vld [vmem:[#allocation2 + $0x138] sm:$0xff] }
  0x87   :  { %6333 = vst [vmem:[#allocation76_spill] sm:$0xff] %v4978_v53  ;;  %6334 = vst [vmem:[#allocation77_spill] sm:$0xff] %v4980_v54  ;;  %v4982_v55 = vld [vmem:[#allocation2 + $0x140] sm:$0xff]  ;;  %v4984_v56 = vld [vmem:[#allocation2 + $0x148] sm:$0xff] }
  0x88   :  { %6335 = vst [vmem:[#allocation78_spill] sm:$0xff] %v4982_v55  ;;  %6336 = vst [vmem:[#allocation79_spill] sm:$0xff] %v4984_v56  ;;  %v4986_v57 = vld [vmem:[#allocation2 + $0x150] sm:$0xff]  ;;  %v4988_v58 = vld [vmem:[#allocation2 + $0x158] sm:$0xff] }
  0x89   :  { %6337 = vst [vmem:[#allocation80_spill] sm:$0xff] %v4986_v57  ;;  %6338 = vst [vmem:[#allocation81_spill] sm:$0xff] %v4988_v58  ;;  %v4990_v59 = vld [vmem:[#allocation2 + $0x160] sm:$0xff]  ;;  %v4992_v60 = vld [vmem:[#allocation2 + $0x168] sm:$0xff] }
  0x8a   :  { %6339 = vst [vmem:[#allocation82_spill] sm:$0xff] %v4990_v59  ;;  %6340 = vst [vmem:[#allocation83_spill] sm:$0xff] %v4992_v60  ;;  %v4994_v61 = vld [vmem:[#allocation2 + $0x170] sm:$0xff]  ;;  %v4996_v62 = vld [vmem:[#allocation2 + $0x178] sm:$0xff] }
  0x8b   :  { %6341 = vst [vmem:[#allocation84_spill] sm:$0xff] %v4994_v61  ;;  %6342 = vst [vmem:[#allocation85_spill] sm:$0xff] %v4996_v62  ;;  %v4998_v63 = vld [vmem:[#allocation2 + $0x180] sm:$0xff]  ;;  %v5000_v0 = vld [vmem:[#allocation2 + $0x188] sm:$0xff] }
  0x8c   :  { %6343 = vst [vmem:[#allocation86_spill] sm:$0xff] %v4998_v63  ;;  %6344 = vst [vmem:[#allocation87_spill] sm:$0xff] %v5000_v0  ;;  %v5002_v1 = vld [vmem:[#allocation2 + $0x190] sm:$0xff]  ;;  %v5004_v2 = vld [vmem:[#allocation2 + $0x198] sm:$0xff] }
  0x8d   :  { %6345 = vst [vmem:[#allocation88_spill] sm:$0xff] %v5002_v1  ;;  %6346 = vst [vmem:[#allocation89_spill] sm:$0xff] %v5004_v2  ;;  %v5006_v3 = vld [vmem:[#allocation2 + $0x1a0] sm:$0xff]  ;;  %v5008_v4 = vld [vmem:[#allocation2 + $0x1a8] sm:$0xff] }
  0x8e   :  { %6347 = vst [vmem:[#allocation90_spill] sm:$0xff] %v5006_v3  ;;  %6348 = vst [vmem:[#allocation91_spill] sm:$0xff] %v5008_v4  ;;  %v5010_v53 = vld [vmem:[#allocation2 + $0x1b0] sm:$0xff]  ;;  %v5012_v59 = vld [vmem:[#allocation2 + $0x1b8] sm:$0xff] }
  0x8f   :  { %6349 = vst [vmem:[#allocation92_spill] sm:$0xff] %v5010_v53  ;;  %6350 = vst [vmem:[#allocation93_spill] sm:$0xff] %v5012_v59  ;;  %v5014_v60 = vld [vmem:[#allocation2 + $0x1c0] sm:$0xff]  ;;  %v5016_v61 = vld [vmem:[#allocation2 + $0x1c8] sm:$0xff] }
  0x90   :  { %6351 = vst [vmem:[#allocation94_spill] sm:$0xff] %v5014_v60  ;;  %6352 = vst [vmem:[#allocation95_spill] sm:$0xff] %v5016_v61  ;;  %v5018_v62 = vld [vmem:[#allocation2 + $0x1d0] sm:$0xff]  ;;  %v5020_v51 = vld [vmem:[#allocation2 + $0x1d8] sm:$0xff] }
  0x91   :  { %6353 = vst [vmem:[#allocation96_spill] sm:$0xff] %v5018_v62  ;;  %6354 = vst [vmem:[#allocation97_spill] sm:$0xff] %v5020_v51  ;;  %v5022_v54 = vld [vmem:[#allocation2 + $0x1e0] sm:$0xff]  ;;  %v5024_v52 = vld [vmem:[#allocation2 + $0x1e8] sm:$0xff] }
  0x92   :  { %6355 = vst [vmem:[#allocation98_spill] sm:$0xff] %v5022_v54  ;;  %6356 = vst [vmem:[#allocation99_spill] sm:$0xff] %v5024_v52  ;;  %v5026_v45 = vld [vmem:[#allocation2 + $0x1f0] sm:$0xff]  ;;  %v5028_v3 = vld [vmem:[#allocation2 + $0x1f8] sm:$0xff] }
  0x93   :  { %6357 = vst [vmem:[#allocation100_spill] sm:$0xff] %v5026_v45  ;;  %6358 = vst [vmem:[#allocation101_spill] sm:$0xff] %v5028_v3  ;;  %v5030_v4 = vld [vmem:[#allocation2 + $0x200] sm:$0xff]  ;;  %v5032_v53 = vld [vmem:[#allocation2 + $0x208] sm:$0xff] }
  0x94   :  { %6359 = vst [vmem:[#allocation102_spill] sm:$0xff] %v5030_v4  ;;  %6360 = vst [vmem:[#allocation103_spill] sm:$0xff] %v5032_v53  ;;  %v5034_v59 = vld [vmem:[#allocation2 + $0x210] sm:$0xff]  ;;  %v5036_v43 = vld [vmem:[#allocation2 + $0x218] sm:$0xff] }
  0x95   :  { %6361 = vst [vmem:[#allocation104_spill] sm:$0xff] %v5034_v59  ;;  %6362 = vst [vmem:[#allocation105_spill] sm:$0xff] %v5036_v43  ;;  %v5038_v46 = vld [vmem:[#allocation2 + $0x220] sm:$0xff]  ;;  %v5040_v44 = vld [vmem:[#allocation2 + $0x228] sm:$0xff] }
  0x96   :  { %6363 = vst [vmem:[#allocation106_spill] sm:$0xff] %v5038_v46  ;;  %6364 = vst [vmem:[#allocation107_spill] sm:$0xff] %v5040_v44  ;;  %v5042_v37 = vld [vmem:[#allocation2 + $0x230] sm:$0xff]  ;;  %v5044_v54 = vld [vmem:[#allocation2 + $0x238] sm:$0xff] }
  0x97   :  { %6365 = vst [vmem:[#allocation108_spill] sm:$0xff] %v5042_v37  ;;  %6366 = vst [vmem:[#allocation109_spill] sm:$0xff] %v5044_v54  ;;  %v5046_v52 = vld [vmem:[#allocation2 + $0x240] sm:$0xff]  ;;  %v5048_v45 = vld [vmem:[#allocation2 + $0x248] sm:$0xff] }
  0x98   :  { %6367 = vst [vmem:[#allocation110_spill] sm:$0xff] %v5046_v52  ;;  %6368 = vst [vmem:[#allocation111_spill] sm:$0xff] %v5048_v45  ;;  %v5050_v3 = vld [vmem:[#allocation2 + $0x250] sm:$0xff]  ;;  %v5052_v35 = vld [vmem:[#allocation2 + $0x258] sm:$0xff] }
  0x99   :  { %6369 = vst [vmem:[#allocation112_spill] sm:$0xff] %v5050_v3  ;;  %6370 = vst [vmem:[#allocation113_spill] sm:$0xff] %v5052_v35  ;;  %v5054_v38 = vld [vmem:[#allocation2 + $0x260] sm:$0xff]  ;;  %v5056_v36 = vld [vmem:[#allocation2 + $0x268] sm:$0xff] }
  0x9a   :  { %6371 = vst [vmem:[#allocation114_spill] sm:$0xff] %v5054_v38  ;;  %6372 = vst [vmem:[#allocation115_spill] sm:$0xff] %v5056_v36  ;;  %v5058_v29 = vld [vmem:[#allocation2 + $0x270] sm:$0xff]  ;;  %v5060_v46 = vld [vmem:[#allocation2 + $0x278] sm:$0xff] }
  0x9b   :  { %6373 = vst [vmem:[#allocation116_spill] sm:$0xff] %v5058_v29  ;;  %6374 = vst [vmem:[#allocation117_spill] sm:$0xff] %v5060_v46  ;;  %v5062_v44 = vld [vmem:[#allocation2 + $0x280] sm:$0xff]  ;;  %v5064_v37 = vld [vmem:[#allocation2 + $0x288] sm:$0xff] }
  0x9c   :  { %6375 = vst [vmem:[#allocation118_spill] sm:$0xff] %v5062_v44  ;;  %6376 = vst [vmem:[#allocation119_spill] sm:$0xff] %v5064_v37  ;;  %v5066_v54 = vld [vmem:[#allocation2 + $0x290] sm:$0xff]  ;;  %v5068_v27 = vld [vmem:[#allocation2 + $0x298] sm:$0xff] }
  0x9d   :  { %6377 = vst [vmem:[#allocation120_spill] sm:$0xff] %v5066_v54  ;;  %6378 = vst [vmem:[#allocation121_spill] sm:$0xff] %v5068_v27  ;;  %v5070_v30 = vld [vmem:[#allocation2 + $0x2a0] sm:$0xff]  ;;  %v5072_v28 = vld [vmem:[#allocation2 + $0x2a8] sm:$0xff] }
  0x9e   :  { %6379 = vst [vmem:[#allocation122_spill] sm:$0xff] %v5070_v30  ;;  %6380 = vst [vmem:[#allocation123_spill] sm:$0xff] %v5072_v28  ;;  %v5074_v21 = vld [vmem:[#allocation2 + $0x2b0] sm:$0xff]  ;;  %v5076_v38 = vld [vmem:[#allocation2 + $0x2b8] sm:$0xff] }
  0x9f   :  { %6381 = vst [vmem:[#allocation124_spill] sm:$0xff] %v5074_v21  ;;  %6382 = vst [vmem:[#allocation125_spill] sm:$0xff] %v5076_v38  ;;  %v5078_v36 = vld [vmem:[#allocation2 + $0x2c0] sm:$0xff]  ;;  %v5080_v29 = vld [vmem:[#allocation2 + $0x2c8] sm:$0xff] }
  0xa0   :  { %6383 = vst [vmem:[#allocation126_spill] sm:$0xff] %v5078_v36  ;;  %6384 = vst [vmem:[#allocation127_spill] sm:$0xff] %v5080_v29  ;;  %v5082_v46 = vld [vmem:[#allocation2 + $0x2d0] sm:$0xff]  ;;  %v5084_v19 = vld [vmem:[#allocation2 + $0x2d8] sm:$0xff] }
  0xa1   :  { %6385 = vst [vmem:[#allocation128_spill] sm:$0xff] %v5082_v46  ;;  %6386 = vst [vmem:[#allocation129_spill] sm:$0xff] %v5084_v19  ;;  %v5086_v22 = vld [vmem:[#allocation2 + $0x2e0] sm:$0xff]  ;;  %v5088_v20 = vld [vmem:[#allocation2 + $0x2e8] sm:$0xff] }
  0xa2   :  { %6387 = vst [vmem:[#allocation130_spill] sm:$0xff] %v5086_v22  ;;  %6388 = vst [vmem:[#allocation131_spill] sm:$0xff] %v5088_v20  ;;  %v5090_v14 = vld [vmem:[#allocation2 + $0x2f0] sm:$0xff]  ;;  %v5092_v30 = vld [vmem:[#allocation2 + $0x2f8] sm:$0xff] }
  0xa3   :  { %6389 = vst [vmem:[#allocation132_spill] sm:$0xff] %v5090_v14  ;;  %6390 = vst [vmem:[#allocation133_spill] sm:$0xff] %v5092_v30  ;;  %v5094_v28 = vld [vmem:[#allocation2 + $0x300] sm:$0xff]  ;;  %v5096_v21 = vld [vmem:[#allocation2 + $0x308] sm:$0xff] }
  0xa4   :  { %6391 = vst [vmem:[#allocation134_spill] sm:$0xff] %v5094_v28  ;;  %6392 = vst [vmem:[#allocation135_spill] sm:$0xff] %v5096_v21  ;;  %v5098_v38 = vld [vmem:[#allocation2 + $0x310] sm:$0xff]  ;;  %v5100_v10 = vld [vmem:[#allocation2 + $0x318] sm:$0xff] }
  0xa5   :  { %6393 = vst [vmem:[#allocation136_spill] sm:$0xff] %v5098_v38  ;;  %6394 = vst [vmem:[#allocation137_spill] sm:$0xff] %v5100_v10  ;;  %v5102_v36 = vld [vmem:[#allocation2 + $0x320] sm:$0xff]  ;;  %v5104_v46 = vld [vmem:[#allocation2 + $0x328] sm:$0xff] }
  0xa6   :  { %6395 = vst [vmem:[#allocation138_spill] sm:$0xff] %v5102_v36  ;;  %6396 = vst [vmem:[#allocation139_spill] sm:$0xff] %v5104_v46  ;;  %v5106_v19 = vld [vmem:[#allocation2 + $0x330] sm:$0xff]  ;;  %v5108_v22 = vld [vmem:[#allocation2 + $0x338] sm:$0xff] }
  0xa7   :  { %6397 = vst [vmem:[#allocation140_spill] sm:$0xff] %v5106_v19  ;;  %6398 = vst [vmem:[#allocation141_spill] sm:$0xff] %v5108_v22  ;;  %v5110_v20 = vld [vmem:[#allocation2 + $0x340] sm:$0xff]  ;;  %v5112_v14 = vld [vmem:[#allocation2 + $0x348] sm:$0xff] }
  0xa8   :  { %6399 = vst [vmem:[#allocation142_spill] sm:$0xff] %v5110_v20  ;;  %6400 = vst [vmem:[#allocation143_spill] sm:$0xff] %v5112_v14  ;;  %v5114_v30 = vld [vmem:[#allocation2 + $0x350] sm:$0xff]  ;;  %v5116_v28 = vld [vmem:[#allocation2 + $0x358] sm:$0xff] }
  0xa9   :  { %6401 = vst [vmem:[#allocation144_spill] sm:$0xff] %v5114_v30  ;;  %6402 = vst [vmem:[#allocation145_spill] sm:$0xff] %v5116_v28  ;;  %v5118_v21 = vld [vmem:[#allocation2 + $0x360] sm:$0xff]  ;;  %v5120_v38 = vld [vmem:[#allocation2 + $0x368] sm:$0xff] }
  0xaa   :  { %6403 = vst [vmem:[#allocation146_spill] sm:$0xff] %v5118_v21  ;;  %6404 = vst [vmem:[#allocation147_spill] sm:$0xff] %v5120_v38  ;;  %v5122_v10 = vld [vmem:[#allocation2 + $0x370] sm:$0xff]  ;;  %v5124_v36 = vld [vmem:[#allocation2 + $0x378] sm:$0xff] }
  0xab   :  { %6405 = vst [vmem:[#allocation148_spill] sm:$0xff] %v5122_v10  ;;  %6406 = vst [vmem:[#allocation149_spill] sm:$0xff] %v5124_v36  ;;  %v5126_v46 = vld [vmem:[#allocation2 + $0x380] sm:$0xff]  ;;  %v5128_v19 = vld [vmem:[#allocation2 + $0x388] sm:$0xff] }
  0xac   :  { %6407 = vst [vmem:[#allocation150_spill] sm:$0xff] %v5126_v46  ;;  %6408 = vst [vmem:[#allocation151_spill] sm:$0xff] %v5128_v19  ;;  %v5130_v22 = vld [vmem:[#allocation2 + $0x390] sm:$0xff]  ;;  %v5132_v20 = vld [vmem:[#allocation2 + $0x398] sm:$0xff] }
  0xad   :  { %6409 = vst [vmem:[#allocation152_spill] sm:$0xff] %v5130_v22  ;;  %6410 = vst [vmem:[#allocation153_spill] sm:$0xff] %v5132_v20  ;;  %v5134_v14 = vld [vmem:[#allocation2 + $0x3a0] sm:$0xff]  ;;  %v5136_v30 = vld [vmem:[#allocation2 + $0x3a8] sm:$0xff] }
  0xae   :  { %6411 = vst [vmem:[#allocation154_spill] sm:$0xff] %v5134_v14  ;;  %6412 = vst [vmem:[#allocation155_spill] sm:$0xff] %v5136_v30  ;;  %v5138_v28 = vld [vmem:[#allocation2 + $0x3b0] sm:$0xff]  ;;  %v5140_v21 = vld [vmem:[#allocation2 + $0x3b8] sm:$0xff] }
  0xaf   :  { %6413 = vst [vmem:[#allocation156_spill] sm:$0xff] %v5138_v28  ;;  %6414 = vst [vmem:[#allocation157_spill] sm:$0xff] %v5140_v21  ;;  %v5142_v38 = vld [vmem:[#allocation2 + $0x3c0] sm:$0xff]  ;;  %v5144_v10 = vld [vmem:[#allocation2 + $0x3c8] sm:$0xff] }
  0xb0   :  { %6415 = vst [vmem:[#allocation158_spill] sm:$0xff] %v5142_v38  ;;  %6416 = vst [vmem:[#allocation159_spill] sm:$0xff] %v5144_v10  ;;  %v5146_v36 = vld [vmem:[#allocation2 + $0x3d0] sm:$0xff]  ;;  %v5148_v46 = vld [vmem:[#allocation2 + $0x3d8] sm:$0xff] }
  0xb1   :  { %6417 = vst [vmem:[#allocation160_spill] sm:$0xff] %v5146_v36  ;;  %6418 = vst [vmem:[#allocation161_spill] sm:$0xff] %v5148_v46  ;;  %v5150_v19 = vld [vmem:[#allocation2 + $0x3e0] sm:$0xff]  ;;  %v5152_v22 = vld [vmem:[#allocation2 + $0x3e8] sm:$0xff] }
  0xb2   :  { %6419 = vst [vmem:[#allocation162_spill] sm:$0xff] %v5150_v19  ;;  %6420 = vst [vmem:[#allocation163_spill] sm:$0xff] %v5152_v22  ;;  %v5154_v20 = vld [vmem:[#allocation2 + $0x3f0] sm:$0xff]  ;;  %v5156_v14 = vld [vmem:[#allocation2 + $0x3f8] sm:$0xff] }
  0xb3   :  { %6421 = vst [vmem:[#allocation164_spill] sm:$0xff] %v5154_v20  ;;  %6422 = vst [vmem:[#allocation165_spill] sm:$0xff] %v5156_v14  ;;  %v5158_v30 = vld [vmem:[#allocation2 + $0x400] sm:$0xff]  ;;  %v5160_v28 = vld [vmem:[#allocation2 + $0x408] sm:$0xff] }
  0xb4   :  { %v5162_v21 = vld [vmem:[#allocation2 + $0x410] sm:$0xff]  ;;  %v5164_v38 = vld [vmem:[#allocation2 + $0x418] sm:$0xff]  ;;  %v5166_v10 = vld [vmem:[#allocation2 + $0x420] sm:$0xff] }
  0xb5   :  { %6423 = vst [vmem:[#allocation166_spill] sm:$0xff] %v5162_v21  ;;  %6424 = vst [vmem:[#allocation167_spill] sm:$0xff] %v5164_v38  ;;  %v5168_v36 = vld [vmem:[#allocation2 + $0x428] sm:$0xff]  ;;  %v5170_v46 = vld [vmem:[#allocation2 + $0x430] sm:$0xff] }
  0xb6   :  { %6425 = vst [vmem:[#allocation168_spill] sm:$0xff] %v5166_v10  ;;  %6426 = vst [vmem:[#allocation169_spill] sm:$0xff] %v5168_v36  ;;  %v5172_v19 = vld [vmem:[#allocation2 + $0x438] sm:$0xff]  ;;  %v5174_v22 = vld [vmem:[#allocation2 + $0x440] sm:$0xff] }
  0xb7   :  { %6427 = vst [vmem:[#allocation170_spill] sm:$0xff] %v5170_v46  ;;  %6428 = vst [vmem:[#allocation171_spill] sm:$0xff] %v5172_v19  ;;  %v5176_v20 = vld [vmem:[#allocation2 + $0x448] sm:$0xff]  ;;  %v5178_v14 = vld [vmem:[#allocation2 + $0x450] sm:$0xff] }
  0xb8   :  { %6429 = vst [vmem:[#allocation172_spill] sm:$0xff] %v5178_v14  ;;  %v5180_v29 = vld [vmem:[#allocation2 + $0x458] sm:$0xff]  ;;  %v5182_v54 = vld [vmem:[#allocation2 + $0x460] sm:$0xff]  ;;  %v5184_v21 = vld [vmem:[#allocation2 + $0x468] sm:$0xff] }
  0xb9   :  { %6430 = vst [vmem:[#allocation173_spill] sm:$0xff] %v5180_v29  ;;  %6431 = vst [vmem:[#allocation174_spill] sm:$0xff] %v5182_v54  ;;  %v5186_v38 = vld [vmem:[#allocation2 + $0x470] sm:$0xff]  ;;  %v5188_v10 = vld [vmem:[#allocation2 + $0x478] sm:$0xff] }
  0xba   :  { %6432 = vst [vmem:[#allocation175_spill] sm:$0xff] %v5184_v21  ;;  %6433 = vst [vmem:[#allocation176_spill] sm:$0xff] %v5186_v38  ;;  %v5190_v36 = vld [vmem:[#allocation2 + $0x480] sm:$0xff]  ;;  %v5192_v46 = vld [vmem:[#allocation2 + $0x488] sm:$0xff] }
  0xbb   :  { %6434 = vst [vmem:[#allocation177_spill] sm:$0xff] %v5188_v10  ;;  %v5194_v19 = vld [vmem:[#allocation2 + $0x490] sm:$0xff]  ;;  %v5196_v44 = vld [vmem:[#allocation2 + $0x498] sm:$0xff]  ;;  %v5198_v27 = vld [vmem:[#allocation2 + $0x4a0] sm:$0xff] }
  0xbc   :  { %6435 = vst [vmem:[#allocation178_spill] sm:$0xff] %v5194_v19  ;;  %6436 = vst [vmem:[#allocation179_spill] sm:$0xff] %v5196_v44  ;;  %v5200_v14 = vld [vmem:[#allocation2 + $0x4a8] sm:$0xff]  ;;  %v5202_v29 = vld [vmem:[#allocation2 + $0x4b0] sm:$0xff] }
  0xbd   :  { %6437 = vst [vmem:[#allocation180_spill] sm:$0xff] %v5198_v27  ;;  %6438 = vst [vmem:[#allocation181_spill] sm:$0xff] %v5200_v14  ;;  %v5204_v54 = vld [vmem:[#allocation2 + $0x4b8] sm:$0xff]  ;;  %v5206_v21 = vld [vmem:[#allocation2 + $0x4c0] sm:$0xff] }
  0xbe   :  { %6439 = vst [vmem:[#allocation182_spill] sm:$0xff] %v5202_v29  ;;  %6440 = vst [vmem:[#allocation183_spill] sm:$0xff] %v5204_v54  ;;  %v5208_v38 = vld [vmem:[#allocation2 + $0x4c8] sm:$0xff]  ;;  %v5210_v10 = vld [vmem:[#allocation2 + $0x4d0] sm:$0xff] }
  0xbf   :  { %6441 = vst [vmem:[#allocation184_spill] sm:$0xff] %v5210_v10  ;;  %v5212_v37 = vld [vmem:[#allocation2 + $0x4d8] sm:$0xff]  ;;  %v5214_v3 = vld [vmem:[#allocation2 + $0x4e0] sm:$0xff]  ;;  %v5216_v19 = vld [vmem:[#allocation2 + $0x4e8] sm:$0xff] }
  0xc0   :  { %6442 = vst [vmem:[#allocation185_spill] sm:$0xff] %v5212_v37  ;;  %6443 = vst [vmem:[#allocation186_spill] sm:$0xff] %v5214_v3  ;;  %v5218_v44 = vld [vmem:[#allocation2 + $0x4f0] sm:$0xff]  ;;  %v5220_v27 = vld [vmem:[#allocation2 + $0x4f8] sm:$0xff] }
  0xc1   :  { %6444 = vst [vmem:[#allocation187_spill] sm:$0xff] %v5216_v19  ;;  %6445 = vst [vmem:[#allocation188_spill] sm:$0xff] %v5218_v44  ;;  %v5222_v14 = vld [vmem:[#allocation2 + $0x500] sm:$0xff]  ;;  %v5224_v29 = vld [vmem:[#allocation2 + $0x508] sm:$0xff] }
  0xc2   :  { %6446 = vst [vmem:[#allocation189_spill] sm:$0xff] %v5220_v27  ;;  %v5226_v54 = vld [vmem:[#allocation2 + $0x510] sm:$0xff]  ;;  %v5228_v52 = vld [vmem:[#allocation2 + $0x518] sm:$0xff]  ;;  %v5230_v35 = vld [vmem:[#allocation2 + $0x520] sm:$0xff] }
  0xc3   :  { %6447 = vst [vmem:[#allocation190_spill] sm:$0xff] %v5226_v54  ;;  %6448 = vst [vmem:[#allocation191_spill] sm:$0xff] %v5228_v52  ;;  %v5232_v10 = vld [vmem:[#allocation2 + $0x528] sm:$0xff]  ;;  %v5234_v37 = vld [vmem:[#allocation2 + $0x530] sm:$0xff] }
  0xc4   :  { %6449 = vst [vmem:[#allocation192_spill] sm:$0xff] %v5230_v35  ;;  %6450 = vst [vmem:[#allocation193_spill] sm:$0xff] %v5232_v10  ;;  %v5236_v3 = vld [vmem:[#allocation2 + $0x538] sm:$0xff]  ;;  %v5238_v19 = vld [vmem:[#allocation2 + $0x540] sm:$0xff] }
  0xc5   :  { %6451 = vst [vmem:[#allocation194_spill] sm:$0xff] %v5234_v37  ;;  %6452 = vst [vmem:[#allocation195_spill] sm:$0xff] %v5236_v3  ;;  %v5240_v44 = vld [vmem:[#allocation2 + $0x548] sm:$0xff]  ;;  %v5242_v27 = vld [vmem:[#allocation2 + $0x550] sm:$0xff] }
  0xc6   :  { %6453 = vst [vmem:[#allocation196_spill] sm:$0xff] %v5242_v27  ;;  %v5244_v45 = vld [vmem:[#allocation2 + $0x558] sm:$0xff]  ;;  %v5246_v59 = vld [vmem:[#allocation2 + $0x560] sm:$0xff]  ;;  %v5248_v54 = vld [vmem:[#allocation2 + $0x568] sm:$0xff] }
  0xc7   :  { %6454 = vst [vmem:[#allocation197_spill] sm:$0xff] %v5244_v45  ;;  %6455 = vst [vmem:[#allocation198_spill] sm:$0xff] %v5246_v59  ;;  %v5250_v52 = vld [vmem:[#allocation2 + $0x570] sm:$0xff]  ;;  %v5252_v35 = vld [vmem:[#allocation2 + $0x578] sm:$0xff] }
  0xc8   :  { %6456 = vst [vmem:[#allocation199_spill] sm:$0xff] %v5248_v54  ;;  %6457 = vst [vmem:[#allocation200_spill] sm:$0xff] %v5250_v52  ;;  %v5254_v10 = vld [vmem:[#allocation2 + $0x580] sm:$0xff]  ;;  %v5256_v37 = vld [vmem:[#allocation2 + $0x588] sm:$0xff] }
  0xc9   :  { %6458 = vst [vmem:[#allocation201_spill] sm:$0xff] %v5252_v35  ;;  %v5258_v3 = vld [vmem:[#allocation2 + $0x590] sm:$0xff]  ;;  %v5260_v4 = vld [vmem:[#allocation2 + $0x598] sm:$0xff]  ;;  %v5262_v43 = vld [vmem:[#allocation2 + $0x5a0] sm:$0xff] }
  0xca   :  { %6459 = vst [vmem:[#allocation202_spill] sm:$0xff] %v5258_v3  ;;  %6460 = vst [vmem:[#allocation203_spill] sm:$0xff] %v5260_v4  ;;  %v5264_v27 = vld [vmem:[#allocation2 + $0x5a8] sm:$0xff]  ;;  %v5266_v45 = vld [vmem:[#allocation2 + $0x5b0] sm:$0xff] }
  0xcb   :  { %6461 = vst [vmem:[#allocation204_spill] sm:$0xff] %v5262_v43  ;;  %6462 = vst [vmem:[#allocation205_spill] sm:$0xff] %v5264_v27  ;;  %v5268_v59 = vld [vmem:[#allocation2 + $0x5b8] sm:$0xff]  ;;  %v5270_v54 = vld [vmem:[#allocation2 + $0x5c0] sm:$0xff] }
  0xcc   :  { %6463 = vst [vmem:[#allocation206_spill] sm:$0xff] %v5266_v45  ;;  %6464 = vst [vmem:[#allocation207_spill] sm:$0xff] %v5268_v59  ;;  %v5272_v52 = vld [vmem:[#allocation2 + $0x5c8] sm:$0xff]  ;;  %v5274_v35 = vld [vmem:[#allocation2 + $0x5d0] sm:$0xff] }
  0xcd   :  { %6465 = vst [vmem:[#allocation208_spill] sm:$0xff] %v5274_v35  ;;  %v5276_v53 = vld [vmem:[#allocation2 + $0x5d8] sm:$0xff]  ;;  %v5278_v62 = vld [vmem:[#allocation2 + $0x5e0] sm:$0xff]  ;;  %v5280_v3 = vld [vmem:[#allocation2 + $0x5e8] sm:$0xff] }
  0xce   :  { %6466 = vst [vmem:[#allocation209_spill] sm:$0xff] %v5276_v53  ;;  %6467 = vst [vmem:[#allocation210_spill] sm:$0xff] %v5278_v62  ;;  %v5282_v4 = vld [vmem:[#allocation2 + $0x5f0] sm:$0xff]  ;;  %v5284_v43 = vld [vmem:[#allocation2 + $0x5f8] sm:$0xff] }
  0xcf   :  { %6468 = vst [vmem:[#allocation211_spill] sm:$0xff] %v5280_v3  ;;  %6469 = vst [vmem:[#allocation212_spill] sm:$0xff] %v5282_v4  ;;  %v5286_v27 = vld [vmem:[#allocation2 + $0x600] sm:$0xff]  ;;  %v5288_v45 = vld [vmem:[#allocation2 + $0x608] sm:$0xff] }
  0xd0   :  { %6470 = vst [vmem:[#allocation213_spill] sm:$0xff] %v5284_v43  ;;  %v5290_v59 = vld [vmem:[#allocation2 + $0x610] sm:$0xff]  ;;  %v5292_v60 = vld [vmem:[#allocation2 + $0x618] sm:$0xff]  ;;  %v5294_v51 = vld [vmem:[#allocation2 + $0x620] sm:$0xff] }
  0xd1   :  { %6471 = vst [vmem:[#allocation214_spill] sm:$0xff] %v5290_v59  ;;  %6472 = vst [vmem:[#allocation215_spill] sm:$0xff] %v5292_v60  ;;  %v5296_v35 = vld [vmem:[#allocation2 + $0x628] sm:$0xff]  ;;  %v5298_v53 = vld [vmem:[#allocation2 + $0x630] sm:$0xff] }
  0xd2   :  { %6473 = vst [vmem:[#allocation216_spill] sm:$0xff] %v5294_v51  ;;  %6474 = vst [vmem:[#allocation217_spill] sm:$0xff] %v5296_v35  ;;  %v5300_v62 = vld [vmem:[#allocation2 + $0x638] sm:$0xff]  ;;  %v5302_v3 = vld [vmem:[#allocation2 + $0x640] sm:$0xff] }
  0xd3   :  { %6475 = vst [vmem:[#allocation218_spill] sm:$0xff] %v5298_v53  ;;  %6476 = vst [vmem:[#allocation219_spill] sm:$0xff] %v5300_v62  ;;  %v5304_v4 = vld [vmem:[#allocation2 + $0x648] sm:$0xff]  ;;  %v5306_v43 = vld [vmem:[#allocation2 + $0x650] sm:$0xff] }
  0xd4   :  { %6477 = vst [vmem:[#allocation220_spill] sm:$0xff] %v5306_v43  ;;  %v5308_v61 = vld [vmem:[#allocation2 + $0x658] sm:$0xff]  ;;  %v5310_v1 = vld [vmem:[#allocation2 + $0x660] sm:$0xff]  ;;  %v5312_v59 = vld [vmem:[#allocation2 + $0x668] sm:$0xff] }
  0xd5   :  { %6478 = vst [vmem:[#allocation221_spill] sm:$0xff] %v5308_v61  ;;  %6479 = vst [vmem:[#allocation222_spill] sm:$0xff] %v5310_v1  ;;  %v5314_v60 = vld [vmem:[#allocation2 + $0x670] sm:$0xff]  ;;  %v5316_v51 = vld [vmem:[#allocation2 + $0x678] sm:$0xff] }
  0xd6   :  { %6480 = vst [vmem:[#allocation223_spill] sm:$0xff] %v5312_v59  ;;  %6481 = vst [vmem:[#allocation224_spill] sm:$0xff] %v5314_v60  ;;  %v5318_v35 = vld [vmem:[#allocation2 + $0x680] sm:$0xff]  ;;  %v5320_v53 = vld [vmem:[#allocation2 + $0x688] sm:$0xff] }
  0xd7   :  { %6482 = vst [vmem:[#allocation225_spill] sm:$0xff] %v5316_v51  ;;  %v5322_v62 = vld [vmem:[#allocation2 + $0x690] sm:$0xff]  ;;  %v5324_v63 = vld [vmem:[#allocation2 + $0x698] sm:$0xff]  ;;  %v5326_v2 = vld [vmem:[#allocation2 + $0x6a0] sm:$0xff] }
  0xd8   :  { %6483 = vst [vmem:[#allocation226_spill] sm:$0xff] %v5322_v62  ;;  %6484 = vst [vmem:[#allocation227_spill] sm:$0xff] %v5324_v63  ;;  %v5328_v43 = vld [vmem:[#allocation2 + $0x6a8] sm:$0xff]  ;;  %v5330_v61 = vld [vmem:[#allocation2 + $0x6b0] sm:$0xff] }
  0xd9   :  { %6485 = vst [vmem:[#allocation228_spill] sm:$0xff] %v5326_v2  ;;  %6486 = vst [vmem:[#allocation229_spill] sm:$0xff] %v5328_v43  ;;  %v5332_v1 = vld [vmem:[#allocation2 + $0x6b8] sm:$0xff]  ;;  %v5334_v59 = vld [vmem:[#allocation2 + $0x6c0] sm:$0xff] }
  0xda   :  { %6487 = vst [vmem:[#allocation230_spill] sm:$0xff] %v5330_v61  ;;  %6488 = vst [vmem:[#allocation231_spill] sm:$0xff] %v5332_v1  ;;  %v5336_v60 = vld [vmem:[#allocation2 + $0x6c8] sm:$0xff]  ;;  %v5338_v51 = vld [vmem:[#allocation2 + $0x6d0] sm:$0xff] }
  0xdb   :  { %6489 = vst [vmem:[#allocation232_spill] sm:$0xff] %v5338_v51  ;;  %v5340_v0 = vld [vmem:[#allocation2 + $0x6d8] sm:$0xff]  ;;  %v5342_v57 = vld [vmem:[#allocation2 + $0x6e0] sm:$0xff]  ;;  %v5344_v62 = vld [vmem:[#allocation2 + $0x6e8] sm:$0xff] }
  0xdc   :  { %6490 = vst [vmem:[#allocation233_spill] sm:$0xff] %v5340_v0  ;;  %6491 = vst [vmem:[#allocation234_spill] sm:$0xff] %v5342_v57  ;;  %v5346_v63 = vld [vmem:[#allocation2 + $0x6f0] sm:$0xff]  ;;  %v5348_v2 = vld [vmem:[#allocation2 + $0x6f8] sm:$0xff] }
  0xdd   :  { %6492 = vst [vmem:[#allocation235_spill] sm:$0xff] %v5344_v62  ;;  %6493 = vst [vmem:[#allocation236_spill] sm:$0xff] %v5346_v63  ;;  %v5350_v43 = vld [vmem:[#allocation2 + $0x700] sm:$0xff]  ;;  %v5352_v61 = vld [vmem:[#allocation2 + $0x708] sm:$0xff] }
  0xde   :  { %6494 = vst [vmem:[#allocation237_spill] sm:$0xff] %v5348_v2  ;;  %v5354_v1 = vld [vmem:[#allocation2 + $0x710] sm:$0xff]  ;;  %v5356_v55 = vld [vmem:[#allocation2 + $0x718] sm:$0xff]  ;;  %v5358_v58 = vld [vmem:[#allocation2 + $0x720] sm:$0xff] }
  0xdf   :  { %6495 = vst [vmem:[#allocation238_spill] sm:$0xff] %v5354_v1  ;;  %6496 = vst [vmem:[#allocation239_spill] sm:$0xff] %v5356_v55  ;;  %v5360_v51 = vld [vmem:[#allocation2 + $0x728] sm:$0xff]  ;;  %v5362_v0 = vld [vmem:[#allocation2 + $0x730] sm:$0xff] }
  0xe0   :  { %6497 = vst [vmem:[#allocation240_spill] sm:$0xff] %v5358_v58  ;;  %6498 = vst [vmem:[#allocation241_spill] sm:$0xff] %v5360_v51  ;;  %v5364_v57 = vld [vmem:[#allocation2 + $0x738] sm:$0xff]  ;;  %v5366_v62 = vld [vmem:[#allocation2 + $0x740] sm:$0xff] }
  0xe1   :  { %6499 = vst [vmem:[#allocation242_spill] sm:$0xff] %v5362_v0  ;;  %6500 = vst [vmem:[#allocation243_spill] sm:$0xff] %v5364_v57  ;;  %v5368_v63 = vld [vmem:[#allocation2 + $0x748] sm:$0xff]  ;;  %v5370_v2 = vld [vmem:[#allocation2 + $0x750] sm:$0xff] }
  0xe2   :  { %6501 = vst [vmem:[#allocation244_spill] sm:$0xff] %v5370_v2  ;;  %v5372_v56 = vld [vmem:[#allocation2 + $0x758] sm:$0xff]  ;;  %v5374_v49 = vld [vmem:[#allocation2 + $0x760] sm:$0xff]  ;;  %v5376_v1 = vld [vmem:[#allocation2 + $0x768] sm:$0xff] }
  0xe3   :  { %6502 = vst [vmem:[#allocation245_spill] sm:$0xff] %v5372_v56  ;;  %6503 = vst [vmem:[#allocation246_spill] sm:$0xff] %v5374_v49  ;;  %v5378_v55 = vld [vmem:[#allocation2 + $0x770] sm:$0xff]  ;;  %v5380_v58 = vld [vmem:[#allocation2 + $0x778] sm:$0xff] }
  0xe4   :  { %6504 = vst [vmem:[#allocation247_spill] sm:$0xff] %v5376_v1  ;;  %6505 = vst [vmem:[#allocation248_spill] sm:$0xff] %v5378_v55  ;;  %v5382_v51 = vld [vmem:[#allocation2 + $0x780] sm:$0xff]  ;;  %v5384_v0 = vld [vmem:[#allocation2 + $0x788] sm:$0xff] }
  0xe5   :  { %6506 = vst [vmem:[#allocation249_spill] sm:$0xff] %v5380_v58  ;;  %v5386_v57 = vld [vmem:[#allocation2 + $0x790] sm:$0xff]  ;;  %v5388_v47 = vld [vmem:[#allocation2 + $0x798] sm:$0xff]  ;;  %v5390_v50 = vld [vmem:[#allocation2 + $0x7a0] sm:$0xff] }
  0xe6   :  { %6507 = vst [vmem:[#allocation250_spill] sm:$0xff] %v5386_v57  ;;  %6508 = vst [vmem:[#allocation251_spill] sm:$0xff] %v5388_v47  ;;  %v5392_v2 = vld [vmem:[#allocation2 + $0x7a8] sm:$0xff]  ;;  %v5394_v56 = vld [vmem:[#allocation2 + $0x7b0] sm:$0xff] }
  0xe7   :  { %6509 = vst [vmem:[#allocation252_spill] sm:$0xff] %v5390_v50  ;;  %6510 = vst [vmem:[#allocation253_spill] sm:$0xff] %v5392_v2  ;;  %v5396_v49 = vld [vmem:[#allocation2 + $0x7b8] sm:$0xff]  ;;  %v5398_v1 = vld [vmem:[#allocation2 + $0x7c0] sm:$0xff] }
  0xe8   :  { %6511 = vst [vmem:[#allocation254_spill] sm:$0xff] %v5394_v56  ;;  %6512 = vst [vmem:[#allocation255_spill] sm:$0xff] %v5396_v49  ;;  %v5400_v55 = vld [vmem:[#allocation2 + $0x7c8] sm:$0xff]  ;;  %v5402_v58 = vld [vmem:[#allocation2 + $0x7d0] sm:$0xff] }
  0xe9   :  { %6513 = vst [vmem:[#allocation256_spill] sm:$0xff] %v5402_v58  ;;  %v5404_v48 = vld [vmem:[#allocation2 + $0x7d8] sm:$0xff]  ;;  %v5406_v41 = vld [vmem:[#allocation2 + $0x7e0] sm:$0xff]  ;;  %v5408_v57 = vld [vmem:[#allocation2 + $0x7e8] sm:$0xff] }
  0xea   :  { %6514 = vst [vmem:[#allocation257_spill] sm:$0xff] %v5404_v48  ;;  %6515 = vst [vmem:[#allocation258_spill] sm:$0xff] %v5406_v41  ;;  %v5410_v47 = vld [vmem:[#allocation2 + $0x7f0] sm:$0xff]  ;;  %v5412_v50 = vld [vmem:[#allocation2 + $0x7f8] sm:$0xff] }
  0xeb   :  { %6516 = vst [vmem:[#allocation259_spill] sm:$0xff] %v5408_v57  ;;  %6517 = vst [vmem:[#allocation260_spill] sm:$0xff] %v5410_v47  ;;  %v5414_v2 = vld [vmem:[#allocation2 + $0x800] sm:$0xff]  ;;  %v5416_v56 = vld [vmem:[#allocation2 + $0x808] sm:$0xff] }
  0xec   :  { %6518 = vst [vmem:[#allocation261_spill] sm:$0xff] %v5412_v50  ;;  %6519 = vst [vmem:[#allocation262_spill] sm:$0xff] %v5414_v2  ;;  %v5418_v49 = vld [vmem:[#allocation2 + $0x810] sm:$0xff]  ;;  %v5420_v39 = vld [vmem:[#allocation2 + $0x818] sm:$0xff] }
  0xed   :  { %6520 = vst [vmem:[#allocation263_spill] sm:$0xff] %v5416_v56  ;;  %6521 = vst [vmem:[#allocation264_spill] sm:$0xff] %v5418_v49  ;;  %v5422_v42 = vld [vmem:[#allocation2 + $0x820] sm:$0xff]  ;;  %v5424_v58 = vld [vmem:[#allocation2 + $0x828] sm:$0xff] }
  0xee   :  { %6522 = vst [vmem:[#allocation265_spill] sm:$0xff] %v5420_v39  ;;  %6523 = vst [vmem:[#allocation266_spill] sm:$0xff] %v5422_v42  ;;  %v5426_v48 = vld [vmem:[#allocation2 + $0x830] sm:$0xff]  ;;  %v5428_v41 = vld [vmem:[#allocation2 + $0x838] sm:$0xff] }
  0xef   :  { %6524 = vst [vmem:[#allocation267_spill] sm:$0xff] %v5424_v58  ;;  %6525 = vst [vmem:[#allocation268_spill] sm:$0xff] %v5426_v48  ;;  %v5430_v57 = vld [vmem:[#allocation2 + $0x840] sm:$0xff]  ;;  %v5432_v47 = vld [vmem:[#allocation2 + $0x848] sm:$0xff] }
  0xf0   :  { %6526 = vst [vmem:[#allocation269_spill] sm:$0xff] %v5428_v41  ;;  %6527 = vst [vmem:[#allocation270_spill] sm:$0xff] %v5430_v57  ;;  %v5434_v50 = vld [vmem:[#allocation2 + $0x850] sm:$0xff]  ;;  %v5436_v2 = vld [vmem:[#allocation2 + $0x858] sm:$0xff] }
  0xf1   :  { %6528 = vst [vmem:[#allocation271_spill] sm:$0xff] %v5432_v47  ;;  %6529 = vst [vmem:[#allocation272_spill] sm:$0xff] %v5434_v50  ;;  %v5438_v56 = vld [vmem:[#allocation2 + $0x860] sm:$0xff]  ;;  %v5440_v49 = vld [vmem:[#allocation2 + $0x868] sm:$0xff] }
  0xf2   :  { %6530 = vst [vmem:[#allocation273_spill] sm:$0xff] %v5436_v2  ;;  %6531 = vst [vmem:[#allocation274_spill] sm:$0xff] %v5438_v56  ;;  %v5442_v39 = vld [vmem:[#allocation2 + $0x870] sm:$0xff]  ;;  %v5444_v42 = vld [vmem:[#allocation2 + $0x878] sm:$0xff] }
  0xf3   :  { %6532 = vst [vmem:[#allocation275_spill] sm:$0xff] %v5440_v49  ;;  %6533 = vst [vmem:[#allocation276_spill] sm:$0xff] %v5442_v39  ;;  %v5446_v58 = vld [vmem:[#allocation2 + $0x880] sm:$0xff]  ;;  %v5448_v48 = vld [vmem:[#allocation2 + $0x888] sm:$0xff] }
  0xf4   :  { %6534 = vst [vmem:[#allocation277_spill] sm:$0xff] %v5444_v42  ;;  %6535 = vst [vmem:[#allocation278_spill] sm:$0xff] %v5446_v58  ;;  %v5450_v41 = vld [vmem:[#allocation2 + $0x890] sm:$0xff]  ;;  %v5452_v57 = vld [vmem:[#allocation2 + $0x898] sm:$0xff] }
  0xf5   :  { %6536 = vst [vmem:[#allocation279_spill] sm:$0xff] %v5448_v48  ;;  %6537 = vst [vmem:[#allocation280_spill] sm:$0xff] %v5450_v41  ;;  %v5454_v47 = vld [vmem:[#allocation2 + $0x8a0] sm:$0xff]  ;;  %v5456_v50 = vld [vmem:[#allocation2 + $0x8a8] sm:$0xff] }
  0xf6   :  { %6538 = vst [vmem:[#allocation281_spill] sm:$0xff] %v5452_v57  ;;  %6539 = vst [vmem:[#allocation282_spill] sm:$0xff] %v5454_v47  ;;  %v5458_v2 = vld [vmem:[#allocation2 + $0x8b0] sm:$0xff]  ;;  %v5460_v56 = vld [vmem:[#allocation2 + $0x8b8] sm:$0xff] }
  0xf7   :  { %6540 = vst [vmem:[#allocation283_spill] sm:$0xff] %v5456_v50  ;;  %6541 = vst [vmem:[#allocation284_spill] sm:$0xff] %v5458_v2  ;;  %v5462_v49 = vld [vmem:[#allocation2 + $0x8c0] sm:$0xff]  ;;  %v5464_v39 = vld [vmem:[#allocation2 + $0x8c8] sm:$0xff] }
  0xf8   :  { %6542 = vst [vmem:[#allocation285_spill] sm:$0xff] %v5460_v56  ;;  %6543 = vst [vmem:[#allocation286_spill] sm:$0xff] %v5462_v49  ;;  %v5466_v42 = vld [vmem:[#allocation2 + $0x8d0] sm:$0xff]  ;;  %v5468_v58 = vld [vmem:[#allocation2 + $0x8d8] sm:$0xff] }
  0xf9   :  { %6544 = vst [vmem:[#allocation287_spill] sm:$0xff] %v5464_v39  ;;  %6545 = vst [vmem:[#allocation288_spill] sm:$0xff] %v5466_v42  ;;  %v5470_v48 = vld [vmem:[#allocation2 + $0x8e0] sm:$0xff]  ;;  %v5472_v41 = vld [vmem:[#allocation2 + $0x8e8] sm:$0xff] }
  0xfa   :  { %6546 = vst [vmem:[#allocation289_spill] sm:$0xff] %v5468_v58  ;;  %6547 = vst [vmem:[#allocation290_spill] sm:$0xff] %v5470_v48  ;;  %v5474_v57 = vld [vmem:[#allocation2 + $0x8f0] sm:$0xff]  ;;  %v5476_v47 = vld [vmem:[#allocation2 + $0x8f8] sm:$0xff] }
  0xfb   :  { %6548 = vst [vmem:[#allocation291_spill] sm:$0xff] %v5472_v41  ;;  %6549 = vst [vmem:[#allocation292_spill] sm:$0xff] %v5474_v57  ;;  %v5478_v50 = vld [vmem:[#allocation2 + $0x900] sm:$0xff]  ;;  %v5480_v2 = vld [vmem:[#allocation2 + $0x908] sm:$0xff] }
  0xfc   :  { %6550 = vst [vmem:[#allocation293_spill] sm:$0xff] %v5476_v47  ;;  %6551 = vst [vmem:[#allocation294_spill] sm:$0xff] %v5478_v50  ;;  %v5482_v56 = vld [vmem:[#allocation2 + $0x910] sm:$0xff]  ;;  %v5484_v49 = vld [vmem:[#allocation2 + $0x918] sm:$0xff] }
  0xfd   :  { %6552 = vst [vmem:[#allocation295_spill] sm:$0xff] %v5480_v2  ;;  %6553 = vst [vmem:[#allocation296_spill] sm:$0xff] %v5482_v56  ;;  %v5486_v39 = vld [vmem:[#allocation2 + $0x920] sm:$0xff]  ;;  %v5488_v42 = vld [vmem:[#allocation2 + $0x928] sm:$0xff] }
  0xfe   :  { %6554 = vst [vmem:[#allocation297_spill] sm:$0xff] %v5484_v49  ;;  %6555 = vst [vmem:[#allocation298_spill] sm:$0xff] %v5486_v39  ;;  %v5490_v58 = vld [vmem:[#allocation2 + $0x930] sm:$0xff]  ;;  %v5492_v48 = vld [vmem:[#allocation2 + $0x938] sm:$0xff] }
  0xff   :  { %6556 = vst [vmem:[#allocation299_spill] sm:$0xff] %v5488_v42  ;;  %6557 = vst [vmem:[#allocation300_spill] sm:$0xff] %v5490_v58  ;;  %v5494_v41 = vld [vmem:[#allocation2 + $0x940] sm:$0xff]  ;;  %v5496_v57 = vld [vmem:[#allocation2 + $0x948] sm:$0xff] }
 0x100   :  { %6558 = vst [vmem:[#allocation301_spill] sm:$0xff] %v5492_v48  ;;  %6559 = vst [vmem:[#allocation302_spill] sm:$0xff] %v5494_v41  ;;  %v5498_v47 = vld [vmem:[#allocation2 + $0x950] sm:$0xff]  ;;  %v5500_v50 = vld [vmem:[#allocation2 + $0x958] sm:$0xff] }
 0x101   :  { %6560 = vst [vmem:[#allocation303_spill] sm:$0xff] %v5496_v57  ;;  %6561 = vst [vmem:[#allocation304_spill] sm:$0xff] %v5498_v47  ;;  %v5502_v2 = vld [vmem:[#allocation2 + $0x960] sm:$0xff]  ;;  %v5504_v56 = vld [vmem:[#allocation2 + $0x968] sm:$0xff] }
 0x102   :  { %6562 = vst [vmem:[#allocation305_spill] sm:$0xff] %v5500_v50  ;;  %6563 = vst [vmem:[#allocation306_spill] sm:$0xff] %v5502_v2  ;;  %v5506_v49 = vld [vmem:[#allocation2 + $0x970] sm:$0xff]  ;;  %v5508_v39 = vld [vmem:[#allocation2 + $0x978] sm:$0xff] }
 0x103   :  { %6564 = vst [vmem:[#allocation307_spill] sm:$0xff] %v5504_v56  ;;  %6565 = vst [vmem:[#allocation308_spill] sm:$0xff] %v5506_v49  ;;  %v5510_v42 = vld [vmem:[#allocation2 + $0x980] sm:$0xff]  ;;  %v5512_v58 = vld [vmem:[#allocation2 + $0x988] sm:$0xff] }
 0x104   :  { %6566 = vst [vmem:[#allocation309_spill] sm:$0xff] %v5508_v39  ;;  %6567 = vst [vmem:[#allocation310_spill] sm:$0xff] %v5510_v42  ;;  %v5514_v48 = vld [vmem:[#allocation2 + $0x990] sm:$0xff]  ;;  %v5516_v41 = vld [vmem:[#allocation2 + $0x998] sm:$0xff] }
 0x105   :  { %6568 = vst [vmem:[#allocation311_spill] sm:$0xff] %v5512_v58  ;;  %6569 = vst [vmem:[#allocation312_spill] sm:$0xff] %v5514_v48  ;;  %v5518_v57 = vld [vmem:[#allocation2 + $0x9a0] sm:$0xff]  ;;  %v5520_v47 = vld [vmem:[#allocation2 + $0x9a8] sm:$0xff] }
 0x106   :  { %6570 = vst [vmem:[#allocation313_spill] sm:$0xff] %v5516_v41  ;;  %6571 = vst [vmem:[#allocation314_spill] sm:$0xff] %v5518_v57  ;;  %v5522_v50 = vld [vmem:[#allocation2 + $0x9b0] sm:$0xff]  ;;  %v5524_v2 = vld [vmem:[#allocation2 + $0x9b8] sm:$0xff] }
 0x107   :  { %6572 = vst [vmem:[#allocation315_spill] sm:$0xff] %v5520_v47  ;;  %6573 = vst [vmem:[#allocation316_spill] sm:$0xff] %v5522_v50  ;;  %v5526_v56 = vld [vmem:[#allocation2 + $0x9c0] sm:$0xff]  ;;  %v5528_v49 = vld [vmem:[#allocation2 + $0x9c8] sm:$0xff] }
 0x108   :  { %6574 = vst [vmem:[#allocation317_spill] sm:$0xff] %v5524_v2  ;;  %6575 = vst [vmem:[#allocation318_spill] sm:$0xff] %v5526_v56  ;;  %v5530_v39 = vld [vmem:[#allocation2 + $0x9d0] sm:$0xff]  ;;  %v5532_v42 = vld [vmem:[#allocation2 + $0x9d8] sm:$0xff] }
 0x109   :  { %6576 = vst [vmem:[#allocation319_spill] sm:$0xff] %v5528_v49  ;;  %6577 = vst [vmem:[#allocation320_spill] sm:$0xff] %v5530_v39  ;;  %v5534_v58 = vld [vmem:[#allocation2 + $0x9e0] sm:$0xff]  ;;  %v5536_v48 = vld [vmem:[#allocation2 + $0x9e8] sm:$0xff] }
 0x10a   :  { %6578 = vst [vmem:[#allocation321_spill] sm:$0xff] %v5532_v42  ;;  %6579 = vst [vmem:[#allocation322_spill] sm:$0xff] %v5534_v58  ;;  %v5538_v41 = vld [vmem:[#allocation2 + $0x9f0] sm:$0xff]  ;;  %v5540_v57 = vld [vmem:[#allocation2 + $0x9f8] sm:$0xff] }
 0x10b   :  { %6580 = vst [vmem:[#allocation323_spill] sm:$0xff] %v5536_v48  ;;  %6581 = vst [vmem:[#allocation324_spill] sm:$0xff] %v5538_v41 }
 0x10c   :  { %6582 = vst [vmem:[#allocation325_spill] sm:$0xff] %v5540_v57 }
 0x10d   :  { %4655 = dma.done.wait [#allocation9 + $0x1], 40960 }
 0x10e   :  { %4656 = vsyncadd [#allocation9 + $0x1], 4294926336  ;;  %v5544_v50 = vpack.c.bf16 %v4884_v6, %v4884_v6  ;;  %v5548_v2 = vpack.c.bf16 %v4888_v8, %v4888_v8  ;;  %v639_v58 = vld [vmem:[#allocation3 + $0x8] sm:$0xff]  ;;  %v638_v47 = vld [vmem:[#allocation3] sm:$0xff]  ;;  %s2154_s25 = ssub.f32 0.0, %s6284_s0 }
 0x10f   :  { %v767_v48 = vld [vmem:[#allocation3 + $0x408] sm:$0xff]  ;;  %963 = vmatprep.subr.bf16.mxu0 %v639_v58  ;;  %v766_v41 = vld [vmem:[#allocation3 + $0x400] sm:$0xff]  ;;  %v957_v32 = vld [vmem:[#allocation3 + $0x9f8] sm:$0xff] }
 0x110   :  { %995 = vmatprep.mubr.bf16.mxu0 %v5544_v50  ;;  %1036 = vmatprep.mubr.bf16.mxu1 %v5548_v2  ;;  %v647_v57 = vld [vmem:[#allocation3 + $0x48] sm:$0xff]  ;;  %v646_v6 = vld [vmem:[#allocation3 + $0x40] sm:$0xff] }
 0x111   :  { %1004 = vmatprep.subr.bf16.mxu1 %v767_v48  ;;  %v775_v39 = vld [vmem:[#allocation3 + $0x448] sm:$0xff]  ;;  %964 = vmatpush1.bf16.msra.mxu0 %v638_v47  ;;  %v774_v56 = vld [vmem:[#allocation3 + $0x440] sm:$0xff] }
 0x112   :  { %1005 = vmatpush1.bf16.msra.mxu1 %v766_v41  ;;  %965 = vmatprep.subr.bf16.mxu0 %v647_v57  ;;  %v655_v8 = vld [vmem:[#allocation3 + $0x88] sm:$0xff]  ;;  %v654_v49 = vld [vmem:[#allocation3 + $0x80] sm:$0xff] }
 0x113   :  { %1006 = vmatprep.subr.bf16.mxu1 %v775_v39  ;;  %v783_v42 = vld [vmem:[#allocation3 + $0x488] sm:$0xff]  ;;  %v782_v40 = vld [vmem:[#allocation3 + $0x480] sm:$0xff] }
 0x114   :  { %v663_v33 = vld [vmem:[#allocation3 + $0xc8] sm:$0xff]  ;;  %v662_v47 = vld [vmem:[#allocation3 + $0xc0] sm:$0xff] }
 0x115   :  { %966 = vmatpush1.bf16.msra.mxu0 %v646_v6  ;;  %v791_v58 = vld [vmem:[#allocation3 + $0x4c8] sm:$0xff]  ;;  %v790_v41 = vld [vmem:[#allocation3 + $0x4c0] sm:$0xff] }
 0x116   :  { %1007 = vmatpush1.bf16.msra.mxu1 %v774_v56  ;;  %967 = vmatprep.subr.bf16.mxu0 %v655_v8  ;;  %v671_v48 = vld [vmem:[#allocation3 + $0x108] sm:$0xff]  ;;  %v670_v57 = vld [vmem:[#allocation3 + $0x100] sm:$0xff] }
 0x117   :  { %1008 = vmatprep.subr.bf16.mxu1 %v783_v42  ;;  %v799_v39 = vld [vmem:[#allocation3 + $0x508] sm:$0xff]  ;;  %v798_v56 = vld [vmem:[#allocation3 + $0x500] sm:$0xff] }
 0x118   :  { %v679_v6 = vld [vmem:[#allocation3 + $0x148] sm:$0xff] }
 0x119   :  { %968 = vmatpush1.bf16.msra.mxu0 %v654_v49  ;;  %v807_v42 = vld [vmem:[#allocation3 + $0x548] sm:$0xff]  ;;  %v678_v49 = vld [vmem:[#allocation3 + $0x140] sm:$0xff] }
 0x11a   :  { %1009 = vmatpush1.bf16.msra.mxu1 %v782_v40  ;;  %969 = vmatprep.subr.bf16.mxu0 %v663_v33  ;;  %v806_v40 = vld [vmem:[#allocation3 + $0x540] sm:$0xff]  ;;  %v687_v33 = vld [vmem:[#allocation3 + $0x188] sm:$0xff] }
 0x11b   :  { %1010 = vmatprep.subr.bf16.mxu1 %v791_v58  ;;  %v815_v8 = vld [vmem:[#allocation3 + $0x588] sm:$0xff]  ;;  %v686_v58 = vld [vmem:[#allocation3 + $0x180] sm:$0xff] }
 0x11c   :  { %v955_v34 = vld [vmem:[#allocation3 + $0x9e8] sm:$0xff] }
 0x11d   :  { %970 = vmatpush1.bf16.msra.mxu0 %v662_v47  ;;  %v814_v47 = vld [vmem:[#allocation3 + $0x580] sm:$0xff] }
 0x11e   :  { %1011 = vmatpush1.bf16.msra.mxu1 %v790_v41  ;;  %971 = vmatprep.subr.bf16.mxu0 %v671_v48  ;;  %v695_v41 = vld [vmem:[#allocation3 + $0x1c8] sm:$0xff] }
 0x11f   :  { %1012 = vmatprep.subr.bf16.mxu1 %v799_v39  ;;  %v823_v48 = vld [vmem:[#allocation3 + $0x5c8] sm:$0xff]  ;;  %v694_v39 = vld [vmem:[#allocation3 + $0x1c0] sm:$0xff] }
 0x121   :  { %972 = vmatpush1.bf16.msra.mxu0 %v670_v57  ;;  %v822_v57 = vld [vmem:[#allocation3 + $0x5c0] sm:$0xff] }
 0x122   :  { %1013 = vmatpush1.bf16.msra.mxu1 %v798_v56  ;;  %973 = vmatprep.subr.bf16.mxu0 %v679_v6  ;;  %v703_v56 = vld [vmem:[#allocation3 + $0x208] sm:$0xff] }
 0x123   :  { %1014 = vmatprep.subr.bf16.mxu1 %v807_v42  ;;  %v831_v6 = vld [vmem:[#allocation3 + $0x608] sm:$0xff]  ;;  %v702_v42 = vld [vmem:[#allocation3 + $0x200] sm:$0xff] }
 0x125   :  { %974 = vmatpush1.bf16.msra.mxu0 %v678_v49  ;;  %v830_v49 = vld [vmem:[#allocation3 + $0x600] sm:$0xff] }
 0x126   :  { %1015 = vmatpush1.bf16.msra.mxu1 %v806_v40  ;;  %975 = vmatprep.subr.bf16.mxu0 %v687_v33  ;;  %v711_v40 = vld [vmem:[#allocation3 + $0x248] sm:$0xff] }
 0x127   :  { %1016 = vmatprep.subr.bf16.mxu1 %v815_v8  ;;  %v839_v33 = vld [vmem:[#allocation3 + $0x648] sm:$0xff]  ;;  %v710_v8 = vld [vmem:[#allocation3 + $0x240] sm:$0xff] }
 0x129   :  { %976 = vmatpush1.bf16.msra.mxu0 %v686_v58  ;;  %v838_v58 = vld [vmem:[#allocation3 + $0x640] sm:$0xff] }
 0x12a   :  { %1017 = vmatpush1.bf16.msra.mxu1 %v814_v47  ;;  %977 = vmatprep.subr.bf16.mxu0 %v695_v41  ;;  %v719_v47 = vld [vmem:[#allocation3 + $0x288] sm:$0xff] }
 0x12b   :  { %1018 = vmatprep.subr.bf16.mxu1 %v823_v48  ;;  %v847_v41 = vld [vmem:[#allocation3 + $0x688] sm:$0xff]  ;;  %v718_v48 = vld [vmem:[#allocation3 + $0x280] sm:$0xff] }
 0x12d   :  { %978 = vmatpush1.bf16.msra.mxu0 %v694_v39  ;;  %v846_v39 = vld [vmem:[#allocation3 + $0x680] sm:$0xff] }
 0x12e   :  { %1019 = vmatpush1.bf16.msra.mxu1 %v822_v57  ;;  %979 = vmatprep.subr.bf16.mxu0 %v703_v56  ;;  %v727_v57 = vld [vmem:[#allocation3 + $0x2c8] sm:$0xff] }
 0x12f   :  { %1020 = vmatprep.subr.bf16.mxu1 %v831_v6  ;;  %v855_v56 = vld [vmem:[#allocation3 + $0x6c8] sm:$0xff]  ;;  %v726_v6 = vld [vmem:[#allocation3 + $0x2c0] sm:$0xff] }
 0x131   :  { %980 = vmatpush1.bf16.msra.mxu0 %v702_v42  ;;  %v854_v42 = vld [vmem:[#allocation3 + $0x6c0] sm:$0xff] }
 0x132   :  { %1021 = vmatpush1.bf16.msra.mxu1 %v830_v49  ;;  %981 = vmatprep.subr.bf16.mxu0 %v711_v40  ;;  %v735_v49 = vld [vmem:[#allocation3 + $0x308] sm:$0xff] }
 0x133   :  { %1022 = vmatprep.subr.bf16.mxu1 %v839_v33  ;;  %v863_v40 = vld [vmem:[#allocation3 + $0x708] sm:$0xff]  ;;  %v734_v33 = vld [vmem:[#allocation3 + $0x300] sm:$0xff] }
 0x135   :  { %982 = vmatpush1.bf16.msra.mxu0 %v710_v8  ;;  %v862_v8 = vld [vmem:[#allocation3 + $0x700] sm:$0xff] }
 0x136   :  { %1023 = vmatpush1.bf16.msra.mxu1 %v838_v58  ;;  %983 = vmatprep.subr.bf16.mxu0 %v719_v47  ;;  %v743_v58 = vld [vmem:[#allocation3 + $0x348] sm:$0xff] }
 0x137   :  { %1024 = vmatprep.subr.bf16.mxu1 %v847_v41  ;;  %v871_v47 = vld [vmem:[#allocation3 + $0x748] sm:$0xff]  ;;  %v742_v41 = vld [vmem:[#allocation3 + $0x340] sm:$0xff] }
 0x139   :  { %984 = vmatpush1.bf16.msra.mxu0 %v718_v48  ;;  %v870_v48 = vld [vmem:[#allocation3 + $0x740] sm:$0xff] }
 0x13a   :  { %1025 = vmatpush1.bf16.msra.mxu1 %v846_v39  ;;  %985 = vmatprep.subr.bf16.mxu0 %v727_v57  ;;  %v751_v39 = vld [vmem:[#allocation3 + $0x388] sm:$0xff] }
 0x13b   :  { %1026 = vmatprep.subr.bf16.mxu1 %v855_v56  ;;  %v879_v57 = vld [vmem:[#allocation3 + $0x788] sm:$0xff]  ;;  %v750_v56 = vld [vmem:[#allocation3 + $0x380] sm:$0xff] }
 0x13d   :  { %986 = vmatpush1.bf16.msra.mxu0 %v726_v6  ;;  %v878_v6 = vld [vmem:[#allocation3 + $0x780] sm:$0xff] }
 0x13e   :  { %1027 = vmatpush1.bf16.msra.mxu1 %v854_v42  ;;  %987 = vmatprep.subr.bf16.mxu0 %v735_v49  ;;  %v759_v42 = vld [vmem:[#allocation3 + $0x3c8] sm:$0xff] }
 0x13f   :  { %1028 = vmatprep.subr.bf16.mxu1 %v863_v40  ;;  %v887_v49 = vld [vmem:[#allocation3 + $0x7c8] sm:$0xff]  ;;  %v758_v40 = vld [vmem:[#allocation3 + $0x3c0] sm:$0xff] }
 0x141   :  { %988 = vmatpush1.bf16.msra.mxu0 %v734_v33  ;;  %v886_v33 = vld [vmem:[#allocation3 + $0x7c0] sm:$0xff] }
 0x142   :  { %1029 = vmatpush1.bf16.msra.mxu1 %v862_v8  ;;  %989 = vmatprep.subr.bf16.mxu0 %v743_v58  ;;  %v895_v8 = vld [vmem:[#allocation3 + $0x808] sm:$0xff]  ;;  %v641_v58 = vld [vmem:[#allocation3 + $0x18] sm:$0xff] }
 0x143   :  { %1030 = vmatprep.subr.bf16.mxu1 %v871_v47  ;;  %v5554_v47 = vpack.c.bf16 %v4882_v5, %v4882_v5  ;;  %v902_v5 = vld [vmem:[#allocation3 + $0x840] sm:$0xff] }
 0x145   :  { %990 = vmatpush1.bf16.msra.mxu0 %v742_v41  ;;  %v5558_v41 = vpack.c.bf16 %v4886_v7, %v4886_v7  ;;  %v911_v7 = vld [vmem:[#allocation3 + $0x888] sm:$0xff] }
 0x146   :  { %1031 = vmatpush1.bf16.msra.mxu1 %v870_v48  ;;  %991 = vmatprep.subr.bf16.mxu0 %v751_v39  ;;  %v894_v48 = vld [vmem:[#allocation3 + $0x800] sm:$0xff]  ;;  %v640_v39 = vld [vmem:[#allocation3 + $0x10] sm:$0xff] }
 0x147   :  { %1032 = vmatprep.subr.bf16.mxu1 %v879_v57  ;;  %v903_v57 = vld [vmem:[#allocation3 + $0x848] sm:$0xff] }
 0x149   :  { %992 = vmatpush1.bf16.msra.mxu0 %v750_v56  ;;  %v649_v56 = vld [vmem:[#allocation3 + $0x58] sm:$0xff] }
 0x14a   :  { %1033 = vmatpush1.bf16.msra.mxu1 %v878_v6  ;;  %993 = vmatprep.subr.bf16.mxu0 %v759_v42  ;;  %v648_v6 = vld [vmem:[#allocation3 + $0x50] sm:$0xff]  ;;  %v657_v42 = vld [vmem:[#allocation3 + $0x98] sm:$0xff] }
 0x14b   :  { %1034 = vmatprep.subr.bf16.mxu1 %v887_v49  ;;  %v6298_v49 = vmov 0  }
 0x14d   :  { %994 = vmatpush1.bf16.msra.mxu0 %v758_v40  ;;  %v910_v40 = vld [vmem:[#allocation3 + $0x880] sm:$0xff] }
 0x14e   :  { %1035 = vmatpush1.bf16.msra.mxu1 %v886_v33  ;;  %1045 = vmatprep.subr.bf16.mxu0 %v895_v8  ;;  %v656_v33 = vld [vmem:[#allocation3 + $0x90] sm:$0xff]  ;;  %v919_v8 = vld [vmem:[#allocation3 + $0x8c8] sm:$0xff] }
 0x14f   :  { %1086 = vmatprep.subr.bf16.mxu1 %v641_v58  ;;  %v665_v58 = vld [vmem:[#allocation3 + $0xd8] sm:$0xff] }
 0x150   :  { %996 = vmatmul.mubr.bf16.vlgmr.msra.gmra.mrb[0].mxu0 %v5554_v47 }
 0x151   :  { %1037 = vmatmul.mubr.bf16.vlgmr.msra.gmra.mrb[0].mxu1 %v5558_v41  ;;  %1046 = vmatpush1.bf16.msra.mxu0 %v894_v48  ;;  %v918_v48 = vld [vmem:[#allocation3 + $0x8c0] sm:$0xff] }
 0x152   :  { %1087 = vmatpush1.bf16.msra.mxu1 %v640_v39  ;;  %1047 = vmatprep.subr.bf16.mxu0 %v903_v57  ;;  %v664_v39 = vld [vmem:[#allocation3 + $0xd0] sm:$0xff]  ;;  %v927_v57 = vld [vmem:[#allocation3 + $0x908] sm:$0xff] }
 0x153   :  { %1088 = vmatprep.subr.bf16.mxu1 %v649_v56  ;;  %1077 = vmatprep.mubr.bf16.mxu0 %v6298_v49  ;;  %v673_v56 = vld [vmem:[#allocation3 + $0x118] sm:$0xff]  ;;  %v5566_v49 = vpack.c.bf16 %v4890_v9, %v4890_v9  ;;  %v720_v9 = vld [vmem:[#allocation3 + $0x290] sm:$0xff] }
 0x154   :  { %1118 = vmatprep.mubr.bf16.mxu1 %v5544_v50 }
 0x155   :  { %1048 = vmatpush1.bf16.msra.mxu0 %v902_v5  ;;  %v926_v5 = vld [vmem:[#allocation3 + $0x900] sm:$0xff] }
 0x156   :  { %1089 = vmatpush1.bf16.msra.mxu1 %v648_v6  ;;  %1049 = vmatprep.subr.bf16.mxu0 %v911_v7  ;;  %v672_v6 = vld [vmem:[#allocation3 + $0x110] sm:$0xff]  ;;  %v935_v7 = vld [vmem:[#allocation3 + $0x948] sm:$0xff] }
 0x157   :  { %1090 = vmatprep.subr.bf16.mxu1 %v657_v42  ;;  %v681_v42 = vld [vmem:[#allocation3 + $0x158] sm:$0xff] }
 0x159   :  { %1050 = vmatpush1.bf16.msra.mxu0 %v910_v40  ;;  %v934_v40 = vld [vmem:[#allocation3 + $0x940] sm:$0xff] }
 0x15a   :  { %1091 = vmatpush1.bf16.msra.mxu1 %v656_v33  ;;  %1051 = vmatprep.subr.bf16.mxu0 %v919_v8  ;;  %v680_v33 = vld [vmem:[#allocation3 + $0x150] sm:$0xff]  ;;  %v943_v8 = vld [vmem:[#allocation3 + $0x988] sm:$0xff] }
 0x15b   :  { %1092 = vmatprep.subr.bf16.mxu1 %v665_v58  ;;  %v689_v58 = vld [vmem:[#allocation3 + $0x198] sm:$0xff] }
 0x15d   :  { %1052 = vmatpush1.bf16.msra.mxu0 %v918_v48  ;;  %v942_v48 = vld [vmem:[#allocation3 + $0x980] sm:$0xff] }
 0x15e   :  { %1093 = vmatpush1.bf16.msra.mxu1 %v664_v39  ;;  %1053 = vmatprep.subr.bf16.mxu0 %v927_v57  ;;  %v688_v39 = vld [vmem:[#allocation3 + $0x190] sm:$0xff]  ;;  %v951_v57 = vld [vmem:[#allocation3 + $0x9c8] sm:$0xff] }
 0x15f   :  { %1094 = vmatprep.subr.bf16.mxu1 %v673_v56  ;;  %v697_v56 = vld [vmem:[#allocation3 + $0x1d8] sm:$0xff] }
 0x161   :  { %1054 = vmatpush1.bf16.msra.mxu0 %v926_v5  ;;  %v950_v5 = vld [vmem:[#allocation3 + $0x9c0] sm:$0xff] }
 0x162   :  { %1095 = vmatpush1.bf16.msra.mxu1 %v672_v6  ;;  %1055 = vmatprep.subr.bf16.mxu0 %v935_v7  ;;  %v696_v6 = vld [vmem:[#allocation3 + $0x1d0] sm:$0xff]  ;;  %v705_v7 = vld [vmem:[#allocation3 + $0x218] sm:$0xff] }
 0x163   :  { %1096 = vmatprep.subr.bf16.mxu1 %v681_v42  ;;  %v769_v42 = vld [vmem:[#allocation3 + $0x418] sm:$0xff] }
 0x165   :  { %1056 = vmatpush1.bf16.msra.mxu0 %v934_v40  ;;  %v704_v40 = vld [vmem:[#allocation3 + $0x210] sm:$0xff] }
 0x166   :  { %1097 = vmatpush1.bf16.msra.mxu1 %v680_v33  ;;  %1057 = vmatprep.subr.bf16.mxu0 %v943_v8  ;;  %v768_v33 = vld [vmem:[#allocation3 + $0x410] sm:$0xff]  ;;  %v713_v8 = vld [vmem:[#allocation3 + $0x258] sm:$0xff] }
 0x167   :  { %1098 = vmatprep.subr.bf16.mxu1 %v689_v58  ;;  %v777_v58 = vld [vmem:[#allocation3 + $0x458] sm:$0xff] }
 0x169   :  { %1058 = vmatpush1.bf16.msra.mxu0 %v942_v48  ;;  %v712_v48 = vld [vmem:[#allocation3 + $0x250] sm:$0xff] }
 0x16a   :  { %1099 = vmatpush1.bf16.msra.mxu1 %v688_v39  ;;  %1059 = vmatprep.subr.bf16.mxu0 %v951_v57  ;;  %v776_v39 = vld [vmem:[#allocation3 + $0x450] sm:$0xff]  ;;  %v721_v57 = vld [vmem:[#allocation3 + $0x298] sm:$0xff] }
 0x16b   :  { %1100 = vmatprep.subr.bf16.mxu1 %v697_v56  ;;  %v785_v56 = vld [vmem:[#allocation3 + $0x498] sm:$0xff] }
 0x16d   :  { %1060 = vmatpush1.bf16.msra.mxu0 %v950_v5  ;;  %v784_v5 = vld [vmem:[#allocation3 + $0x490] sm:$0xff] }
 0x16e   :  { %1101 = vmatpush1.bf16.msra.mxu1 %v696_v6  ;;  %1127 = vmatprep.subr.bf16.mxu0 %v769_v42  ;;  %v729_v6 = vld [vmem:[#allocation3 + $0x2d8] sm:$0xff]  ;;  %v728_v42 = vld [vmem:[#allocation3 + $0x2d0] sm:$0xff] }
 0x16f   :  { %1102 = vmatprep.subr.bf16.mxu1 %v705_v7  ;;  %v793_v7 = vld [vmem:[#allocation3 + $0x4d8] sm:$0xff] }
 0x170   :  { %1078 = vmatmul.mubr.bf16.vlgmr.msra.gmra.mrb[4].mxu0 %v5566_v49 }
 0x171   :  { %1128 = vmatpush1.bf16.msra.mxu0 %v768_v33  ;;  %1159 = vmatprep.mubr.bf16.mxu0 %v5548_v2  ;;  %v737_v33 = vld [vmem:[#allocation3 + $0x318] sm:$0xff] }
 0x172   :  { %1103 = vmatpush1.bf16.msra.mxu1 %v704_v40  ;;  %1129 = vmatprep.subr.bf16.mxu0 %v777_v58  ;;  %v792_v40 = vld [vmem:[#allocation3 + $0x4d0] sm:$0xff] }
 0x173   :  { %1104 = vmatprep.subr.bf16.mxu1 %v713_v8  ;;  %v801_v8 = vld [vmem:[#allocation3 + $0x518] sm:$0xff]  ;;  %v736_v58 = vld [vmem:[#allocation3 + $0x310] sm:$0xff] }
 0x175   :  { %1130 = vmatpush1.bf16.msra.mxu0 %v776_v39  ;;  %v745_v39 = vld [vmem:[#allocation3 + $0x358] sm:$0xff] }
 0x176   :  { %1105 = vmatpush1.bf16.msra.mxu1 %v712_v48  ;;  %1131 = vmatprep.subr.bf16.mxu0 %v785_v56  ;;  %v800_v48 = vld [vmem:[#allocation3 + $0x510] sm:$0xff] }
 0x177   :  { %1106 = vmatprep.subr.bf16.mxu1 %v721_v57  ;;  %v809_v57 = vld [vmem:[#allocation3 + $0x558] sm:$0xff]  ;;  %v744_v56 = vld [vmem:[#allocation3 + $0x350] sm:$0xff] }
 0x179   :  { %1132 = vmatpush1.bf16.msra.mxu0 %v784_v5  ;;  %v753_v5 = vld [vmem:[#allocation3 + $0x398] sm:$0xff] }
 0x17a   :  { %1107 = vmatpush1.bf16.msra.mxu1 %v720_v9  ;;  %1133 = vmatprep.subr.bf16.mxu0 %v793_v7  ;;  %v808_v9 = vld [vmem:[#allocation3 + $0x550] sm:$0xff] }
 0x17b   :  { %1108 = vmatprep.subr.bf16.mxu1 %v729_v6  ;;  %v817_v6 = vld [vmem:[#allocation3 + $0x598] sm:$0xff]  ;;  %v752_v7 = vld [vmem:[#allocation3 + $0x390] sm:$0xff] }
 0x17d   :  { %1134 = vmatpush1.bf16.msra.mxu0 %v792_v40  ;;  %v761_v40 = vld [vmem:[#allocation3 + $0x3d8] sm:$0xff] }
 0x17e   :  { %1109 = vmatpush1.bf16.msra.mxu1 %v728_v42  ;;  %1135 = vmatprep.subr.bf16.mxu0 %v801_v8  ;;  %v816_v42 = vld [vmem:[#allocation3 + $0x590] sm:$0xff] }
 0x17f   :  { %1110 = vmatprep.subr.bf16.mxu1 %v737_v33  ;;  %v825_v33 = vld [vmem:[#allocation3 + $0x5d8] sm:$0xff]  ;;  %v760_v8 = vld [vmem:[#allocation3 + $0x3d0] sm:$0xff] }
 0x181   :  { %1136 = vmatpush1.bf16.msra.mxu0 %v800_v48  ;;  %v833_v48 = vld [vmem:[#allocation3 + $0x618] sm:$0xff] }
 0x182   :  { %1111 = vmatpush1.bf16.msra.mxu1 %v736_v58  ;;  %1137 = vmatprep.subr.bf16.mxu0 %v809_v57  ;;  %v824_v58 = vld [vmem:[#allocation3 + $0x5d0] sm:$0xff] }
 0x183   :  { %1112 = vmatprep.subr.bf16.mxu1 %v745_v39  ;;  %v771_v39 = vld [vmem:[#allocation3 + $0x428] sm:$0xff]  ;;  %v832_v57 = vld [vmem:[#allocation3 + $0x610] sm:$0xff] }
 0x185   :  { %1138 = vmatpush1.bf16.msra.mxu0 %v808_v9  ;;  %v841_v9 = vld [vmem:[#allocation3 + $0x658] sm:$0xff] }
 0x186   :  { %1113 = vmatpush1.bf16.msra.mxu1 %v744_v56  ;;  %1139 = vmatprep.subr.bf16.mxu0 %v817_v6  ;;  %v770_v56 = vld [vmem:[#allocation3 + $0x420] sm:$0xff]  ;;  %v840_v6 = vld [vmem:[#allocation3 + $0x650] sm:$0xff] }
 0x187   :  { %1114 = vmatprep.subr.bf16.mxu1 %v753_v5  ;;  %v779_v5 = vld [vmem:[#allocation3 + $0x468] sm:$0xff] }
 0x189   :  { %1140 = vmatpush1.bf16.msra.mxu0 %v816_v42  ;;  %v849_v42 = vld [vmem:[#allocation3 + $0x698] sm:$0xff] }
 0x18a   :  { %1115 = vmatpush1.bf16.msra.mxu1 %v752_v7  ;;  %1141 = vmatprep.subr.bf16.mxu0 %v825_v33  ;;  %v778_v7 = vld [vmem:[#allocation3 + $0x460] sm:$0xff]  ;;  %v848_v33 = vld [vmem:[#allocation3 + $0x690] sm:$0xff] }
 0x18b   :  { %1116 = vmatprep.subr.bf16.mxu1 %v761_v40  ;;  %v787_v40 = vld [vmem:[#allocation3 + $0x4a8] sm:$0xff] }
 0x18d   :  { %1142 = vmatpush1.bf16.msra.mxu0 %v824_v58  ;;  %v857_v58 = vld [vmem:[#allocation3 + $0x6d8] sm:$0xff] }
 0x18e   :  { %1117 = vmatpush1.bf16.msra.mxu1 %v760_v8  ;;  %1143 = vmatprep.subr.bf16.mxu0 %v833_v48  ;;  %v786_v8 = vld [vmem:[#allocation3 + $0x4a0] sm:$0xff]  ;;  %v795_v48 = vld [vmem:[#allocation3 + $0x4e8] sm:$0xff] }
 0x18f   :  { %1250 = vmatprep.subr.bf16.mxu1 %v771_v39  ;;  %v856_v39 = vld [vmem:[#allocation3 + $0x6d0] sm:$0xff] }
 0x191   :  { %1119 = vmatmul.mubr.bf16.vlgmr.msra.gmra.mrb[4].mxu1 %v5554_v47  ;;  %1144 = vmatpush1.bf16.msra.mxu0 %v832_v57  ;;  %v794_v57 = vld [vmem:[#allocation3 + $0x4e0] sm:$0xff] }
 0x192   :  { %1251 = vmatpush1.bf16.msra.mxu1 %v770_v56  ;;  %1145 = vmatprep.subr.bf16.mxu0 %v841_v9  ;;  %v865_v56 = vld [vmem:[#allocation3 + $0x718] sm:$0xff]  ;;  %v803_v9 = vld [vmem:[#allocation3 + $0x528] sm:$0xff] }
 0x193   :  { %1252 = vmatprep.subr.bf16.mxu1 %v779_v5  ;;  %1282 = vmatprep.mubr.bf16.mxu1 %v5548_v2  ;;  %v864_v5 = vld [vmem:[#allocation3 + $0x710] sm:$0xff] }
 0x195   :  { %1146 = vmatpush1.bf16.msra.mxu0 %v840_v6  ;;  %v802_v6 = vld [vmem:[#allocation3 + $0x520] sm:$0xff] }
 0x196   :  { %1253 = vmatpush1.bf16.msra.mxu1 %v778_v7  ;;  %1147 = vmatprep.subr.bf16.mxu0 %v849_v42  ;;  %v873_v7 = vld [vmem:[#allocation3 + $0x758] sm:$0xff]  ;;  %v811_v42 = vld [vmem:[#allocation3 + $0x568] sm:$0xff] }
 0x197   :  { %1254 = vmatprep.subr.bf16.mxu1 %v787_v40  ;;  %v872_v40 = vld [vmem:[#allocation3 + $0x750] sm:$0xff] }
 0x199   :  { %1148 = vmatpush1.bf16.msra.mxu0 %v848_v33  ;;  %v810_v33 = vld [vmem:[#allocation3 + $0x560] sm:$0xff] }
 0x19a   :  { %1255 = vmatpush1.bf16.msra.mxu1 %v786_v8  ;;  %1149 = vmatprep.subr.bf16.mxu0 %v857_v58  ;;  %v881_v8 = vld [vmem:[#allocation3 + $0x798] sm:$0xff]  ;;  %v819_v58 = vld [vmem:[#allocation3 + $0x5a8] sm:$0xff] }
 0x19b   :  { %1256 = vmatprep.subr.bf16.mxu1 %v795_v48  ;;  %v880_v48 = vld [vmem:[#allocation3 + $0x790] sm:$0xff] }
 0x19d   :  { %1150 = vmatpush1.bf16.msra.mxu0 %v856_v39  ;;  %v818_v39 = vld [vmem:[#allocation3 + $0x5a0] sm:$0xff] }
 0x19e   :  { %1257 = vmatpush1.bf16.msra.mxu1 %v794_v57  ;;  %1151 = vmatprep.subr.bf16.mxu0 %v865_v56  ;;  %v889_v57 = vld [vmem:[#allocation3 + $0x7d8] sm:$0xff]  ;;  %v827_v56 = vld [vmem:[#allocation3 + $0x5e8] sm:$0xff] }
 0x19f   :  { %1258 = vmatprep.subr.bf16.mxu1 %v803_v9  ;;  %v888_v9 = vld [vmem:[#allocation3 + $0x7d0] sm:$0xff] }
 0x1a1   :  { %1152 = vmatpush1.bf16.msra.mxu0 %v864_v5  ;;  %v826_v5 = vld [vmem:[#allocation3 + $0x5e0] sm:$0xff] }
 0x1a2   :  { %1259 = vmatpush1.bf16.msra.mxu1 %v802_v6  ;;  %1153 = vmatprep.subr.bf16.mxu0 %v873_v7  ;;  %v897_v6 = vld [vmem:[#allocation3 + $0x818] sm:$0xff]  ;;  %v835_v7 = vld [vmem:[#allocation3 + $0x628] sm:$0xff] }
 0x1a3   :  { %1260 = vmatprep.subr.bf16.mxu1 %v811_v42  ;;  %v896_v42 = vld [vmem:[#allocation3 + $0x810] sm:$0xff] }
 0x1a5   :  { %1154 = vmatpush1.bf16.msra.mxu0 %v872_v40  ;;  %v834_v40 = vld [vmem:[#allocation3 + $0x620] sm:$0xff] }
 0x1a6   :  { %1261 = vmatpush1.bf16.msra.mxu1 %v810_v33  ;;  %1155 = vmatprep.subr.bf16.mxu0 %v881_v8  ;;  %v905_v33 = vld [vmem:[#allocation3 + $0x858] sm:$0xff]  ;;  %v843_v8 = vld [vmem:[#allocation3 + $0x668] sm:$0xff] }
 0x1a7   :  { %1262 = vmatprep.subr.bf16.mxu1 %v819_v58  ;;  %v904_v58 = vld [vmem:[#allocation3 + $0x850] sm:$0xff] }
 0x1a9   :  { %1156 = vmatpush1.bf16.msra.mxu0 %v880_v48  ;;  %v842_v48 = vld [vmem:[#allocation3 + $0x660] sm:$0xff] }
 0x1aa   :  { %1263 = vmatpush1.bf16.msra.mxu1 %v818_v39  ;;  %1157 = vmatprep.subr.bf16.mxu0 %v889_v57  ;;  %v913_v39 = vld [vmem:[#allocation3 + $0x898] sm:$0xff]  ;;  %v851_v57 = vld [vmem:[#allocation3 + $0x6a8] sm:$0xff] }
 0x1ab   :  { %1264 = vmatprep.subr.bf16.mxu1 %v827_v56  ;;  %v6583_v56 = vmov 0  }
 0x1ad   :  { %1158 = vmatpush1.bf16.msra.mxu0 %v888_v9  ;;  %v912_v9 = vld [vmem:[#allocation3 + $0x890] sm:$0xff] }
 0x1ae   :  { %1265 = vmatpush1.bf16.msra.mxu1 %v826_v5  ;;  %1168 = vmatprep.subr.bf16.mxu0 %v897_v6  ;;  %v850_v5 = vld [vmem:[#allocation3 + $0x6a0] sm:$0xff]  ;;  %v921_v6 = vld [vmem:[#allocation3 + $0x8d8] sm:$0xff] }
 0x1af   :  { %1266 = vmatprep.subr.bf16.mxu1 %v835_v7  ;;  %v859_v7 = vld [vmem:[#allocation3 + $0x6e8] sm:$0xff] }
 0x1b0   :  { %1160 = vmatmul.mubr.bf16.vlgmr.msra.gmra.mrb[8].mxu0 %v5558_v41 }
 0x1b1   :  { %1169 = vmatpush1.bf16.msra.mxu0 %v896_v42  ;;  %1200 = vmatprep.mubr.bf16.mxu0 %v6583_v56  ;;  %v920_v42 = vld [vmem:[#allocation3 + $0x8d0] sm:$0xff] }
 0x1b2   :  { %1267 = vmatpush1.bf16.msra.mxu1 %v834_v40  ;;  %1170 = vmatprep.subr.bf16.mxu0 %v905_v33  ;;  %v858_v40 = vld [vmem:[#allocation3 + $0x6e0] sm:$0xff]  ;;  %v929_v33 = vld [vmem:[#allocation3 + $0x918] sm:$0xff] }
 0x1b3   :  { %1268 = vmatprep.subr.bf16.mxu1 %v843_v8  ;;  %v867_v8 = vld [vmem:[#allocation3 + $0x728] sm:$0xff] }
 0x1b5   :  { %1171 = vmatpush1.bf16.msra.mxu0 %v904_v58  ;;  %v928_v58 = vld [vmem:[#allocation3 + $0x910] sm:$0xff] }
 0x1b6   :  { %1269 = vmatpush1.bf16.msra.mxu1 %v842_v48  ;;  %1172 = vmatprep.subr.bf16.mxu0 %v913_v39  ;;  %v866_v48 = vld [vmem:[#allocation3 + $0x720] sm:$0xff]  ;;  %v937_v39 = vld [vmem:[#allocation3 + $0x958] sm:$0xff] }
 0x1b7   :  { %1270 = vmatprep.subr.bf16.mxu1 %v851_v57  ;;  %v875_v57 = vld [vmem:[#allocation3 + $0x768] sm:$0xff] }
 0x1b9   :  { %1173 = vmatpush1.bf16.msra.mxu0 %v912_v9  ;;  %v936_v9 = vld [vmem:[#allocation3 + $0x950] sm:$0xff] }
 0x1ba   :  { %1271 = vmatpush1.bf16.msra.mxu1 %v850_v5  ;;  %1174 = vmatprep.subr.bf16.mxu0 %v921_v6  ;;  %v874_v5 = vld [vmem:[#allocation3 + $0x760] sm:$0xff]  ;;  %v945_v6 = vld [vmem:[#allocation3 + $0x998] sm:$0xff] }
 0x1bb   :  { %1272 = vmatprep.subr.bf16.mxu1 %v859_v7  ;;  %v883_v7 = vld [vmem:[#allocation3 + $0x7a8] sm:$0xff] }
 0x1bd   :  { %1175 = vmatpush1.bf16.msra.mxu0 %v920_v42  ;;  %v944_v42 = vld [vmem:[#allocation3 + $0x990] sm:$0xff] }
 0x1be   :  { %1273 = vmatpush1.bf16.msra.mxu1 %v858_v40  ;;  %1176 = vmatprep.subr.bf16.mxu0 %v929_v33  ;;  %v882_v40 = vld [vmem:[#allocation3 + $0x7a0] sm:$0xff]  ;;  %v953_v33 = vld [vmem:[#allocation3 + $0x9d8] sm:$0xff] }
 0x1bf   :  { %1274 = vmatprep.subr.bf16.mxu1 %v867_v8  ;;  %v891_v8 = vld [vmem:[#allocation3 + $0x7e8] sm:$0xff] }
 0x1c1   :  { %1177 = vmatpush1.bf16.msra.mxu0 %v928_v58  ;;  %v952_v58 = vld [vmem:[#allocation3 + $0x9d0] sm:$0xff] }
 0x1c2   :  { %1275 = vmatpush1.bf16.msra.mxu1 %v866_v48  ;;  %1178 = vmatprep.subr.bf16.mxu0 %v937_v39  ;;  %v890_v48 = vld [vmem:[#allocation3 + $0x7e0] sm:$0xff]  ;;  %v643_v39 = vld [vmem:[#allocation3 + $0x28] sm:$0xff] }
 0x1c3   :  { %1276 = vmatprep.subr.bf16.mxu1 %v875_v57  ;;  %v645_v57 = vld [vmem:[#allocation3 + $0x38] sm:$0xff] }
 0x1c5   :  { %1179 = vmatpush1.bf16.msra.mxu0 %v936_v9  ;;  %v642_v9 = vld [vmem:[#allocation3 + $0x20] sm:$0xff] }
 0x1c6   :  { %1277 = vmatpush1.bf16.msra.mxu1 %v874_v5  ;;  %1180 = vmatprep.subr.bf16.mxu0 %v945_v6  ;;  %v644_v5 = vld [vmem:[#allocation3 + $0x30] sm:$0xff]  ;;  %v651_v6 = vld [vmem:[#allocation3 + $0x68] sm:$0xff] }
 0x1c7   :  { %1278 = vmatprep.subr.bf16.mxu1 %v883_v7  ;;  %v653_v7 = vld [vmem:[#allocation3 + $0x78] sm:$0xff] }
 0x1c9   :  { %1181 = vmatpush1.bf16.msra.mxu0 %v944_v42  ;;  %v650_v42 = vld [vmem:[#allocation3 + $0x60] sm:$0xff] }
 0x1ca   :  { %1279 = vmatpush1.bf16.msra.mxu1 %v882_v40  ;;  %1182 = vmatprep.subr.bf16.mxu0 %v953_v33  ;;  %v652_v40 = vld [vmem:[#allocation3 + $0x70] sm:$0xff]  ;;  %v659_v33 = vld [vmem:[#allocation3 + $0xa8] sm:$0xff] }
 0x1cb   :  { %1280 = vmatprep.subr.bf16.mxu1 %v891_v8  ;;  %v661_v8 = vld [vmem:[#allocation3 + $0xb8] sm:$0xff] }
 0x1cd   :  { %1183 = vmatpush1.bf16.msra.mxu0 %v952_v58  ;;  %v658_v58 = vld [vmem:[#allocation3 + $0xa0] sm:$0xff] }
 0x1ce   :  { %1281 = vmatpush1.bf16.msra.mxu1 %v890_v48  ;;  %1209 = vmatprep.subr.bf16.mxu0 %v643_v39  ;;  %v660_v48 = vld [vmem:[#allocation3 + $0xb0] sm:$0xff]  ;;  %v667_v39 = vld [vmem:[#allocation3 + $0xe8] sm:$0xff] }
 0x1cf   :  { %1332 = vmatprep.subr.bf16.mxu1 %v645_v57  ;;  %v669_v57 = vld [vmem:[#allocation3 + $0xf8] sm:$0xff] }
 0x1d0   :  { %1201 = vmatmul.mubr.bf16.vlgmr.msra.gmra.mrb[12].mxu0 %v5566_v49 }
 0x1d1   :  { %1283 = vmatmul.mubr.bf16.vlgmr.msra.gmra.mrb[8].mxu1 %v5558_v41  ;;  %1210 = vmatpush1.bf16.msra.mxu0 %v642_v9  ;;  %v666_v9 = vld [vmem:[#allocation3 + $0xe0] sm:$0xff] }
 0x1d2   :  { %1333 = vmatpush1.bf16.msra.mxu1 %v644_v5  ;;  %1211 = vmatprep.subr.bf16.mxu0 %v651_v6  ;;  %v668_v5 = vld [vmem:[#allocation3 + $0xf0] sm:$0xff]  ;;  %v675_v6 = vld [vmem:[#allocation3 + $0x128] sm:$0xff] }
 0x1d3   :  { %1334 = vmatprep.subr.bf16.mxu1 %v653_v7  ;;  %1241 = vmatprep.mubr.bf16.mxu0 %v5544_v50  ;;  %v677_v7 = vld [vmem:[#allocation3 + $0x138] sm:$0xff] }
 0x1d4   :  { %1364 = vmatprep.mubr.bf16.mxu1 %v5544_v50  ;;  %v674_v50 = vld [vmem:[#allocation3 + $0x120] sm:$0xff] }
 0x1d5   :  { %1212 = vmatpush1.bf16.msra.mxu0 %v650_v42  ;;  %v676_v42 = vld [vmem:[#allocation3 + $0x130] sm:$0xff] }
 0x1d6   :  { %1335 = vmatpush1.bf16.msra.mxu1 %v652_v40  ;;  %1213 = vmatprep.subr.bf16.mxu0 %v659_v33  ;;  %v683_v40 = vld [vmem:[#allocation3 + $0x168] sm:$0xff]  ;;  %v685_v33 = vld [vmem:[#allocation3 + $0x178] sm:$0xff] }
 0x1d7   :  { %1336 = vmatprep.subr.bf16.mxu1 %v661_v8  ;;  %v682_v8 = vld [vmem:[#allocation3 + $0x160] sm:$0xff] }
 0x1d9   :  { %1214 = vmatpush1.bf16.msra.mxu0 %v658_v58  ;;  %v684_v58 = vld [vmem:[#allocation3 + $0x170] sm:$0xff] }
 0x1da   :  { %1337 = vmatpush1.bf16.msra.mxu1 %v660_v48  ;;  %1215 = vmatprep.subr.bf16.mxu0 %v667_v39  ;;  %v691_v48 = vld [vmem:[#allocation3 + $0x1a8] sm:$0xff]  ;;  %v693_v39 = vld [vmem:[#allocation3 + $0x1b8] sm:$0xff] }
 0x1db   :  { %1338 = vmatprep.subr.bf16.mxu1 %v669_v57  ;;  %v690_v57 = vld [vmem:[#allocation3 + $0x1a0] sm:$0xff] }
 0x1dd   :  { %1216 = vmatpush1.bf16.msra.mxu0 %v666_v9  ;;  %v692_v9 = vld [vmem:[#allocation3 + $0x1b0] sm:$0xff] }
 0x1de   :  { %1339 = vmatpush1.bf16.msra.mxu1 %v668_v5  ;;  %1217 = vmatprep.subr.bf16.mxu0 %v675_v6  ;;  %v699_v5 = vld [vmem:[#allocation3 + $0x1e8] sm:$0xff]  ;;  %v701_v6 = vld [vmem:[#allocation3 + $0x1f8] sm:$0xff] }
 0x1df   :  { %1340 = vmatprep.subr.bf16.mxu1 %v677_v7  ;;  %v698_v7 = vld [vmem:[#allocation3 + $0x1e0] sm:$0xff] }
 0x1e1   :  { %1218 = vmatpush1.bf16.msra.mxu0 %v674_v50  ;;  %v700_v50 = vld [vmem:[#allocation3 + $0x1f0] sm:$0xff] }
 0x1e2   :  { %1341 = vmatpush1.bf16.msra.mxu1 %v676_v42  ;;  %1219 = vmatprep.subr.bf16.mxu0 %v683_v40  ;;  %v707_v42 = vld [vmem:[#allocation3 + $0x228] sm:$0xff]  ;;  %v709_v40 = vld [vmem:[#allocation3 + $0x238] sm:$0xff] }
 0x1e3   :  { %1342 = vmatprep.subr.bf16.mxu1 %v685_v33  ;;  %v706_v33 = vld [vmem:[#allocation3 + $0x220] sm:$0xff] }
 0x1e5   :  { %1220 = vmatpush1.bf16.msra.mxu0 %v682_v8  ;;  %v708_v8 = vld [vmem:[#allocation3 + $0x230] sm:$0xff] }
 0x1e6   :  { %1343 = vmatpush1.bf16.msra.mxu1 %v684_v58  ;;  %1221 = vmatprep.subr.bf16.mxu0 %v691_v48  ;;  %v715_v58 = vld [vmem:[#allocation3 + $0x268] sm:$0xff]  ;;  %v717_v48 = vld [vmem:[#allocation3 + $0x278] sm:$0xff] }
 0x1e7   :  { %1344 = vmatprep.subr.bf16.mxu1 %v693_v39  ;;  %v714_v39 = vld [vmem:[#allocation3 + $0x260] sm:$0xff] }
 0x1e9   :  { %1222 = vmatpush1.bf16.msra.mxu0 %v690_v57  ;;  %v716_v57 = vld [vmem:[#allocation3 + $0x270] sm:$0xff] }
 0x1ea   :  { %1345 = vmatpush1.bf16.msra.mxu1 %v692_v9  ;;  %1223 = vmatprep.subr.bf16.mxu0 %v699_v5  ;;  %v723_v9 = vld [vmem:[#allocation3 + $0x2a8] sm:$0xff]  ;;  %v725_v5 = vld [vmem:[#allocation3 + $0x2b8] sm:$0xff] }
 0x1eb   :  { %1346 = vmatprep.subr.bf16.mxu1 %v701_v6  ;;  %v722_v6 = vld [vmem:[#allocation3 + $0x2a0] sm:$0xff] }
 0x1ed   :  { %1224 = vmatpush1.bf16.msra.mxu0 %v698_v7  ;;  %v724_v7 = vld [vmem:[#allocation3 + $0x2b0] sm:$0xff] }
 0x1ee   :  { %1347 = vmatpush1.bf16.msra.mxu1 %v700_v50  ;;  %1225 = vmatprep.subr.bf16.mxu0 %v707_v42  ;;  %v731_v50 = vld [vmem:[#allocation3 + $0x2e8] sm:$0xff]  ;;  %v733_v42 = vld [vmem:[#allocation3 + $0x2f8] sm:$0xff] }
 0x1ef   :  { %1348 = vmatprep.subr.bf16.mxu1 %v709_v40  ;;  %v730_v40 = vld [vmem:[#allocation3 + $0x2e0] sm:$0xff] }
 0x1f1   :  { %1226 = vmatpush1.bf16.msra.mxu0 %v706_v33  ;;  %v732_v33 = vld [vmem:[#allocation3 + $0x2f0] sm:$0xff] }
 0x1f2   :  { %1349 = vmatpush1.bf16.msra.mxu1 %v708_v8  ;;  %1227 = vmatprep.subr.bf16.mxu0 %v715_v58  ;;  %v739_v8 = vld [vmem:[#allocation3 + $0x328] sm:$0xff]  ;;  %v741_v58 = vld [vmem:[#allocation3 + $0x338] sm:$0xff] }
 0x1f3   :  { %1350 = vmatprep.subr.bf16.mxu1 %v717_v48  ;;  %v738_v48 = vld [vmem:[#allocation3 + $0x320] sm:$0xff] }
 0x1f5   :  { %1228 = vmatpush1.bf16.msra.mxu0 %v714_v39  ;;  %v740_v39 = vld [vmem:[#allocation3 + $0x330] sm:$0xff] }
 0x1f6   :  { %1351 = vmatpush1.bf16.msra.mxu1 %v716_v57  ;;  %1229 = vmatprep.subr.bf16.mxu0 %v723_v9  ;;  %v747_v57 = vld [vmem:[#allocation3 + $0x368] sm:$0xff]  ;;  %v749_v9 = vld [vmem:[#allocation3 + $0x378] sm:$0xff] }
 0x1f7   :  { %1352 = vmatprep.subr.bf16.mxu1 %v725_v5  ;;  %v746_v5 = vld [vmem:[#allocation3 + $0x360] sm:$0xff] }
 0x1f9   :  { %1230 = vmatpush1.bf16.msra.mxu0 %v722_v6  ;;  %v748_v6 = vld [vmem:[#allocation3 + $0x370] sm:$0xff] }
 0x1fa   :  { %1353 = vmatpush1.bf16.msra.mxu1 %v724_v7  ;;  %1231 = vmatprep.subr.bf16.mxu0 %v731_v50  ;;  %v755_v7 = vld [vmem:[#allocation3 + $0x3a8] sm:$0xff]  ;;  %v757_v50 = vld [vmem:[#allocation3 + $0x3b8] sm:$0xff] }
 0x1fb   :  { %1354 = vmatprep.subr.bf16.mxu1 %v733_v42  ;;  %v754_v42 = vld [vmem:[#allocation3 + $0x3a0] sm:$0xff] }
 0x1fd   :  { %1232 = vmatpush1.bf16.msra.mxu0 %v730_v40  ;;  %v756_v40 = vld [vmem:[#allocation3 + $0x3b0] sm:$0xff] }
 0x1fe   :  { %1355 = vmatpush1.bf16.msra.mxu1 %v732_v33  ;;  %1233 = vmatprep.subr.bf16.mxu0 %v739_v8  ;;  %v763_v33 = vld [vmem:[#allocation3 + $0x3e8] sm:$0xff]  ;;  %v765_v8 = vld [vmem:[#allocation3 + $0x3f8] sm:$0xff] }
 0x1ff   :  { %1356 = vmatprep.subr.bf16.mxu1 %v741_v58  ;;  %v762_v58 = vld [vmem:[#allocation3 + $0x3e0] sm:$0xff] }
 0x201   :  { %1234 = vmatpush1.bf16.msra.mxu0 %v738_v48  ;;  %v764_v48 = vld [vmem:[#allocation3 + $0x3f0] sm:$0xff] }
 0x202   :  { %1357 = vmatpush1.bf16.msra.mxu1 %v740_v39  ;;  %1235 = vmatprep.subr.bf16.mxu0 %v747_v57  ;;  %v899_v39 = vld [vmem:[#allocation3 + $0x828] sm:$0xff]  ;;  %v901_v57 = vld [vmem:[#allocation3 + $0x838] sm:$0xff] }
 0x203   :  { %1358 = vmatprep.subr.bf16.mxu1 %v749_v9  ;;  %v898_v9 = vld [vmem:[#allocation3 + $0x820] sm:$0xff] }
 0x205   :  { %1236 = vmatpush1.bf16.msra.mxu0 %v746_v5  ;;  %v900_v5 = vld [vmem:[#allocation3 + $0x830] sm:$0xff] }
 0x206   :  { %1359 = vmatpush1.bf16.msra.mxu1 %v748_v6  ;;  %1237 = vmatprep.subr.bf16.mxu0 %v755_v7  ;;  %v907_v6 = vld [vmem:[#allocation3 + $0x868] sm:$0xff]  ;;  %v909_v7 = vld [vmem:[#allocation3 + $0x878] sm:$0xff] }
 0x207   :  { %1360 = vmatprep.subr.bf16.mxu1 %v757_v50  ;;  %v906_v50 = vld [vmem:[#allocation3 + $0x860] sm:$0xff] }
 0x209   :  { %1238 = vmatpush1.bf16.msra.mxu0 %v754_v42  ;;  %v908_v42 = vld [vmem:[#allocation3 + $0x870] sm:$0xff] }
 0x20a   :  { %1361 = vmatpush1.bf16.msra.mxu1 %v756_v40  ;;  %1239 = vmatprep.subr.bf16.mxu0 %v763_v33  ;;  %v915_v40 = vld [vmem:[#allocation3 + $0x8a8] sm:$0xff]  ;;  %v917_v33 = vld [vmem:[#allocation3 + $0x8b8] sm:$0xff] }
 0x20b   :  { %1362 = vmatprep.subr.bf16.mxu1 %v765_v8  ;;  %v914_v8 = vld [vmem:[#allocation3 + $0x8a0] sm:$0xff] }
 0x20d   :  { %1240 = vmatpush1.bf16.msra.mxu0 %v762_v58  ;;  %v916_v58 = vld [vmem:[#allocation3 + $0x8b0] sm:$0xff] }
 0x20e   :  { %1363 = vmatpush1.bf16.msra.mxu1 %v764_v48  ;;  %1291 = vmatprep.subr.bf16.mxu0 %v899_v39  ;;  %v923_v48 = vld [vmem:[#allocation3 + $0x8e8] sm:$0xff]  ;;  %v922_v39 = vld [vmem:[#allocation3 + $0x8e0] sm:$0xff] }
 0x20f   :  { %1414 = vmatprep.subr.bf16.mxu1 %v901_v57  ;;  %v924_v57 = vld [vmem:[#allocation3 + $0x8f0] sm:$0xff] }
 0x210   :  { %1242 = vmatmul.mubr.bf16.vlgmr.msra.gmra.mrb[16].mxu0 %v5554_v47 }
 0x211   :  { %1365 = vmatmul.mubr.bf16.vlgmr.msra.gmra.mrb[12].mxu1 %v5554_v47  ;;  %1292 = vmatpush1.bf16.msra.mxu0 %v898_v9  ;;  %v925_v47 = vld [vmem:[#allocation3 + $0x8f8] sm:$0xff]  ;;  %v931_v9 = vld [vmem:[#allocation3 + $0x928] sm:$0xff] }
 0x212   :  { %1415 = vmatpush1.bf16.msra.mxu1 %v900_v5  ;;  %1293 = vmatprep.subr.bf16.mxu0 %v907_v6  ;;  %v933_v5 = vld [vmem:[#allocation3 + $0x938] sm:$0xff]  ;;  %v930_v6 = vld [vmem:[#allocation3 + $0x920] sm:$0xff] }
 0x213   :  { %1416 = vmatprep.subr.bf16.mxu1 %v909_v7  ;;  %1323 = vmatprep.mubr.bf16.mxu0 %v6583_v56  ;;  %v932_v7 = vld [vmem:[#allocation3 + $0x930] sm:$0xff] }
 0x214   :  { %1446 = vmatprep.mubr.bf16.mxu1 %v6583_v56 }
 0x215   :  { %1294 = vmatpush1.bf16.msra.mxu0 %v906_v50  ;;  %v939_v50 = vld [vmem:[#allocation3 + $0x968] sm:$0xff] }
 0x216   :  { %1417 = vmatpush1.bf16.msra.mxu1 %v908_v42  ;;  %1295 = vmatprep.subr.bf16.mxu0 %v915_v40  ;;  %v941_v42 = vld [vmem:[#allocation3 + $0x978] sm:$0xff]  ;;  %v938_v40 = vld [vmem:[#allocation3 + $0x960] sm:$0xff] }
 0x217   :  { %1418 = vmatprep.subr.bf16.mxu1 %v917_v33  ;;  %v940_v33 = vld [vmem:[#allocation3 + $0x970] sm:$0xff] }
 0x219   :  { %1296 = vmatpush1.bf16.msra.mxu0 %v914_v8 }
 0x21a   :  { %1419 = vmatpush1.bf16.msra.mxu1 %v916_v58  ;;  %1297 = vmatprep.subr.bf16.mxu0 %v923_v48  ;;  %v947_v48 = vld [vmem:[#allocation3 + $0x9a8] sm:$0xff] }
 0x21b   :  { %1420 = vmatprep.subr.bf16.mxu1 %v925_v47  ;;  %v949_v47 = vld [vmem:[#allocation3 + $0x9b8] sm:$0xff] }
 0x21d   :  { %1298 = vmatpush1.bf16.msra.mxu0 %v922_v39 }
 0x21e   :  { %1421 = vmatpush1.bf16.msra.mxu1 %v924_v57  ;;  %1299 = vmatprep.subr.bf16.mxu0 %v931_v9 }
 0x21f   :  { %1422 = vmatprep.subr.bf16.mxu1 %v933_v5 }
 0x221   :  { %1300 = vmatpush1.bf16.msra.mxu0 %v930_v6 }
 0x222   :  { %1423 = vmatpush1.bf16.msra.mxu1 %v932_v7  ;;  %1301 = vmatprep.subr.bf16.mxu0 %v939_v50  ;;  %v946_v7 = vld [vmem:[#allocation3 + $0x9a0] sm:$0xff]  ;;  %v948_v50 = vld [vmem:[#allocation3 + $0x9b0] sm:$0xff] }
 0x223   :  { %1424 = vmatprep.subr.bf16.mxu1 %v941_v42  ;;  %v997_v8 = vpop.f32.mrb[0].mxu0 }
 0x224   :  { %v1038_v58 = vpop.f32.mrb[0].mxu1  ;;  %v999_v39 = vpop.f32.mrb[1].mxu0 }
 0x225   :  { %v5582_v56 = vadd.f32 %v1038_v58, %v997_v8  ;;  %v1040_v57 = vpop.f32.mrb[1].mxu1  ;;  %v1001_v5 = vpop.f32.mrb[2].mxu0  ;;  %1302 = vmatpush1.bf16.msra.mxu0 %v938_v40  ;;  %v954_v8 = vld [vmem:[#allocation3 + $0x9e0] sm:$0xff]  ;;  %v956_v58 = vld [vmem:[#allocation3 + $0x9f0] sm:$0xff]  ;;  %v781_v40 = vld [vmem:[#allocation3 + $0x478] sm:$0xff] }
 0x226   :  { %v5584_v9 = vadd.f32 %v1040_v57, %v999_v39  ;;  %1425 = vmatpush1.bf16.msra.mxu1 %v940_v33  ;;  %v1042_v31 = vpop.f32.mrb[2].mxu1  ;;  %v1002_v6 = vpop.f32.mrb[3].mxu0  ;;  %1303 = vmatprep.subr.bf16.mxu0 %v947_v48  ;;  %v773_v39 = vld [vmem:[#allocation3 + $0x438] sm:$0xff] }
 0x227   :  { %1426 = vmatprep.subr.bf16.mxu1 %v949_v47  ;;  %v1043_v42 = vpop.f32.mrb[3].mxu1  ;;  %v772_v31 = vld [vmem:[#allocation3 + $0x430] sm:$0xff]  ;;  %v821_v33 = vld [vmem:[#allocation3 + $0x5b8] sm:$0xff] }
 0x228   :  { %v837_v57 = vld [vmem:[#allocation3 + $0x638] sm:$0xff] }
 0x229   :  { %1304 = vmatpush1.bf16.msra.mxu0 %v946_v7  ;;  %v893_v7 = vld [vmem:[#allocation3 + $0x7f8] sm:$0xff] }
 0x22a   :  { %1427 = vmatpush1.bf16.msra.mxu1 %v948_v50  ;;  %1305 = vmatprep.subr.bf16.mxu0 %v955_v34  ;;  %v789_v34 = vld [vmem:[#allocation3 + $0x4b8] sm:$0xff] }
 0x22b   :  { %1428 = vmatprep.subr.bf16.mxu1 %v957_v32  ;;  %v780_v32 = vld [vmem:[#allocation3 + $0x470] sm:$0xff] }
 0x22d   :  { %1306 = vmatpush1.bf16.msra.mxu0 %v954_v8 }
 0x22e   :  { %1429 = vmatpush1.bf16.msra.mxu1 %v956_v58  ;;  %1373 = vmatprep.subr.bf16.mxu0 %v773_v39  ;;  %v6598_v39 = vld [vmem:[#allocation78_spill] sm:$0xff] }
 0x22f   :  { %1496 = vmatprep.subr.bf16.mxu1 %v5160_v28  ;;  %v788_v28 = vld [vmem:[#allocation3 + $0x4b0] sm:$0xff] }
 0x230   :  { %1324 = vmatmul.mubr.bf16.vlgmr.msra.gmra.mrb[20].mxu0 %v5566_v49 }
 0x231   :  { %1447 = vmatmul.mubr.bf16.vlgmr.msra.gmra.mrb[16].mxu1 %v5566_v49  ;;  %1374 = vmatpush1.bf16.msra.mxu0 %v772_v31  ;;  %v797_v49 = vld [vmem:[#allocation3 + $0x4f8] sm:$0xff]  ;;  %v6599_v31 = vld [vmem:[#allocation80_spill] sm:$0xff] }
 0x232   :  { %1497 = vmatpush1.bf16.msra.mxu1 %v5158_v30  ;;  %1375 = vmatprep.subr.bf16.mxu0 %v781_v40  ;;  %v805_v30 = vld [vmem:[#allocation3 + $0x538] sm:$0xff] }
 0x233   :  { %1498 = vmatprep.subr.bf16.mxu1 %v5176_v20  ;;  %1405 = vmatprep.mubr.bf16.mxu0 %v5548_v2  ;;  %v796_v20 = vld [vmem:[#allocation3 + $0x4f0] sm:$0xff]  ;;  %v813_v2 = vld [vmem:[#allocation3 + $0x578] sm:$0xff] }
 0x234   :  { %1528 = vmatprep.mubr.bf16.mxu1 %v4898_v13 }
 0x235   :  { %1376 = vmatpush1.bf16.msra.mxu0 %v780_v32  ;;  %v6600_v32 = vld [vmem:[#allocation87_spill] sm:$0xff] }
 0x236   :  { %1499 = vmatpush1.bf16.msra.mxu1 %v5174_v22  ;;  %1377 = vmatprep.subr.bf16.mxu0 %v789_v34  ;;  %v804_v22 = vld [vmem:[#allocation3 + $0x530] sm:$0xff] }
 0x237   :  { %1500 = vmatprep.subr.bf16.mxu1 %v5192_v46  ;;  %v6601_v34 = vld [vmem:[#allocation89_spill] sm:$0xff] }
 0x239   :  { %1378 = vmatpush1.bf16.msra.mxu0 %v788_v28  ;;  %v6602_v28 = vld [vmem:[#allocation86_spill] sm:$0xff] }
 0x23a   :  { %1501 = vmatpush1.bf16.msra.mxu1 %v5190_v36  ;;  %1379 = vmatprep.subr.bf16.mxu0 %v797_v49  ;;  %v812_v36 = vld [vmem:[#allocation3 + $0x570] sm:$0xff] }
 0x23b   :  { %1502 = vmatprep.subr.bf16.mxu1 %v5208_v38  ;;  %v6603_v49 = vld [vmem:[#allocation88_spill] sm:$0xff] }
 0x23d   :  { %1380 = vmatpush1.bf16.msra.mxu0 %v796_v20  ;;  %v6604_v20 = vld [vmem:[#allocation95_spill] sm:$0xff] }
 0x23e   :  { %1503 = vmatpush1.bf16.msra.mxu1 %v5206_v21  ;;  %1381 = vmatprep.subr.bf16.mxu0 %v805_v30  ;;  %v6605_v30 = vld [vmem:[#allocation97_spill] sm:$0xff] }
 0x23f   :  { %1504 = vmatprep.subr.bf16.mxu1 %v5224_v29 }
 0x241   :  { %1382 = vmatpush1.bf16.msra.mxu0 %v804_v22  ;;  %v6606_v22 = vld [vmem:[#allocation94_spill] sm:$0xff] }
 0x242   :  { %1505 = vmatpush1.bf16.msra.mxu1 %v5222_v14  ;;  %1383 = vmatprep.subr.bf16.mxu0 %v813_v2  ;;  %v820_v14 = vld [vmem:[#allocation3 + $0x5b0] sm:$0xff] }
 0x243   :  { %1506 = vmatprep.subr.bf16.mxu1 %v5240_v44  ;;  %v1079_v46 = vpop.f32.mrb[4].mxu0  ;;  %v829_v44 = vld [vmem:[#allocation3 + $0x5f8] sm:$0xff]  ;;  %v6607_v2 = vld [vmem:[#allocation96_spill] sm:$0xff] }
 0x244   :  { %v5602_v38 = vadd.f32 %v1079_v46, %v5582_v56  ;;  %v1081_v48 = vpop.f32.mrb[5].mxu0  ;;  %v828_v56 = vld [vmem:[#allocation3 + $0x5f0] sm:$0xff] }
 0x245   :  { %v5605_v21 = vadd.f32 %v1081_v48, %v5584_v9  ;;  %v1083_v47 = vpop.f32.mrb[6].mxu0  ;;  %1384 = vmatpush1.bf16.msra.mxu0 %v812_v36  ;;  %v845_v9 = vld [vmem:[#allocation3 + $0x678] sm:$0xff]  ;;  %v6608_v36 = vld [vmem:[#allocation103_spill] sm:$0xff]  ;;  %v6611_v48 = vld [vmem:[#allocation104_spill] sm:$0xff] }
 0x246   :  { %1507 = vmatpush1.bf16.msra.mxu1 %v5238_v19  ;;  %v1084_v29 = vpop.f32.mrb[7].mxu0  ;;  %1385 = vmatprep.subr.bf16.mxu0 %v821_v33  ;;  %v836_v19 = vld [vmem:[#allocation3 + $0x630] sm:$0xff]  ;;  %v6610_v33 = vld [vmem:[#allocation102_spill] sm:$0xff]  ;;  %v6612_v47 = vld [vmem:[#allocation111_spill] sm:$0xff] }
 0x247   :  { %1508 = vmatprep.subr.bf16.mxu1 %v5256_v37  ;;  %v853_v37 = vld [vmem:[#allocation3 + $0x6b8] sm:$0xff] }
 0x248   :  { %v6609_v46 = vld [vmem:[#allocation105_spill] sm:$0xff] }
 0x249   :  { %1386 = vmatpush1.bf16.msra.mxu0 %v820_v14  ;;  %v6613_v29 = vld [vmem:[#allocation113_spill] sm:$0xff]  ;;  %v6614_v14 = vld [vmem:[#allocation110_spill] sm:$0xff] }
 0x24a   :  { %1509 = vmatpush1.bf16.msra.mxu1 %v5254_v10  ;;  %1387 = vmatprep.subr.bf16.mxu0 %v829_v44  ;;  %v844_v10 = vld [vmem:[#allocation3 + $0x670] sm:$0xff] }
 0x24b   :  { %1510 = vmatprep.subr.bf16.mxu1 %v5272_v52  ;;  %v852_v52 = vld [vmem:[#allocation3 + $0x6b0] sm:$0xff] }
 0x24c   :  { %v6615_v44 = vld [vmem:[#allocation112_spill] sm:$0xff] }
 0x24d   :  { %1388 = vmatpush1.bf16.msra.mxu0 %v828_v56  ;;  %v6616_v56 = vld [vmem:[#allocation119_spill] sm:$0xff] }
 0x24e   :  { %1511 = vmatpush1.bf16.msra.mxu1 %v5270_v54  ;;  %1389 = vmatprep.subr.bf16.mxu0 %v837_v57  ;;  %v861_v54 = vld [vmem:[#allocation3 + $0x6f8] sm:$0xff] }
 0x24f   :  { %1512 = vmatprep.subr.bf16.mxu1 %v5288_v45  ;;  %v869_v45 = vld [vmem:[#allocation3 + $0x738] sm:$0xff] }
 0x250   :  { %v6617_v57 = vld [vmem:[#allocation121_spill] sm:$0xff] }
 0x251   :  { %1390 = vmatpush1.bf16.msra.mxu0 %v836_v19  ;;  %v6618_v19 = vld [vmem:[#allocation118_spill] sm:$0xff] }
 0x252   :  { %1513 = vmatpush1.bf16.msra.mxu1 %v5286_v27  ;;  %1391 = vmatprep.subr.bf16.mxu0 %v845_v9  ;;  %v860_v27 = vld [vmem:[#allocation3 + $0x6f0] sm:$0xff] }
 0x253   :  { %1514 = vmatprep.subr.bf16.mxu1 %v5304_v4  ;;  %v877_v4 = vld [vmem:[#allocation3 + $0x778] sm:$0xff]  ;;  %v6619_v9 = vld [vmem:[#allocation120_spill] sm:$0xff] }
 0x255   :  { %1392 = vmatpush1.bf16.msra.mxu0 %v844_v10  ;;  %v6620_v10 = vld [vmem:[#allocation127_spill] sm:$0xff] }
 0x256   :  { %1515 = vmatpush1.bf16.msra.mxu1 %v5302_v3  ;;  %1393 = vmatprep.subr.bf16.mxu0 %v853_v37  ;;  %v868_v3 = vld [vmem:[#allocation3 + $0x730] sm:$0xff] }
 0x257   :  { %1516 = vmatprep.subr.bf16.mxu1 %v5320_v53  ;;  %v885_v53 = vld [vmem:[#allocation3 + $0x7b8] sm:$0xff] }
 0x258   :  { %v6621_v37 = vld [vmem:[#allocation129_spill] sm:$0xff] }
 0x259   :  { %1394 = vmatpush1.bf16.msra.mxu0 %v852_v52  ;;  %v6622_v52 = vld [vmem:[#allocation126_spill] sm:$0xff] }
 0x25a   :  { %1517 = vmatpush1.bf16.msra.mxu1 %v5318_v35  ;;  %1395 = vmatprep.subr.bf16.mxu0 %v861_v54  ;;  %v876_v35 = vld [vmem:[#allocation3 + $0x770] sm:$0xff] }
 0x25b   :  { %1518 = vmatprep.subr.bf16.mxu1 %v5336_v60  ;;  %v6623_v54 = vld [vmem:[#allocation128_spill] sm:$0xff] }
 0x25d   :  { %1396 = vmatpush1.bf16.msra.mxu0 %v860_v27  ;;  %v6624_v27 = vld [vmem:[#allocation135_spill] sm:$0xff] }
 0x25e   :  { %1519 = vmatpush1.bf16.msra.mxu1 %v5334_v59  ;;  %1397 = vmatprep.subr.bf16.mxu0 %v869_v45  ;;  %v884_v59 = vld [vmem:[#allocation3 + $0x7b0] sm:$0xff] }
 0x25f   :  { %1520 = vmatprep.subr.bf16.mxu1 %v5352_v61  ;;  %v6625_v45 = vld [vmem:[#allocation137_spill] sm:$0xff] }
 0x261   :  { %1398 = vmatpush1.bf16.msra.mxu0 %v868_v3  ;;  %v6626_v3 = vld [vmem:[#allocation134_spill] sm:$0xff] }
 0x262   :  { %1521 = vmatpush1.bf16.msra.mxu1 %v5350_v43  ;;  %1399 = vmatprep.subr.bf16.mxu0 %v877_v4  ;;  %v892_v43 = vld [vmem:[#allocation3 + $0x7f0] sm:$0xff] }
 0x263   :  { %1522 = vmatprep.subr.bf16.mxu1 %v5368_v63  ;;  %v6595_v63 = vld [vmem:[#allocation72_spill] sm:$0xff] }
 0x264   :  { %v1120_v5 = vpop.f32.mrb[4].mxu1  ;;  %v6627_v4 = vld [vmem:[#allocation136_spill] sm:$0xff] }
 0x265   :  { %v1122_v60 = vpop.f32.mrb[5].mxu1  ;;  %1400 = vmatpush1.bf16.msra.mxu0 %v876_v35  ;;  %v6628_v35 = vld [vmem:[#allocation143_spill] sm:$0xff] }
 0x266   :  { %1523 = vmatpush1.bf16.msra.mxu1 %v5366_v62  ;;  %v1124_v6 = vpop.f32.mrb[6].mxu1  ;;  %1401 = vmatprep.subr.bf16.mxu0 %v885_v53  ;;  %v6592_v62 = vld [vmem:[#allocation71_spill] sm:$0xff]  ;;  %v6629_v53 = vld [vmem:[#allocation145_spill] sm:$0xff] }
 0x267   :  { %1524 = vmatprep.subr.bf16.mxu1 %v5384_v0  ;;  %v1125_v61 = vpop.f32.mrb[7].mxu1  ;;  %v6596_v0 = vld [vmem:[#allocation79_spill] sm:$0xff] }
 0x269   :  { %1402 = vmatpush1.bf16.msra.mxu0 %v884_v59 }
 0x26a   :  { %1525 = vmatpush1.bf16.msra.mxu1 %v5382_v51  ;;  %1403 = vmatprep.subr.bf16.mxu0 %v893_v7  ;;  %v6586_v51 = vld [vmem:[#allocation54_spill] sm:$0xff] }
 0x26b   :  { %1526 = vmatprep.subr.bf16.mxu1 %v5400_v55  ;;  %v6591_v55 = vld [vmem:[#allocation64_spill] sm:$0xff] }
 0x26d   :  { %1404 = vmatpush1.bf16.msra.mxu0 %v892_v43 }
 0x26e   :  { %1527 = vmatpush1.bf16.msra.mxu1 %v5398_v1  ;;  %1455 = vmatprep.subr.bf16.mxu0 %v4904_v16  ;;  %v6584_v16 = vld [vmem:[#allocation55_spill] sm:$0xff]  ;;  %v6597_v1 = vld [vmem:[#allocation81_spill] sm:$0xff] }
 0x26f   :  { %1578 = vmatprep.subr.bf16.mxu1 %v4908_v18  ;;  %v6585_v18 = vld [vmem:[#allocation57_spill] sm:$0xff] }
 0x270   :  { %1406 = vmatmul.mubr.bf16.vlgmr.msra.gmra.mrb[24].mxu0 %v5558_v41 }
 0x271   :  { %1529 = vmatmul.mubr.bf16.vlgmr.msra.gmra.mrb[20].mxu1 %v4896_v12  ;;  %1456 = vmatpush1.bf16.msra.mxu0 %v4902_v15  ;;  %v6587_v15 = vld [vmem:[#allocation56_spill] sm:$0xff] }
 0x272   :  { %1579 = vmatpush1.bf16.msra.mxu1 %v4906_v17  ;;  %1457 = vmatprep.subr.bf16.mxu0 %v4920_v24  ;;  %v6588_v17 = vld [vmem:[#allocation63_spill] sm:$0xff]  ;;  %v6589_v24 = vld [vmem:[#allocation65_spill] sm:$0xff] }
 0x273   :  { %1580 = vmatprep.subr.bf16.mxu1 %v4924_v26  ;;  %1487 = vmatprep.mubr.bf16.mxu0 %v4894_v11  ;;  %v6590_v26 = vld [vmem:[#allocation62_spill] sm:$0xff] }
 0x274   :  { %1610 = vmatprep.mubr.bf16.mxu1 %v4894_v11 }
 0x275   :  { %1458 = vmatpush1.bf16.msra.mxu0 %v4918_v23  ;;  %v6593_v23 = vld [vmem:[#allocation73_spill] sm:$0xff] }
 0x276   :  { %1581 = vmatpush1.bf16.msra.mxu1 %v4922_v25  ;;  %1459 = vmatprep.subr.bf16.mxu0 %v6584_v16  ;;  %v6594_v25 = vld [vmem:[#allocation70_spill] sm:$0xff] }
 0x277   :  { %1582 = vmatprep.subr.bf16.mxu1 %v6585_v18  ;;  %v6630_v16 = vld [vmem:[#allocation142_spill] sm:$0xff]  ;;  %v6631_v18 = vld [vmem:[#allocation144_spill] sm:$0xff] }
 0x279   :  { %1460 = vmatpush1.bf16.msra.mxu0 %v6586_v51 }
 0x27a   :  { %1583 = vmatpush1.bf16.msra.mxu1 %v6587_v15  ;;  %1461 = vmatprep.subr.bf16.mxu0 %v6588_v17  ;;  %v6632_v17 = vld [vmem:[#allocation151_spill] sm:$0xff] }
 0x27b   :  { %1584 = vmatprep.subr.bf16.mxu1 %v6589_v24  ;;  %v6633_v24 = vld [vmem:[#allocation153_spill] sm:$0xff] }
 0x27d   :  { %1462 = vmatpush1.bf16.msra.mxu0 %v6590_v26 }
 0x27e   :  { %1585 = vmatpush1.bf16.msra.mxu1 %v6591_v55  ;;  %1463 = vmatprep.subr.bf16.mxu0 %v6592_v62  ;;  %v6634_v55 = vld [vmem:[#allocation150_spill] sm:$0xff]  ;;  %v6635_v62 = vld [vmem:[#allocation152_spill] sm:$0xff] }
 0x27f   :  { %1586 = vmatprep.subr.bf16.mxu1 %v6593_v23  ;;  %v6636_v23 = vld [vmem:[#allocation159_spill] sm:$0xff] }
 0x281   :  { %1464 = vmatpush1.bf16.msra.mxu0 %v6594_v25  ;;  %v6637_v25 = vld [vmem:[#allocation161_spill] sm:$0xff] }
 0x282   :  { %1587 = vmatpush1.bf16.msra.mxu1 %v6595_v63  ;;  %1465 = vmatprep.subr.bf16.mxu0 %v6596_v0  ;;  %v6638_v63 = vld [vmem:[#allocation158_spill] sm:$0xff]  ;;  %v6639_v0 = vld [vmem:[#allocation160_spill] sm:$0xff] }
 0x283   :  { %1588 = vmatprep.subr.bf16.mxu1 %v6597_v1  ;;  %v1161_v41 = vpop.f32.mrb[8].mxu0  ;;  %v6640_v1 = vld [vmem:[#allocation263_spill] sm:$0xff] }
 0x284   :  { %v1162_v50 = vadd.f32 %v1161_v41, %v1120_v5  ;;  %v1163_v42 = vpop.f32.mrb[9].mxu0  ;;  %v6641_v41 = vld [vmem:[#allocation265_spill] sm:$0xff] }
 0x285   :  { %v1164_v8 = vadd.f32 %v1163_v42, %v1122_v60  ;;  %v1165_v58 = vpop.f32.mrb[10].mxu0  ;;  %1466 = vmatpush1.bf16.msra.mxu0 %v6598_v39  ;;  %v6643_v42 = vld [vmem:[#allocation262_spill] sm:$0xff]  ;;  %v6646_v39 = vld [vmem:[#allocation273_spill] sm:$0xff] }
 0x286   :  { %1589 = vmatpush1.bf16.msra.mxu1 %v6599_v31  ;;  %v1166_v40 = vpop.f32.mrb[11].mxu0  ;;  %1467 = vmatprep.subr.bf16.mxu0 %v6600_v32  ;;  %v6645_v58 = vld [vmem:[#allocation271_spill] sm:$0xff]  ;;  %v6647_v31 = vmov 0   ;;  %v6649_v32 = vld [vmem:[#allocation272_spill] sm:$0xff] }
 0x287   :  { %1590 = vmatprep.subr.bf16.mxu1 %v6601_v34  ;;  %v6648_v40 = vld [vmem:[#allocation270_spill] sm:$0xff]  ;;  %v6650_v34 = vld [vmem:[#allocation279_spill] sm:$0xff] }
 0x289   :  { %1468 = vmatpush1.bf16.msra.mxu0 %v6602_v28  ;;  %v6651_v28 = vld [vmem:[#allocation281_spill] sm:$0xff] }
 0x28a   :  { %1591 = vmatpush1.bf16.msra.mxu1 %v6603_v49  ;;  %1469 = vmatprep.subr.bf16.mxu0 %v6604_v20  ;;  %v6652_v49 = vld [vmem:[#allocation278_spill] sm:$0xff]  ;;  %v6653_v20 = vld [vmem:[#allocation280_spill] sm:$0xff] }
 0x28b   :  { %1592 = vmatprep.subr.bf16.mxu1 %v6605_v30  ;;  %v6654_v30 = vld [vmem:[#allocation287_spill] sm:$0xff] }
 0x28d   :  { %1470 = vmatpush1.bf16.msra.mxu0 %v6606_v22  ;;  %v6655_v22 = vld [vmem:[#allocation289_spill] sm:$0xff] }
 0x28e   :  { %1593 = vmatpush1.bf16.msra.mxu1 %v6607_v2  ;;  %1471 = vmatprep.subr.bf16.mxu0 %v6608_v36  ;;  %v6656_v2 = vld [vmem:[#allocation286_spill] sm:$0xff]  ;;  %v6657_v36 = vld [vmem:[#allocation288_spill] sm:$0xff] }
 0x28f   :  { %1594 = vmatprep.subr.bf16.mxu1 %v6609_v46  ;;  %v6658_v46 = vld [vmem:[#allocation295_spill] sm:$0xff] }
 0x291   :  { %1472 = vmatpush1.bf16.msra.mxu0 %v6610_v33  ;;  %v6659_v33 = vld [vmem:[#allocation297_spill] sm:$0xff] }
 0x292   :  { %1595 = vmatpush1.bf16.msra.mxu1 %v6611_v48  ;;  %1473 = vmatprep.subr.bf16.mxu0 %v6612_v47  ;;  %v6660_v48 = vld [vmem:[#allocation294_spill] sm:$0xff]  ;;  %v6661_v47 = vld [vmem:[#allocation296_spill] sm:$0xff] }
 0x293   :  { %1596 = vmatprep.subr.bf16.mxu1 %v6613_v29  ;;  %v6662_v29 = vld [vmem:[#allocation303_spill] sm:$0xff] }
 0x295   :  { %1474 = vmatpush1.bf16.msra.mxu0 %v6614_v14  ;;  %v6663_v14 = vld [vmem:[#allocation305_spill] sm:$0xff] }
 0x296   :  { %1597 = vmatpush1.bf16.msra.mxu1 %v6615_v44  ;;  %1475 = vmatprep.subr.bf16.mxu0 %v6616_v56  ;;  %v6664_v44 = vld [vmem:[#allocation302_spill] sm:$0xff]  ;;  %v6665_v56 = vld [vmem:[#allocation304_spill] sm:$0xff] }
 0x297   :  { %1598 = vmatprep.subr.bf16.mxu1 %v6617_v57  ;;  %v6666_v57 = vld [vmem:[#allocation311_spill] sm:$0xff] }
 0x299   :  { %1476 = vmatpush1.bf16.msra.mxu0 %v6618_v19  ;;  %v6667_v19 = vld [vmem:[#allocation313_spill] sm:$0xff] }
 0x29a   :  { %1599 = vmatpush1.bf16.msra.mxu1 %v6619_v9  ;;  %1477 = vmatprep.subr.bf16.mxu0 %v6620_v10  ;;  %v6668_v9 = vld [vmem:[#allocation310_spill] sm:$0xff]  ;;  %v6669_v10 = vld [vmem:[#allocation312_spill] sm:$0xff] }
 0x29b   :  { %1600 = vmatprep.subr.bf16.mxu1 %v6621_v37  ;;  %v6670_v37 = vld [vmem:[#allocation319_spill] sm:$0xff] }
 0x29d   :  { %1478 = vmatpush1.bf16.msra.mxu0 %v6622_v52  ;;  %v6671_v52 = vld [vmem:[#allocation321_spill] sm:$0xff] }
 0x29e   :  { %1601 = vmatpush1.bf16.msra.mxu1 %v6623_v54  ;;  %1479 = vmatprep.subr.bf16.mxu0 %v6624_v27  ;;  %v6672_v54 = vld [vmem:[#allocation318_spill] sm:$0xff]  ;;  %v6673_v27 = vld [vmem:[#allocation320_spill] sm:$0xff] }
 0x29f   :  { %1602 = vmatprep.subr.bf16.mxu1 %v6625_v45  ;;  %v6674_v45 = vld [vmem:[#allocation167_spill] sm:$0xff] }
 0x2a1   :  { %1480 = vmatpush1.bf16.msra.mxu0 %v6626_v3  ;;  %v6675_v3 = vld [vmem:[#allocation169_spill] sm:$0xff] }
 0x2a2   :  { %1603 = vmatpush1.bf16.msra.mxu1 %v6627_v4  ;;  %1481 = vmatprep.subr.bf16.mxu0 %v6628_v35  ;;  %v6676_v4 = vld [vmem:[#allocation45_spill] sm:$0xff]  ;;  %v6677_v35 = vld [vmem:[#allocation166_spill] sm:$0xff] }
 0x2a3   :  { %1604 = vmatprep.subr.bf16.mxu1 %v6629_v53  ;;  %v1202_v5 = vpop.f32.mrb[12].mxu0  ;;  %v6678_v53 = vld [vmem:[#allocation168_spill] sm:$0xff] }
 0x2a4   :  { %v5686_v60 = vpop.f32.mrb[8].mxu1  ;;  %v5688_v6 = vadd.f32 %v1202_v5, %v1162_v50  ;;  %v1204_v59 = vpop.f32.mrb[13].mxu0  ;;  %v6642_v50 = vld [vmem:[#allocation44_spill] sm:$0xff]  ;;  %v6679_v5 = vld [vmem:[#allocation173_spill] sm:$0xff] }
 0x2a5   :  { %v5690_v61 = vpop.f32.mrb[9].mxu1  ;;  %v5692_v7 = vadd.f32 %v1204_v59, %v1164_v8  ;;  %v1206_v43 = vpop.f32.mrb[14].mxu0  ;;  %1482 = vmatpush1.bf16.msra.mxu0 %v6630_v16  ;;  %v6644_v8 = vld [vmem:[#allocation264_spill] sm:$0xff]  ;;  %v6680_v59 = vld [vmem:[#allocation175_spill] sm:$0xff]  ;;  %v6682_v16 = vld [vmem:[#allocation174_spill] sm:$0xff] }
 0x2a6   :  { %1605 = vmatpush1.bf16.msra.mxu1 %v6631_v18  ;;  %v1288_v51 = vpop.f32.mrb[10].mxu1  ;;  %v1207_v15 = vpop.f32.mrb[15].mxu0  ;;  %1483 = vmatprep.subr.bf16.mxu0 %v6632_v17  ;;  %v6681_v43 = vld [vmem:[#allocation172_spill] sm:$0xff]  ;;  %v6683_v18 = vld [vmem:[#allocation179_spill] sm:$0xff] }
 0x2a7   :  { %1606 = vmatprep.subr.bf16.mxu1 %v6633_v24  ;;  %v1289_v26 = vpop.f32.mrb[11].mxu1  ;;  %v6684_v51 = vld [vmem:[#allocation181_spill] sm:$0xff]  ;;  %v6685_v15 = vld [vmem:[#allocation178_spill] sm:$0xff]  ;;  %v6686_v17 = vld [vmem:[#allocation180_spill] sm:$0xff] }
 0x2a8   :  { %v6687_v24 = vld [vmem:[#allocation185_spill] sm:$0xff]  ;;  %v6688_v26 = vld [vmem:[#allocation187_spill] sm:$0xff] }
 0x2a9   :  { %1484 = vmatpush1.bf16.msra.mxu0 %v6634_v55  ;;  %v6689_v55 = vld [vmem:[#allocation184_spill] sm:$0xff] }
 0x2aa   :  { %1607 = vmatpush1.bf16.msra.mxu1 %v6635_v62  ;;  %1485 = vmatprep.subr.bf16.mxu0 %v6636_v23  ;;  %v6690_v62 = vld [vmem:[#allocation186_spill] sm:$0xff]  ;;  %v6691_v23 = vld [vmem:[#allocation191_spill] sm:$0xff] }
 0x2ab   :  { %1608 = vmatprep.subr.bf16.mxu1 %v6637_v25  ;;  %v6692_v25 = vld [vmem:[#allocation193_spill] sm:$0xff] }
 0x2ad   :  { %1486 = vmatpush1.bf16.msra.mxu0 %v6638_v63  ;;  %v6693_v63 = vld [vmem:[#allocation190_spill] sm:$0xff] }
 0x2ae   :  { %1609 = vmatpush1.bf16.msra.mxu1 %v6639_v0  ;;  %1537 = vmatprep.subr.bf16.mxu0 %v6640_v1  ;;  %v6694_v0 = vld [vmem:[#allocation192_spill] sm:$0xff]  ;;  %v6695_v1 = vld [vmem:[#allocation197_spill] sm:$0xff] }
 0x2af   :  { %1660 = vmatprep.subr.bf16.mxu1 %v6641_v41  ;;  %v6696_v41 = vld [vmem:[#allocation199_spill] sm:$0xff] }
 0x2b0   :  { %1488 = vmatmul.mubr.bf16.vlgmr.msra.gmra.mrb[28].mxu0 %v6642_v50 }
 0x2b1   :  { %1611 = vmatmul.mubr.bf16.vlgmr.msra.gmra.mrb[24].mxu1 %v6642_v50  ;;  %1538 = vmatpush1.bf16.msra.mxu0 %v6643_v42 }
 0x2b2   :  { %1661 = vmatpush1.bf16.msra.mxu1 %v6644_v8  ;;  %1539 = vmatprep.subr.bf16.mxu0 %v6645_v58 }
 0x2b3   :  { %1662 = vmatprep.subr.bf16.mxu1 %v6646_v39  ;;  %1569 = vmatprep.mubr.bf16.mxu0 %v6647_v31 }
 0x2b4   :  { %1692 = vmatprep.mubr.bf16.mxu1 %v6647_v31 }
 0x2b5   :  { %1540 = vmatpush1.bf16.msra.mxu0 %v6648_v40 }
 0x2b6   :  { %1663 = vmatpush1.bf16.msra.mxu1 %v6649_v32  ;;  %1541 = vmatprep.subr.bf16.mxu0 %v6650_v34 }
 0x2b7   :  { %1664 = vmatprep.subr.bf16.mxu1 %v6651_v28  ;;  %v6697_v28 = vld [vmem:[#allocation196_spill] sm:$0xff] }
 0x2b9   :  { %1542 = vmatpush1.bf16.msra.mxu0 %v6652_v49  ;;  %v6698_v49 = vld [vmem:[#allocation198_spill] sm:$0xff] }
 0x2ba   :  { %1665 = vmatpush1.bf16.msra.mxu1 %v6653_v20  ;;  %1543 = vmatprep.subr.bf16.mxu0 %v6654_v30 }
 0x2bb   :  { %1666 = vmatprep.subr.bf16.mxu1 %v6655_v22  ;;  %v6699_v22 = vld [vmem:[#allocation203_spill] sm:$0xff] }
 0x2bd   :  { %1544 = vmatpush1.bf16.msra.mxu0 %v6656_v2  ;;  %v6700_v2 = vld [vmem:[#allocation205_spill] sm:$0xff] }
 0x2be   :  { %1667 = vmatpush1.bf16.msra.mxu1 %v6657_v36  ;;  %1545 = vmatprep.subr.bf16.mxu0 %v6658_v46  ;;  %v6701_v46 = vld [vmem:[#allocation202_spill] sm:$0xff] }
 0x2bf   :  { %1668 = vmatprep.subr.bf16.mxu1 %v6659_v33  ;;  %v6703_v33 = vld [vmem:[#allocation209_spill] sm:$0xff] }
 0x2c1   :  { %1546 = vmatpush1.bf16.msra.mxu0 %v6660_v48  ;;  %v6704_v48 = vld [vmem:[#allocation211_spill] sm:$0xff] }
 0x2c2   :  { %1669 = vmatpush1.bf16.msra.mxu1 %v6661_v47  ;;  %1547 = vmatprep.subr.bf16.mxu0 %v6662_v29  ;;  %v6706_v47 = vld [vmem:[#allocation210_spill] sm:$0xff]  ;;  %v6707_v29 = vld [vmem:[#allocation215_spill] sm:$0xff] }
 0x2c3   :  { %1670 = vmatprep.subr.bf16.mxu1 %v6663_v14  ;;  %v6708_v14 = vld [vmem:[#allocation217_spill] sm:$0xff] }
 0x2c5   :  { %1548 = vmatpush1.bf16.msra.mxu0 %v6664_v44  ;;  %v6709_v44 = vld [vmem:[#allocation214_spill] sm:$0xff] }
 0x2c6   :  { %1671 = vmatpush1.bf16.msra.mxu1 %v6665_v56  ;;  %1549 = vmatprep.subr.bf16.mxu0 %v6666_v57  ;;  %v6710_v56 = vld [vmem:[#allocation216_spill] sm:$0xff]  ;;  %v6711_v57 = vld [vmem:[#allocation221_spill] sm:$0xff] }
 0x2c7   :  { %1672 = vmatprep.subr.bf16.mxu1 %v6667_v19  ;;  %v6712_v19 = vld [vmem:[#allocation223_spill] sm:$0xff] }
 0x2c9   :  { %1550 = vmatpush1.bf16.msra.mxu0 %v6668_v9  ;;  %v6713_v9 = vld [vmem:[#allocation220_spill] sm:$0xff] }
 0x2ca   :  { %1673 = vmatpush1.bf16.msra.mxu1 %v6669_v10  ;;  %1551 = vmatprep.subr.bf16.mxu0 %v6670_v37  ;;  %v6714_v10 = vld [vmem:[#allocation222_spill] sm:$0xff]  ;;  %v6715_v37 = vld [vmem:[#allocation227_spill] sm:$0xff] }
 0x2cb   :  { %1674 = vmatprep.subr.bf16.mxu1 %v6671_v52  ;;  %v6716_v52 = vld [vmem:[#allocation229_spill] sm:$0xff] }
 0x2cd   :  { %1552 = vmatpush1.bf16.msra.mxu0 %v6672_v54  ;;  %v6717_v54 = vld [vmem:[#allocation226_spill] sm:$0xff] }
 0x2ce   :  { %1675 = vmatpush1.bf16.msra.mxu1 %v6673_v27  ;;  %1619 = vmatprep.subr.bf16.mxu0 %v6674_v45  ;;  %v6718_v27 = vld [vmem:[#allocation228_spill] sm:$0xff]  ;;  %v6719_v45 = vld [vmem:[#allocation233_spill] sm:$0xff] }
 0x2cf   :  { %1742 = vmatprep.subr.bf16.mxu1 %v6675_v3  ;;  %v6720_v3 = vld [vmem:[#allocation235_spill] sm:$0xff] }
 0x2d0   :  { %1570 = vmatmul.mubr.bf16.vlgmr.msra.gmra.mrb[32].mxu0 %v6676_v4 }
 0x2d1   :  { %1693 = vmatmul.mubr.bf16.vlgmr.msra.gmra.mrb[28].mxu1 %v6676_v4  ;;  %1620 = vmatpush1.bf16.msra.mxu0 %v6677_v35  ;;  %v6721_v35 = vld [vmem:[#allocation232_spill] sm:$0xff] }
 0x2d2   :  { %1743 = vmatpush1.bf16.msra.mxu1 %v6678_v53  ;;  %1621 = vmatprep.subr.bf16.mxu0 %v6679_v5  ;;  %v6722_v53 = vld [vmem:[#allocation234_spill] sm:$0xff]  ;;  %v6723_v5 = vld [vmem:[#allocation239_spill] sm:$0xff] }
 0x2d3   :  { %1744 = vmatprep.subr.bf16.mxu1 %v6680_v59  ;;  %1651 = vmatprep.mubr.bf16.mxu0 %v4898_v13  ;;  %v6724_v59 = vld [vmem:[#allocation241_spill] sm:$0xff] }
 0x2d4   :  { %1774 = vmatprep.mubr.bf16.mxu1 %v4898_v13 }
 0x2d5   :  { %1622 = vmatpush1.bf16.msra.mxu0 %v6681_v43  ;;  %v6725_v43 = vld [vmem:[#allocation238_spill] sm:$0xff] }
 0x2d6   :  { %1745 = vmatpush1.bf16.msra.mxu1 %v6682_v16  ;;  %1623 = vmatprep.subr.bf16.mxu0 %v6683_v18  ;;  %v6726_v16 = vld [vmem:[#allocation240_spill] sm:$0xff]  ;;  %v6727_v18 = vld [vmem:[#allocation245_spill] sm:$0xff] }
 0x2d7   :  { %1746 = vmatprep.subr.bf16.mxu1 %v6684_v51  ;;  %v6728_v51 = vld [vmem:[#allocation247_spill] sm:$0xff] }
 0x2d9   :  { %1624 = vmatpush1.bf16.msra.mxu0 %v6685_v15 }
 0x2da   :  { %1747 = vmatpush1.bf16.msra.mxu1 %v6686_v17  ;;  %1625 = vmatprep.subr.bf16.mxu0 %v6687_v24 }
 0x2db   :  { %1748 = vmatprep.subr.bf16.mxu1 %v6688_v26 }
 0x2dd   :  { %1626 = vmatpush1.bf16.msra.mxu0 %v6689_v55 }
 0x2de   :  { %1749 = vmatpush1.bf16.msra.mxu1 %v6690_v62  ;;  %1627 = vmatprep.subr.bf16.mxu0 %v6691_v23 }
 0x2df   :  { %1750 = vmatprep.subr.bf16.mxu1 %v6692_v25  ;;  %v6729_v25 = vld [vmem:[#allocation244_spill] sm:$0xff] }
 0x2e1   :  { %1628 = vmatpush1.bf16.msra.mxu0 %v6693_v63  ;;  %v6730_v63 = vld [vmem:[#allocation246_spill] sm:$0xff] }
 0x2e2   :  { %1751 = vmatpush1.bf16.msra.mxu1 %v6694_v0  ;;  %1629 = vmatprep.subr.bf16.mxu0 %v6695_v1 }
 0x2e3   :  { %1752 = vmatprep.subr.bf16.mxu1 %v6696_v41  ;;  %v1243_v42 = vpop.f32.mrb[16].mxu0  ;;  %v6731_v41 = vld [vmem:[#allocation251_spill] sm:$0xff] }
 0x2e4   :  { %v5766_v8 = vpop.f32.mrb[12].mxu1  ;;  %v1285_v58 = vadd.f32 %v5686_v60, %v1243_v42  ;;  %v1245_v39 = vpop.f32.mrb[17].mxu0  ;;  %v6702_v60 = vld [vmem:[#allocation204_spill] sm:$0xff]  ;;  %v6732_v42 = vld [vmem:[#allocation253_spill] sm:$0xff] }
 0x2e5   :  { %v5769_v40 = vpop.f32.mrb[13].mxu1  ;;  %v1287_v32 = vadd.f32 %v5690_v61, %v1245_v39  ;;  %v1247_v34 = vpop.f32.mrb[18].mxu0  ;;  %1630 = vmatpush1.bf16.msra.mxu0 %v6697_v28  ;;  %v6705_v61 = vld [vmem:[#allocation208_spill] sm:$0xff]  ;;  %v6735_v28 = vld [vmem:[#allocation257_spill] sm:$0xff] }
 0x2e6   :  { %1753 = vmatpush1.bf16.msra.mxu1 %v6698_v49  ;;  %v1370_v20 = vpop.f32.mrb[14].mxu1  ;;  %v1248_v30 = vpop.f32.mrb[19].mxu0  ;;  %1631 = vmatprep.subr.bf16.mxu0 %v6699_v22  ;;  %v6733_v34 = vld [vmem:[#allocation250_spill] sm:$0xff]  ;;  %v6737_v49 = vld [vmem:[#allocation256_spill] sm:$0xff]  ;;  %v6740_v22 = vld [vmem:[#allocation49_spill] sm:$0xff] }
 0x2e7   :  { %1754 = vmatprep.subr.bf16.mxu1 %v6700_v2  ;;  %v1371_v36 = vpop.f32.mrb[15].mxu1  ;;  %v6738_v20 = vld [vmem:[#allocation258_spill] sm:$0xff]  ;;  %v6739_v30 = vld [vmem:[#allocation47_spill] sm:$0xff] }
 0x2e8   :  { %v6741_v2 = vld [vmem:[#allocation46_spill] sm:$0xff]  ;;  %v6742_v36 = vld [vmem:[#allocation48_spill] sm:$0xff] }
 0x2e9   :  { %1632 = vmatpush1.bf16.msra.mxu0 %v6701_v46  ;;  %v6743_v46 = vld [vmem:[#allocation51_spill] sm:$0xff] }
 0x2ea   :  { %1755 = vmatpush1.bf16.msra.mxu1 %v6702_v60  ;;  %1633 = vmatprep.subr.bf16.mxu0 %v6703_v33  ;;  %v6744_v60 = vld [vmem:[#allocation53_spill] sm:$0xff]  ;;  %v6745_v33 = vld [vmem:[#allocation50_spill] sm:$0xff] }
 0x2eb   :  { %1756 = vmatprep.subr.bf16.mxu1 %v6704_v48  ;;  %v6746_v48 = vld [vmem:[#allocation52_spill] sm:$0xff] }
 0x2ed   :  { %1634 = vmatpush1.bf16.msra.mxu0 %v6705_v61  ;;  %v6747_v61 = vld [vmem:[#allocation59_spill] sm:$0xff] }
 0x2ee   :  { %1757 = vmatpush1.bf16.msra.mxu1 %v6706_v47  ;;  %1635 = vmatprep.subr.bf16.mxu0 %v6707_v29  ;;  %v6748_v47 = vld [vmem:[#allocation61_spill] sm:$0xff]  ;;  %v6749_v29 = vld [vmem:[#allocation58_spill] sm:$0xff] }
 0x2ef   :  { %1758 = vmatprep.subr.bf16.mxu1 %v6708_v14  ;;  %v6750_v14 = vld [vmem:[#allocation60_spill] sm:$0xff] }
 0x2f1   :  { %1636 = vmatpush1.bf16.msra.mxu0 %v6709_v44  ;;  %v6751_v44 = vld [vmem:[#allocation67_spill] sm:$0xff] }
 0x2f2   :  { %1759 = vmatpush1.bf16.msra.mxu1 %v6710_v56  ;;  %1637 = vmatprep.subr.bf16.mxu0 %v6711_v57  ;;  %v6752_v56 = vld [vmem:[#allocation69_spill] sm:$0xff]  ;;  %v6753_v57 = vld [vmem:[#allocation66_spill] sm:$0xff] }
 0x2f3   :  { %1760 = vmatprep.subr.bf16.mxu1 %v6712_v19  ;;  %v6754_v19 = vld [vmem:[#allocation68_spill] sm:$0xff] }
 0x2f5   :  { %1638 = vmatpush1.bf16.msra.mxu0 %v6713_v9  ;;  %v6756_v9 = vld [vmem:[#allocation77_spill] sm:$0xff] }
 0x2f6   :  { %1761 = vmatpush1.bf16.msra.mxu1 %v6714_v10  ;;  %1639 = vmatprep.subr.bf16.mxu0 %v6715_v37  ;;  %v6757_v10 = vld [vmem:[#allocation74_spill] sm:$0xff]  ;;  %v6758_v37 = vld [vmem:[#allocation76_spill] sm:$0xff] }
 0x2f7   :  { %1762 = vmatprep.subr.bf16.mxu1 %v6716_v52  ;;  %v6759_v52 = vld [vmem:[#allocation83_spill] sm:$0xff] }
 0x2f9   :  { %1640 = vmatpush1.bf16.msra.mxu0 %v6717_v54  ;;  %v6760_v54 = vld [vmem:[#allocation85_spill] sm:$0xff] }
 0x2fa   :  { %1763 = vmatpush1.bf16.msra.mxu1 %v6718_v27  ;;  %1641 = vmatprep.subr.bf16.mxu0 %v6719_v45  ;;  %v6761_v27 = vld [vmem:[#allocation82_spill] sm:$0xff]  ;;  %v6762_v45 = vld [vmem:[#allocation84_spill] sm:$0xff] }
 0x2fb   :  { %1764 = vmatprep.subr.bf16.mxu1 %v6720_v3  ;;  %v6763_v3 = vld [vmem:[#allocation91_spill] sm:$0xff] }
 0x2fd   :  { %1642 = vmatpush1.bf16.msra.mxu0 %v6721_v35  ;;  %v6764_v35 = vld [vmem:[#allocation93_spill] sm:$0xff] }
 0x2fe   :  { %1765 = vmatpush1.bf16.msra.mxu1 %v6722_v53  ;;  %1643 = vmatprep.subr.bf16.mxu0 %v6723_v5  ;;  %v6765_v53 = vld [vmem:[#allocation90_spill] sm:$0xff]  ;;  %v6766_v5 = vld [vmem:[#allocation92_spill] sm:$0xff] }
 0x2ff   :  { %1766 = vmatprep.subr.bf16.mxu1 %v6724_v59  ;;  %v6767_v59 = vld [vmem:[#allocation99_spill] sm:$0xff] }
 0x301   :  { %1644 = vmatpush1.bf16.msra.mxu0 %v6725_v43  ;;  %v6768_v43 = vld [vmem:[#allocation101_spill] sm:$0xff] }
 0x302   :  { %1767 = vmatpush1.bf16.msra.mxu1 %v6726_v16  ;;  %1645 = vmatprep.subr.bf16.mxu0 %v6727_v18  ;;  %v6769_v16 = vld [vmem:[#allocation98_spill] sm:$0xff]  ;;  %v6770_v18 = vld [vmem:[#allocation100_spill] sm:$0xff] }
 0x303   :  { %1768 = vmatprep.subr.bf16.mxu1 %v6728_v51  ;;  %v1325_v15 = vpop.f32.mrb[20].mxu0  ;;  %v6771_v51 = vld [vmem:[#allocation107_spill] sm:$0xff] }
 0x304   :  { %v5804_v17 = vpop.f32.mrb[16].mxu1  ;;  %v5806_v24 = vadd.f32 %v1325_v15, %v1285_v58  ;;  %v1327_v26 = vpop.f32.mrb[21].mxu0  ;;  %v6734_v58 = vld [vmem:[#allocation252_spill] sm:$0xff]  ;;  %v6772_v15 = vld [vmem:[#allocation109_spill] sm:$0xff] }
 0x305   :  { %v5808_v55 = vpop.f32.mrb[17].mxu1  ;;  %v5810_v62 = vadd.f32 %v1327_v26, %v1287_v32  ;;  %v1329_v23 = vpop.f32.mrb[22].mxu0  ;;  %1646 = vmatpush1.bf16.msra.mxu0 %v6729_v25  ;;  %v6736_v32 = vld [vmem:[#allocation259_spill] sm:$0xff]  ;;  %v6773_v26 = vld [vmem:[#allocation106_spill] sm:$0xff] }
 0x306   :  { %1769 = vmatpush1.bf16.msra.mxu1 %v6730_v63  ;;  %v1452_v0 = vpop.f32.mrb[18].mxu1  ;;  %v1330_v1 = vpop.f32.mrb[23].mxu0  ;;  %1647 = vmatprep.subr.bf16.mxu0 %v6731_v41  ;;  %v6774_v23 = vld [vmem:[#allocation108_spill] sm:$0xff]  ;;  %v6775_v25 = vld [vmem:[#allocation115_spill] sm:$0xff]  ;;  %v6776_v63 = vld [vmem:[#allocation117_spill] sm:$0xff] }
 0x307   :  { %1770 = vmatprep.subr.bf16.mxu1 %v6732_v42  ;;  %v1453_v39 = vpop.f32.mrb[19].mxu1  ;;  %v6777_v0 = vld [vmem:[#allocation114_spill] sm:$0xff]  ;;  %v6778_v1 = vld [vmem:[#allocation116_spill] sm:$0xff]  ;;  %v6779_v41 = vld [vmem:[#allocation123_spill] sm:$0xff] }
 0x308   :  { %v6780_v42 = vld [vmem:[#allocation125_spill] sm:$0xff]  ;;  %v6781_v39 = vld [vmem:[#allocation122_spill] sm:$0xff] }
 0x309   :  { %1648 = vmatpush1.bf16.msra.mxu0 %v6733_v34  ;;  %v6782_v34 = vld [vmem:[#allocation124_spill] sm:$0xff] }
 0x30a   :  { %1771 = vmatpush1.bf16.msra.mxu1 %v6734_v58  ;;  %1649 = vmatprep.subr.bf16.mxu0 %v6735_v28  ;;  %v6783_v58 = vld [vmem:[#allocation131_spill] sm:$0xff]  ;;  %v6784_v28 = vld [vmem:[#allocation133_spill] sm:$0xff] }
 0x30b   :  { %1772 = vmatprep.subr.bf16.mxu1 %v6736_v32  ;;  %v6785_v32 = vld [vmem:[#allocation130_spill] sm:$0xff] }
 0x30d   :  { %1650 = vmatpush1.bf16.msra.mxu0 %v6737_v49  ;;  %v6786_v49 = vld [vmem:[#allocation132_spill] sm:$0xff] }
 0x30e   :  { %1773 = vmatpush1.bf16.msra.mxu1 %v6738_v20  ;;  %1701 = vmatprep.subr.bf16.mxu0 %v6739_v30  ;;  %v6787_v20 = vld [vmem:[#allocation139_spill] sm:$0xff]  ;;  %v6788_v30 = vld [vmem:[#allocation141_spill] sm:$0xff] }
 0x30f   :  { %1824 = vmatprep.subr.bf16.mxu1 %v6740_v22  ;;  %v6789_v22 = vld [vmem:[#allocation138_spill] sm:$0xff] }
 0x310   :  { %1652 = vmatmul.mubr.bf16.vlgmr.msra.gmra.mrb[36].mxu0 %v4896_v12 }
 0x311   :  { %1775 = vmatmul.mubr.bf16.vlgmr.msra.gmra.mrb[32].mxu1 %v4896_v12  ;;  %1702 = vmatpush1.bf16.msra.mxu0 %v6741_v2  ;;  %v6790_v2 = vld [vmem:[#allocation140_spill] sm:$0xff] }
 0x312   :  { %1825 = vmatpush1.bf16.msra.mxu1 %v6742_v36  ;;  %1703 = vmatprep.subr.bf16.mxu0 %v6743_v46  ;;  %v6791_v36 = vld [vmem:[#allocation147_spill] sm:$0xff]  ;;  %v6792_v46 = vld [vmem:[#allocation149_spill] sm:$0xff] }
 0x313   :  { %1826 = vmatprep.subr.bf16.mxu1 %v6744_v60  ;;  %1733 = vmatprep.mubr.bf16.mxu0 %v4894_v11 }
 0x314   :  { %1856 = vmatprep.mubr.bf16.mxu1 %v4894_v11  ;;  %v6755_v11 = vld [vmem:[#allocation75_spill] sm:$0xff] }
 0x315   :  { %1704 = vmatpush1.bf16.msra.mxu0 %v6745_v33 }
 0x316   :  { %1827 = vmatpush1.bf16.msra.mxu1 %v6746_v48  ;;  %1705 = vmatprep.subr.bf16.mxu0 %v6747_v61 }
 0x317   :  { %1828 = vmatprep.subr.bf16.mxu1 %v6748_v47 }
 0x319   :  { %1706 = vmatpush1.bf16.msra.mxu0 %v6749_v29 }
 0x31a   :  { %1829 = vmatpush1.bf16.msra.mxu1 %v6750_v14  ;;  %1707 = vmatprep.subr.bf16.mxu0 %v6751_v44  ;;  %v6793_v44 = vld [vmem:[#allocation146_spill] sm:$0xff] }
 0x31b   :  { %1830 = vmatprep.subr.bf16.mxu1 %v6752_v56  ;;  %v6794_v56 = vld [vmem:[#allocation148_spill] sm:$0xff] }
 0x31d   :  { %1708 = vmatpush1.bf16.msra.mxu0 %v6753_v57 }
 0x31e   :  { %1831 = vmatpush1.bf16.msra.mxu1 %v6754_v19  ;;  %1709 = vmatprep.subr.bf16.mxu0 %v6755_v11 }
 0x31f   :  { %1832 = vmatprep.subr.bf16.mxu1 %v6756_v9  ;;  %v6795_v9 = vld [vmem:[#allocation155_spill] sm:$0xff] }
 0x321   :  { %1710 = vmatpush1.bf16.msra.mxu0 %v6757_v10  ;;  %v6796_v10 = vld [vmem:[#allocation157_spill] sm:$0xff] }
 0x322   :  { %1833 = vmatpush1.bf16.msra.mxu1 %v6758_v37  ;;  %1711 = vmatprep.subr.bf16.mxu0 %v6759_v52  ;;  %v6797_v52 = vld [vmem:[#allocation154_spill] sm:$0xff] }
 0x323   :  { %1834 = vmatprep.subr.bf16.mxu1 %v6760_v54  ;;  %v6799_v54 = vld [vmem:[#allocation163_spill] sm:$0xff] }
 0x325   :  { %1712 = vmatpush1.bf16.msra.mxu0 %v6761_v27  ;;  %v6800_v27 = vld [vmem:[#allocation165_spill] sm:$0xff] }
 0x326   :  { %1835 = vmatpush1.bf16.msra.mxu1 %v6762_v45  ;;  %1713 = vmatprep.subr.bf16.mxu0 %v6763_v3  ;;  %v6801_v45 = vld [vmem:[#allocation162_spill] sm:$0xff]  ;;  %v6803_v3 = vld [vmem:[#allocation267_spill] sm:$0xff] }
 0x327   :  { %1836 = vmatprep.subr.bf16.mxu1 %v6764_v35  ;;  %v6804_v35 = vld [vmem:[#allocation269_spill] sm:$0xff] }
 0x329   :  { %1714 = vmatpush1.bf16.msra.mxu0 %v6765_v53  ;;  %v6806_v53 = vld [vmem:[#allocation275_spill] sm:$0xff] }
 0x32a   :  { %1837 = vmatpush1.bf16.msra.mxu1 %v6766_v5  ;;  %1715 = vmatprep.subr.bf16.mxu0 %v6767_v59  ;;  %v6807_v5 = vld [vmem:[#allocation268_spill] sm:$0xff]  ;;  %v6808_v59 = vld [vmem:[#allocation277_spill] sm:$0xff] }
 0x32b   :  { %1838 = vmatprep.subr.bf16.mxu1 %v6768_v43  ;;  %v6809_v43 = vld [vmem:[#allocation274_spill] sm:$0xff] }
 0x32d   :  { %1716 = vmatpush1.bf16.msra.mxu0 %v6769_v16  ;;  %v6810_v16 = vld [vmem:[#allocation283_spill] sm:$0xff] }
 0x32e   :  { %1839 = vmatpush1.bf16.msra.mxu1 %v6770_v18  ;;  %1717 = vmatprep.subr.bf16.mxu0 %v6771_v51  ;;  %v6811_v18 = vld [vmem:[#allocation276_spill] sm:$0xff]  ;;  %v6812_v51 = vld [vmem:[#allocation285_spill] sm:$0xff] }
 0x32f   :  { %1840 = vmatprep.subr.bf16.mxu1 %v6772_v15  ;;  %v6814_v15 = vld [vmem:[#allocation291_spill] sm:$0xff] }
 0x331   :  { %1718 = vmatpush1.bf16.msra.mxu0 %v6773_v26  ;;  %v6815_v26 = vld [vmem:[#allocation284_spill] sm:$0xff] }
 0x332   :  { %1841 = vmatpush1.bf16.msra.mxu1 %v6774_v23  ;;  %1719 = vmatprep.subr.bf16.mxu0 %v6775_v25  ;;  %v6816_v23 = vld [vmem:[#allocation293_spill] sm:$0xff]  ;;  %v6817_v25 = vld [vmem:[#allocation290_spill] sm:$0xff] }
 0x333   :  { %1842 = vmatprep.subr.bf16.mxu1 %v6776_v63  ;;  %v6818_v63 = vld [vmem:[#allocation299_spill] sm:$0xff] }
 0x335   :  { %1720 = vmatpush1.bf16.msra.mxu0 %v6777_v0  ;;  %v6820_v0 = vld [vmem:[#allocation301_spill] sm:$0xff] }
 0x336   :  { %1843 = vmatpush1.bf16.msra.mxu1 %v6778_v1  ;;  %1721 = vmatprep.subr.bf16.mxu0 %v6779_v41  ;;  %v6821_v1 = vld [vmem:[#allocation298_spill] sm:$0xff]  ;;  %v6822_v41 = vld [vmem:[#allocation307_spill] sm:$0xff] }
 0x337   :  { %1844 = vmatprep.subr.bf16.mxu1 %v6780_v42  ;;  %v6823_v42 = vld [vmem:[#allocation300_spill] sm:$0xff] }
 0x339   :  { %1722 = vmatpush1.bf16.msra.mxu0 %v6781_v39  ;;  %v6824_v39 = vld [vmem:[#allocation309_spill] sm:$0xff] }
 0x33a   :  { %1845 = vmatpush1.bf16.msra.mxu1 %v6782_v34  ;;  %1723 = vmatprep.subr.bf16.mxu0 %v6783_v58  ;;  %v6825_v34 = vld [vmem:[#allocation306_spill] sm:$0xff]  ;;  %v6826_v58 = vld [vmem:[#allocation315_spill] sm:$0xff] }
 0x33b   :  { %1846 = vmatprep.subr.bf16.mxu1 %v6784_v28  ;;  %v6827_v28 = vld [vmem:[#allocation308_spill] sm:$0xff] }
 0x33d   :  { %1724 = vmatpush1.bf16.msra.mxu0 %v6785_v32  ;;  %v6828_v32 = vld [vmem:[#allocation317_spill] sm:$0xff] }
 0x33e   :  { %1847 = vmatpush1.bf16.msra.mxu1 %v6786_v49  ;;  %1725 = vmatprep.subr.bf16.mxu0 %v6787_v20  ;;  %v6829_v49 = vld [vmem:[#allocation314_spill] sm:$0xff]  ;;  %v6830_v20 = vld [vmem:[#allocation323_spill] sm:$0xff] }
 0x33f   :  { %1848 = vmatprep.subr.bf16.mxu1 %v6788_v30  ;;  %v6831_v30 = vld [vmem:[#allocation316_spill] sm:$0xff] }
 0x341   :  { %1726 = vmatpush1.bf16.msra.mxu0 %v6789_v22  ;;  %v6832_v22 = vld [vmem:[#allocation325_spill] sm:$0xff] }
 0x342   :  { %1849 = vmatpush1.bf16.msra.mxu1 %v6790_v2  ;;  %1727 = vmatprep.subr.bf16.mxu0 %v6791_v36  ;;  %v6833_v2 = vld [vmem:[#allocation322_spill] sm:$0xff]  ;;  %v6834_v36 = vld [vmem:[#allocation171_spill] sm:$0xff] }
 0x343   :  { %1850 = vmatprep.subr.bf16.mxu1 %v6792_v46  ;;  %v1407_v60 = vpop.f32.mrb[24].mxu0  ;;  %v6835_v46 = vld [vmem:[#allocation324_spill] sm:$0xff] }
 0x344   :  { %v5880_v33 = vpop.f32.mrb[20].mxu1  ;;  %v1408_v48 = vadd.f32 %v1407_v60, %v5766_v8  ;;  %v1409_v61 = vpop.f32.mrb[25].mxu0  ;;  %v6836_v60 = vld [vmem:[#allocation170_spill] sm:$0xff] }
 0x345   :  { %v5883_v47 = vpop.f32.mrb[21].mxu1  ;;  %v1410_v29 = vadd.f32 %v1409_v61, %v5769_v40  ;;  %v1411_v14 = vpop.f32.mrb[26].mxu0  ;;  %1728 = vmatpush1.bf16.msra.mxu0 %v6793_v44  ;;  %v6798_v40 = vld [vmem:[#allocation156_spill] sm:$0xff]  ;;  %v6841_v44 = vld [vmem:[#allocation189_spill] sm:$0xff] }
 0x346   :  { %1851 = vmatpush1.bf16.msra.mxu1 %v6794_v56  ;;  %v1534_v57 = vpop.f32.mrb[22].mxu1  ;;  %v5889_v19 = vadd.f32 %v5804_v17, %v1408_v48  ;;  %v1412_v11 = vpop.f32.mrb[27].mxu0  ;;  %1729 = vmatprep.subr.bf16.mxu0 %v6795_v9  ;;  %v6802_v17 = vld [vmem:[#allocation164_spill] sm:$0xff]  ;;  %v6837_v48 = vld [vmem:[#allocation177_spill] sm:$0xff]  ;;  %v6840_v14 = vld [vmem:[#allocation182_spill] sm:$0xff] }
 0x347   :  { %1852 = vmatprep.subr.bf16.mxu1 %v6796_v10  ;;  %v1535_v8 = vpop.f32.mrb[23].mxu1  ;;  %v5894_v37 = vadd.f32 %v5808_v55, %v1410_v29  ;;  %v6805_v55 = vld [vmem:[#allocation266_spill] sm:$0xff]  ;;  %v6838_v61 = vld [vmem:[#allocation176_spill] sm:$0xff]  ;;  %v6839_v29 = vld [vmem:[#allocation183_spill] sm:$0xff] }
 0x348   :  { %v6842_v56 = vld [vmem:[#allocation188_spill] sm:$0xff]  ;;  %v6843_v57 = vld [vmem:[#allocation195_spill] sm:$0xff]  ;;  %v6844_v11 = vld [vmem:[#allocation194_spill] sm:$0xff] }
 0x349   :  { %1730 = vmatpush1.bf16.msra.mxu0 %v6797_v52  ;;  %v6845_v9 = vld [vmem:[#allocation201_spill] sm:$0xff] }
 0x34a   :  { %1853 = vmatpush1.bf16.msra.mxu1 %v6798_v40  ;;  %1731 = vmatprep.subr.bf16.mxu0 %v6799_v54 }
 0x34b   :  { %1854 = vmatprep.subr.bf16.mxu1 %v6800_v27 }
 0x34d   :  { %1732 = vmatpush1.bf16.msra.mxu0 %v6801_v45 }
 0x34e   :  { %1855 = vmatpush1.bf16.msra.mxu1 %v6802_v17  ;;  %1783 = vmatprep.subr.bf16.mxu0 %v6803_v3  ;;  %v6846_v17 = vld [vmem:[#allocation200_spill] sm:$0xff] }
 0x34f   :  { %1906 = vmatprep.subr.bf16.mxu1 %v6804_v35 }
 0x350   :  { %1734 = vmatmul.mubr.bf16.vlgmr.msra.gmra.mrb[40].mxu0 %v6642_v50 }
 0x351   :  { %1857 = vmatmul.mubr.bf16.vlgmr.msra.gmra.mrb[36].mxu1 %v6642_v50  ;;  %1784 = vmatpush1.bf16.msra.mxu0 %v6805_v55  ;;  %v6813_v50 = vld [vmem:[#allocation282_spill] sm:$0xff]  ;;  %v6847_v55 = vld [vmem:[#allocation207_spill] sm:$0xff] }
 0x352   :  { %1815 = vmatprep.mubr.bf16.mxu0 %v6647_v31  ;;  %1785 = vmatprep.subr.bf16.mxu0 %v6806_v53 }
 0x353   :  { %1907 = vmatpush1.bf16.msra.mxu1 %v6807_v5  ;;  %1938 = vmatprep.mubr.bf16.mxu1 %v6647_v31  ;;  %v6819_v31 = vld [vmem:[#allocation292_spill] sm:$0xff]  ;;  %v6848_v5 = vld [vmem:[#allocation206_spill] sm:$0xff] }
 0x354   :  { %1908 = vmatprep.subr.bf16.mxu1 %v6808_v59  ;;  %v6849_v59 = vld [vmem:[#allocation213_spill] sm:$0xff] }
 0x355   :  { %1786 = vmatpush1.bf16.msra.mxu0 %v6809_v43  ;;  %v6852_v43 = vld [vmem:[#allocation218_spill] sm:$0xff] }
 0x356   :  { %1787 = vmatprep.subr.bf16.mxu0 %v6810_v16  ;;  %v6853_v16 = vld [vmem:[#allocation225_spill] sm:$0xff] }
 0x357   :  { %1909 = vmatpush1.bf16.msra.mxu1 %v6811_v18  ;;  %v6854_v18 = vld [vmem:[#allocation224_spill] sm:$0xff] }
 0x358   :  { %1910 = vmatprep.subr.bf16.mxu1 %v6812_v51  ;;  %v6855_v51 = vld [vmem:[#allocation231_spill] sm:$0xff] }
 0x359   :  { %1788 = vmatpush1.bf16.msra.mxu0 %v6813_v50  ;;  %v6856_v50 = vld [vmem:[#allocation230_spill] sm:$0xff] }
 0x35a   :  { %1789 = vmatprep.subr.bf16.mxu0 %v6814_v15 }
 0x35b   :  { %1911 = vmatpush1.bf16.msra.mxu1 %v6815_v26  ;;  %v6858_v26 = vld [vmem:[#allocation236_spill] sm:$0xff] }
 0x35c   :  { %1912 = vmatprep.subr.bf16.mxu1 %v6816_v23  ;;  %v6859_v23 = vld [vmem:[#allocation243_spill] sm:$0xff] }
 0x35d   :  { %1790 = vmatpush1.bf16.msra.mxu0 %v6817_v25 }
 0x35e   :  { %1791 = vmatprep.subr.bf16.mxu0 %v6818_v63  ;;  %v5981_v63 = vld [vmem:[#allocation14] sm:$0xf] }
 0x35f   :  { %1913 = vmatpush1.bf16.msra.mxu1 %v6819_v31 }
 0x360   :  { %1914 = vmatprep.subr.bf16.mxu1 %v6820_v0  ;;  %v6860_v0 = vld [vmem:[#allocation242_spill] sm:$0xff] }
 0x361   :  { %1792 = vmatpush1.bf16.msra.mxu0 %v6821_v1 }
 0x362   :  { %1793 = vmatprep.subr.bf16.mxu0 %v6822_v41  ;;  %v6861_v41 = vld [vmem:[#allocation249_spill] sm:$0xff] }
 0x363   :  { %1915 = vmatpush1.bf16.msra.mxu1 %v6823_v42 }
 0x364   :  { %1916 = vmatprep.subr.bf16.mxu1 %v6824_v39 }
 0x365   :  { %1794 = vmatpush1.bf16.msra.mxu0 %v6825_v34 }
 0x366   :  { %1795 = vmatprep.subr.bf16.mxu0 %v6826_v58 }
 0x367   :  { %1917 = vmatpush1.bf16.msra.mxu1 %v6827_v28 }
 0x368   :  { %1918 = vmatprep.subr.bf16.mxu1 %v6828_v32 }
 0x369   :  { %1796 = vmatpush1.bf16.msra.mxu0 %v6829_v49 }
 0x36a   :  { %1797 = vmatprep.subr.bf16.mxu0 %v6830_v20 }
 0x36b   :  { %1919 = vmatpush1.bf16.msra.mxu1 %v6831_v30  ;;  %v6862_v30 = vld [vmem:[#allocation248_spill] sm:$0xff] }
 0x36c   :  { %1920 = vmatprep.subr.bf16.mxu1 %v6832_v22 }
 0x36d   :  { %1798 = vmatpush1.bf16.msra.mxu0 %v6833_v2 }
 0x36e   :  { %1865 = vmatprep.subr.bf16.mxu0 %v6834_v36 }
 0x36f   :  { %1921 = vmatpush1.bf16.msra.mxu1 %v6835_v46  ;;  %v6863_v46 = vld [vmem:[#allocation255_spill] sm:$0xff] }
 0x370   :  { %1816 = vmatmul.mubr.bf16.vlgmr.msra.gmra.mrb[44].mxu0 %v6676_v4 }
 0x371   :  { %1866 = vmatpush1.bf16.msra.mxu0 %v6836_v60  ;;  %1897 = vmatprep.mubr.bf16.mxu0 %v4898_v13 }
 0x372   :  { %1867 = vmatprep.subr.bf16.mxu0 %v6837_v48  ;;  %1939 = vmatmul.mubr.bf16.vlgmr.msra.gmra.mrb[40].mxu1 %v6676_v4 }
 0x375   :  { %1868 = vmatpush1.bf16.msra.mxu0 %v6838_v61 }
 0x376   :  { %1869 = vmatprep.subr.bf16.mxu0 %v6839_v29 }
 0x379   :  { %1870 = vmatpush1.bf16.msra.mxu0 %v6840_v14  ;;  %v6864_v14 = vld [vmem:[#allocation254_spill] sm:$0xff] }
 0x37a   :  { %1871 = vmatprep.subr.bf16.mxu0 %v6841_v44 }
 0x37d   :  { %1872 = vmatpush1.bf16.msra.mxu0 %v6842_v56  ;;  %v6865_v56 = vld [vmem:[#allocation261_spill] sm:$0xff] }
 0x37e   :  { %1873 = vmatprep.subr.bf16.mxu0 %v6843_v57 }
 0x381   :  { %1874 = vmatpush1.bf16.msra.mxu0 %v6844_v11 }
 0x382   :  { %1875 = vmatprep.subr.bf16.mxu0 %v6845_v9 }
 0x383   :  { %v1489_v13 = vpop.f32.mrb[28].mxu0 }
 0x384   :  { %v1612_v10 = vpop.f32.mrb[24].mxu1  ;;  %v1490_v4 = vadd.f32 %v1489_v13, %v5602_v38  ;;  %v1491_v52 = vpop.f32.mrb[29].mxu0  ;;  %v6866_v13 = vld [vmem:[#allocation260_spill] sm:$0xff] }
 0x385   :  { %v5954_v8 = vadd.f32 %v1612_v10, %v5688_v6  ;;  %v1614_v40 = vpop.f32.mrb[25].mxu1  ;;  %v1492_v54 = vadd.f32 %v1491_v52, %v5605_v21  ;;  %v1493_v45 = vpop.f32.mrb[30].mxu0  ;;  %1876 = vmatpush1.bf16.msra.mxu0 %v6846_v17  ;;  %v6850_v21 = vld [vmem:[#allocation212_spill] sm:$0xff] }
 0x386   :  { %v5958_v27 = vadd.f32 %v1614_v40, %v5692_v7  ;;  %v1616_v3 = vpop.f32.mrb[26].mxu1  ;;  %v1494_v35 = vpop.f32.mrb[31].mxu0  ;;  %1877 = vmatprep.subr.bf16.mxu0 %v6847_v55  ;;  %v1531_v53 = vadd.f32 %v5880_v33, %v1490_v4  ;;  %v6851_v7 = vld [vmem:[#allocation219_spill] sm:$0xff]  ;;  %v1952_v33 = vlaneseq }
 0x387   :  { %v1617_v38 = vpop.f32.mrb[27].mxu1  ;;  %v1533_v6 = vadd.f32 %v5883_v47, %v1492_v54  ;;  %v6857_v47 = vld [vmem:[#allocation237_spill] sm:$0xff] }
 0x388   :  { %v5974_v15 = vshrl.u32 %v1952_v33, 7 }
 0x389   :  { %1878 = vmatpush1.bf16.msra.mxu0 %v6848_v5 }
 0x38a   :  { %1879 = vmatprep.subr.bf16.mxu0 %v6849_v59  ;;  %v5979_v25 = vsub.s32 0, %v5974_v15  ;;  %v5984_v31 = vsub.s32 1, %v5974_v15 }
 0x38c   :  { %v1955_v1 = vrot.slane %v5981_v63, %v5979_v25  ;;  %v1959_v39 = vrot.slane %v5981_v63, %v5984_v31 }
 0x38d   :  { %1880 = vmatpush1.bf16.msra.mxu0 %v6850_v21 }
 0x38e   :  { %1881 = vmatprep.subr.bf16.mxu0 %v6851_v7 }
 0x391   :  { %1882 = vmatpush1.bf16.msra.mxu0 %v6852_v43 }
 0x392   :  { %1883 = vmatprep.subr.bf16.mxu0 %v6853_v16 }
 0x395   :  { %1884 = vmatpush1.bf16.msra.mxu0 %v6854_v18 }
 0x396   :  { %1885 = vmatprep.subr.bf16.mxu0 %v6855_v51 }
 0x399   :  { %1886 = vmatpush1.bf16.msra.mxu0 %v6856_v50 }
 0x39a   :  { %1887 = vmatprep.subr.bf16.mxu0 %v6857_v47 }
 0x39d   :  { %1888 = vmatpush1.bf16.msra.mxu0 %v6858_v26 }
 0x39e   :  { %1889 = vmatprep.subr.bf16.mxu0 %v6859_v23 }
 0x3a1   :  { %1890 = vmatpush1.bf16.msra.mxu0 %v6860_v0 }
 0x3a2   :  { %1891 = vmatprep.subr.bf16.mxu0 %v6861_v41 }
 0x3a3   :  { %v1571_v42 = vpop.f32.mrb[32].mxu0 }
 0x3a4   :  { %v5992_v34 = vpop.f32.mrb[28].mxu1  ;;  %v1572_v58 = vadd.f32 %v1571_v42, %v1531_v53  ;;  %v1573_v28 = vpop.f32.mrb[33].mxu0 }
 0x3a5   :  { %v5994_v32 = vpop.f32.mrb[29].mxu1  ;;  %v1574_v49 = vadd.f32 %v1573_v28, %v1533_v6  ;;  %v1575_v20 = vpop.f32.mrb[34].mxu0  ;;  %1892 = vmatpush1.bf16.msra.mxu0 %v6862_v30 }
 0x3a6   :  { %v1698_v22 = vpop.f32.mrb[30].mxu1  ;;  %v1972_v2 = vadd.f32 %v1955_v1, %v1572_v58  ;;  %v1576_v36 = vpop.f32.mrb[35].mxu0  ;;  %1893 = vmatprep.subr.bf16.mxu0 %v6863_v46  ;;  %v6020_v58 = vsub.s32 3, %v5974_v15 }
 0x3a7   :  { %v1699_v60 = vpop.f32.mrb[31].mxu1  ;;  %v1973_v48 = vadd.f32 %v1959_v39, %v1574_v49  ;;  %v6017_v39 = vsub.s32 2, %v5974_v15 }
 0x3a8   :  { %v2001_v61 = vrot.slane %v1972_v2, 4  ;;  %v1967_v46 = vrot.slane %v5981_v63, %v6020_v58 }
 0x3a9   :  { %v2007_v29 = vrot.slane %v1973_v48, 4  ;;  %1894 = vmatpush1.bf16.msra.mxu0 %v6864_v14  ;;  %v1963_v30 = vrot.slane %v5981_v63, %v6017_v39 }
 0x3aa   :  { %v2002_v44 = vadd.f32 %v2001_v61, %v1972_v2  ;;  %1895 = vmatprep.subr.bf16.mxu0 %v6865_v56 }
 0x3ab   :  { %v2008_v57 = vadd.f32 %v2007_v29, %v1973_v48 }
 0x3ac   :  { %v2003_v11 = vrot.slane %v2002_v44, 2 }
 0x3ad   :  { %v2009_v9 = vrot.slane %v2008_v57, 2  ;;  %1896 = vmatpush1.bf16.msra.mxu0 %v6866_v13 }
 0x3ae   :  { %v2004_v10 = vadd.f32 %v2003_v11, %v2002_v44 }
 0x3af   :  { %v2010_v4 = vadd.f32 %v2009_v9, %v2008_v57 }
 0x3b0   :  { %v2005_v52 = vrot.slane %v2004_v10, 1  ;;  %1898 = vmatmul.mubr.bf16.vlgmr.msra.gmra.mrb[48].mxu0 %v4896_v12 }
 0x3b1   :  { %v2011_v40 = vrot.slane %v2010_v4, 1 }
 0x3b2   :  { %v2006_v54 = vadd.f32 %v2005_v52, %v2004_v10 }
 0x3b3   :  { %v2012_v45 = vadd.f32 %v2011_v40, %v2010_v4 }
 0x3b4   :  { %v2026_v17 = vmul.f32 0.125, %v2006_v54 }
 0x3b5   :  { %v2027_v3 = vmul.f32 0.125, %v2012_v45 }
 0x3b6   :  { %v6002_v35 = vsub.f32 %v1972_v2, %v2026_v17 }
 0x3b7   :  { %v6004_v55 = vsub.f32 %v1973_v48, %v2027_v3 }
 0x3b8   :  { %v2034_v53 = vmul.f32 %v6002_v35, %v6002_v35 }
 0x3b9   :  { %v2035_v38 = vmul.f32 %v6004_v55, %v6004_v55 }
 0x3ba   :  { %v2038_v6 = vrot.slane %v2034_v53, 4 }
 0x3bb   :  { %v2044_v5 = vrot.slane %v2035_v38, 4 }
 0x3bc   :  { %v2039_v59 = vadd.f32 %v2038_v6, %v2034_v53 }
 0x3bd   :  { %v2045_v21 = vadd.f32 %v2044_v5, %v2035_v38 }
 0x3be   :  { %v2040_v12 = vrot.slane %v2039_v59, 2 }
 0x3bf   :  { %v2046_v7 = vrot.slane %v2045_v21, 2 }
 0x3c0   :  { %v2041_v43 = vadd.f32 %v2040_v12, %v2039_v59 }
 0x3c1   :  { %v2047_v16 = vadd.f32 %v2046_v7, %v2045_v21 }
 0x3c2   :  { %v2042_v18 = vrot.slane %v2041_v43, 1 }
 0x3c3   :  { %v2048_v51 = vrot.slane %v2047_v16, 1 }
 0x3c4   :  { %v2043_v33 = vadd.f32 %v2042_v18, %v2041_v43 }
 0x3c5   :  { %v2049_v50 = vadd.f32 %v2048_v51, %v2047_v16 }
 0x3c6   :  { %v2062_v47 = vmul.f32 0.125, %v2043_v33 }
 0x3c7   :  { %v2063_v26 = vmul.f32 0.125, %v2049_v50 }
 0x3c8   :  { %v2066_v23 = vadd.f32 1e-05, %v2062_v47 }
 0x3c9   :  { %v2067_v0 = vadd.f32 1e-05, %v2063_v26 }
 0x3ca   :  { %4489 = vrsqrt.f32 %v2066_v23 }
 0x3cb   :  { %4491 = vrsqrt.f32 %v2067_v0 }
 0x3d4   :  { %v6010_v1 = vpop.eup %4489 }
 0x3d5   :  { %v6012_v41 = vpop.eup %4491 }
 0x3d6   :  { %v2078_v42 = vcombine.low %v6010_v1, %v6012_v41  ;;  %v4706_v1 = vmov 1966171168  }
 0x3d7   :  { %v2081_v41 = vunpack.c.l.s4 %v4706_v1 }
 0x3e3   :  { %v1653_v28 = vpop.f32.mrb[36].mxu0 }
 0x3e4   :  { %v6022_v49 = vpop.f32.mrb[32].mxu1  ;;  %v1654_v20 = vadd.f32 %v1653_v28, %v5954_v8  ;;  %v1655_v22 = vpop.f32.mrb[37].mxu0  ;;  %v2082_v28 = vunpack.c.0.s8 %v2081_v41 }
 0x3e5   :  { %v6027_v2 = vpop.f32.mrb[33].mxu1  ;;  %v1656_v36 = vadd.f32 %v1655_v22, %v5958_v27  ;;  %v1657_v60 = vpop.f32.mrb[38].mxu0 }
 0x3e6   :  { %v1780_v48 = vpop.f32.mrb[34].mxu1  ;;  %v1695_v61 = vadd.f32 %v5992_v34, %v1654_v20  ;;  %v1658_v29 = vpop.f32.mrb[39].mxu0 }
 0x3e7   :  { %v1781_v14 = vpop.f32.mrb[35].mxu1  ;;  %v1697_v44 = vadd.f32 %v5994_v32, %v1656_v36 }
 0x3e8   :  { %v1974_v8 = vadd.f32 %v1963_v30, %v1695_v61  ;;  %v6035_v30 = vsub.s32 %v2082_v28, %v5974_v15  ;;  %v1949_v61 = vld [vmem:[#allocation14 + $0x8] sm:$0xf]  ;;  %v6040_v14 = vld [vmem:[#allocation14 + $0xc] sm:$0xf] }
 0x3e9   :  { %v1975_v56 = vadd.f32 %v1967_v46, %v1697_v44 }
 0x3ea   :  { %v2013_v57 = vrot.slane %v1974_v8, 4  ;;  %v2086_v46 = vrot.slane %v2078_v42, %v6035_v30 }
 0x3eb   :  { %v2019_v11 = vrot.slane %v1975_v56, 4 }
 0x3ec   :  { %v2014_v9 = vadd.f32 %v2013_v57, %v1974_v8 }
 0x3ed   :  { %v2020_v13 = vadd.f32 %v2019_v11, %v1975_v56 }
 0x3ee   :  { %v2015_v10 = vrot.slane %v2014_v9, 2 }
 0x3ef   :  { %v2021_v4 = vrot.slane %v2020_v13, 2 }
 0x3f0   :  { %v2016_v27 = vadd.f32 %v2015_v10, %v2014_v9  ;;  %v6051_v10 = vstv %s2154_s25 }
 0x3f1   :  { %v2022_v52 = vadd.f32 %v2021_v4, %v2020_v13  ;;  %v2137_v4 = vrot.slane %v6040_v14, %v5984_v31 }
 0x3f2   :  { %v2017_v40 = vrot.slane %v2016_v27, 1 }
 0x3f3   :  { %v2023_v63 = vrot.slane %v2022_v52, 1 }
 0x3f4   :  { %v2018_v54 = vadd.f32 %v2017_v40, %v2016_v27 }
 0x3f5   :  { %v2024_v45 = vadd.f32 %v2023_v63, %v2022_v52 }
 0x3f6   :  { %v2028_v17 = vmul.f32 0.125, %v2018_v54 }
 0x3f7   :  { %v2029_v34 = vmul.f32 0.125, %v2024_v45 }
 0x3f8   :  { %v2032_v3 = vsub.f32 %v1974_v8, %v2028_v17  ;;  %v2133_v8 = vrot.slane %v6040_v14, %v5979_v25 }
 0x3f9   :  { %v2033_v53 = vsub.f32 %v1975_v56, %v2029_v34 }
 0x3fa   :  { %v2036_v38 = vmul.f32 %v2032_v3, %v2032_v3 }
 0x3fb   :  { %v2037_v32 = vmul.f32 %v2033_v53, %v2033_v53 }
 0x3fc   :  { %v2050_v6 = vrot.slane %v2036_v38, 4 }
 0x3fd   :  { %v2056_v5 = vrot.slane %v2037_v32, 4 }
 0x3fe   :  { %v2051_v59 = vadd.f32 %v2050_v6, %v2036_v38 }
 0x3ff   :  { %v2057_v21 = vadd.f32 %v2056_v5, %v2037_v32 }
 0x400   :  { %v2052_v12 = vrot.slane %v2051_v59, 2 }
 0x401   :  { %v2058_v7 = vrot.slane %v2057_v21, 2 }
 0x402   :  { %v2053_v43 = vadd.f32 %v2052_v12, %v2051_v59 }
 0x403   :  { %v2059_v16 = vadd.f32 %v2058_v7, %v2057_v21 }
 0x404   :  { %v2054_v18 = vrot.slane %v2053_v43, 1 }
 0x405   :  { %v2060_v51 = vrot.slane %v2059_v16, 1 }
 0x406   :  { %v2055_v33 = vadd.f32 %v2054_v18, %v2053_v43 }
 0x407   :  { %v2061_v50 = vadd.f32 %v2060_v51, %v2059_v16 }
 0x408   :  { %v2064_v47 = vmul.f32 0.125, %v2055_v33 }
 0x409   :  { %v2065_v26 = vmul.f32 0.125, %v2061_v50 }
 0x40a   :  { %v2068_v23 = vadd.f32 1e-05, %v2064_v47 }
 0x40b   :  { %v2069_v0 = vadd.f32 1e-05, %v2065_v26 }
 0x40c   :  { %4493 = vrsqrt.f32 %v2068_v23 }
 0x40d   :  { %4495 = vrsqrt.f32 %v2069_v0 }
 0x416   :  { %v4494_v20 = vpop.eup %4493 }
 0x417   :  { %v4496_v22 = vpop.eup %4495 }
 0x418   :  { %v2079_v36 = vcombine.low %v4494_v20, %v4496_v22 }
 0x41a   :  { %v2093_v60 = vrot.slane %v2079_v36, %v6035_v30 }
 0x41c   :  { %v2094_v48 = vcombine.low %v2086_v46, %v2093_v60 }
 0x41e   :  { %v2101_v29 = vrot.slane %v2094_v48, %v6035_v30 }
 0x420   :  { %v2103_v44 = vmul.f32 %v2101_v29, %v1949_v61 }
 0x422   :  { %v2120_v56 = vrot.slane %v2103_v44, %v6020_v58  ;;  %v2108_v42 = vrot.slane %v2103_v44, %v5979_v25  ;;  %v2112_v57 = vrot.slane %v2103_v44, %v5984_v31  ;;  %v2116_v11 = vrot.slane %v2103_v44, %v6017_v39 }
 0x423   :  { %v1735_v9 = vpop.f32.mrb[40].mxu0 }
 0x424   :  { %v1858_v13 = vpop.f32.mrb[36].mxu1  ;;  %v2128_v27 = vmul.f32 %v2120_v56, %v2033_v53  ;;  %v1736_v52 = vadd.f32 %v1735_v9, %v5806_v24  ;;  %v1737_v63 = vpop.f32.mrb[41].mxu0  ;;  %v2125_v45 = vmul.f32 %v2108_v42, %v6002_v35  ;;  %v2126_v32 = vmul.f32 %v2112_v57, %v6004_v55 }
 0x425   :  { %v6057_v40 = vadd.f32 %v1858_v13, %v5889_v19  ;;  %v1860_v54 = vpop.f32.mrb[37].mxu1  ;;  %v1738_v17 = vadd.f32 %v1737_v63, %v5810_v62  ;;  %v1739_v38 = vpop.f32.mrb[42].mxu0  ;;  %v2127_v5 = vmul.f32 %v2116_v11, %v2032_v3  ;;  %v2141_v56 = vrot.slane %v6040_v14, %v6017_v39 }
 0x426   :  { %v6062_v34 = vadd.f32 %v1860_v54, %v5894_v37  ;;  %v1862_v6 = vpop.f32.mrb[38].mxu1  ;;  %v1740_v53 = vpop.f32.mrb[43].mxu0  ;;  %v1777_v24 = vadd.f32 %v6022_v49, %v1736_v52  ;;  %v2150_v59 = vadd.f32 %v2133_v8, %v2125_v45  ;;  %v2151_v12 = vadd.f32 %v2137_v4, %v2126_v32  ;;  %v1948_v49 = vld [vmem:[#allocation14 + $0x4] sm:$0xf] }
 0x427   :  { %v1863_v19 = vpop.f32.mrb[39].mxu1  ;;  %v1779_v21 = vadd.f32 %v6027_v2, %v1738_v17  ;;  %v1980_v2 = vrot.slane %v1948_v49, %v5979_v25  ;;  %v1984_v50 = vrot.slane %v1948_v49, %v5984_v31  ;;  %v2145_v42 = vrot.slane %v6040_v14, %v6020_v58 }
 0x428   :  { %v2156_v35 = vmul.f32 %v6051_v10, %v2150_v59  ;;  %v2157_v62 = vmul.f32 %v6051_v10, %v2151_v12  ;;  %v2152_v57 = vadd.f32 %v2141_v56, %v2127_v5 }
 0x429   :  { %v2153_v11 = vadd.f32 %v2145_v42, %v2128_v27  ;;  %v1988_v27 = vrot.slane %v1948_v49, %v6017_v39 }
 0x42a   :  { %v2160_v7 = vmin.f32 %v2156_v35, 80.0  ;;  %v2161_v37 = vmin.f32 %v2157_v62, 80.0  ;;  %v2158_v9 = vmul.f32 %v6051_v10, %v2152_v57 }
 0x42b   :  { %v2159_v13 = vmul.f32 %v6051_v10, %v2153_v11 }
 0x42c   :  { %v2164_v43 = vmul.f32 1.442695, %v2160_v7  ;;  %v2166_v16 = vmul.f32 1.442695, %v2161_v37  ;;  %v2162_v4 = vmin.f32 %v2158_v9, 80.0 }
 0x42d   :  { %v2163_v52 = vmin.f32 %v2159_v13, 80.0 }
 0x42e   :  { %4497 = vpow2.f32 %v2164_v43  ;;  %v2168_v63 = vmul.f32 1.442695, %v2162_v4 }
 0x42f   :  { %4499 = vpow2.f32 %v2166_v16  ;;  %v2170_v54 = vmul.f32 1.442695, %v2163_v52 }
 0x438   :  { %v4498_v55 = vpop.eup %4497 }
 0x439   :  { %v4500_v3 = vpop.eup %4499  ;;  %v2172_v18 = vadd.f32 1.0, %v4498_v55 }
 0x43a   :  { %v2173_v51 = vadd.f32 1.0, %v4500_v3 }
 0x43b   :  { %4501 = vrcp.f32 %v2172_v18 }
 0x43c   :  { %4503 = vrcp.f32 %v2173_v51 }
 0x43d   :  { %4505 = vpow2.f32 %v2168_v63 }
 0x43e   :  { %4507 = vpow2.f32 %v2170_v54 }
 0x443   :  { %v1817_v33 = vpop.f32.mrb[44].mxu0 }
 0x444   :  { %v1818_v47 = vadd.f32 %v1817_v33, %v1777_v24  ;;  %v1819_v26 = vpop.f32.mrb[45].mxu0 }
 0x445   :  { %v4502_v23 = vpop.eup %4501  ;;  %v1820_v0 = vadd.f32 %v1819_v26, %v1779_v21  ;;  %v1821_v1 = vpop.f32.mrb[46].mxu0 }
 0x446   :  { %v1940_v41 = vpop.f32.mrb[40].mxu1  ;;  %v4504_v28 = vpop.eup %4503  ;;  %v1997_v20 = vadd.f32 %v1980_v2, %v1818_v47  ;;  %v2180_v22 = vmul.f32 %v4502_v23, %v2150_v59  ;;  %v1992_v59 = vrot.slane %v1948_v49, %v6020_v58 }
 0x447   :  { %v1822_v36 = vpop.f32.mrb[47].mxu0  ;;  %v1942_v46 = vpop.f32.mrb[41].mxu1  ;;  %v1998_v60 = vadd.f32 %v1984_v50, %v1820_v0  ;;  %v2181_v48 = vmul.f32 %v4504_v28, %v2151_v12 }
 0x448   :  { %v1944_v61 = vpop.f32.mrb[42].mxu1  ;;  %v6071_v29 = vadd.f32 %v2180_v22, %v1997_v20  ;;  %v4506_v45 = vpop.eup %4505 }
 0x449   :  { %v1945_v44 = vpop.f32.mrb[43].mxu1  ;;  %v2185_v8 = vadd.f32 %v2181_v48, %v1998_v60  ;;  %v4508_v17 = vpop.eup %4507  ;;  %v2174_v38 = vadd.f32 1.0, %v4506_v45 }
 0x44a   :  { %v2175_v32 = vadd.f32 1.0, %v4508_v17 }
 0x44b   :  { %4509 = vrcp.f32 %v2174_v38 }
 0x44c   :  { %4511 = vrcp.f32 %v2175_v32 }
 0x455   :  { %v4510_v53 = vpop.eup %4509 }
 0x456   :  { %v4512_v21 = vpop.eup %4511  ;;  %v2182_v37 = vmul.f32 %v4510_v53, %v2152_v57 }
 0x457   :  { %v2183_v16 = vmul.f32 %v4512_v21, %v2153_v11 }
 0x483   :  { %v1899_v6 = vpop.f32.mrb[48].mxu0 }
 0x484   :  { %v1900_v14 = vadd.f32 %v1899_v6, %v6057_v40  ;;  %v1901_v5 = vpop.f32.mrb[49].mxu0 }
 0x485   :  { %v1902_v24 = vadd.f32 %v1901_v5, %v6062_v34  ;;  %v1903_v19 = vpop.f32.mrb[50].mxu0 }
 0x486   :  { %v1941_v12 = vadd.f32 %v1940_v41, %v1900_v14  ;;  %v1904_v35 = vpop.f32.mrb[51].mxu0 }
 0x487   :  { %v1943_v62 = vadd.f32 %v1942_v46, %v1902_v24 }
 0x488   :  { %v1999_v7 = vadd.f32 %v1988_v27, %v1941_v12 }
 0x489   :  { %v2000_v43 = vadd.f32 %v1992_v59, %v1943_v62 }
 0x48a   :  { %v6083_v55 = vadd.f32 %v2182_v37, %v1999_v7 }
 0x48b   :  { %v2187_v40 = vadd.f32 %v2183_v16, %v2000_v43 }
 0x48c   :  { %4657 = dma.done.wait [#allocation9 + $0x2], 16384 }
 0x48d   :  { %4658 = vsyncadd [#allocation9 + $0x2], 4294950912  ;;  %v6085_v3 = vpack.c.bf16 %v2185_v8, %v2185_v8  ;;  %v6087_v18 = vpack.c.bf16 %v2187_v40, %v2187_v40  ;;  %v2193_v34 = vld [vmem:[#allocation4 + $0x8] sm:$0xff]  ;;  %v2192_v49 = vld [vmem:[#allocation4] sm:$0xff] }
 0x48e   :  { %v2257_v51 = vld [vmem:[#allocation4 + $0x208] sm:$0xff]  ;;  %2324 = vmatprep.subr.bf16.mxu0 %v2193_v34  ;;  %v2256_v2 = vld [vmem:[#allocation4 + $0x200] sm:$0xff] }
 0x48f   :  { %2356 = vmatprep.mubr.bf16.mxu0 %v6085_v3  ;;  %2397 = vmatprep.mubr.bf16.mxu1 %v6087_v18  ;;  %v2197_v33 = vld [vmem:[#allocation4 + $0x28] sm:$0xff]  ;;  %v2196_v47 = vld [vmem:[#allocation4 + $0x20] sm:$0xff] }
 0x490   :  { %2365 = vmatprep.subr.bf16.mxu1 %v2257_v51  ;;  %v2261_v50 = vld [vmem:[#allocation4 + $0x228] sm:$0xff]  ;;  %2325 = vmatpush1.bf16.msra.mxu0 %v2192_v49  ;;  %v2260_v26 = vld [vmem:[#allocation4 + $0x220] sm:$0xff] }
 0x491   :  { %2366 = vmatpush1.bf16.msra.mxu1 %v2256_v2  ;;  %2326 = vmatprep.subr.bf16.mxu0 %v2197_v33  ;;  %v2201_v23 = vld [vmem:[#allocation4 + $0x48] sm:$0xff]  ;;  %v2200_v1 = vld [vmem:[#allocation4 + $0x40] sm:$0xff] }
 0x492   :  { %2367 = vmatprep.subr.bf16.mxu1 %v2261_v50  ;;  %v2265_v0 = vld [vmem:[#allocation4 + $0x248] sm:$0xff]  ;;  %v2264_v41 = vld [vmem:[#allocation4 + $0x240] sm:$0xff] }
 0x493   :  { %v2205_v28 = vld [vmem:[#allocation4 + $0x68] sm:$0xff]  ;;  %v2204_v22 = vld [vmem:[#allocation4 + $0x60] sm:$0xff] }
 0x494   :  { %2327 = vmatpush1.bf16.msra.mxu0 %v2196_v47  ;;  %v2269_v20 = vld [vmem:[#allocation4 + $0x268] sm:$0xff]  ;;  %v2268_v36 = vld [vmem:[#allocation4 + $0x260] sm:$0xff] }
 0x495   :  { %2368 = vmatpush1.bf16.msra.mxu1 %v2260_v26  ;;  %2328 = vmatprep.subr.bf16.mxu0 %v2201_v23  ;;  %v2209_v46 = vld [vmem:[#allocation4 + $0x88] sm:$0xff]  ;;  %v2208_v48 = vld [vmem:[#allocation4 + $0x80] sm:$0xff] }
 0x496   :  { %2369 = vmatprep.subr.bf16.mxu1 %v2265_v0  ;;  %v2273_v60 = vld [vmem:[#allocation4 + $0x288] sm:$0xff]  ;;  %v2272_v61 = vld [vmem:[#allocation4 + $0x280] sm:$0xff] }
 0x497   :  { %v2213_v44 = vld [vmem:[#allocation4 + $0xa8] sm:$0xff]  ;;  %v2212_v56 = vld [vmem:[#allocation4 + $0xa0] sm:$0xff] }
 0x498   :  { %2329 = vmatpush1.bf16.msra.mxu0 %v2200_v1  ;;  %v2277_v8 = vld [vmem:[#allocation4 + $0x2a8] sm:$0xff]  ;;  %v2276_v42 = vld [vmem:[#allocation4 + $0x2a0] sm:$0xff] }
 0x499   :  { %2370 = vmatpush1.bf16.msra.mxu1 %v2264_v41  ;;  %2330 = vmatprep.subr.bf16.mxu0 %v2205_v28  ;;  %v2217_v57 = vld [vmem:[#allocation4 + $0xc8] sm:$0xff]  ;;  %v2216_v9 = vld [vmem:[#allocation4 + $0xc0] sm:$0xff]  ;;  %v2195_v41 = vld [vmem:[#allocation4 + $0x18] sm:$0xff] }
 0x49a   :  { %2371 = vmatprep.subr.bf16.mxu1 %v2269_v20  ;;  %v2281_v11 = vld [vmem:[#allocation4 + $0x2c8] sm:$0xff]  ;;  %v2280_v13 = vld [vmem:[#allocation4 + $0x2c0] sm:$0xff]  ;;  %v2259_v28 = vld [vmem:[#allocation4 + $0x218] sm:$0xff]  ;;  %v6093_v20 = vpack.c.bf16 %v6071_v29, %v6071_v29 }
 0x49b   :  { %v2221_v4 = vld [vmem:[#allocation4 + $0xe8] sm:$0xff]  ;;  %v2220_v63 = vld [vmem:[#allocation4 + $0xe0] sm:$0xff]  ;;  %v2198_v29 = vld [vmem:[#allocation4 + $0x30] sm:$0xff] }
 0x49c   :  { %2331 = vmatpush1.bf16.msra.mxu0 %v2204_v22  ;;  %v2285_v52 = vld [vmem:[#allocation4 + $0x2e8] sm:$0xff]  ;;  %v2284_v54 = vld [vmem:[#allocation4 + $0x2e0] sm:$0xff]  ;;  %v6097_v22 = vpack.c.bf16 %v6083_v55, %v6083_v55  ;;  %v2203_v55 = vld [vmem:[#allocation4 + $0x58] sm:$0xff] }
 0x49d   :  { %2372 = vmatpush1.bf16.msra.mxu1 %v2268_v36  ;;  %2332 = vmatprep.subr.bf16.mxu0 %v2209_v46  ;;  %v2225_v45 = vld [vmem:[#allocation4 + $0x108] sm:$0xff]  ;;  %v2224_v38 = vld [vmem:[#allocation4 + $0x100] sm:$0xff]  ;;  %v2194_v36 = vld [vmem:[#allocation4 + $0x10] sm:$0xff] }
 0x49e   :  { %2373 = vmatprep.subr.bf16.mxu1 %v2273_v60  ;;  %v2289_v17 = vld [vmem:[#allocation4 + $0x308] sm:$0xff]  ;;  %v2288_v32 = vld [vmem:[#allocation4 + $0x300] sm:$0xff]  ;;  %v2258_v46 = vld [vmem:[#allocation4 + $0x210] sm:$0xff] }
 0x49f   :  { %v2229_v6 = vld [vmem:[#allocation4 + $0x128] sm:$0xff]  ;;  %v2228_v27 = vld [vmem:[#allocation4 + $0x120] sm:$0xff]  ;;  %v2199_v60 = vld [vmem:[#allocation4 + $0x38] sm:$0xff] }
 0x4a0   :  { %2333 = vmatpush1.bf16.msra.mxu0 %v2208_v48  ;;  %v2293_v14 = vld [vmem:[#allocation4 + $0x328] sm:$0xff]  ;;  %v2292_v5 = vld [vmem:[#allocation4 + $0x320] sm:$0xff]  ;;  %v2263_v48 = vld [vmem:[#allocation4 + $0x238] sm:$0xff] }
 0x4a1   :  { %2374 = vmatpush1.bf16.msra.mxu1 %v2272_v61  ;;  %2334 = vmatprep.subr.bf16.mxu0 %v2213_v44  ;;  %v2233_v53 = vld [vmem:[#allocation4 + $0x148] sm:$0xff]  ;;  %v2232_v59 = vld [vmem:[#allocation4 + $0x140] sm:$0xff]  ;;  %v2262_v61 = vld [vmem:[#allocation4 + $0x230] sm:$0xff] }
 0x4a2   :  { %2375 = vmatprep.subr.bf16.mxu1 %v2277_v8  ;;  %v2297_v24 = vld [vmem:[#allocation4 + $0x348] sm:$0xff]  ;;  %v2296_v19 = vld [vmem:[#allocation4 + $0x340] sm:$0xff]  ;;  %v2267_v44 = vld [vmem:[#allocation4 + $0x258] sm:$0xff] }
 0x4a3   :  { %v2237_v21 = vld [vmem:[#allocation4 + $0x168] sm:$0xff]  ;;  %v2236_v35 = vld [vmem:[#allocation4 + $0x160] sm:$0xff]  ;;  %v2202_v8 = vld [vmem:[#allocation4 + $0x50] sm:$0xff] }
 0x4a4   :  { %2335 = vmatpush1.bf16.msra.mxu0 %v2212_v56  ;;  %v2301_v12 = vld [vmem:[#allocation4 + $0x368] sm:$0xff]  ;;  %v2300_v62 = vld [vmem:[#allocation4 + $0x360] sm:$0xff]  ;;  %v2266_v56 = vld [vmem:[#allocation4 + $0x250] sm:$0xff] }
 0x4a5   :  { %2376 = vmatpush1.bf16.msra.mxu1 %v2276_v42  ;;  %2336 = vmatprep.subr.bf16.mxu0 %v2217_v57  ;;  %v2241_v7 = vld [vmem:[#allocation4 + $0x188] sm:$0xff]  ;;  %v2240_v43 = vld [vmem:[#allocation4 + $0x180] sm:$0xff]  ;;  %v2207_v42 = vld [vmem:[#allocation4 + $0x78] sm:$0xff] }
 0x4a6   :  { %2377 = vmatprep.subr.bf16.mxu1 %v2281_v11  ;;  %v2305_v37 = vld [vmem:[#allocation4 + $0x388] sm:$0xff]  ;;  %v2304_v16 = vld [vmem:[#allocation4 + $0x380] sm:$0xff]  ;;  %v2271_v57 = vld [vmem:[#allocation4 + $0x278] sm:$0xff] }
 0x4a7   :  { %v2245_v40 = vld [vmem:[#allocation4 + $0x1a8] sm:$0xff]  ;;  %v2244_v51 = vld [vmem:[#allocation4 + $0x1a0] sm:$0xff]  ;;  %v2206_v11 = vld [vmem:[#allocation4 + $0x70] sm:$0xff] }
 0x4a8   :  { %2337 = vmatpush1.bf16.msra.mxu0 %v2216_v9  ;;  %v2309_v34 = vld [vmem:[#allocation4 + $0x3a8] sm:$0xff]  ;;  %v2308_v49 = vld [vmem:[#allocation4 + $0x3a0] sm:$0xff]  ;;  %v2270_v9 = vld [vmem:[#allocation4 + $0x270] sm:$0xff] }
 0x4a9   :  { %2378 = vmatpush1.bf16.msra.mxu1 %v2280_v13  ;;  %2338 = vmatprep.subr.bf16.mxu0 %v2221_v4  ;;  %v2249_v2 = vld [vmem:[#allocation4 + $0x1c8] sm:$0xff]  ;;  %v2248_v50 = vld [vmem:[#allocation4 + $0x1c0] sm:$0xff]  ;;  %v2211_v13 = vld [vmem:[#allocation4 + $0x98] sm:$0xff] }
 0x4aa   :  { %2379 = vmatprep.subr.bf16.mxu1 %v2285_v52  ;;  %v2313_v33 = vld [vmem:[#allocation4 + $0x3c8] sm:$0xff]  ;;  %v2312_v47 = vld [vmem:[#allocation4 + $0x3c0] sm:$0xff]  ;;  %v2275_v4 = vld [vmem:[#allocation4 + $0x298] sm:$0xff] }
 0x4ab   :  { %v2253_v26 = vld [vmem:[#allocation4 + $0x1e8] sm:$0xff]  ;;  %v2252_v0 = vld [vmem:[#allocation4 + $0x1e0] sm:$0xff]  ;;  %v2215_v52 = vld [vmem:[#allocation4 + $0xb8] sm:$0xff] }
 0x4ac   :  { %2339 = vmatpush1.bf16.msra.mxu0 %v2220_v63  ;;  %v2317_v23 = vld [vmem:[#allocation4 + $0x3e8] sm:$0xff]  ;;  %v2316_v1 = vld [vmem:[#allocation4 + $0x3e0] sm:$0xff]  ;;  %v2279_v63 = vld [vmem:[#allocation4 + $0x2b8] sm:$0xff] }
 0x4ad   :  { %2380 = vmatpush1.bf16.msra.mxu1 %v2284_v54  ;;  %2340 = vmatprep.subr.bf16.mxu0 %v2225_v45  ;;  %v2214_v54 = vld [vmem:[#allocation4 + $0xb0] sm:$0xff] }
 0x4ae   :  { %2381 = vmatprep.subr.bf16.mxu1 %v2289_v17  ;;  %v2278_v45 = vld [vmem:[#allocation4 + $0x2b0] sm:$0xff]  ;;  %v2219_v17 = vld [vmem:[#allocation4 + $0xd8] sm:$0xff] }
 0x4b0   :  { %2341 = vmatpush1.bf16.msra.mxu0 %v2224_v38  ;;  %v2283_v38 = vld [vmem:[#allocation4 + $0x2d8] sm:$0xff] }
 0x4b1   :  { %2382 = vmatpush1.bf16.msra.mxu1 %v2288_v32  ;;  %2342 = vmatprep.subr.bf16.mxu0 %v2229_v6  ;;  %v2218_v32 = vld [vmem:[#allocation4 + $0xd0] sm:$0xff] }
 0x4b2   :  { %2383 = vmatprep.subr.bf16.mxu1 %v2293_v14  ;;  %v2282_v6 = vld [vmem:[#allocation4 + $0x2d0] sm:$0xff]  ;;  %v2223_v14 = vld [vmem:[#allocation4 + $0xf8] sm:$0xff] }
 0x4b4   :  { %2343 = vmatpush1.bf16.msra.mxu0 %v2228_v27  ;;  %v2287_v27 = vld [vmem:[#allocation4 + $0x2f8] sm:$0xff] }
 0x4b5   :  { %2384 = vmatpush1.bf16.msra.mxu1 %v2292_v5  ;;  %2344 = vmatprep.subr.bf16.mxu0 %v2233_v53  ;;  %v2222_v5 = vld [vmem:[#allocation4 + $0xf0] sm:$0xff] }
 0x4b6   :  { %2385 = vmatprep.subr.bf16.mxu1 %v2297_v24  ;;  %v2286_v53 = vld [vmem:[#allocation4 + $0x2f0] sm:$0xff]  ;;  %v2227_v24 = vld [vmem:[#allocation4 + $0x118] sm:$0xff] }
 0x4b8   :  { %2345 = vmatpush1.bf16.msra.mxu0 %v2232_v59  ;;  %v2291_v59 = vld [vmem:[#allocation4 + $0x318] sm:$0xff] }
 0x4b9   :  { %2386 = vmatpush1.bf16.msra.mxu1 %v2296_v19  ;;  %2346 = vmatprep.subr.bf16.mxu0 %v2237_v21  ;;  %v2226_v19 = vld [vmem:[#allocation4 + $0x110] sm:$0xff] }
 0x4ba   :  { %2387 = vmatprep.subr.bf16.mxu1 %v2301_v12  ;;  %v2290_v21 = vld [vmem:[#allocation4 + $0x310] sm:$0xff]  ;;  %v2231_v12 = vld [vmem:[#allocation4 + $0x138] sm:$0xff] }
 0x4bc   :  { %2347 = vmatpush1.bf16.msra.mxu0 %v2236_v35  ;;  %v2295_v35 = vld [vmem:[#allocation4 + $0x338] sm:$0xff] }
 0x4bd   :  { %2388 = vmatpush1.bf16.msra.mxu1 %v2300_v62  ;;  %2348 = vmatprep.subr.bf16.mxu0 %v2241_v7  ;;  %v2230_v62 = vld [vmem:[#allocation4 + $0x130] sm:$0xff] }
 0x4be   :  { %2389 = vmatprep.subr.bf16.mxu1 %v2305_v37  ;;  %v2294_v7 = vld [vmem:[#allocation4 + $0x330] sm:$0xff]  ;;  %v2235_v37 = vld [vmem:[#allocation4 + $0x158] sm:$0xff] }
 0x4c0   :  { %2349 = vmatpush1.bf16.msra.mxu0 %v2240_v43  ;;  %v2299_v43 = vld [vmem:[#allocation4 + $0x358] sm:$0xff] }
 0x4c1   :  { %2390 = vmatpush1.bf16.msra.mxu1 %v2304_v16  ;;  %2350 = vmatprep.subr.bf16.mxu0 %v2245_v40  ;;  %v2234_v16 = vld [vmem:[#allocation4 + $0x150] sm:$0xff] }
 0x4c2   :  { %2391 = vmatprep.subr.bf16.mxu1 %v2309_v34  ;;  %v2298_v40 = vld [vmem:[#allocation4 + $0x350] sm:$0xff]  ;;  %v2239_v34 = vld [vmem:[#allocation4 + $0x178] sm:$0xff] }
 0x4c4   :  { %2351 = vmatpush1.bf16.msra.mxu0 %v2244_v51  ;;  %v2303_v51 = vld [vmem:[#allocation4 + $0x378] sm:$0xff] }
 0x4c5   :  { %2392 = vmatpush1.bf16.msra.mxu1 %v2308_v49  ;;  %2352 = vmatprep.subr.bf16.mxu0 %v2249_v2  ;;  %v2238_v49 = vld [vmem:[#allocation4 + $0x170] sm:$0xff] }
 0x4c6   :  { %2393 = vmatprep.subr.bf16.mxu1 %v2313_v33  ;;  %v2302_v2 = vld [vmem:[#allocation4 + $0x370] sm:$0xff]  ;;  %v2243_v33 = vld [vmem:[#allocation4 + $0x198] sm:$0xff] }
 0x4c8   :  { %2353 = vmatpush1.bf16.msra.mxu0 %v2248_v50  ;;  %v2307_v50 = vld [vmem:[#allocation4 + $0x398] sm:$0xff] }
 0x4c9   :  { %2394 = vmatpush1.bf16.msra.mxu1 %v2312_v47  ;;  %2354 = vmatprep.subr.bf16.mxu0 %v2253_v26  ;;  %v2242_v47 = vld [vmem:[#allocation4 + $0x190] sm:$0xff] }
 0x4ca   :  { %2395 = vmatprep.subr.bf16.mxu1 %v2317_v23  ;;  %v2306_v26 = vld [vmem:[#allocation4 + $0x390] sm:$0xff]  ;;  %v2247_v23 = vld [vmem:[#allocation4 + $0x1b8] sm:$0xff] }
 0x4cc   :  { %2355 = vmatpush1.bf16.msra.mxu0 %v2252_v0  ;;  %v2311_v0 = vld [vmem:[#allocation4 + $0x3b8] sm:$0xff] }
 0x4cd   :  { %2396 = vmatpush1.bf16.msra.mxu1 %v2316_v1  ;;  %2406 = vmatprep.subr.bf16.mxu0 %v2195_v41  ;;  %v2246_v1 = vld [vmem:[#allocation4 + $0x1b0] sm:$0xff] }
 0x4ce   :  { %2447 = vmatprep.subr.bf16.mxu1 %v2259_v28  ;;  %v2310_v41 = vld [vmem:[#allocation4 + $0x3b0] sm:$0xff]  ;;  %v2251_v28 = vld [vmem:[#allocation4 + $0x1d8] sm:$0xff] }
 0x4cf   :  { %2357 = vmatmul.mubr.bf16.vlgmr.msra.gmra.mrb[52].mxu0 %v6093_v20 }
 0x4d0   :  { %2398 = vmatmul.mubr.bf16.vlgmr.msra.gmra.mrb[44].mxu1 %v6097_v22  ;;  %2407 = vmatpush1.bf16.msra.mxu0 %v2194_v36  ;;  %v2315_v36 = vld [vmem:[#allocation4 + $0x3d8] sm:$0xff] }
 0x4d1   :  { %2448 = vmatpush1.bf16.msra.mxu1 %v2258_v46  ;;  %2408 = vmatprep.subr.bf16.mxu0 %v2199_v60  ;;  %v2250_v46 = vld [vmem:[#allocation4 + $0x1d0] sm:$0xff] }
 0x4d2   :  { %2449 = vmatprep.subr.bf16.mxu1 %v2263_v48  ;;  %2438 = vmatprep.mubr.bf16.mxu0 %v6085_v3  ;;  %v2210_v3 = vld [vmem:[#allocation4 + $0x90] sm:$0xff]  ;;  %v2255_v48 = vld [vmem:[#allocation4 + $0x1f8] sm:$0xff] }
 0x4d3   :  { %2479 = vmatprep.mubr.bf16.mxu1 %v6087_v18  ;;  %v2274_v18 = vld [vmem:[#allocation4 + $0x290] sm:$0xff] }
 0x4d4   :  { %2409 = vmatpush1.bf16.msra.mxu0 %v2198_v29  ;;  %v2314_v60 = vld [vmem:[#allocation4 + $0x3d0] sm:$0xff]  ;;  %v2319_v29 = vld [vmem:[#allocation4 + $0x3f8] sm:$0xff] }
 0x4d5   :  { %2450 = vmatpush1.bf16.msra.mxu1 %v2262_v61  ;;  %2410 = vmatprep.subr.bf16.mxu0 %v2203_v55  ;;  %v2254_v61 = vld [vmem:[#allocation4 + $0x1f0] sm:$0xff] }
 0x4d6   :  { %2451 = vmatprep.subr.bf16.mxu1 %v2267_v44  ;;  %v2318_v55 = vld [vmem:[#allocation4 + $0x3f0] sm:$0xff]  ;;  %v2488_v44 = vld [vmem:[#allocation14 + $0x10] sm:$0x3] }
 0x4d8   :  { %2411 = vmatpush1.bf16.msra.mxu0 %v2202_v8  ;;  %v2496_v8 = vrot.slane %v2488_v44, %v5979_v25 }
 0x4d9   :  { %2452 = vmatpush1.bf16.msra.mxu1 %v2266_v56  ;;  %2412 = vmatprep.subr.bf16.mxu0 %v2207_v42 }
 0x4da   :  { %2453 = vmatprep.subr.bf16.mxu1 %v2271_v57  ;;  %v2500_v57 = vrot.slane %v2488_v44, %v5984_v31 }
 0x4dc   :  { %2413 = vmatpush1.bf16.msra.mxu0 %v2206_v11 }
 0x4dd   :  { %2454 = vmatpush1.bf16.msra.mxu1 %v2270_v9  ;;  %2414 = vmatprep.subr.bf16.mxu0 %v2211_v13 }
 0x4de   :  { %2455 = vmatprep.subr.bf16.mxu1 %v2275_v4 }
 0x4e0   :  { %2415 = vmatpush1.bf16.msra.mxu0 %v2210_v3 }
 0x4e1   :  { %2456 = vmatpush1.bf16.msra.mxu1 %v2274_v18  ;;  %2416 = vmatprep.subr.bf16.mxu0 %v2215_v52 }
 0x4e2   :  { %2457 = vmatprep.subr.bf16.mxu1 %v2279_v63 }
 0x4e4   :  { %2417 = vmatpush1.bf16.msra.mxu0 %v2214_v54 }
 0x4e5   :  { %2458 = vmatpush1.bf16.msra.mxu1 %v2278_v45  ;;  %2418 = vmatprep.subr.bf16.mxu0 %v2219_v17 }
 0x4e6   :  { %2459 = vmatprep.subr.bf16.mxu1 %v2283_v38 }
 0x4e8   :  { %2419 = vmatpush1.bf16.msra.mxu0 %v2218_v32 }
 0x4e9   :  { %2460 = vmatpush1.bf16.msra.mxu1 %v2282_v6  ;;  %2420 = vmatprep.subr.bf16.mxu0 %v2223_v14 }
 0x4ea   :  { %2461 = vmatprep.subr.bf16.mxu1 %v2287_v27 }
 0x4ec   :  { %2421 = vmatpush1.bf16.msra.mxu0 %v2222_v5 }
 0x4ed   :  { %2462 = vmatpush1.bf16.msra.mxu1 %v2286_v53  ;;  %2422 = vmatprep.subr.bf16.mxu0 %v2227_v24 }
 0x4ee   :  { %2463 = vmatprep.subr.bf16.mxu1 %v2291_v59 }
 0x4f0   :  { %2423 = vmatpush1.bf16.msra.mxu0 %v2226_v19 }
 0x4f1   :  { %2464 = vmatpush1.bf16.msra.mxu1 %v2290_v21  ;;  %2424 = vmatprep.subr.bf16.mxu0 %v2231_v12 }
 0x4f2   :  { %2465 = vmatprep.subr.bf16.mxu1 %v2295_v35 }
 0x4f4   :  { %2425 = vmatpush1.bf16.msra.mxu0 %v2230_v62 }
 0x4f5   :  { %2466 = vmatpush1.bf16.msra.mxu1 %v2294_v7  ;;  %2426 = vmatprep.subr.bf16.mxu0 %v2235_v37 }
 0x4f6   :  { %2467 = vmatprep.subr.bf16.mxu1 %v2299_v43 }
 0x4f8   :  { %2427 = vmatpush1.bf16.msra.mxu0 %v2234_v16 }
 0x4f9   :  { %2468 = vmatpush1.bf16.msra.mxu1 %v2298_v40  ;;  %2428 = vmatprep.subr.bf16.mxu0 %v2239_v34 }
 0x4fa   :  { %2469 = vmatprep.subr.bf16.mxu1 %v2303_v51 }
 0x4fc   :  { %2429 = vmatpush1.bf16.msra.mxu0 %v2238_v49 }
 0x4fd   :  { %2470 = vmatpush1.bf16.msra.mxu1 %v2302_v2  ;;  %2430 = vmatprep.subr.bf16.mxu0 %v2243_v33 }
 0x4fe   :  { %2471 = vmatprep.subr.bf16.mxu1 %v2307_v50 }
 0x500   :  { %2431 = vmatpush1.bf16.msra.mxu0 %v2242_v47 }
 0x501   :  { %2472 = vmatpush1.bf16.msra.mxu1 %v2306_v26  ;;  %2432 = vmatprep.subr.bf16.mxu0 %v2247_v23 }
 0x502   :  { %2473 = vmatprep.subr.bf16.mxu1 %v2311_v0 }
 0x504   :  { %2433 = vmatpush1.bf16.msra.mxu0 %v2246_v1 }
 0x505   :  { %2474 = vmatpush1.bf16.msra.mxu1 %v2310_v41  ;;  %2434 = vmatprep.subr.bf16.mxu0 %v2251_v28 }
 0x506   :  { %2475 = vmatprep.subr.bf16.mxu1 %v2315_v36 }
 0x508   :  { %2435 = vmatpush1.bf16.msra.mxu0 %v2250_v46 }
 0x509   :  { %2476 = vmatpush1.bf16.msra.mxu1 %v2314_v60  ;;  %2436 = vmatprep.subr.bf16.mxu0 %v2255_v48  ;;  %v2490_v48 = vld [vmem:[#allocation14 + $0x14] sm:$0x3] }
 0x50a   :  { %2477 = vmatprep.subr.bf16.mxu1 %v2319_v29 }
 0x50c   :  { %2437 = vmatpush1.bf16.msra.mxu0 %v2254_v61  ;;  %v2491_v61 = vld [vmem:[#allocation14 + $0x16] sm:$0x3] }
 0x50d   :  { %2478 = vmatpush1.bf16.msra.mxu1 %v2318_v55 }
 0x50f   :  { %2439 = vmatmul.mubr.bf16.vlgmr.msra.gmra.mrb[56].mxu0 %v6093_v20 }
 0x510   :  { %2480 = vmatmul.mubr.bf16.vlgmr.msra.gmra.mrb[48].mxu1 %v6097_v22 }
 0x5a2   :  { %v2358_v56 = vpop.f32.mrb[52].mxu0 }
 0x5a3   :  { %v2399_v42 = vpop.f32.mrb[44].mxu1  ;;  %v2360_v9 = vpop.f32.mrb[53].mxu0 }
 0x5a4   :  { %v2400_v11 = vadd.f32 %v2399_v42, %v2358_v56  ;;  %v2401_v13 = vpop.f32.mrb[45].mxu1  ;;  %v2362_v3 = vpop.f32.mrb[54].mxu0  ;;  %v2590_v56 = vrot.slane %v2491_v61, %v5979_v25  ;;  %v2594_v42 = vrot.slane %v2491_v61, %v5984_v31 }
 0x5a5   :  { %v2402_v4 = vadd.f32 %v2401_v13, %v2360_v9  ;;  %v2403_v18 = vpop.f32.mrb[46].mxu1  ;;  %v2363_v63 = vpop.f32.mrb[55].mxu0 }
 0x5a6   :  { %v2503_v52 = vadd.f32 %v2496_v8, %v2400_v11  ;;  %v2404_v54 = vpop.f32.mrb[47].mxu1 }
 0x5a7   :  { %v2504_v45 = vadd.f32 %v2500_v57, %v2402_v4 }
 0x5a8   :  { %v2518_v20 = vrot.slane %v2503_v52, 4 }
 0x5a9   :  { %v2524_v17 = vrot.slane %v2504_v45, 4 }
 0x5aa   :  { %v2519_v22 = vadd.f32 %v2518_v20, %v2503_v52 }
 0x5ab   :  { %v2525_v38 = vadd.f32 %v2524_v17, %v2504_v45 }
 0x5ac   :  { %v2520_v32 = vrot.slane %v2519_v22, 2 }
 0x5ad   :  { %v2526_v6 = vrot.slane %v2525_v38, 2 }
 0x5ae   :  { %v2521_v14 = vadd.f32 %v2520_v32, %v2519_v22 }
 0x5af   :  { %v2527_v27 = vadd.f32 %v2526_v6, %v2525_v38 }
 0x5b0   :  { %v2522_v5 = vrot.slane %v2521_v14, 1 }
 0x5b1   :  { %v2528_v53 = vrot.slane %v2527_v27, 1 }
 0x5b2   :  { %v2523_v24 = vadd.f32 %v2522_v5, %v2521_v14 }
 0x5b3   :  { %v2529_v59 = vadd.f32 %v2528_v53, %v2527_v27 }
 0x5b4   :  { %v2530_v19 = vmul.f32 0.125, %v2523_v24 }
 0x5b5   :  { %v2531_v21 = vmul.f32 0.125, %v2529_v59 }
 0x5b6   :  { %v2532_v12 = vsub.f32 %v2503_v52, %v2530_v19 }
 0x5b7   :  { %v2533_v35 = vsub.f32 %v2504_v45, %v2531_v21  ;;  %v2489_v21 = vld [vmem:[#allocation14 + $0x12] sm:$0x3] }
 0x5b8   :  { %v2534_v62 = vmul.f32 %v2532_v12, %v2532_v12 }
 0x5b9   :  { %v2535_v7 = vmul.f32 %v2533_v35, %v2533_v35 }
 0x5ba   :  { %v2536_v37 = vrot.slane %v2534_v62, 4 }
 0x5bb   :  { %v2542_v43 = vrot.slane %v2535_v7, 4 }
 0x5bc   :  { %v2537_v16 = vadd.f32 %v2536_v37, %v2534_v62 }
 0x5bd   :  { %v2543_v40 = vadd.f32 %v2542_v43, %v2535_v7 }
 0x5be   :  { %v2538_v34 = vrot.slane %v2537_v16, 2 }
 0x5bf   :  { %v2544_v51 = vrot.slane %v2543_v40, 2 }
 0x5c0   :  { %v2539_v49 = vadd.f32 %v2538_v34, %v2537_v16 }
 0x5c1   :  { %v2545_v2 = vadd.f32 %v2544_v51, %v2543_v40 }
 0x5c2   :  { %v2540_v33 = vrot.slane %v2539_v49, 1 }
 0x5c3   :  { %v2546_v50 = vrot.slane %v2545_v2, 1 }
 0x5c4   :  { %v2541_v47 = vadd.f32 %v2540_v33, %v2539_v49 }
 0x5c5   :  { %v2547_v26 = vadd.f32 %v2546_v50, %v2545_v2 }
 0x5c6   :  { %v2548_v23 = vmul.f32 0.125, %v2541_v47 }
 0x5c7   :  { %v2549_v0 = vmul.f32 0.125, %v2547_v26 }
 0x5c8   :  { %v2550_v1 = vadd.f32 1e-05, %v2548_v23 }
 0x5c9   :  { %v2551_v41 = vadd.f32 1e-05, %v2549_v0 }
 0x5ca   :  { %4513 = vrsqrt.f32 %v2550_v1 }
 0x5cb   :  { %4515 = vrsqrt.f32 %v2551_v41 }
 0x5d4   :  { %v4514_v28 = vpop.eup %4513 }
 0x5d5   :  { %v4516_v36 = vpop.eup %4515 }
 0x5d6   :  { %v2556_v46 = vcombine.low %v4514_v28, %v4516_v36 }
 0x5d8   :  { %v2563_v60 = vrot.slane %v2556_v46, %v6035_v30 }
 0x5da   :  { %v2570_v29 = vrot.slane %v2563_v60, %v6035_v30 }
 0x5dc   :  { %v2572_v55 = vmul.f32 %v2570_v29, %v2490_v48 }
 0x5de   :  { %v2581_v44 = vrot.slane %v2572_v55, %v5984_v31  ;;  %v2577_v8 = vrot.slane %v2572_v55, %v5979_v25 }
 0x5e0   :  { %v2585_v57 = vmul.f32 %v2581_v44, %v2533_v35  ;;  %v2584_v11 = vmul.f32 %v2577_v8, %v2532_v12  ;;  %v2509_v12 = vrot.slane %v2489_v21, %v5979_v25  ;;  %v2513_v35 = vrot.slane %v2489_v21, %v5984_v31 }
 0x5e2   :  { %v2597_v9 = vadd.f32 %v2590_v56, %v2584_v11  ;;  %v2598_v13 = vadd.f32 %v2594_v42, %v2585_v57  ;;  %v2440_v4 = vpop.f32.mrb[56].mxu0 }
 0x5e3   :  { %v2481_v3 = vpop.f32.mrb[48].mxu1  ;;  %v2442_v63 = vpop.f32.mrb[57].mxu0 }
 0x5e4   :  { %v2482_v18 = vadd.f32 %v2481_v3, %v2440_v4  ;;  %v2599_v52 = vmul.f32 %v2597_v9, %v6051_v10  ;;  %v2483_v54 = vpop.f32.mrb[49].mxu1  ;;  %v2600_v45 = vmul.f32 %v2598_v13, %v6051_v10  ;;  %v2444_v17 = vpop.f32.mrb[58].mxu0 }
 0x5e5   :  { %v2484_v20 = vadd.f32 %v2483_v54, %v2442_v63  ;;  %v2485_v22 = vpop.f32.mrb[50].mxu1  ;;  %v2445_v6 = vpop.f32.mrb[59].mxu0 }
 0x5e6   :  { %v2601_v38 = vmin.f32 %v2599_v52, 80.0  ;;  %v2602_v32 = vmin.f32 %v2600_v45, 80.0  ;;  %v2486_v14 = vpop.f32.mrb[51].mxu1  ;;  %v2516_v62 = vadd.f32 %v2509_v12, %v2482_v18 }
 0x5e7   :  { %v2517_v37 = vadd.f32 %v2513_v35, %v2484_v20 }
 0x5e8   :  { %v2603_v27 = vmul.f32 1.442695, %v2601_v38  ;;  %v2605_v5 = vmul.f32 1.442695, %v2602_v32 }
 0x5ea   :  { %4517 = vpow2.f32 %v2603_v27 }
 0x5eb   :  { %4519 = vpow2.f32 %v2605_v5 }
 0x5f4   :  { %v4518_v53 = vpop.eup %4517 }
 0x5f5   :  { %v4520_v24 = vpop.eup %4519  ;;  %v2607_v59 = vadd.f32 1.0, %v4518_v53 }
 0x5f6   :  { %v2608_v19 = vadd.f32 1.0, %v4520_v24 }
 0x5f7   :  { %4521 = vrcp.f32 %v2607_v59 }
 0x5f8   :  { %4523 = vrcp.f32 %v2608_v19 }
 0x601   :  { %v4522_v7 = vpop.eup %4521 }
 0x602   :  { %v4524_v43 = vpop.eup %4523  ;;  %v2611_v16 = vmul.f32 %v4522_v7, %v2597_v9 }
 0x603   :  { %v2612_v40 = vmul.f32 %v4524_v43, %v2598_v13 }
 0x604   :  { %v6117_v34 = vadd.f32 %v2611_v16, %v2516_v62 }
 0x605   :  { %v2614_v51 = vadd.f32 %v2612_v40, %v2517_v37 }
 0x606   :  { %4659 = dma.done.wait [#allocation9 + $0x3], 4096 }
 0x607   :  { %4660 = vsyncadd [#allocation9 + $0x3], 4294963200  ;;  %v2653_v49 = vpack.c.bf16 %v2614_v51, %v2614_v51  ;;  %v2621_v2 = vld [vmem:[#allocation5 + $0x8] sm:$0xff]  ;;  %v2620_v33 = vld [vmem:[#allocation5] sm:$0xff]  ;;  %v2652_v20 = vpack.c.bf16 %v6117_v34, %v6117_v34 }
 0x608   :  { %v2623_v50 = vld [vmem:[#allocation5 + $0x18] sm:$0xff]  ;;  %2665 = vmatprep.subr.bf16.mxu0 %v2621_v2  ;;  %v2622_v47 = vld [vmem:[#allocation5 + $0x10] sm:$0xff]  ;;  %v2625_v26 = vld [vmem:[#allocation5 + $0x28] sm:$0xff] }
 0x609   :  { %2697 = vmatprep.mubr.bf16.mxu0 %v2653_v49  ;;  %2666 = vmatpush1.bf16.msra.mxu0 %v2620_v33  ;;  %v2624_v23 = vld [vmem:[#allocation5 + $0x20] sm:$0xff]  ;;  %v2627_v0 = vld [vmem:[#allocation5 + $0x38] sm:$0xff]  ;;  %v2626_v1 = vld [vmem:[#allocation5 + $0x30] sm:$0xff] }
 0x60a   :  { %2667 = vmatprep.subr.bf16.mxu0 %v2623_v50  ;;  %v2629_v41 = vld [vmem:[#allocation5 + $0x48] sm:$0xff]  ;;  %v2628_v28 = vld [vmem:[#allocation5 + $0x40] sm:$0xff]  ;;  %v2631_v36 = vld [vmem:[#allocation5 + $0x58] sm:$0xff] }
 0x60b   :  { %v2630_v46 = vld [vmem:[#allocation5 + $0x50] sm:$0xff]  ;;  %v2633_v60 = vld [vmem:[#allocation5 + $0x68] sm:$0xff]  ;;  %v2632_v48 = vld [vmem:[#allocation5 + $0x60] sm:$0xff] }
 0x60c   :  { %v2635_v29 = vld [vmem:[#allocation5 + $0x78] sm:$0xff]  ;;  %v2634_v61 = vld [vmem:[#allocation5 + $0x70] sm:$0xff]  ;;  %v2637_v55 = vld [vmem:[#allocation5 + $0x88] sm:$0xff] }
 0x60d   :  { %2668 = vmatpush1.bf16.msra.mxu0 %v2622_v47  ;;  %v2636_v44 = vld [vmem:[#allocation5 + $0x80] sm:$0xff]  ;;  %v2639_v8 = vld [vmem:[#allocation5 + $0x98] sm:$0xff]  ;;  %v2638_v56 = vld [vmem:[#allocation5 + $0x90] sm:$0xff] }
 0x60e   :  { %2669 = vmatprep.subr.bf16.mxu0 %v2625_v26  ;;  %v2641_v42 = vld [vmem:[#allocation5 + $0xa8] sm:$0xff]  ;;  %v2640_v57 = vld [vmem:[#allocation5 + $0xa0] sm:$0xff]  ;;  %v2643_v11 = vld [vmem:[#allocation5 + $0xb8] sm:$0xff] }
 0x60f   :  { %v2642_v9 = vld [vmem:[#allocation5 + $0xb0] sm:$0xff]  ;;  %v2645_v13 = vld [vmem:[#allocation5 + $0xc8] sm:$0xff]  ;;  %v2644_v4 = vld [vmem:[#allocation5 + $0xc0] sm:$0xff] }
 0x610   :  { %v2647_v3 = vld [vmem:[#allocation5 + $0xd8] sm:$0xff]  ;;  %v2646_v18 = vld [vmem:[#allocation5 + $0xd0] sm:$0xff]  ;;  %v2649_v52 = vld [vmem:[#allocation5 + $0xe8] sm:$0xff] }
 0x611   :  { %2670 = vmatpush1.bf16.msra.mxu0 %v2624_v23  ;;  %v2648_v63 = vld [vmem:[#allocation5 + $0xe0] sm:$0xff]  ;;  %v2651_v54 = vld [vmem:[#allocation5 + $0xf8] sm:$0xff]  ;;  %v2650_v45 = vld [vmem:[#allocation5 + $0xf0] sm:$0xff] }
 0x612   :  { %2671 = vmatprep.subr.bf16.mxu0 %v2627_v0  ;;  %v2619_v17 = vld [vmem:[#allocation14 + $0x18] sm:$0x3] }
 0x613   :  { %v2658_v22 = vrot.slane %v2619_v17, %v5979_v25  ;;  %v2662_v38 = vrot.slane %v2619_v17, %v5984_v31 }
 0x615   :  { %2672 = vmatpush1.bf16.msra.mxu0 %v2626_v1 }
 0x616   :  { %2673 = vmatprep.subr.bf16.mxu0 %v2629_v41 }
 0x619   :  { %2674 = vmatpush1.bf16.msra.mxu0 %v2628_v28 }
 0x61a   :  { %2675 = vmatprep.subr.bf16.mxu0 %v2631_v36 }
 0x61d   :  { %2676 = vmatpush1.bf16.msra.mxu0 %v2630_v46 }
 0x61e   :  { %2677 = vmatprep.subr.bf16.mxu0 %v2633_v60 }
 0x621   :  { %2678 = vmatpush1.bf16.msra.mxu0 %v2632_v48 }
 0x622   :  { %2679 = vmatprep.subr.bf16.mxu0 %v2635_v29 }
 0x625   :  { %2680 = vmatpush1.bf16.msra.mxu0 %v2634_v61 }
 0x626   :  { %2681 = vmatprep.subr.bf16.mxu0 %v2637_v55 }
 0x629   :  { %2682 = vmatpush1.bf16.msra.mxu0 %v2636_v44 }
 0x62a   :  { %2683 = vmatprep.subr.bf16.mxu0 %v2639_v8 }
 0x62d   :  { %2684 = vmatpush1.bf16.msra.mxu0 %v2638_v56 }
 0x62e   :  { %2685 = vmatprep.subr.bf16.mxu0 %v2641_v42 }
 0x631   :  { %2686 = vmatpush1.bf16.msra.mxu0 %v2640_v57 }
 0x632   :  { %2687 = vmatprep.subr.bf16.mxu0 %v2643_v11 }
 0x635   :  { %2688 = vmatpush1.bf16.msra.mxu0 %v2642_v9 }
 0x636   :  { %2689 = vmatprep.subr.bf16.mxu0 %v2645_v13 }
 0x639   :  { %2690 = vmatpush1.bf16.msra.mxu0 %v2644_v4 }
 0x63a   :  { %2691 = vmatprep.subr.bf16.mxu0 %v2647_v3 }
 0x63d   :  { %2692 = vmatpush1.bf16.msra.mxu0 %v2646_v18 }
 0x63e   :  { %2693 = vmatprep.subr.bf16.mxu0 %v2649_v52 }
 0x641   :  { %2694 = vmatpush1.bf16.msra.mxu0 %v2648_v63 }
 0x642   :  { %2695 = vmatprep.subr.bf16.mxu0 %v2651_v54 }
 0x645   :  { %2696 = vmatpush1.bf16.msra.mxu0 %v2650_v45 }
 0x648   :  { %2698 = vmatmul.mubr.bf16.vlgmr.msra.gmra.mrb[60].mxu0 %v2652_v20 }
 0x71b   :  { %v2699_v32 = vpop.f32.mrb[60].mxu0 }
 0x71c   :  { %v6123_v6 = vadd.f32 %v2699_v32, %v2658_v22  ;;  %v2701_v14 = vpop.f32.mrb[61].mxu0 }
 0x71d   :  { %v2702_v27 = vadd.f32 %v2701_v14, %v2662_v38  ;;  %v2703_v5 = vpop.f32.mrb[62].mxu0 }
 0x71e   :  { %2706 = vst [vmem:[#allocation16] sm:$0xff] %v6123_v6  ;;  %v2704_v53 = vpop.f32.mrb[63].mxu0 }
 0x71f   :  { %2707 = vst [vmem:[#allocation16 + $0x8] sm:$0xff] %v2702_v27 }
 0x720   :  { %4661 = dma.done.wait [#allocation9 + $0x4], 8192 }
 0x721   :  { %4662 = vsyncadd [#allocation9 + $0x4], 4294959104  ;;  %v2776_v24 = vpack.c.bf16 %v2702_v27, %v2702_v27  ;;  %v2712_v59 = vld [vmem:[#allocation6 + $0x8] sm:$0xff]  ;;  %v2711_v19 = vld [vmem:[#allocation6] sm:$0xff] }
 0x722   :  { %v2716_v21 = vld [vmem:[#allocation6 + $0x28] sm:$0xff]  ;;  %2777 = vmatprep.subr.bf16.mxu1 %v2712_v59  ;;  %v2715_v12 = vld [vmem:[#allocation6 + $0x20] sm:$0xff]  ;;  %v2714_v37 = vld [vmem:[#allocation6 + $0x18] sm:$0xff] }
 0x723   :  { %2809 = vmatprep.mubr.bf16.mxu1 %v2776_v24  ;;  %2850 = vmatprep.mubr.bf16.mxu0 %v2776_v24  ;;  %v2720_v35 = vld [vmem:[#allocation6 + $0x48] sm:$0xff]  ;;  %v2719_v62 = vld [vmem:[#allocation6 + $0x40] sm:$0xff]  ;;  %v2713_v16 = vld [vmem:[#allocation6 + $0x10] sm:$0xff] }
 0x724   :  { %2778 = vmatpush1.bf16.msra.mxu1 %v2711_v19  ;;  %v2724_v7 = vld [vmem:[#allocation6 + $0x68] sm:$0xff]  ;;  %v2723_v43 = vld [vmem:[#allocation6 + $0x60] sm:$0xff]  ;;  %2818 = vmatprep.subr.bf16.mxu0 %v2714_v37  ;;  %v2718_v40 = vld [vmem:[#allocation6 + $0x38] sm:$0xff] }
 0x725   :  { %2779 = vmatprep.subr.bf16.mxu1 %v2716_v21  ;;  %v2728_v34 = vld [vmem:[#allocation6 + $0x88] sm:$0xff]  ;;  %2819 = vmatpush1.bf16.msra.mxu0 %v2713_v16  ;;  %v2717_v51 = vld [vmem:[#allocation6 + $0x30] sm:$0xff]  ;;  %v2722_v49 = vld [vmem:[#allocation6 + $0x58] sm:$0xff] }
 0x726   :  { %2820 = vmatprep.subr.bf16.mxu0 %v2718_v40  ;;  %v2727_v2 = vld [vmem:[#allocation6 + $0x80] sm:$0xff]  ;;  %v2732_v33 = vld [vmem:[#allocation6 + $0xa8] sm:$0xff]  ;;  %v2721_v50 = vld [vmem:[#allocation6 + $0x50] sm:$0xff] }
 0x727   :  { %v2726_v47 = vld [vmem:[#allocation6 + $0x78] sm:$0xff]  ;;  %v2731_v26 = vld [vmem:[#allocation6 + $0xa0] sm:$0xff]  ;;  %v2736_v23 = vld [vmem:[#allocation6 + $0xc8] sm:$0xff] }
 0x728   :  { %2780 = vmatpush1.bf16.msra.mxu1 %v2715_v12  ;;  %v2725_v0 = vld [vmem:[#allocation6 + $0x70] sm:$0xff]  ;;  %v2730_v1 = vld [vmem:[#allocation6 + $0x98] sm:$0xff]  ;;  %v2735_v41 = vld [vmem:[#allocation6 + $0xc0] sm:$0xff]  ;;  %v2775_v12 = vpack.c.bf16 %v6123_v6, %v6123_v6 }
 0x729   :  { %2781 = vmatprep.subr.bf16.mxu1 %v2720_v35  ;;  %2821 = vmatpush1.bf16.msra.mxu0 %v2717_v51  ;;  %v2740_v28 = vld [vmem:[#allocation6 + $0xe8] sm:$0xff]  ;;  %v2729_v36 = vld [vmem:[#allocation6 + $0x90] sm:$0xff]  ;;  %v2734_v46 = vld [vmem:[#allocation6 + $0xb8] sm:$0xff] }
 0x72a   :  { %2822 = vmatprep.subr.bf16.mxu0 %v2722_v49  ;;  %v2739_v60 = vld [vmem:[#allocation6 + $0xe0] sm:$0xff]  ;;  %v2744_v48 = vld [vmem:[#allocation6 + $0x108] sm:$0xff]  ;;  %v2733_v29 = vld [vmem:[#allocation6 + $0xb0] sm:$0xff] }
 0x72b   :  { %v2738_v61 = vld [vmem:[#allocation6 + $0xd8] sm:$0xff]  ;;  %v2743_v55 = vld [vmem:[#allocation6 + $0x100] sm:$0xff]  ;;  %v2748_v44 = vld [vmem:[#allocation6 + $0x128] sm:$0xff] }
 0x72c   :  { %2782 = vmatpush1.bf16.msra.mxu1 %v2719_v62  ;;  %v2737_v8 = vld [vmem:[#allocation6 + $0xd0] sm:$0xff]  ;;  %v2742_v56 = vld [vmem:[#allocation6 + $0xf8] sm:$0xff]  ;;  %v2747_v42 = vld [vmem:[#allocation6 + $0x120] sm:$0xff] }
 0x72d   :  { %2783 = vmatprep.subr.bf16.mxu1 %v2724_v7  ;;  %2823 = vmatpush1.bf16.msra.mxu0 %v2721_v50  ;;  %v2752_v57 = vld [vmem:[#allocation6 + $0x148] sm:$0xff]  ;;  %v2741_v11 = vld [vmem:[#allocation6 + $0xf0] sm:$0xff]  ;;  %v2746_v9 = vld [vmem:[#allocation6 + $0x118] sm:$0xff] }
 0x72e   :  { %2824 = vmatprep.subr.bf16.mxu0 %v2726_v47  ;;  %v2751_v13 = vld [vmem:[#allocation6 + $0x140] sm:$0xff]  ;;  %v2756_v4 = vld [vmem:[#allocation6 + $0x168] sm:$0xff]  ;;  %v2745_v3 = vld [vmem:[#allocation6 + $0x110] sm:$0xff] }
 0x72f   :  { %v2750_v18 = vld [vmem:[#allocation6 + $0x138] sm:$0xff]  ;;  %v2755_v52 = vld [vmem:[#allocation6 + $0x160] sm:$0xff]  ;;  %v2760_v63 = vld [vmem:[#allocation6 + $0x188] sm:$0xff] }
 0x730   :  { %2784 = vmatpush1.bf16.msra.mxu1 %v2723_v43  ;;  %v2749_v54 = vld [vmem:[#allocation6 + $0x130] sm:$0xff]  ;;  %v2754_v45 = vld [vmem:[#allocation6 + $0x158] sm:$0xff]  ;;  %v2759_v20 = vld [vmem:[#allocation6 + $0x180] sm:$0xff] }
 0x731   :  { %2785 = vmatprep.subr.bf16.mxu1 %v2728_v34  ;;  %2825 = vmatpush1.bf16.msra.mxu0 %v2725_v0  ;;  %v2764_v17 = vld [vmem:[#allocation6 + $0x1a8] sm:$0xff]  ;;  %v2753_v22 = vld [vmem:[#allocation6 + $0x150] sm:$0xff]  ;;  %v2758_v38 = vld [vmem:[#allocation6 + $0x178] sm:$0xff] }
 0x732   :  { %2826 = vmatprep.subr.bf16.mxu0 %v2730_v1  ;;  %v2763_v32 = vld [vmem:[#allocation6 + $0x1a0] sm:$0xff]  ;;  %v2768_v14 = vld [vmem:[#allocation6 + $0x1c8] sm:$0xff]  ;;  %v2757_v27 = vld [vmem:[#allocation6 + $0x170] sm:$0xff] }
 0x733   :  { %v2762_v5 = vld [vmem:[#allocation6 + $0x198] sm:$0xff]  ;;  %v2767_v53 = vld [vmem:[#allocation6 + $0x1c0] sm:$0xff]  ;;  %v2772_v24 = vld [vmem:[#allocation6 + $0x1e8] sm:$0xff] }
 0x734   :  { %2786 = vmatpush1.bf16.msra.mxu1 %v2727_v2  ;;  %v2761_v59 = vld [vmem:[#allocation6 + $0x190] sm:$0xff]  ;;  %v2766_v19 = vld [vmem:[#allocation6 + $0x1b8] sm:$0xff]  ;;  %v2771_v21 = vld [vmem:[#allocation6 + $0x1e0] sm:$0xff] }
 0x735   :  { %2787 = vmatprep.subr.bf16.mxu1 %v2732_v33  ;;  %2827 = vmatpush1.bf16.msra.mxu0 %v2729_v36  ;;  %v2765_v35 = vld [vmem:[#allocation6 + $0x1b0] sm:$0xff]  ;;  %v2770_v62 = vld [vmem:[#allocation6 + $0x1d8] sm:$0xff]  ;;  %v2859_v16 = vld [vmem:[#allocation14 + $0x1a] sm:$0x3] }
 0x736   :  { %2828 = vmatprep.subr.bf16.mxu0 %v2734_v46  ;;  %v2769_v7 = vld [vmem:[#allocation6 + $0x1d0] sm:$0xff]  ;;  %v2774_v37 = vld [vmem:[#allocation6 + $0x1f8] sm:$0xff]  ;;  %v2867_v40 = vrot.slane %v2859_v16, %v5979_v25  ;;  %v2871_v34 = vrot.slane %v2859_v16, %v5984_v31 }
 0x737   :  { %v2773_v43 = vld [vmem:[#allocation6 + $0x1f0] sm:$0xff] }
 0x738   :  { %2788 = vmatpush1.bf16.msra.mxu1 %v2731_v26 }
 0x739   :  { %2789 = vmatprep.subr.bf16.mxu1 %v2736_v23  ;;  %2829 = vmatpush1.bf16.msra.mxu0 %v2733_v29 }
 0x73a   :  { %2830 = vmatprep.subr.bf16.mxu0 %v2738_v61 }
 0x73c   :  { %2790 = vmatpush1.bf16.msra.mxu1 %v2735_v41 }
 0x73d   :  { %2791 = vmatprep.subr.bf16.mxu1 %v2740_v28  ;;  %2831 = vmatpush1.bf16.msra.mxu0 %v2737_v8 }
 0x73e   :  { %2832 = vmatprep.subr.bf16.mxu0 %v2742_v56 }
 0x740   :  { %2792 = vmatpush1.bf16.msra.mxu1 %v2739_v60 }
 0x741   :  { %2793 = vmatprep.subr.bf16.mxu1 %v2744_v48  ;;  %2833 = vmatpush1.bf16.msra.mxu0 %v2741_v11 }
 0x742   :  { %2834 = vmatprep.subr.bf16.mxu0 %v2746_v9 }
 0x744   :  { %2794 = vmatpush1.bf16.msra.mxu1 %v2743_v55 }
 0x745   :  { %2795 = vmatprep.subr.bf16.mxu1 %v2748_v44  ;;  %2835 = vmatpush1.bf16.msra.mxu0 %v2745_v3 }
 0x746   :  { %2836 = vmatprep.subr.bf16.mxu0 %v2750_v18 }
 0x748   :  { %2796 = vmatpush1.bf16.msra.mxu1 %v2747_v42 }
 0x749   :  { %2797 = vmatprep.subr.bf16.mxu1 %v2752_v57  ;;  %2837 = vmatpush1.bf16.msra.mxu0 %v2749_v54 }
 0x74a   :  { %2838 = vmatprep.subr.bf16.mxu0 %v2754_v45 }
 0x74c   :  { %2798 = vmatpush1.bf16.msra.mxu1 %v2751_v13 }
 0x74d   :  { %2799 = vmatprep.subr.bf16.mxu1 %v2756_v4  ;;  %2839 = vmatpush1.bf16.msra.mxu0 %v2753_v22 }
 0x74e   :  { %2840 = vmatprep.subr.bf16.mxu0 %v2758_v38 }
 0x750   :  { %2800 = vmatpush1.bf16.msra.mxu1 %v2755_v52 }
 0x751   :  { %2801 = vmatprep.subr.bf16.mxu1 %v2760_v63  ;;  %2841 = vmatpush1.bf16.msra.mxu0 %v2757_v27 }
 0x752   :  { %2842 = vmatprep.subr.bf16.mxu0 %v2762_v5 }
 0x754   :  { %2802 = vmatpush1.bf16.msra.mxu1 %v2759_v20 }
 0x755   :  { %2803 = vmatprep.subr.bf16.mxu1 %v2764_v17  ;;  %2843 = vmatpush1.bf16.msra.mxu0 %v2761_v59 }
 0x756   :  { %2844 = vmatprep.subr.bf16.mxu0 %v2766_v19 }
 0x758   :  { %2804 = vmatpush1.bf16.msra.mxu1 %v2763_v32 }
 0x759   :  { %2805 = vmatprep.subr.bf16.mxu1 %v2768_v14  ;;  %2845 = vmatpush1.bf16.msra.mxu0 %v2765_v35 }
 0x75a   :  { %2846 = vmatprep.subr.bf16.mxu0 %v2770_v62  ;;  %v2862_v62 = vld [vmem:[#allocation14 + $0x20] sm:$0x3] }
 0x75b   :  { %v2961_v16 = vrot.slane %v2862_v62, %v5979_v25 }
 0x75c   :  { %2806 = vmatpush1.bf16.msra.mxu1 %v2767_v53 }
 0x75d   :  { %2807 = vmatprep.subr.bf16.mxu1 %v2772_v24  ;;  %2847 = vmatpush1.bf16.msra.mxu0 %v2769_v7 }
 0x75e   :  { %2848 = vmatprep.subr.bf16.mxu0 %v2774_v37 }
 0x760   :  { %2808 = vmatpush1.bf16.msra.mxu1 %v2771_v21 }
 0x761   :  { %2849 = vmatpush1.bf16.msra.mxu0 %v2773_v43 }
 0x763   :  { %2810 = vmatmul.mubr.bf16.vlgmr.msra.gmra.mrb[52].mxu1 %v2775_v12 }
 0x764   :  { %2851 = vmatmul.mubr.bf16.vlgmr.msra.gmra.mrb[64].mxu0 %v2775_v12  ;;  %v2861_v12 = vld [vmem:[#allocation14 + $0x1e] sm:$0x3] }
 0x836   :  { %v2811_v6 = vpop.f32.mrb[52].mxu1 }
 0x837   :  { %v2874_v51 = vadd.f32 %v2867_v40, %v2811_v6  ;;  %v2813_v49 = vpop.f32.mrb[53].mxu1  ;;  %v6130_v46 = vpop.f32.mrb[64].mxu0  ;;  %v2965_v40 = vrot.slane %v2862_v62, %v5984_v31 }
 0x838   :  { %v2875_v2 = vadd.f32 %v2871_v34, %v2813_v49  ;;  %v2815_v33 = vpop.f32.mrb[54].mxu1  ;;  %v6132_v48 = vpop.f32.mrb[65].mxu0 }
 0x839   :  { %v2889_v50 = vrot.slane %v2874_v51, 4  ;;  %v2816_v47 = vpop.f32.mrb[55].mxu1  ;;  %v2856_v61 = vpop.f32.mrb[66].mxu0 }
 0x83a   :  { %v2895_v26 = vrot.slane %v2875_v2, 4  ;;  %v2857_v44 = vpop.f32.mrb[67].mxu0 }
 0x83b   :  { %v2890_v23 = vadd.f32 %v2889_v50, %v2874_v51 }
 0x83c   :  { %v2896_v0 = vadd.f32 %v2895_v26, %v2875_v2 }
 0x83d   :  { %v2891_v1 = vrot.slane %v2890_v23, 2 }
 0x83e   :  { %v2897_v41 = vrot.slane %v2896_v0, 2 }
 0x83f   :  { %v2892_v28 = vadd.f32 %v2891_v1, %v2890_v23 }
 0x840   :  { %v2898_v36 = vadd.f32 %v2897_v41, %v2896_v0 }
 0x841   :  { %v2893_v60 = vrot.slane %v2892_v28, 1 }
 0x842   :  { %v2899_v29 = vrot.slane %v2898_v36, 1 }
 0x843   :  { %v2894_v55 = vadd.f32 %v2893_v60, %v2892_v28 }
 0x844   :  { %v2900_v8 = vadd.f32 %v2899_v29, %v2898_v36  ;;  %v2860_v36 = vld [vmem:[#allocation14 + $0x1c] sm:$0x3] }
 0x845   :  { %v2901_v56 = vmul.f32 0.125, %v2894_v55  ;;  %v2880_v60 = vrot.slane %v2860_v36, %v5979_v25  ;;  %v2884_v29 = vrot.slane %v2860_v36, %v5984_v31 }
 0x846   :  { %v2902_v42 = vmul.f32 0.125, %v2900_v8 }
 0x847   :  { %v2903_v57 = vsub.f32 %v2874_v51, %v2901_v56  ;;  %v2887_v61 = vadd.f32 %v2880_v60, %v6130_v46  ;;  %v2888_v44 = vadd.f32 %v2884_v29, %v6132_v48 }
 0x848   :  { %v2904_v11 = vsub.f32 %v2875_v2, %v2902_v42 }
 0x849   :  { %v2905_v9 = vmul.f32 %v2903_v57, %v2903_v57 }
 0x84a   :  { %v2906_v13 = vmul.f32 %v2904_v11, %v2904_v11 }
 0x84b   :  { %v2907_v4 = vrot.slane %v2905_v9, 4 }
 0x84c   :  { %v2913_v3 = vrot.slane %v2906_v13, 4 }
 0x84d   :  { %v2908_v18 = vadd.f32 %v2907_v4, %v2905_v9 }
 0x84e   :  { %v2914_v52 = vadd.f32 %v2913_v3, %v2906_v13 }
 0x84f   :  { %v2909_v63 = vrot.slane %v2908_v18, 2 }
 0x850   :  { %v2915_v54 = vrot.slane %v2914_v52, 2 }
 0x851   :  { %v2910_v45 = vadd.f32 %v2909_v63, %v2908_v18 }
 0x852   :  { %v2916_v20 = vadd.f32 %v2915_v54, %v2914_v52 }
 0x853   :  { %v2911_v17 = vrot.slane %v2910_v45, 1 }
 0x854   :  { %v2917_v22 = vrot.slane %v2916_v20, 1 }
 0x855   :  { %v2912_v38 = vadd.f32 %v2911_v17, %v2910_v45 }
 0x856   :  { %v2918_v32 = vadd.f32 %v2917_v22, %v2916_v20 }
 0x857   :  { %v2919_v14 = vmul.f32 0.125, %v2912_v38 }
 0x858   :  { %v2920_v27 = vmul.f32 0.125, %v2918_v32 }
 0x859   :  { %v2921_v5 = vadd.f32 1e-05, %v2919_v14 }
 0x85a   :  { %v2922_v53 = vadd.f32 1e-05, %v2920_v27 }
 0x85b   :  { %4525 = vrsqrt.f32 %v2921_v5 }
 0x85c   :  { %4527 = vrsqrt.f32 %v2922_v53 }
 0x865   :  { %v4526_v24 = vpop.eup %4525 }
 0x866   :  { %v4528_v59 = vpop.eup %4527 }
 0x867   :  { %v2927_v19 = vcombine.low %v4526_v24, %v4528_v59 }
 0x869   :  { %v2934_v21 = vrot.slane %v2927_v19, %v6035_v30 }
 0x86b   :  { %v2941_v35 = vrot.slane %v2934_v21, %v6035_v30 }
 0x86d   :  { %v2943_v7 = vmul.f32 %v2941_v35, %v2861_v12 }
 0x86f   :  { %v2952_v37 = vrot.slane %v2943_v7, %v5984_v31  ;;  %v2948_v43 = vrot.slane %v2943_v7, %v5979_v25 }
 0x871   :  { %v2956_v34 = vmul.f32 %v2952_v37, %v2904_v11  ;;  %v2955_v6 = vmul.f32 %v2948_v43, %v2903_v57 }
 0x873   :  { %v2968_v51 = vadd.f32 %v2961_v16, %v2955_v6  ;;  %v2969_v49 = vadd.f32 %v2965_v40, %v2956_v34 }
 0x875   :  { %v2970_v2 = vmul.f32 %v2968_v51, %v6051_v10  ;;  %v2971_v33 = vmul.f32 %v2969_v49, %v6051_v10 }
 0x877   :  { %v2972_v50 = vmin.f32 %v2970_v2, 80.0  ;;  %v2973_v47 = vmin.f32 %v2971_v33, 80.0 }
 0x879   :  { %v2974_v26 = vmul.f32 1.442695, %v2972_v50  ;;  %v2976_v23 = vmul.f32 1.442695, %v2973_v47 }
 0x87b   :  { %4529 = vpow2.f32 %v2974_v26 }
 0x87c   :  { %4531 = vpow2.f32 %v2976_v23 }
 0x885   :  { %v4530_v0 = vpop.eup %4529 }
 0x886   :  { %v4532_v1 = vpop.eup %4531  ;;  %v2978_v41 = vadd.f32 1.0, %v4530_v0 }
 0x887   :  { %v2979_v28 = vadd.f32 1.0, %v4532_v1 }
 0x888   :  { %4533 = vrcp.f32 %v2978_v41 }
 0x889   :  { %4535 = vrcp.f32 %v2979_v28 }
 0x892   :  { %v4534_v55 = vpop.eup %4533 }
 0x893   :  { %v4536_v8 = vpop.eup %4535  ;;  %v2982_v56 = vmul.f32 %v4534_v55, %v2968_v51 }
 0x894   :  { %v2983_v42 = vmul.f32 %v4536_v8, %v2969_v49 }
 0x895   :  { %v6146_v57 = vadd.f32 %v2982_v56, %v2887_v61 }
 0x896   :  { %v2985_v11 = vadd.f32 %v2983_v42, %v2888_v44 }
 0x897   :  { %4663 = dma.done.wait [#allocation9 + $0x5], 16384 }
 0x898   :  { %4664 = vsyncadd [#allocation9 + $0x5], 4294950912  ;;  %v6148_v9 = vpack.c.bf16 %v2985_v11, %v2985_v11  ;;  %v2990_v13 = vld [vmem:[#allocation7 + $0x8] sm:$0xff]  ;;  %v2992_v4 = vld [vmem:[#allocation7 + $0x18] sm:$0xff] }
 0x899   :  { %v2989_v46 = vld [vmem:[#allocation7] sm:$0xff]  ;;  %3119 = vmatprep.subr.bf16.mxu1 %v2990_v13  ;;  %3160 = vmatprep.subr.bf16.mxu0 %v2992_v4  ;;  %v2991_v48 = vld [vmem:[#allocation7 + $0x10] sm:$0xff]  ;;  %v2998_v3 = vld [vmem:[#allocation7 + $0x48] sm:$0xff] }
 0x89a   :  { %3151 = vmatprep.mubr.bf16.mxu1 %v6148_v9  ;;  %3192 = vmatprep.mubr.bf16.mxu0 %v6148_v9  ;;  %v3000_v18 = vld [vmem:[#allocation7 + $0x58] sm:$0xff]  ;;  %v2997_v52 = vld [vmem:[#allocation7 + $0x40] sm:$0xff]  ;;  %v2999_v63 = vld [vmem:[#allocation7 + $0x50] sm:$0xff] }
 0x89b   :  { %3120 = vmatpush1.bf16.msra.mxu1 %v2989_v46  ;;  %3161 = vmatpush1.bf16.msra.mxu0 %v2991_v48  ;;  %v3006_v54 = vld [vmem:[#allocation7 + $0x88] sm:$0xff]  ;;  %v3008_v45 = vld [vmem:[#allocation7 + $0x98] sm:$0xff]  ;;  %v3005_v20 = vld [vmem:[#allocation7 + $0x80] sm:$0xff] }
 0x89c   :  { %3121 = vmatprep.subr.bf16.mxu1 %v2998_v3  ;;  %3162 = vmatprep.subr.bf16.mxu0 %v3000_v18  ;;  %v3007_v17 = vld [vmem:[#allocation7 + $0x90] sm:$0xff]  ;;  %v3014_v22 = vld [vmem:[#allocation7 + $0xc8] sm:$0xff]  ;;  %v3016_v38 = vld [vmem:[#allocation7 + $0xd8] sm:$0xff] }
 0x89d   :  { %v3013_v32 = vld [vmem:[#allocation7 + $0xc0] sm:$0xff]  ;;  %v3015_v14 = vld [vmem:[#allocation7 + $0xd0] sm:$0xff]  ;;  %v3022_v27 = vld [vmem:[#allocation7 + $0x108] sm:$0xff] }
 0x89e   :  { %v3024_v5 = vld [vmem:[#allocation7 + $0x118] sm:$0xff]  ;;  %v3021_v53 = vld [vmem:[#allocation7 + $0x100] sm:$0xff]  ;;  %v3023_v24 = vld [vmem:[#allocation7 + $0x110] sm:$0xff] }
 0x89f   :  { %3122 = vmatpush1.bf16.msra.mxu1 %v2997_v52  ;;  %3163 = vmatpush1.bf16.msra.mxu0 %v2999_v63  ;;  %v3030_v59 = vld [vmem:[#allocation7 + $0x148] sm:$0xff]  ;;  %v3032_v19 = vld [vmem:[#allocation7 + $0x158] sm:$0xff]  ;;  %v3029_v21 = vld [vmem:[#allocation7 + $0x140] sm:$0xff] }
 0x8a0   :  { %3123 = vmatprep.subr.bf16.mxu1 %v3006_v54  ;;  %3164 = vmatprep.subr.bf16.mxu0 %v3008_v45  ;;  %v3031_v12 = vld [vmem:[#allocation7 + $0x150] sm:$0xff]  ;;  %v3038_v35 = vld [vmem:[#allocation7 + $0x188] sm:$0xff]  ;;  %v3040_v62 = vld [vmem:[#allocation7 + $0x198] sm:$0xff] }
 0x8a1   :  { %v3037_v7 = vld [vmem:[#allocation7 + $0x180] sm:$0xff]  ;;  %v3039_v37 = vld [vmem:[#allocation7 + $0x190] sm:$0xff]  ;;  %v3046_v43 = vld [vmem:[#allocation7 + $0x1c8] sm:$0xff] }
 0x8a2   :  { %v3048_v16 = vld [vmem:[#allocation7 + $0x1d8] sm:$0xff]  ;;  %v3045_v40 = vld [vmem:[#allocation7 + $0x1c0] sm:$0xff]  ;;  %v3047_v34 = vld [vmem:[#allocation7 + $0x1d0] sm:$0xff] }
 0x8a3   :  { %3124 = vmatpush1.bf16.msra.mxu1 %v3005_v20  ;;  %3165 = vmatpush1.bf16.msra.mxu0 %v3007_v17  ;;  %v3054_v6 = vld [vmem:[#allocation7 + $0x208] sm:$0xff]  ;;  %v3056_v51 = vld [vmem:[#allocation7 + $0x218] sm:$0xff]  ;;  %v3053_v49 = vld [vmem:[#allocation7 + $0x200] sm:$0xff]  ;;  %v6154_v17 = vpack.c.bf16 %v6146_v57, %v6146_v57 }
 0x8a4   :  { %3125 = vmatprep.subr.bf16.mxu1 %v3014_v22  ;;  %3166 = vmatprep.subr.bf16.mxu0 %v3016_v38  ;;  %v3055_v2 = vld [vmem:[#allocation7 + $0x210] sm:$0xff]  ;;  %v3062_v33 = vld [vmem:[#allocation7 + $0x248] sm:$0xff]  ;;  %v3064_v50 = vld [vmem:[#allocation7 + $0x258] sm:$0xff] }
 0x8a5   :  { %v3061_v47 = vld [vmem:[#allocation7 + $0x240] sm:$0xff]  ;;  %v3063_v26 = vld [vmem:[#allocation7 + $0x250] sm:$0xff]  ;;  %v3070_v23 = vld [vmem:[#allocation7 + $0x288] sm:$0xff] }
 0x8a6   :  { %v3072_v0 = vld [vmem:[#allocation7 + $0x298] sm:$0xff]  ;;  %v3069_v1 = vld [vmem:[#allocation7 + $0x280] sm:$0xff]  ;;  %v3071_v41 = vld [vmem:[#allocation7 + $0x290] sm:$0xff] }
 0x8a7   :  { %3126 = vmatpush1.bf16.msra.mxu1 %v3013_v32  ;;  %3167 = vmatpush1.bf16.msra.mxu0 %v3015_v14  ;;  %v3078_v28 = vld [vmem:[#allocation7 + $0x2c8] sm:$0xff]  ;;  %v3080_v36 = vld [vmem:[#allocation7 + $0x2d8] sm:$0xff]  ;;  %v3077_v60 = vld [vmem:[#allocation7 + $0x2c0] sm:$0xff] }
 0x8a8   :  { %3127 = vmatprep.subr.bf16.mxu1 %v3022_v27  ;;  %3168 = vmatprep.subr.bf16.mxu0 %v3024_v5  ;;  %v3079_v29 = vld [vmem:[#allocation7 + $0x2d0] sm:$0xff]  ;;  %v3086_v61 = vld [vmem:[#allocation7 + $0x308] sm:$0xff]  ;;  %v3088_v55 = vld [vmem:[#allocation7 + $0x318] sm:$0xff] }
 0x8a9   :  { %v3085_v44 = vld [vmem:[#allocation7 + $0x300] sm:$0xff]  ;;  %v3087_v8 = vld [vmem:[#allocation7 + $0x310] sm:$0xff]  ;;  %v3094_v56 = vld [vmem:[#allocation7 + $0x348] sm:$0xff] }
 0x8aa   :  { %v3096_v42 = vld [vmem:[#allocation7 + $0x358] sm:$0xff]  ;;  %v3093_v11 = vld [vmem:[#allocation7 + $0x340] sm:$0xff]  ;;  %v3095_v13 = vld [vmem:[#allocation7 + $0x350] sm:$0xff] }
 0x8ab   :  { %3128 = vmatpush1.bf16.msra.mxu1 %v3021_v53  ;;  %3169 = vmatpush1.bf16.msra.mxu0 %v3023_v24  ;;  %v3102_v4 = vld [vmem:[#allocation7 + $0x388] sm:$0xff]  ;;  %v3104_v46 = vld [vmem:[#allocation7 + $0x398] sm:$0xff]  ;;  %v3101_v48 = vld [vmem:[#allocation7 + $0x380] sm:$0xff] }
 0x8ac   :  { %3129 = vmatprep.subr.bf16.mxu1 %v3030_v59  ;;  %3170 = vmatprep.subr.bf16.mxu0 %v3032_v19  ;;  %v3103_v3 = vld [vmem:[#allocation7 + $0x390] sm:$0xff]  ;;  %v3110_v18 = vld [vmem:[#allocation7 + $0x3c8] sm:$0xff]  ;;  %v3112_v52 = vld [vmem:[#allocation7 + $0x3d8] sm:$0xff] }
 0x8ad   :  { %v3109_v63 = vld [vmem:[#allocation7 + $0x3c0] sm:$0xff]  ;;  %v3111_v54 = vld [vmem:[#allocation7 + $0x3d0] sm:$0xff]  ;;  %v2994_v45 = vld [vmem:[#allocation7 + $0x28] sm:$0xff] }
 0x8ae   :  { %v2996_v20 = vld [vmem:[#allocation7 + $0x38] sm:$0xff]  ;;  %v2993_v22 = vld [vmem:[#allocation7 + $0x20] sm:$0xff]  ;;  %v2995_v38 = vld [vmem:[#allocation7 + $0x30] sm:$0xff] }
 0x8af   :  { %3130 = vmatpush1.bf16.msra.mxu1 %v3029_v21  ;;  %3171 = vmatpush1.bf16.msra.mxu0 %v3031_v12  ;;  %v3002_v32 = vld [vmem:[#allocation7 + $0x68] sm:$0xff]  ;;  %v3004_v14 = vld [vmem:[#allocation7 + $0x78] sm:$0xff]  ;;  %v3001_v27 = vld [vmem:[#allocation7 + $0x60] sm:$0xff] }
 0x8b0   :  { %3131 = vmatprep.subr.bf16.mxu1 %v3038_v35  ;;  %3172 = vmatprep.subr.bf16.mxu0 %v3040_v62  ;;  %v3003_v5 = vld [vmem:[#allocation7 + $0x70] sm:$0xff]  ;;  %v3010_v57 = vld [vmem:[#allocation7 + $0xa8] sm:$0xff]  ;;  %v3012_v53 = vld [vmem:[#allocation7 + $0xb8] sm:$0xff] }
 0x8b1   :  { %v3009_v24 = vld [vmem:[#allocation7 + $0xa0] sm:$0xff]  ;;  %v3011_v59 = vld [vmem:[#allocation7 + $0xb0] sm:$0xff]  ;;  %v3018_v19 = vld [vmem:[#allocation7 + $0xe8] sm:$0xff] }
 0x8b2   :  { %v3020_v21 = vld [vmem:[#allocation7 + $0xf8] sm:$0xff]  ;;  %v3017_v12 = vld [vmem:[#allocation7 + $0xe0] sm:$0xff]  ;;  %v3019_v35 = vld [vmem:[#allocation7 + $0xf0] sm:$0xff] }
 0x8b3   :  { %3132 = vmatpush1.bf16.msra.mxu1 %v3037_v7  ;;  %3173 = vmatpush1.bf16.msra.mxu0 %v3039_v37  ;;  %v3026_v62 = vld [vmem:[#allocation7 + $0x128] sm:$0xff]  ;;  %v3028_v7 = vld [vmem:[#allocation7 + $0x138] sm:$0xff]  ;;  %v3027_v37 = vld [vmem:[#allocation7 + $0x130] sm:$0xff] }
 0x8b4   :  { %3133 = vmatprep.subr.bf16.mxu1 %v3046_v43  ;;  %3174 = vmatprep.subr.bf16.mxu0 %v3048_v16  ;;  %v3034_v43 = vld [vmem:[#allocation7 + $0x168] sm:$0xff]  ;;  %v3036_v16 = vld [vmem:[#allocation7 + $0x178] sm:$0xff] }
 0x8b7   :  { %3134 = vmatpush1.bf16.msra.mxu1 %v3045_v40  ;;  %3175 = vmatpush1.bf16.msra.mxu0 %v3047_v34  ;;  %v3033_v40 = vld [vmem:[#allocation7 + $0x160] sm:$0xff]  ;;  %v3035_v34 = vld [vmem:[#allocation7 + $0x170] sm:$0xff] }
 0x8b8   :  { %3135 = vmatprep.subr.bf16.mxu1 %v3054_v6  ;;  %3176 = vmatprep.subr.bf16.mxu0 %v3056_v51  ;;  %v3042_v6 = vld [vmem:[#allocation7 + $0x1a8] sm:$0xff]  ;;  %v3044_v51 = vld [vmem:[#allocation7 + $0x1b8] sm:$0xff] }
 0x8bb   :  { %3136 = vmatpush1.bf16.msra.mxu1 %v3053_v49  ;;  %3177 = vmatpush1.bf16.msra.mxu0 %v3055_v2  ;;  %v3041_v49 = vld [vmem:[#allocation7 + $0x1a0] sm:$0xff]  ;;  %v3043_v2 = vld [vmem:[#allocation7 + $0x1b0] sm:$0xff] }
 0x8bc   :  { %3137 = vmatprep.subr.bf16.mxu1 %v3062_v33  ;;  %3178 = vmatprep.subr.bf16.mxu0 %v3064_v50  ;;  %v3050_v33 = vld [vmem:[#allocation7 + $0x1e8] sm:$0xff]  ;;  %v3052_v50 = vld [vmem:[#allocation7 + $0x1f8] sm:$0xff] }
 0x8bf   :  { %3138 = vmatpush1.bf16.msra.mxu1 %v3061_v47  ;;  %3179 = vmatpush1.bf16.msra.mxu0 %v3063_v26  ;;  %v3049_v47 = vld [vmem:[#allocation7 + $0x1e0] sm:$0xff]  ;;  %v3051_v26 = vld [vmem:[#allocation7 + $0x1f0] sm:$0xff] }
 0x8c0   :  { %3139 = vmatprep.subr.bf16.mxu1 %v3070_v23  ;;  %3180 = vmatprep.subr.bf16.mxu0 %v3072_v0  ;;  %v3058_v23 = vld [vmem:[#allocation7 + $0x228] sm:$0xff]  ;;  %v3060_v0 = vld [vmem:[#allocation7 + $0x238] sm:$0xff] }
 0x8c3   :  { %3140 = vmatpush1.bf16.msra.mxu1 %v3069_v1  ;;  %3181 = vmatpush1.bf16.msra.mxu0 %v3071_v41  ;;  %v3057_v1 = vld [vmem:[#allocation7 + $0x220] sm:$0xff]  ;;  %v3059_v41 = vld [vmem:[#allocation7 + $0x230] sm:$0xff] }
 0x8c4   :  { %3141 = vmatprep.subr.bf16.mxu1 %v3078_v28  ;;  %3182 = vmatprep.subr.bf16.mxu0 %v3080_v36  ;;  %v3066_v28 = vld [vmem:[#allocation7 + $0x268] sm:$0xff]  ;;  %v3068_v36 = vld [vmem:[#allocation7 + $0x278] sm:$0xff] }
 0x8c7   :  { %3142 = vmatpush1.bf16.msra.mxu1 %v3077_v60  ;;  %3183 = vmatpush1.bf16.msra.mxu0 %v3079_v29  ;;  %v3065_v60 = vld [vmem:[#allocation7 + $0x260] sm:$0xff]  ;;  %v3067_v29 = vld [vmem:[#allocation7 + $0x270] sm:$0xff] }
 0x8c8   :  { %3143 = vmatprep.subr.bf16.mxu1 %v3086_v61  ;;  %3184 = vmatprep.subr.bf16.mxu0 %v3088_v55  ;;  %v3074_v61 = vld [vmem:[#allocation7 + $0x2a8] sm:$0xff]  ;;  %v3076_v55 = vld [vmem:[#allocation7 + $0x2b8] sm:$0xff] }
 0x8cb   :  { %3144 = vmatpush1.bf16.msra.mxu1 %v3085_v44  ;;  %3185 = vmatpush1.bf16.msra.mxu0 %v3087_v8  ;;  %v3073_v44 = vld [vmem:[#allocation7 + $0x2a0] sm:$0xff]  ;;  %v3075_v8 = vld [vmem:[#allocation7 + $0x2b0] sm:$0xff] }
 0x8cc   :  { %3145 = vmatprep.subr.bf16.mxu1 %v3094_v56  ;;  %3186 = vmatprep.subr.bf16.mxu0 %v3096_v42  ;;  %v3082_v56 = vld [vmem:[#allocation7 + $0x2e8] sm:$0xff]  ;;  %v3084_v42 = vld [vmem:[#allocation7 + $0x2f8] sm:$0xff] }
 0x8cf   :  { %3146 = vmatpush1.bf16.msra.mxu1 %v3093_v11  ;;  %3187 = vmatpush1.bf16.msra.mxu0 %v3095_v13  ;;  %v3081_v11 = vld [vmem:[#allocation7 + $0x2e0] sm:$0xff]  ;;  %v3083_v13 = vld [vmem:[#allocation7 + $0x2f0] sm:$0xff] }
 0x8d0   :  { %3147 = vmatprep.subr.bf16.mxu1 %v3102_v4  ;;  %3188 = vmatprep.subr.bf16.mxu0 %v3104_v46  ;;  %v3090_v4 = vld [vmem:[#allocation7 + $0x328] sm:$0xff]  ;;  %v3092_v46 = vld [vmem:[#allocation7 + $0x338] sm:$0xff] }
 0x8d3   :  { %3148 = vmatpush1.bf16.msra.mxu1 %v3101_v48  ;;  %3189 = vmatpush1.bf16.msra.mxu0 %v3103_v3  ;;  %v3089_v48 = vld [vmem:[#allocation7 + $0x320] sm:$0xff]  ;;  %v3091_v3 = vld [vmem:[#allocation7 + $0x330] sm:$0xff] }
 0x8d4   :  { %3149 = vmatprep.subr.bf16.mxu1 %v3110_v18  ;;  %3190 = vmatprep.subr.bf16.mxu0 %v3112_v52  ;;  %v3098_v18 = vld [vmem:[#allocation7 + $0x368] sm:$0xff]  ;;  %v3100_v52 = vld [vmem:[#allocation7 + $0x378] sm:$0xff] }
 0x8d7   :  { %3150 = vmatpush1.bf16.msra.mxu1 %v3109_v63  ;;  %3191 = vmatpush1.bf16.msra.mxu0 %v3111_v54  ;;  %v3097_v63 = vld [vmem:[#allocation7 + $0x360] sm:$0xff]  ;;  %v3099_v54 = vld [vmem:[#allocation7 + $0x370] sm:$0xff] }
 0x8d8   :  { %3201 = vmatprep.subr.bf16.mxu1 %v2994_v45  ;;  %3242 = vmatprep.subr.bf16.mxu0 %v2996_v20  ;;  %v3106_v45 = vld [vmem:[#allocation7 + $0x3a8] sm:$0xff]  ;;  %v3108_v20 = vld [vmem:[#allocation7 + $0x3b8] sm:$0xff] }
 0x8da   :  { %3152 = vmatmul.mubr.bf16.vlgmr.msra.gmra.mrb[56].mxu1 %v6154_v17  ;;  %3193 = vmatmul.mubr.bf16.vlgmr.msra.gmra.mrb[68].mxu0 %v6154_v17 }
 0x8db   :  { %3202 = vmatpush1.bf16.msra.mxu1 %v2993_v22  ;;  %3243 = vmatpush1.bf16.msra.mxu0 %v2995_v38  ;;  %v3105_v22 = vld [vmem:[#allocation7 + $0x3a0] sm:$0xff]  ;;  %v3107_v38 = vld [vmem:[#allocation7 + $0x3b0] sm:$0xff] }
 0x8dc   :  { %3203 = vmatprep.subr.bf16.mxu1 %v3002_v32  ;;  %3244 = vmatprep.subr.bf16.mxu0 %v3004_v14  ;;  %v3114_v32 = vld [vmem:[#allocation7 + $0x3e8] sm:$0xff]  ;;  %v3116_v14 = vld [vmem:[#allocation7 + $0x3f8] sm:$0xff] }
 0x8dd   :  { %3233 = vmatprep.mubr.bf16.mxu1 %v6148_v9  ;;  %3274 = vmatprep.mubr.bf16.mxu0 %v6148_v9  ;;  %v3025_v9 = vld [vmem:[#allocation7 + $0x120] sm:$0xff] }
 0x8df   :  { %3204 = vmatpush1.bf16.msra.mxu1 %v3001_v27  ;;  %3245 = vmatpush1.bf16.msra.mxu0 %v3003_v5  ;;  %v3113_v27 = vld [vmem:[#allocation7 + $0x3e0] sm:$0xff]  ;;  %v3115_v5 = vld [vmem:[#allocation7 + $0x3f0] sm:$0xff] }
 0x8e0   :  { %3205 = vmatprep.subr.bf16.mxu1 %v3010_v57  ;;  %3246 = vmatprep.subr.bf16.mxu0 %v3012_v53  ;;  %v3283_v57 = vld [vmem:[#allocation14 + $0x22] sm:$0xf] }
 0x8e1   :  { %v3291_v53 = vrot.slane %v3283_v57, %v5979_v25 }
 0x8e3   :  { %3206 = vmatpush1.bf16.msra.mxu1 %v3009_v24  ;;  %3247 = vmatpush1.bf16.msra.mxu0 %v3011_v59  ;;  %v3299_v24 = vrot.slane %v3283_v57, %v6017_v39  ;;  %v3295_v59 = vrot.slane %v3283_v57, %v5984_v31 }
 0x8e4   :  { %3207 = vmatprep.subr.bf16.mxu1 %v3018_v19  ;;  %3248 = vmatprep.subr.bf16.mxu0 %v3020_v21  ;;  %v3303_v19 = vrot.slane %v3283_v57, %v6020_v58 }
 0x8e7   :  { %3208 = vmatpush1.bf16.msra.mxu1 %v3017_v12  ;;  %3249 = vmatpush1.bf16.msra.mxu0 %v3019_v35 }
 0x8e8   :  { %3209 = vmatprep.subr.bf16.mxu1 %v3026_v62  ;;  %3250 = vmatprep.subr.bf16.mxu0 %v3028_v7 }
 0x8eb   :  { %3210 = vmatpush1.bf16.msra.mxu1 %v3025_v9  ;;  %3251 = vmatpush1.bf16.msra.mxu0 %v3027_v37 }
 0x8ec   :  { %3211 = vmatprep.subr.bf16.mxu1 %v3034_v43  ;;  %3252 = vmatprep.subr.bf16.mxu0 %v3036_v16 }
 0x8ef   :  { %3212 = vmatpush1.bf16.msra.mxu1 %v3033_v40  ;;  %3253 = vmatpush1.bf16.msra.mxu0 %v3035_v34 }
 0x8f0   :  { %3213 = vmatprep.subr.bf16.mxu1 %v3042_v6  ;;  %3254 = vmatprep.subr.bf16.mxu0 %v3044_v51 }
 0x8f3   :  { %3214 = vmatpush1.bf16.msra.mxu1 %v3041_v49  ;;  %3255 = vmatpush1.bf16.msra.mxu0 %v3043_v2 }
 0x8f4   :  { %3215 = vmatprep.subr.bf16.mxu1 %v3050_v33  ;;  %3256 = vmatprep.subr.bf16.mxu0 %v3052_v50 }
 0x8f7   :  { %3216 = vmatpush1.bf16.msra.mxu1 %v3049_v47  ;;  %3257 = vmatpush1.bf16.msra.mxu0 %v3051_v26 }
 0x8f8   :  { %3217 = vmatprep.subr.bf16.mxu1 %v3058_v23  ;;  %3258 = vmatprep.subr.bf16.mxu0 %v3060_v0 }
 0x8fb   :  { %3218 = vmatpush1.bf16.msra.mxu1 %v3057_v1  ;;  %3259 = vmatpush1.bf16.msra.mxu0 %v3059_v41 }
 0x8fc   :  { %3219 = vmatprep.subr.bf16.mxu1 %v3066_v28  ;;  %3260 = vmatprep.subr.bf16.mxu0 %v3068_v36 }
 0x8ff   :  { %3220 = vmatpush1.bf16.msra.mxu1 %v3065_v60  ;;  %3261 = vmatpush1.bf16.msra.mxu0 %v3067_v29 }
 0x900   :  { %3221 = vmatprep.subr.bf16.mxu1 %v3074_v61  ;;  %3262 = vmatprep.subr.bf16.mxu0 %v3076_v55 }
 0x903   :  { %3222 = vmatpush1.bf16.msra.mxu1 %v3073_v44  ;;  %3263 = vmatpush1.bf16.msra.mxu0 %v3075_v8 }
 0x904   :  { %3223 = vmatprep.subr.bf16.mxu1 %v3082_v56  ;;  %3264 = vmatprep.subr.bf16.mxu0 %v3084_v42 }
 0x907   :  { %3224 = vmatpush1.bf16.msra.mxu1 %v3081_v11  ;;  %3265 = vmatpush1.bf16.msra.mxu0 %v3083_v13 }
 0x908   :  { %3225 = vmatprep.subr.bf16.mxu1 %v3090_v4  ;;  %3266 = vmatprep.subr.bf16.mxu0 %v3092_v46 }
 0x90b   :  { %3226 = vmatpush1.bf16.msra.mxu1 %v3089_v48  ;;  %3267 = vmatpush1.bf16.msra.mxu0 %v3091_v3 }
 0x90c   :  { %3227 = vmatprep.subr.bf16.mxu1 %v3098_v18  ;;  %3268 = vmatprep.subr.bf16.mxu0 %v3100_v52 }
 0x90f   :  { %3228 = vmatpush1.bf16.msra.mxu1 %v3097_v63  ;;  %3269 = vmatpush1.bf16.msra.mxu0 %v3099_v54 }
 0x910   :  { %3229 = vmatprep.subr.bf16.mxu1 %v3106_v45  ;;  %3270 = vmatprep.subr.bf16.mxu0 %v3108_v20 }
 0x913   :  { %3230 = vmatpush1.bf16.msra.mxu1 %v3105_v22  ;;  %3271 = vmatpush1.bf16.msra.mxu0 %v3107_v38 }
 0x914   :  { %3231 = vmatprep.subr.bf16.mxu1 %v3114_v32  ;;  %3272 = vmatprep.subr.bf16.mxu0 %v3116_v14 }
 0x917   :  { %3232 = vmatpush1.bf16.msra.mxu1 %v3113_v27  ;;  %3273 = vmatpush1.bf16.msra.mxu0 %v3115_v5 }
 0x91a   :  { %3234 = vmatmul.mubr.bf16.vlgmr.msra.gmra.mrb[60].mxu1 %v6154_v17  ;;  %3275 = vmatmul.mubr.bf16.vlgmr.msra.gmra.mrb[72].mxu0 %v6154_v17 }
 0x9ad   :  { %v3153_v21 = vpop.f32.mrb[56].mxu1  ;;  %v3194_v12 = vpop.f32.mrb[68].mxu0 }
 0x9ae   :  { %v3308_v35 = vadd.f32 %v3291_v53, %v3153_v21  ;;  %v3310_v62 = vadd.f32 %v3299_v24, %v3194_v12  ;;  %v3155_v7 = vpop.f32.mrb[57].mxu1  ;;  %v3196_v9 = vpop.f32.mrb[69].mxu0 }
 0x9af   :  { %v3309_v37 = vadd.f32 %v3295_v59, %v3155_v7  ;;  %v3311_v43 = vadd.f32 %v3303_v19, %v3196_v9  ;;  %v3157_v16 = vpop.f32.mrb[58].mxu1  ;;  %v3198_v40 = vpop.f32.mrb[70].mxu0 }
 0x9b0   :  { %v3337_v17 = vrot.slane %v3308_v35, 4  ;;  %v3349_v34 = vrot.slane %v3310_v62, 4  ;;  %v3158_v6 = vpop.f32.mrb[59].mxu1  ;;  %v3199_v51 = vpop.f32.mrb[71].mxu0 }
 0x9b1   :  { %v3343_v49 = vrot.slane %v3309_v37, 4  ;;  %v3355_v2 = vrot.slane %v3311_v43, 4 }
 0x9b2   :  { %v3338_v33 = vadd.f32 %v3337_v17, %v3308_v35  ;;  %v3350_v50 = vadd.f32 %v3349_v34, %v3310_v62 }
 0x9b3   :  { %v3344_v47 = vadd.f32 %v3343_v49, %v3309_v37  ;;  %v3356_v26 = vadd.f32 %v3355_v2, %v3311_v43 }
 0x9b4   :  { %v3339_v23 = vrot.slane %v3338_v33, 2  ;;  %v3351_v0 = vrot.slane %v3350_v50, 2 }
 0x9b5   :  { %v3345_v1 = vrot.slane %v3344_v47, 2  ;;  %v3357_v41 = vrot.slane %v3356_v26, 2 }
 0x9b6   :  { %v3340_v28 = vadd.f32 %v3339_v23, %v3338_v33  ;;  %v3352_v36 = vadd.f32 %v3351_v0, %v3350_v50 }
 0x9b7   :  { %v3346_v60 = vadd.f32 %v3345_v1, %v3344_v47  ;;  %v3358_v29 = vadd.f32 %v3357_v41, %v3356_v26 }
 0x9b8   :  { %v3341_v61 = vrot.slane %v3340_v28, 1  ;;  %v3353_v55 = vrot.slane %v3352_v36, 1 }
 0x9b9   :  { %v3347_v44 = vrot.slane %v3346_v60, 1  ;;  %v3359_v8 = vrot.slane %v3358_v29, 1 }
 0x9ba   :  { %v3342_v56 = vadd.f32 %v3341_v61, %v3340_v28  ;;  %v3354_v42 = vadd.f32 %v3353_v55, %v3352_v36 }
 0x9bb   :  { %v3348_v11 = vadd.f32 %v3347_v44, %v3346_v60  ;;  %v3360_v13 = vadd.f32 %v3359_v8, %v3358_v29 }
 0x9bc   :  { %v3361_v4 = vmul.f32 0.125, %v3342_v56  ;;  %v3363_v46 = vmul.f32 0.125, %v3354_v42  ;;  %v3285_v56 = vld [vmem:[#allocation14 + $0x2a] sm:$0xf] }
 0x9bd   :  { %v3362_v48 = vmul.f32 0.125, %v3348_v11  ;;  %v3364_v3 = vmul.f32 0.125, %v3360_v13  ;;  %v3286_v11 = vld [vmem:[#allocation14 + $0x2e] sm:$0xf] }
 0x9be   :  { %v6166_v18 = vsub.f32 %v3308_v35, %v3361_v4  ;;  %v6168_v52 = vsub.f32 %v3310_v62, %v3363_v46  ;;  %v3468_v4 = vrot.slane %v3286_v11, %v5979_v25  ;;  %v3476_v46 = vrot.slane %v3286_v11, %v6017_v39 }
 0x9bf   :  { %v6170_v63 = vsub.f32 %v3309_v37, %v3362_v48  ;;  %v3368_v54 = vsub.f32 %v3311_v43, %v3364_v3 }
 0x9c0   :  { %v3369_v45 = vmul.f32 %v6166_v18, %v6166_v18  ;;  %v3371_v20 = vmul.f32 %v6168_v52, %v6168_v52 }
 0x9c1   :  { %v3370_v22 = vmul.f32 %v6170_v63, %v6170_v63  ;;  %v3372_v38 = vmul.f32 %v3368_v54, %v3368_v54 }
 0x9c2   :  { %v3373_v32 = vrot.slane %v3369_v45, 4  ;;  %v3385_v14 = vrot.slane %v3371_v20, 4 }
 0x9c3   :  { %v3379_v27 = vrot.slane %v3370_v22, 4  ;;  %v3391_v5 = vrot.slane %v3372_v38, 4 }
 0x9c4   :  { %v3374_v57 = vadd.f32 %v3373_v32, %v3369_v45  ;;  %v3386_v53 = vadd.f32 %v3385_v14, %v3371_v20 }
 0x9c5   :  { %v3380_v24 = vadd.f32 %v3379_v27, %v3370_v22  ;;  %v3392_v59 = vadd.f32 %v3391_v5, %v3372_v38  ;;  %v3472_v22 = vrot.slane %v3286_v11, %v5984_v31  ;;  %v3480_v38 = vrot.slane %v3286_v11, %v6020_v58 }
 0x9c6   :  { %v3375_v19 = vrot.slane %v3374_v57, 2  ;;  %v3387_v21 = vrot.slane %v3386_v53, 2 }
 0x9c7   :  { %v3381_v12 = vrot.slane %v3380_v24, 2  ;;  %v3393_v35 = vrot.slane %v3392_v59, 2 }
 0x9c8   :  { %v3376_v62 = vadd.f32 %v3375_v19, %v3374_v57  ;;  %v3388_v7 = vadd.f32 %v3387_v21, %v3386_v53 }
 0x9c9   :  { %v3382_v9 = vadd.f32 %v3381_v12, %v3380_v24  ;;  %v3394_v37 = vadd.f32 %v3393_v35, %v3392_v59 }
 0x9ca   :  { %v3377_v43 = vrot.slane %v3376_v62, 1  ;;  %v3389_v16 = vrot.slane %v3388_v7, 1 }
 0x9cb   :  { %v3383_v40 = vrot.slane %v3382_v9, 1  ;;  %v3395_v17 = vrot.slane %v3394_v37, 1 }
 0x9cc   :  { %v3378_v34 = vadd.f32 %v3377_v43, %v3376_v62  ;;  %v3390_v6 = vadd.f32 %v3389_v16, %v3388_v7 }
 0x9cd   :  { %v3384_v51 = vadd.f32 %v3383_v40, %v3382_v9  ;;  %v3396_v49 = vadd.f32 %v3395_v17, %v3394_v37 }
 0x9ce   :  { %v3397_v2 = vmul.f32 0.125, %v3378_v34  ;;  %v3399_v33 = vmul.f32 0.125, %v3390_v6 }
 0x9cf   :  { %v3398_v50 = vmul.f32 0.125, %v3384_v51  ;;  %v3400_v47 = vmul.f32 0.125, %v3396_v49 }
 0x9d0   :  { %v3401_v26 = vadd.f32 1e-05, %v3397_v2  ;;  %v3403_v23 = vadd.f32 1e-05, %v3399_v33 }
 0x9d1   :  { %v3402_v0 = vadd.f32 1e-05, %v3398_v50  ;;  %v3404_v1 = vadd.f32 1e-05, %v3400_v47 }
 0x9d2   :  { %4537 = vrsqrt.f32 %v3401_v26 }
 0x9d3   :  { %4539 = vrsqrt.f32 %v3403_v23 }
 0x9d4   :  { %4541 = vrsqrt.f32 %v3402_v0  ;;  %v3284_v0 = vld [vmem:[#allocation14 + $0x26] sm:$0xf] }
 0x9d5   :  { %4543 = vrsqrt.f32 %v3404_v1  ;;  %v3316_v1 = vrot.slane %v3284_v0, %v5979_v25 }
 0x9dc   :  { %v4538_v41 = vpop.eup %4537 }
 0x9dd   :  { %v4540_v28 = vpop.eup %4539 }
 0x9de   :  { %v4542_v36 = vpop.eup %4541 }
 0x9df   :  { %v4544_v60 = vpop.eup %4543  ;;  %v3413_v29 = vcombine.low %v4538_v41, %v4542_v36  ;;  %v3324_v41 = vrot.slane %v3284_v0, %v6017_v39  ;;  %v3328_v36 = vrot.slane %v3284_v0, %v6020_v58 }
 0x9e0   :  { %v3414_v61 = vcombine.low %v4540_v28, %v4544_v60  ;;  %v3320_v28 = vrot.slane %v3284_v0, %v5984_v31 }
 0x9e1   :  { %v3421_v55 = vrot.slane %v3413_v29, %v6035_v30 }
 0x9e2   :  { %v3428_v44 = vrot.slane %v3414_v61, %v6035_v30 }
 0x9e4   :  { %v3429_v8 = vcombine.low %v3421_v55, %v3428_v44 }
 0x9e6   :  { %v3436_v42 = vrot.slane %v3429_v8, %v6035_v30 }
 0x9e8   :  { %v3438_v13 = vmul.f32 %v3436_v42, %v3285_v56 }
 0x9ea   :  { %v3455_v48 = vrot.slane %v3438_v13, %v6020_v58  ;;  %v3443_v3 = vrot.slane %v3438_v13, %v5979_v25  ;;  %v3451_v45 = vrot.slane %v3438_v13, %v6017_v39  ;;  %v3447_v20 = vrot.slane %v3438_v13, %v5984_v31 }
 0x9ec   :  { %v3463_v32 = vmul.f32 %v3455_v48, %v3368_v54  ;;  %v3460_v30 = vmul.f32 %v3443_v3, %v6166_v18  ;;  %v3462_v14 = vmul.f32 %v3451_v45, %v6168_v52  ;;  %v3461_v27 = vmul.f32 %v3447_v20, %v6170_v63 }
 0x9ed   :  { %v3235_v5 = vpop.f32.mrb[60].mxu1  ;;  %v3276_v57 = vpop.f32.mrb[72].mxu0 }
 0x9ee   :  { %v3485_v53 = vadd.f32 %v3468_v4, %v3460_v30  ;;  %v3487_v24 = vadd.f32 %v3476_v46, %v3462_v14  ;;  %v3237_v59 = vpop.f32.mrb[61].mxu1  ;;  %v3278_v19 = vpop.f32.mrb[73].mxu0  ;;  %v3486_v21 = vadd.f32 %v3472_v22, %v3461_v27  ;;  %v3488_v12 = vadd.f32 %v3480_v38, %v3463_v32 }
 0x9ef   :  { %v3239_v35 = vpop.f32.mrb[62].mxu1  ;;  %v3280_v62 = vpop.f32.mrb[74].mxu0  ;;  %v3333_v60 = vadd.f32 %v3316_v1, %v3235_v5  ;;  %v3335_v61 = vadd.f32 %v3324_v41, %v3276_v57  ;;  %v3334_v8 = vadd.f32 %v3320_v28, %v3237_v59  ;;  %v3336_v11 = vadd.f32 %v3328_v36, %v3278_v19 }
 0x9f0   :  { %v3489_v7 = vmul.f32 %v3485_v53, %v6051_v10  ;;  %v3491_v54 = vmul.f32 %v3487_v24, %v6051_v10  ;;  %v3240_v9 = vpop.f32.mrb[63].mxu1  ;;  %v3281_v18 = vpop.f32.mrb[75].mxu0  ;;  %v3490_v52 = vmul.f32 %v3486_v21, %v6051_v10  ;;  %v3492_v63 = vmul.f32 %v3488_v12, %v6051_v10 }
 0x9f2   :  { %v3493_v37 = vmin.f32 %v3489_v7, 80.0  ;;  %v3495_v43 = vmin.f32 %v3491_v54, 80.0  ;;  %v3494_v16 = vmin.f32 %v3490_v52, 80.0  ;;  %v3496_v40 = vmin.f32 %v3492_v63, 80.0 }
 0x9f4   :  { %v3497_v17 = vmul.f32 1.442695, %v3493_v37  ;;  %v3501_v34 = vmul.f32 1.442695, %v3495_v43  ;;  %v3499_v6 = vmul.f32 1.442695, %v3494_v16 }
 0x9f5   :  { %v3503_v51 = vmul.f32 1.442695, %v3496_v40 }
 0x9f6   :  { %4545 = vpow2.f32 %v3497_v17 }
 0x9f7   :  { %4547 = vpow2.f32 %v3501_v34 }
 0x9f8   :  { %4549 = vpow2.f32 %v3499_v6 }
 0x9f9   :  { %4551 = vpow2.f32 %v3503_v51 }
 0xa00   :  { %v4546_v49 = vpop.eup %4545 }
 0xa01   :  { %v4548_v2 = vpop.eup %4547  ;;  %v3505_v33 = vadd.f32 1.0, %v4546_v49 }
 0xa02   :  { %v4550_v50 = vpop.eup %4549  ;;  %v3507_v47 = vadd.f32 1.0, %v4548_v2 }
 0xa03   :  { %v4552_v26 = vpop.eup %4551  ;;  %4553 = vrcp.f32 %v3505_v33  ;;  %v3506_v10 = vadd.f32 1.0, %v4550_v50 }
 0xa04   :  { %4555 = vrcp.f32 %v3507_v47  ;;  %v3508_v23 = vadd.f32 1.0, %v4552_v26 }
 0xa05   :  { %4557 = vrcp.f32 %v3506_v10 }
 0xa06   :  { %4559 = vrcp.f32 %v3508_v23 }
 0xa0d   :  { %v4554_v29 = vpop.eup %4553 }
 0xa0e   :  { %v4556_v55 = vpop.eup %4555  ;;  %v3513_v44 = vmul.f32 %v4554_v29, %v3485_v53 }
 0xa0f   :  { %v4558_v56 = vpop.eup %4557  ;;  %v3515_v42 = vmul.f32 %v4556_v55, %v3487_v24 }
 0xa10   :  { %v4560_v13 = vpop.eup %4559  ;;  %v6200_v4 = vadd.f32 %v3513_v44, %v3333_v60  ;;  %v3514_v46 = vmul.f32 %v4558_v56, %v3486_v21 }
 0xa11   :  { %v6202_v48 = vadd.f32 %v3515_v42, %v3335_v61  ;;  %v3516_v3 = vmul.f32 %v4560_v13, %v3488_v12 }
 0xa12   :  { %v3518_v45 = vadd.f32 %v3514_v46, %v3334_v8 }
 0xa13   :  { %v6204_v20 = vadd.f32 %v3516_v3, %v3336_v11 }
 0xa14   :  { %4665 = dma.done.wait [#allocation9 + $0x6], 40960 }
 0xa15   :  { %4666 = vsyncadd [#allocation9 + $0x6], 4294926336  ;;  %v6206_v22 = vpack.c.bf16 %v3518_v45, %v3518_v45  ;;  %v3527_v38 = vld [vmem:[#allocation8 + $0x8] sm:$0xff]  ;;  %v3526_v32 = vld [vmem:[#allocation8] sm:$0xff]  ;;  %s4707_s0 = smov [#allocation16]  }
 0xa16   :  { %v3537_v30 = vld [vmem:[#allocation8 + $0x58] sm:$0xff]  ;;  %3902 = vmatprep.subr.bf16.mxu1 %v3527_v38  ;;  %v3536_v14 = vld [vmem:[#allocation8 + $0x50] sm:$0xff]  ;;  %v3547_v27 = vld [vmem:[#allocation8 + $0xa8] sm:$0xff]  ;;  %s4328_s26 = sshll.u32 %s4707_s0, 4  ;;  %s4329_s26 = int_to_ptr.vmem [resolvable:$true] %s4328_s26 }
 0xa17   :  { %3934 = vmatprep.mubr.bf16.mxu1 %v6206_v22  ;;  %4016 = vmatprep.mubr.bf16.mxu0 %v6206_v22  ;;  %v3546_v5 = vld [vmem:[#allocation8 + $0xa0] sm:$0xff]  ;;  %v3557_v57 = vld [vmem:[#allocation8 + $0xf8] sm:$0xff]  ;;  %v3556_v24 = vld [vmem:[#allocation8 + $0xf0] sm:$0xff]  ;;  %s4605_s27 = scalar_lea.vmem %s4329_s26, 256  ;;  %p4610_p3 = scmp.lt.s32.totalorder %s4329_s26, %s4329_s26 }
 0xa18   :  { %3903 = vmatpush1.bf16.msra.mxu1 %v3526_v32  ;;  %v3529_v53 = vld [vmem:[#allocation8 + $0x18] sm:$0xff]  ;;  %v3528_v59 = vld [vmem:[#allocation8 + $0x10] sm:$0xff]  ;;  %v3567_v19 = vld [vmem:[#allocation8 + $0x148] sm:$0xff]  ;;  %p4606_p2 = scmp.ne.s32.totalorder %s4329_s26, %s4605_s27  ;;  %p4611_p4 = scmp.lt.s32.totalorder %s4605_s27, %s4605_s27 }
 0xa19   :  { %3904 = vmatprep.subr.bf16.mxu1 %v3537_v30  ;;  %3984 = vmatprep.subr.bf16.mxu0 %v3529_v53  ;;  %v3539_v21 = vld [vmem:[#allocation8 + $0x68] sm:$0xff]  ;;  %v3538_v12 = vld [vmem:[#allocation8 + $0x60] sm:$0xff]  ;;  %v3549_v35 = vld [vmem:[#allocation8 + $0xb8] sm:$0xff] }
 0xa1a   :  { %3985 = vmatpush1.bf16.msra.mxu0 %v3528_v59  ;;  %v3566_v62 = vld [vmem:[#allocation8 + $0x140] sm:$0xff]  ;;  %v3577_v7 = vld [vmem:[#allocation8 + $0x198] sm:$0xff]  ;;  %v3548_v54 = vld [vmem:[#allocation8 + $0xb0] sm:$0xff]  ;;  %p4612_p5 = por %p4611_p4, %p4610_p3 }
 0xa1b   :  { %3986 = vmatprep.subr.bf16.mxu0 %v3539_v21  ;;  %v3559_v9 = vld [vmem:[#allocation8 + $0x108] sm:$0xff]  ;;  %v3576_v18 = vld [vmem:[#allocation8 + $0x190] sm:$0xff]  ;;  %v3558_v63 = vld [vmem:[#allocation8 + $0x100] sm:$0xff] }
 0xa1c   :  { %3905 = vmatpush1.bf16.msra.mxu1 %v3536_v14  ;;  %v3587_v52 = vld [vmem:[#allocation8 + $0x1e8] sm:$0xff]  ;;  %v3569_v37 = vld [vmem:[#allocation8 + $0x158] sm:$0xff]  ;;  %v3586_v43 = vld [vmem:[#allocation8 + $0x1e0] sm:$0xff]  ;;  %p4613_p6 = pnand %p4612_p5, %p4606_p2 }
 0xa1d   :  { %3906 = vmatprep.subr.bf16.mxu1 %v3547_v27  ;;  %v3597_v16 = vld [vmem:[#allocation8 + $0x238] sm:$0xff]  ;;  %v3568_v40 = vld [vmem:[#allocation8 + $0x150] sm:$0xff]  ;;  %v3579_v17 = vld [vmem:[#allocation8 + $0x1a8] sm:$0xff] }
 0xa1e   :  { %3987 = vmatpush1.bf16.msra.mxu0 %v3538_v12  ;;  %v3596_v34 = vld [vmem:[#allocation8 + $0x230] sm:$0xff]  ;;  %v3607_v6 = vld [vmem:[#allocation8 + $0x288] sm:$0xff]  ;;  %v3578_v51 = vld [vmem:[#allocation8 + $0x1a0] sm:$0xff] }
 0xa1f   :  { %3988 = vmatprep.subr.bf16.mxu0 %v3549_v35  ;;  %v3589_v49 = vld [vmem:[#allocation8 + $0x1f8] sm:$0xff]  ;;  %v3606_v2 = vld [vmem:[#allocation8 + $0x280] sm:$0xff]  ;;  %v3588_v50 = vld [vmem:[#allocation8 + $0x1f0] sm:$0xff] }
 0xa20   :  { %3907 = vmatpush1.bf16.msra.mxu1 %v3546_v5  ;;  %v3617_v33 = vld [vmem:[#allocation8 + $0x2d8] sm:$0xff]  ;;  %v3599_v47 = vld [vmem:[#allocation8 + $0x248] sm:$0xff]  ;;  %v3616_v26 = vld [vmem:[#allocation8 + $0x2d0] sm:$0xff]  ;;  %v6212_v5 = vpack.c.bf16 %v6200_v4, %v6200_v4 }
 0xa21   :  { %3908 = vmatprep.subr.bf16.mxu1 %v3557_v57  ;;  %v3627_v10 = vld [vmem:[#allocation8 + $0x328] sm:$0xff]  ;;  %v3598_v23 = vld [vmem:[#allocation8 + $0x240] sm:$0xff]  ;;  %v3609_v0 = vld [vmem:[#allocation8 + $0x298] sm:$0xff] }
 0xa22   :  { %3989 = vmatpush1.bf16.msra.mxu0 %v3548_v54  ;;  %v3626_v1 = vld [vmem:[#allocation8 + $0x320] sm:$0xff]  ;;  %v3637_v41 = vld [vmem:[#allocation8 + $0x378] sm:$0xff]  ;;  %v3608_v28 = vld [vmem:[#allocation8 + $0x290] sm:$0xff] }
 0xa23   :  { %3990 = vmatprep.subr.bf16.mxu0 %v3559_v9  ;;  %v3619_v36 = vld [vmem:[#allocation8 + $0x2e8] sm:$0xff]  ;;  %v3636_v60 = vld [vmem:[#allocation8 + $0x370] sm:$0xff]  ;;  %v3618_v61 = vld [vmem:[#allocation8 + $0x2e0] sm:$0xff] }
 0xa24   :  { %3909 = vmatpush1.bf16.msra.mxu1 %v3556_v24  ;;  %v3647_v29 = vld [vmem:[#allocation8 + $0x3c8] sm:$0xff]  ;;  %v3629_v55 = vld [vmem:[#allocation8 + $0x338] sm:$0xff]  ;;  %v3646_v44 = vld [vmem:[#allocation8 + $0x3c0] sm:$0xff]  ;;  %v6216_v24 = vpack.c.bf16 %v6204_v20, %v6204_v20 }
 0xa25   :  { %3910 = vmatprep.subr.bf16.mxu1 %v3567_v19  ;;  %v3657_v8 = vld [vmem:[#allocation8 + $0x418] sm:$0xff]  ;;  %v3628_v56 = vld [vmem:[#allocation8 + $0x330] sm:$0xff]  ;;  %v3639_v42 = vld [vmem:[#allocation8 + $0x388] sm:$0xff] }
 0xa26   :  { %3991 = vmatpush1.bf16.msra.mxu0 %v3558_v63  ;;  %v3656_v11 = vld [vmem:[#allocation8 + $0x410] sm:$0xff]  ;;  %v3667_v13 = vld [vmem:[#allocation8 + $0x468] sm:$0xff]  ;;  %v3638_v46 = vld [vmem:[#allocation8 + $0x380] sm:$0xff] }
 0xa27   :  { %3992 = vmatprep.subr.bf16.mxu0 %v3569_v37  ;;  %v3649_v3 = vld [vmem:[#allocation8 + $0x3d8] sm:$0xff]  ;;  %v3666_v45 = vld [vmem:[#allocation8 + $0x460] sm:$0xff]  ;;  %v3648_v32 = vld [vmem:[#allocation8 + $0x3d0] sm:$0xff] }
 0xa28   :  { %3911 = vmatpush1.bf16.msra.mxu1 %v3566_v62  ;;  %v3677_v38 = vld [vmem:[#allocation8 + $0x4b8] sm:$0xff]  ;;  %v3659_v30 = vld [vmem:[#allocation8 + $0x428] sm:$0xff]  ;;  %v3676_v14 = vld [vmem:[#allocation8 + $0x4b0] sm:$0xff] }
 0xa29   :  { %3912 = vmatprep.subr.bf16.mxu1 %v3577_v7  ;;  %v3687_v27 = vld [vmem:[#allocation8 + $0x508] sm:$0xff]  ;;  %v3658_v57 = vld [vmem:[#allocation8 + $0x420] sm:$0xff]  ;;  %v3669_v53 = vld [vmem:[#allocation8 + $0x478] sm:$0xff] }
 0xa2a   :  { %3993 = vmatpush1.bf16.msra.mxu0 %v3568_v40  ;;  %v3686_v59 = vld [vmem:[#allocation8 + $0x500] sm:$0xff]  ;;  %v3697_v19 = vld [vmem:[#allocation8 + $0x558] sm:$0xff]  ;;  %v3668_v21 = vld [vmem:[#allocation8 + $0x470] sm:$0xff] }
 0xa2b   :  { %3994 = vmatprep.subr.bf16.mxu0 %v3579_v17  ;;  %v3679_v12 = vld [vmem:[#allocation8 + $0x4c8] sm:$0xff]  ;;  %v3696_v4 = vld [vmem:[#allocation8 + $0x550] sm:$0xff]  ;;  %v3678_v62 = vld [vmem:[#allocation8 + $0x4c0] sm:$0xff] }
 0xa2c   :  { %3913 = vmatpush1.bf16.msra.mxu1 %v3576_v18  ;;  %v3707_v35 = vld [vmem:[#allocation8 + $0x5a8] sm:$0xff]  ;;  %v3689_v20 = vld [vmem:[#allocation8 + $0x518] sm:$0xff]  ;;  %v3706_v7 = vld [vmem:[#allocation8 + $0x5a0] sm:$0xff] }
 0xa2d   :  { %3914 = vmatprep.subr.bf16.mxu1 %v3587_v52  ;;  %v3717_v54 = vld [vmem:[#allocation8 + $0x5f8] sm:$0xff]  ;;  %v3688_v9 = vld [vmem:[#allocation8 + $0x510] sm:$0xff]  ;;  %v3699_v18 = vld [vmem:[#allocation8 + $0x568] sm:$0xff] }
 0xa2e   :  { %3995 = vmatpush1.bf16.msra.mxu0 %v3578_v51  ;;  %v3716_v52 = vld [vmem:[#allocation8 + $0x5f0] sm:$0xff]  ;;  %v3727_v63 = vld [vmem:[#allocation8 + $0x648] sm:$0xff]  ;;  %v3698_v37 = vld [vmem:[#allocation8 + $0x560] sm:$0xff] }
 0xa2f   :  { %3996 = vmatprep.subr.bf16.mxu0 %v3589_v49  ;;  %v3737_v40 = vld [vmem:[#allocation8 + $0x698] sm:$0xff]  ;;  %v3708_v17 = vld [vmem:[#allocation8 + $0x5b0] sm:$0xff]  ;;  %v3747_v51 = vld [vmem:[#allocation8 + $0x6e8] sm:$0xff] }
 0xa30   :  { %3915 = vmatpush1.bf16.msra.mxu1 %v3586_v43  ;;  %v3709_v43 = vld [vmem:[#allocation8 + $0x5b8] sm:$0xff]  ;;  %v3718_v49 = vld [vmem:[#allocation8 + $0x600] sm:$0xff] }
 0xa31   :  { %3916 = vmatprep.subr.bf16.mxu1 %v3597_v16  ;;  %v3726_v16 = vld [vmem:[#allocation8 + $0x640] sm:$0xff] }
 0xa32   :  { %3997 = vmatpush1.bf16.msra.mxu0 %v3588_v50  ;;  %v3757_v50 = vld [vmem:[#allocation8 + $0x738] sm:$0xff] }
 0xa33   :  { %3998 = vmatprep.subr.bf16.mxu0 %v3599_v47  ;;  %v3728_v47 = vld [vmem:[#allocation8 + $0x650] sm:$0xff] }
 0xa34   :  { %3917 = vmatpush1.bf16.msra.mxu1 %v3596_v34  ;;  %v3719_v34 = vld [vmem:[#allocation8 + $0x608] sm:$0xff] }
 0xa35   :  { %3918 = vmatprep.subr.bf16.mxu1 %v3607_v6  ;;  %v3736_v6 = vld [vmem:[#allocation8 + $0x690] sm:$0xff] }
 0xa36   :  { %3999 = vmatpush1.bf16.msra.mxu0 %v3598_v23  ;;  %v3767_v23 = vld [vmem:[#allocation8 + $0x788] sm:$0xff] }
 0xa37   :  { %4000 = vmatprep.subr.bf16.mxu0 %v3609_v0  ;;  %v3738_v0 = vld [vmem:[#allocation8 + $0x6a0] sm:$0xff] }
 0xa38   :  { %3919 = vmatpush1.bf16.msra.mxu1 %v3606_v2  ;;  %v3729_v2 = vld [vmem:[#allocation8 + $0x658] sm:$0xff] }
 0xa39   :  { %3920 = vmatprep.subr.bf16.mxu1 %v3617_v33  ;;  %v3746_v33 = vld [vmem:[#allocation8 + $0x6e0] sm:$0xff] }
 0xa3a   :  { %4001 = vmatpush1.bf16.msra.mxu0 %v3608_v28  ;;  %v3777_v28 = vld [vmem:[#allocation8 + $0x7d8] sm:$0xff] }
 0xa3b   :  { %4002 = vmatprep.subr.bf16.mxu0 %v3619_v36  ;;  %v3748_v36 = vld [vmem:[#allocation8 + $0x6f0] sm:$0xff] }
 0xa3c   :  { %3921 = vmatpush1.bf16.msra.mxu1 %v3616_v26  ;;  %v3739_v26 = vld [vmem:[#allocation8 + $0x6a8] sm:$0xff] }
 0xa3d   :  { %3922 = vmatprep.subr.bf16.mxu1 %v3627_v10  ;;  %v3756_v10 = vld [vmem:[#allocation8 + $0x730] sm:$0xff] }
 0xa3e   :  { %4003 = vmatpush1.bf16.msra.mxu0 %v3618_v61  ;;  %v3787_v61 = vld [vmem:[#allocation8 + $0x828] sm:$0xff] }
 0xa3f   :  { %4004 = vmatprep.subr.bf16.mxu0 %v3629_v55  ;;  %v3758_v55 = vld [vmem:[#allocation8 + $0x740] sm:$0xff] }
 0xa40   :  { %3923 = vmatpush1.bf16.msra.mxu1 %v3626_v1  ;;  %v3749_v1 = vld [vmem:[#allocation8 + $0x6f8] sm:$0xff] }
 0xa41   :  { %3924 = vmatprep.subr.bf16.mxu1 %v3637_v41  ;;  %v3766_v41 = vld [vmem:[#allocation8 + $0x780] sm:$0xff] }
 0xa42   :  { %4005 = vmatpush1.bf16.msra.mxu0 %v3628_v56  ;;  %v3797_v56 = vld [vmem:[#allocation8 + $0x878] sm:$0xff] }
 0xa43   :  { %4006 = vmatprep.subr.bf16.mxu0 %v3639_v42  ;;  %v3768_v42 = vld [vmem:[#allocation8 + $0x790] sm:$0xff] }
 0xa44   :  { %3925 = vmatpush1.bf16.msra.mxu1 %v3636_v60  ;;  %v3759_v60 = vld [vmem:[#allocation8 + $0x748] sm:$0xff] }
 0xa45   :  { %3926 = vmatprep.subr.bf16.mxu1 %v3647_v29  ;;  %v3776_v29 = vld [vmem:[#allocation8 + $0x7d0] sm:$0xff] }
 0xa46   :  { %4007 = vmatpush1.bf16.msra.mxu0 %v3638_v46  ;;  %v3807_v46 = vld [vmem:[#allocation8 + $0x8c8] sm:$0xff] }
 0xa47   :  { %4008 = vmatprep.subr.bf16.mxu0 %v3649_v3  ;;  %v3778_v3 = vld [vmem:[#allocation8 + $0x7e0] sm:$0xff] }
 0xa48   :  { %3927 = vmatpush1.bf16.msra.mxu1 %v3646_v44  ;;  %v3769_v44 = vld [vmem:[#allocation8 + $0x798] sm:$0xff] }
 0xa49   :  { %3928 = vmatprep.subr.bf16.mxu1 %v3657_v8  ;;  %v3786_v8 = vld [vmem:[#allocation8 + $0x820] sm:$0xff] }
 0xa4a   :  { %4009 = vmatpush1.bf16.msra.mxu0 %v3648_v32  ;;  %v3817_v32 = vld [vmem:[#allocation8 + $0x918] sm:$0xff] }
 0xa4b   :  { %4010 = vmatprep.subr.bf16.mxu0 %v3659_v30  ;;  %v3788_v30 = vld [vmem:[#allocation8 + $0x830] sm:$0xff] }
 0xa4c   :  { %3929 = vmatpush1.bf16.msra.mxu1 %v3656_v11  ;;  %v3779_v11 = vld [vmem:[#allocation8 + $0x7e8] sm:$0xff] }
 0xa4d   :  { %3930 = vmatprep.subr.bf16.mxu1 %v3667_v13  ;;  %v3796_v13 = vld [vmem:[#allocation8 + $0x870] sm:$0xff] }
 0xa4e   :  { %4011 = vmatpush1.bf16.msra.mxu0 %v3658_v57  ;;  %v3827_v57 = vld [vmem:[#allocation8 + $0x968] sm:$0xff] }
 0xa4f   :  { %4012 = vmatprep.subr.bf16.mxu0 %v3669_v53  ;;  %v3798_v53 = vld [vmem:[#allocation8 + $0x880] sm:$0xff] }
 0xa50   :  { %3931 = vmatpush1.bf16.msra.mxu1 %v3666_v45  ;;  %v3789_v45 = vld [vmem:[#allocation8 + $0x838] sm:$0xff] }
 0xa51   :  { %3932 = vmatprep.subr.bf16.mxu1 %v3677_v38  ;;  %v3806_v38 = vld [vmem:[#allocation8 + $0x8c0] sm:$0xff] }
 0xa52   :  { %4013 = vmatpush1.bf16.msra.mxu0 %v3668_v21  ;;  %v3837_v21 = vld [vmem:[#allocation8 + $0x9b8] sm:$0xff] }
 0xa53   :  { %4014 = vmatprep.subr.bf16.mxu0 %v3679_v12  ;;  %v3808_v12 = vld [vmem:[#allocation8 + $0x8d0] sm:$0xff] }
 0xa54   :  { %3933 = vmatpush1.bf16.msra.mxu1 %v3676_v14  ;;  %v3799_v14 = vld [vmem:[#allocation8 + $0x888] sm:$0xff] }
 0xa55   :  { %3943 = vmatprep.subr.bf16.mxu1 %v3687_v27  ;;  %v3816_v27 = vld [vmem:[#allocation8 + $0x910] sm:$0xff] }
 0xa56   :  { %4015 = vmatpush1.bf16.msra.mxu0 %v3678_v62  ;;  %v3531_v62 = vld [vmem:[#allocation8 + $0x28] sm:$0xff] }
 0xa57   :  { %3935 = vmatmul.mubr.bf16.vlgmr.msra.gmra.mrb[64].mxu1 %v6212_v5  ;;  %4025 = vmatprep.subr.bf16.mxu0 %v3689_v20  ;;  %v6224_v20 = vpack.c.bf16 %v6202_v48, %v6202_v48  ;;  %v3551_v48 = vld [vmem:[#allocation8 + $0xc8] sm:$0xff] }
 0xa58   :  { %3944 = vmatpush1.bf16.msra.mxu1 %v3686_v59  ;;  %3975 = vmatprep.mubr.bf16.mxu1 %v6216_v24  ;;  %v3809_v59 = vld [vmem:[#allocation8 + $0x8d8] sm:$0xff] }
 0xa59   :  { %3945 = vmatprep.subr.bf16.mxu1 %v3697_v19  ;;  %4017 = vmatmul.mubr.bf16.vlgmr.msra.gmra.mrb[76].mxu0 %v6212_v5  ;;  %v3826_v19 = vld [vmem:[#allocation8 + $0x960] sm:$0xff] }
 0xa5a   :  { %4026 = vmatpush1.bf16.msra.mxu0 %v3688_v9  ;;  %4057 = vmatprep.mubr.bf16.mxu0 %v6216_v24  ;;  %v3530_v9 = vld [vmem:[#allocation8 + $0x20] sm:$0xff] }
 0xa5b   :  { %4027 = vmatprep.subr.bf16.mxu0 %v3699_v18  ;;  %v3541_v18 = vld [vmem:[#allocation8 + $0x78] sm:$0xff] }
 0xa5c   :  { %3946 = vmatpush1.bf16.msra.mxu1 %v3696_v4  ;;  %v3819_v4 = vld [vmem:[#allocation8 + $0x928] sm:$0xff] }
 0xa5d   :  { %3947 = vmatprep.subr.bf16.mxu1 %v3707_v35  ;;  %v3836_v35 = vld [vmem:[#allocation8 + $0x9b0] sm:$0xff] }
 0xa5e   :  { %4028 = vmatpush1.bf16.msra.mxu0 %v3698_v37  ;;  %v3540_v37 = vld [vmem:[#allocation8 + $0x70] sm:$0xff] }
 0xa5f   :  { %4029 = vmatprep.subr.bf16.mxu0 %v3709_v43  ;;  %v3838_v43 = vld [vmem:[#allocation8 + $0x9c0] sm:$0xff] }
 0xa60   :  { %3948 = vmatpush1.bf16.msra.mxu1 %v3706_v7  ;;  %v3818_v7 = vld [vmem:[#allocation8 + $0x920] sm:$0xff] }
 0xa61   :  { %3949 = vmatprep.subr.bf16.mxu1 %v3717_v54  ;;  %v3829_v54 = vld [vmem:[#allocation8 + $0x978] sm:$0xff] }
 0xa62   :  { %4030 = vmatpush1.bf16.msra.mxu0 %v3708_v17  ;;  %v3561_v17 = vld [vmem:[#allocation8 + $0x118] sm:$0xff] }
 0xa63   :  { %4031 = vmatprep.subr.bf16.mxu0 %v3719_v34  ;;  %v3532_v34 = vld [vmem:[#allocation8 + $0x30] sm:$0xff] }
 0xa64   :  { %3950 = vmatpush1.bf16.msra.mxu1 %v3716_v52  ;;  %v3828_v52 = vld [vmem:[#allocation8 + $0x970] sm:$0xff] }
 0xa65   :  { %3951 = vmatprep.subr.bf16.mxu1 %v3727_v63  ;;  %v3839_v63 = vld [vmem:[#allocation8 + $0x9c8] sm:$0xff] }
 0xa66   :  { %4032 = vmatpush1.bf16.msra.mxu0 %v3718_v49  ;;  %v3571_v49 = vld [vmem:[#allocation8 + $0x168] sm:$0xff] }
 0xa67   :  { %4033 = vmatprep.subr.bf16.mxu0 %v3729_v2  ;;  %v3542_v2 = vld [vmem:[#allocation8 + $0x80] sm:$0xff] }
 0xa68   :  { %3952 = vmatpush1.bf16.msra.mxu1 %v3726_v16  ;;  %v3533_v16 = vld [vmem:[#allocation8 + $0x38] sm:$0xff] }
 0xa69   :  { %3953 = vmatprep.subr.bf16.mxu1 %v3737_v40  ;;  %v3550_v40 = vld [vmem:[#allocation8 + $0xc0] sm:$0xff] }
 0xa6a   :  { %4034 = vmatpush1.bf16.msra.mxu0 %v3728_v47  ;;  %v3581_v47 = vld [vmem:[#allocation8 + $0x1b8] sm:$0xff] }
 0xa6b   :  { %4035 = vmatprep.subr.bf16.mxu0 %v3739_v26  ;;  %v3552_v26 = vld [vmem:[#allocation8 + $0xd0] sm:$0xff] }
 0xa6c   :  { %3954 = vmatpush1.bf16.msra.mxu1 %v3736_v6  ;;  %v3543_v6 = vld [vmem:[#allocation8 + $0x88] sm:$0xff] }
 0xa6d   :  { %3955 = vmatprep.subr.bf16.mxu1 %v3747_v51  ;;  %v3560_v51 = vld [vmem:[#allocation8 + $0x110] sm:$0xff] }
 0xa6e   :  { %4036 = vmatpush1.bf16.msra.mxu0 %v3738_v0  ;;  %v3591_v0 = vld [vmem:[#allocation8 + $0x208] sm:$0xff] }
 0xa6f   :  { %4037 = vmatprep.subr.bf16.mxu0 %v3749_v1  ;;  %v3562_v1 = vld [vmem:[#allocation8 + $0x120] sm:$0xff] }
 0xa70   :  { %3956 = vmatpush1.bf16.msra.mxu1 %v3746_v33  ;;  %v3553_v33 = vld [vmem:[#allocation8 + $0xd8] sm:$0xff] }
 0xa71   :  { %3957 = vmatprep.subr.bf16.mxu1 %v3757_v50  ;;  %v3570_v50 = vld [vmem:[#allocation8 + $0x160] sm:$0xff] }
 0xa72   :  { %4038 = vmatpush1.bf16.msra.mxu0 %v3748_v36  ;;  %v3601_v36 = vld [vmem:[#allocation8 + $0x258] sm:$0xff] }
 0xa73   :  { %4039 = vmatprep.subr.bf16.mxu0 %v3759_v60  ;;  %v3572_v60 = vld [vmem:[#allocation8 + $0x170] sm:$0xff] }
 0xa74   :  { %3958 = vmatpush1.bf16.msra.mxu1 %v3756_v10  ;;  %v3563_v10 = vld [vmem:[#allocation8 + $0x128] sm:$0xff] }
 0xa75   :  { %3959 = vmatprep.subr.bf16.mxu1 %v3767_v23  ;;  %v3580_v23 = vld [vmem:[#allocation8 + $0x1b0] sm:$0xff] }
 0xa76   :  { %4040 = vmatpush1.bf16.msra.mxu0 %v3758_v55  ;;  %v3611_v55 = vld [vmem:[#allocation8 + $0x2a8] sm:$0xff] }
 0xa77   :  { %4041 = vmatprep.subr.bf16.mxu0 %v3769_v44  ;;  %v3582_v44 = vld [vmem:[#allocation8 + $0x1c0] sm:$0xff] }
 0xa78   :  { %3960 = vmatpush1.bf16.msra.mxu1 %v3766_v41  ;;  %v3573_v41 = vld [vmem:[#allocation8 + $0x178] sm:$0xff] }
 0xa79   :  { %3961 = vmatprep.subr.bf16.mxu1 %v3777_v28  ;;  %v3590_v28 = vld [vmem:[#allocation8 + $0x200] sm:$0xff] }
 0xa7a   :  { %4042 = vmatpush1.bf16.msra.mxu0 %v3768_v42  ;;  %v3621_v42 = vld [vmem:[#allocation8 + $0x2f8] sm:$0xff] }
 0xa7b   :  { %4043 = vmatprep.subr.bf16.mxu0 %v3779_v11  ;;  %v3592_v11 = vld [vmem:[#allocation8 + $0x210] sm:$0xff] }
 0xa7c   :  { %3962 = vmatpush1.bf16.msra.mxu1 %v3776_v29  ;;  %v3583_v29 = vld [vmem:[#allocation8 + $0x1c8] sm:$0xff] }
 0xa7d   :  { %3963 = vmatprep.subr.bf16.mxu1 %v3787_v61  ;;  %v3600_v61 = vld [vmem:[#allocation8 + $0x250] sm:$0xff] }
 0xa7e   :  { %4044 = vmatpush1.bf16.msra.mxu0 %v3778_v3  ;;  %v3631_v3 = vld [vmem:[#allocation8 + $0x348] sm:$0xff] }
 0xa7f   :  { %4045 = vmatprep.subr.bf16.mxu0 %v3789_v45  ;;  %v3602_v45 = vld [vmem:[#allocation8 + $0x260] sm:$0xff] }
 0xa80   :  { %3964 = vmatpush1.bf16.msra.mxu1 %v3786_v8  ;;  %v3593_v8 = vld [vmem:[#allocation8 + $0x218] sm:$0xff] }
 0xa81   :  { %3965 = vmatprep.subr.bf16.mxu1 %v3797_v56  ;;  %v3610_v56 = vld [vmem:[#allocation8 + $0x2a0] sm:$0xff] }
 0xa82   :  { %4046 = vmatpush1.bf16.msra.mxu0 %v3788_v30  ;;  %v3641_v30 = vld [vmem:[#allocation8 + $0x398] sm:$0xff] }
 0xa83   :  { %4047 = vmatprep.subr.bf16.mxu0 %v3799_v14  ;;  %v3612_v14 = vld [vmem:[#allocation8 + $0x2b0] sm:$0xff] }
 0xa84   :  { %3966 = vmatpush1.bf16.msra.mxu1 %v3796_v13  ;;  %v3603_v13 = vld [vmem:[#allocation8 + $0x268] sm:$0xff] }
 0xa85   :  { %3967 = vmatprep.subr.bf16.mxu1 %v3807_v46  ;;  %v3620_v46 = vld [vmem:[#allocation8 + $0x2f0] sm:$0xff] }
 0xa86   :  { %4048 = vmatpush1.bf16.msra.mxu0 %v3798_v53  ;;  %v3651_v53 = vld [vmem:[#allocation8 + $0x3e8] sm:$0xff] }
 0xa87   :  { %4049 = vmatprep.subr.bf16.mxu0 %v3809_v59  ;;  %v3622_v59 = vld [vmem:[#allocation8 + $0x300] sm:$0xff] }
 0xa88   :  { %3968 = vmatpush1.bf16.msra.mxu1 %v3806_v38  ;;  %v3613_v38 = vld [vmem:[#allocation8 + $0x2b8] sm:$0xff] }
 0xa89   :  { %3969 = vmatprep.subr.bf16.mxu1 %v3817_v32  ;;  %v3630_v32 = vld [vmem:[#allocation8 + $0x340] sm:$0xff] }
 0xa8a   :  { %4050 = vmatpush1.bf16.msra.mxu0 %v3808_v12  ;;  %v3661_v12 = vld [vmem:[#allocation8 + $0x438] sm:$0xff] }
 0xa8b   :  { %4051 = vmatprep.subr.bf16.mxu0 %v3819_v4  ;;  %v3632_v4 = vld [vmem:[#allocation8 + $0x350] sm:$0xff] }
 0xa8c   :  { %3970 = vmatpush1.bf16.msra.mxu1 %v3816_v27  ;;  %v3623_v27 = vld [vmem:[#allocation8 + $0x308] sm:$0xff] }
 0xa8d   :  { %3971 = vmatprep.subr.bf16.mxu1 %v3827_v57  ;;  %v3640_v57 = vld [vmem:[#allocation8 + $0x390] sm:$0xff] }
 0xa8e   :  { %4052 = vmatpush1.bf16.msra.mxu0 %v3818_v7  ;;  %v3671_v7 = vld [vmem:[#allocation8 + $0x488] sm:$0xff] }
 0xa8f   :  { %4053 = vmatprep.subr.bf16.mxu0 %v3829_v54  ;;  %v3642_v54 = vld [vmem:[#allocation8 + $0x3a0] sm:$0xff] }
 0xa90   :  { %3972 = vmatpush1.bf16.msra.mxu1 %v3826_v19  ;;  %v3633_v19 = vld [vmem:[#allocation8 + $0x358] sm:$0xff] }
 0xa91   :  { %3973 = vmatprep.subr.bf16.mxu1 %v3837_v21  ;;  %v3650_v21 = vld [vmem:[#allocation8 + $0x3e0] sm:$0xff] }
 0xa92   :  { %4054 = vmatpush1.bf16.msra.mxu0 %v3828_v52  ;;  %v3681_v52 = vld [vmem:[#allocation8 + $0x4d8] sm:$0xff] }
 0xa93   :  { %4055 = vmatprep.subr.bf16.mxu0 %v3839_v63  ;;  %v3652_v63 = vld [vmem:[#allocation8 + $0x3f0] sm:$0xff] }
 0xa94   :  { %3974 = vmatpush1.bf16.msra.mxu1 %v3836_v35  ;;  %v3643_v35 = vld [vmem:[#allocation8 + $0x3a8] sm:$0xff] }
 0xa95   :  { %4066 = vmatprep.subr.bf16.mxu1 %v3531_v62  ;;  %v3660_v62 = vld [vmem:[#allocation8 + $0x430] sm:$0xff] }
 0xa96   :  { %4056 = vmatpush1.bf16.msra.mxu0 %v3838_v43  ;;  %v3691_v43 = vld [vmem:[#allocation8 + $0x528] sm:$0xff] }
 0xa97   :  { %3976 = vmatmul.mubr.bf16.vlgmr.msra.gmra.mrb[64].mxu1 %v6224_v20  ;;  %4148 = vmatprep.subr.bf16.mxu0 %v3533_v16  ;;  %v3662_v16 = vld [vmem:[#allocation8 + $0x440] sm:$0xff] }
 0xa98   :  { %4067 = vmatpush1.bf16.msra.mxu1 %v3530_v9  ;;  %4098 = vmatprep.mubr.bf16.mxu1 %v6206_v22  ;;  %v3653_v9 = vld [vmem:[#allocation8 + $0x3f8] sm:$0xff] }
 0xa99   :  { %4068 = vmatprep.subr.bf16.mxu1 %v3541_v18  ;;  %4058 = vmatmul.mubr.bf16.vlgmr.msra.gmra.mrb[76].mxu0 %v6224_v20  ;;  %v3670_v18 = vld [vmem:[#allocation8 + $0x480] sm:$0xff] }
 0xa9a   :  { %4149 = vmatpush1.bf16.msra.mxu0 %v3532_v34  ;;  %4180 = vmatprep.mubr.bf16.mxu0 %v6206_v22  ;;  %v3701_v34 = vld [vmem:[#allocation8 + $0x578] sm:$0xff] }
 0xa9b   :  { %4150 = vmatprep.subr.bf16.mxu0 %v3543_v6  ;;  %v3672_v6 = vld [vmem:[#allocation8 + $0x490] sm:$0xff] }
 0xa9c   :  { %4069 = vmatpush1.bf16.msra.mxu1 %v3540_v37  ;;  %v3663_v37 = vld [vmem:[#allocation8 + $0x448] sm:$0xff] }
 0xa9d   :  { %4070 = vmatprep.subr.bf16.mxu1 %v3551_v48  ;;  %v3680_v48 = vld [vmem:[#allocation8 + $0x4d0] sm:$0xff] }
 0xa9e   :  { %4151 = vmatpush1.bf16.msra.mxu0 %v3542_v2  ;;  %v3711_v2 = vld [vmem:[#allocation8 + $0x5c8] sm:$0xff] }
 0xa9f   :  { %4152 = vmatprep.subr.bf16.mxu0 %v3553_v33  ;;  %v3682_v33 = vld [vmem:[#allocation8 + $0x4e0] sm:$0xff] }
 0xaa0   :  { %4071 = vmatpush1.bf16.msra.mxu1 %v3550_v40  ;;  %v3673_v40 = vld [vmem:[#allocation8 + $0x498] sm:$0xff] }
 0xaa1   :  { %4072 = vmatprep.subr.bf16.mxu1 %v3561_v17  ;;  %v3690_v17 = vld [vmem:[#allocation8 + $0x520] sm:$0xff] }
 0xaa2   :  { %4153 = vmatpush1.bf16.msra.mxu0 %v3552_v26  ;;  %v3721_v26 = vld [vmem:[#allocation8 + $0x618] sm:$0xff] }
 0xaa3   :  { %4154 = vmatprep.subr.bf16.mxu0 %v3563_v10  ;;  %v3692_v10 = vld [vmem:[#allocation8 + $0x530] sm:$0xff] }
 0xaa4   :  { %4073 = vmatpush1.bf16.msra.mxu1 %v3560_v51  ;;  %v3683_v51 = vld [vmem:[#allocation8 + $0x4e8] sm:$0xff] }
 0xaa5   :  { %4074 = vmatprep.subr.bf16.mxu1 %v3571_v49  ;;  %v3700_v49 = vld [vmem:[#allocation8 + $0x570] sm:$0xff] }
 0xaa6   :  { %4155 = vmatpush1.bf16.msra.mxu0 %v3562_v1  ;;  %v3731_v1 = vld [vmem:[#allocation8 + $0x668] sm:$0xff] }
 0xaa7   :  { %4156 = vmatprep.subr.bf16.mxu0 %v3573_v41  ;;  %v3702_v41 = vld [vmem:[#allocation8 + $0x580] sm:$0xff] }
 0xaa8   :  { %4075 = vmatpush1.bf16.msra.mxu1 %v3570_v50  ;;  %v3693_v50 = vld [vmem:[#allocation8 + $0x538] sm:$0xff] }
 0xaa9   :  { %4076 = vmatprep.subr.bf16.mxu1 %v3581_v47  ;;  %v3710_v47 = vld [vmem:[#allocation8 + $0x5c0] sm:$0xff] }
 0xaaa   :  { %4157 = vmatpush1.bf16.msra.mxu0 %v3572_v60  ;;  %v3741_v60 = vld [vmem:[#allocation8 + $0x6b8] sm:$0xff] }
 0xaab   :  { %4158 = vmatprep.subr.bf16.mxu0 %v3583_v29  ;;  %v3712_v29 = vld [vmem:[#allocation8 + $0x5d0] sm:$0xff] }
 0xaac   :  { %4077 = vmatpush1.bf16.msra.mxu1 %v3580_v23  ;;  %v3703_v23 = vld [vmem:[#allocation8 + $0x588] sm:$0xff] }
 0xaad   :  { %4078 = vmatprep.subr.bf16.mxu1 %v3591_v0  ;;  %v3720_v0 = vld [vmem:[#allocation8 + $0x610] sm:$0xff] }
 0xaae   :  { %4159 = vmatpush1.bf16.msra.mxu0 %v3582_v44  ;;  %v3751_v44 = vld [vmem:[#allocation8 + $0x708] sm:$0xff] }
 0xaaf   :  { %4160 = vmatprep.subr.bf16.mxu0 %v3593_v8  ;;  %v3722_v8 = vld [vmem:[#allocation8 + $0x620] sm:$0xff] }
 0xab0   :  { %4079 = vmatpush1.bf16.msra.mxu1 %v3590_v28  ;;  %v3713_v28 = vld [vmem:[#allocation8 + $0x5d8] sm:$0xff] }
 0xab1   :  { %4080 = vmatprep.subr.bf16.mxu1 %v3601_v36  ;;  %v3730_v36 = vld [vmem:[#allocation8 + $0x660] sm:$0xff] }
 0xab2   :  { %4161 = vmatpush1.bf16.msra.mxu0 %v3592_v11  ;;  %v3761_v11 = vld [vmem:[#allocation8 + $0x758] sm:$0xff] }
 0xab3   :  { %4162 = vmatprep.subr.bf16.mxu0 %v3603_v13  ;;  %v3732_v13 = vld [vmem:[#allocation8 + $0x670] sm:$0xff] }
 0xab4   :  { %4081 = vmatpush1.bf16.msra.mxu1 %v3600_v61  ;;  %v3723_v61 = vld [vmem:[#allocation8 + $0x628] sm:$0xff] }
 0xab5   :  { %4082 = vmatprep.subr.bf16.mxu1 %v3611_v55  ;;  %v3740_v55 = vld [vmem:[#allocation8 + $0x6b0] sm:$0xff] }
 0xab6   :  { %4163 = vmatpush1.bf16.msra.mxu0 %v3602_v45  ;;  %v3771_v45 = vld [vmem:[#allocation8 + $0x7a8] sm:$0xff] }
 0xab7   :  { %4164 = vmatprep.subr.bf16.mxu0 %v3613_v38  ;;  %v3742_v38 = vld [vmem:[#allocation8 + $0x6c0] sm:$0xff] }
 0xab8   :  { %4083 = vmatpush1.bf16.msra.mxu1 %v3610_v56  ;;  %v3733_v56 = vld [vmem:[#allocation8 + $0x678] sm:$0xff] }
 0xab9   :  { %4084 = vmatprep.subr.bf16.mxu1 %v3621_v42  ;;  %v3750_v42 = vld [vmem:[#allocation8 + $0x700] sm:$0xff] }
 0xaba   :  { %4165 = vmatpush1.bf16.msra.mxu0 %v3612_v14  ;;  %v3781_v14 = vld [vmem:[#allocation8 + $0x7f8] sm:$0xff] }
 0xabb   :  { %4166 = vmatprep.subr.bf16.mxu0 %v3623_v27  ;;  %v3752_v27 = vld [vmem:[#allocation8 + $0x710] sm:$0xff] }
 0xabc   :  { %4085 = vmatpush1.bf16.msra.mxu1 %v3620_v46  ;;  %v3743_v46 = vld [vmem:[#allocation8 + $0x6c8] sm:$0xff] }
 0xabd   :  { %4086 = vmatprep.subr.bf16.mxu1 %v3631_v3  ;;  %v3760_v3 = vld [vmem:[#allocation8 + $0x750] sm:$0xff] }
 0xabe   :  { %4167 = vmatpush1.bf16.msra.mxu0 %v3622_v59  ;;  %v3791_v59 = vld [vmem:[#allocation8 + $0x848] sm:$0xff] }
 0xabf   :  { %4168 = vmatprep.subr.bf16.mxu0 %v3633_v19  ;;  %v3762_v19 = vld [vmem:[#allocation8 + $0x760] sm:$0xff] }
 0xac0   :  { %4087 = vmatpush1.bf16.msra.mxu1 %v3630_v32  ;;  %v3753_v32 = vld [vmem:[#allocation8 + $0x718] sm:$0xff] }
 0xac1   :  { %4088 = vmatprep.subr.bf16.mxu1 %v3641_v30  ;;  %v3770_v30 = vld [vmem:[#allocation8 + $0x7a0] sm:$0xff] }
 0xac2   :  { %4169 = vmatpush1.bf16.msra.mxu0 %v3632_v4  ;;  %v3801_v4 = vld [vmem:[#allocation8 + $0x898] sm:$0xff] }
 0xac3   :  { %4170 = vmatprep.subr.bf16.mxu0 %v3643_v35  ;;  %v3772_v35 = vld [vmem:[#allocation8 + $0x7b0] sm:$0xff] }
 0xac4   :  { %4089 = vmatpush1.bf16.msra.mxu1 %v3640_v57  ;;  %v3763_v57 = vld [vmem:[#allocation8 + $0x768] sm:$0xff] }
 0xac5   :  { %4090 = vmatprep.subr.bf16.mxu1 %v3651_v53  ;;  %v3780_v53 = vld [vmem:[#allocation8 + $0x7f0] sm:$0xff] }
 0xac6   :  { %4171 = vmatpush1.bf16.msra.mxu0 %v3642_v54  ;;  %v3811_v54 = vld [vmem:[#allocation8 + $0x8e8] sm:$0xff] }
 0xac7   :  { %4172 = vmatprep.subr.bf16.mxu0 %v3653_v9  ;;  %v3782_v9 = vld [vmem:[#allocation8 + $0x800] sm:$0xff] }
 0xac8   :  { %4091 = vmatpush1.bf16.msra.mxu1 %v3650_v21  ;;  %v3773_v21 = vld [vmem:[#allocation8 + $0x7b8] sm:$0xff] }
 0xac9   :  { %4092 = vmatprep.subr.bf16.mxu1 %v3661_v12  ;;  %v3790_v12 = vld [vmem:[#allocation8 + $0x840] sm:$0xff] }
 0xaca   :  { %4173 = vmatpush1.bf16.msra.mxu0 %v3652_v63  ;;  %v3821_v63 = vld [vmem:[#allocation8 + $0x938] sm:$0xff] }
 0xacb   :  { %4174 = vmatprep.subr.bf16.mxu0 %v3663_v37  ;;  %v3792_v37 = vld [vmem:[#allocation8 + $0x850] sm:$0xff] }
 0xacc   :  { %4093 = vmatpush1.bf16.msra.mxu1 %v3660_v62  ;;  %v3783_v62 = vld [vmem:[#allocation8 + $0x808] sm:$0xff] }
 0xacd   :  { %4094 = vmatprep.subr.bf16.mxu1 %v3671_v7  ;;  %v3800_v7 = vld [vmem:[#allocation8 + $0x890] sm:$0xff] }
 0xace   :  { %4175 = vmatpush1.bf16.msra.mxu0 %v3662_v16  ;;  %v3831_v16 = vld [vmem:[#allocation8 + $0x988] sm:$0xff] }
 0xacf   :  { %4176 = vmatprep.subr.bf16.mxu0 %v3673_v40  ;;  %v3802_v40 = vld [vmem:[#allocation8 + $0x8a0] sm:$0xff] }
 0xad0   :  { %4095 = vmatpush1.bf16.msra.mxu1 %v3670_v18  ;;  %v3793_v18 = vld [vmem:[#allocation8 + $0x858] sm:$0xff] }
 0xad1   :  { %4096 = vmatprep.subr.bf16.mxu1 %v3681_v52  ;;  %v3810_v52 = vld [vmem:[#allocation8 + $0x8e0] sm:$0xff] }
 0xad2   :  { %4177 = vmatpush1.bf16.msra.mxu0 %v3672_v6  ;;  %v3841_v6 = vld [vmem:[#allocation8 + $0x9d8] sm:$0xff] }
 0xad3   :  { %4178 = vmatprep.subr.bf16.mxu0 %v3683_v51  ;;  %v3812_v51 = vld [vmem:[#allocation8 + $0x8f0] sm:$0xff] }
 0xad4   :  { %4097 = vmatpush1.bf16.msra.mxu1 %v3680_v48  ;;  %v3803_v48 = vld [vmem:[#allocation8 + $0x8a8] sm:$0xff] }
 0xad5   :  { %4107 = vmatprep.subr.bf16.mxu1 %v3691_v43  ;;  %v3820_v43 = vld [vmem:[#allocation8 + $0x930] sm:$0xff] }
 0xad6   :  { %4179 = vmatpush1.bf16.msra.mxu0 %v3682_v33  ;;  %v3535_v33 = vld [vmem:[#allocation8 + $0x48] sm:$0xff] }
 0xad7   :  { %4099 = vmatmul.mubr.bf16.vlgmr.msra.gmra.mrb[68].mxu1 %v6212_v5  ;;  %4189 = vmatprep.subr.bf16.mxu0 %v3693_v50  ;;  %v3822_v50 = vld [vmem:[#allocation8 + $0x940] sm:$0xff] }
 0xad8   :  { %4108 = vmatpush1.bf16.msra.mxu1 %v3690_v17  ;;  %4139 = vmatprep.mubr.bf16.mxu1 %v6216_v24  ;;  %v3813_v17 = vld [vmem:[#allocation8 + $0x8f8] sm:$0xff] }
 0xad9   :  { %4109 = vmatprep.subr.bf16.mxu1 %v3701_v34  ;;  %4181 = vmatmul.mubr.bf16.vlgmr.msra.gmra.mrb[80].mxu0 %v6212_v5  ;;  %v3830_v34 = vld [vmem:[#allocation8 + $0x980] sm:$0xff] }
 0xada   :  { %4190 = vmatpush1.bf16.msra.mxu0 %v3692_v10  ;;  %4221 = vmatprep.mubr.bf16.mxu0 %v6216_v24  ;;  %v3545_v10 = vld [vmem:[#allocation8 + $0x98] sm:$0xff] }
 0xadb   :  { %4191 = vmatprep.subr.bf16.mxu0 %v3703_v23  ;;  %v3832_v23 = vld [vmem:[#allocation8 + $0x990] sm:$0xff] }
 0xadc   :  { %4110 = vmatpush1.bf16.msra.mxu1 %v3700_v49  ;;  %v3823_v49 = vld [vmem:[#allocation8 + $0x948] sm:$0xff] }
 0xadd   :  { %4111 = vmatprep.subr.bf16.mxu1 %v3711_v2  ;;  %v3840_v2 = vld [vmem:[#allocation8 + $0x9d0] sm:$0xff] }
 0xade   :  { %4192 = vmatpush1.bf16.msra.mxu0 %v3702_v41  ;;  %v3555_v41 = vld [vmem:[#allocation8 + $0xe8] sm:$0xff] }
 0xadf   :  { %4193 = vmatprep.subr.bf16.mxu0 %v3713_v28  ;;  %v3842_v28 = vld [vmem:[#allocation8 + $0x9e0] sm:$0xff] }
 0xae0   :  { %4112 = vmatpush1.bf16.msra.mxu1 %v3710_v47  ;;  %v3833_v47 = vld [vmem:[#allocation8 + $0x998] sm:$0xff] }
 0xae1   :  { %4113 = vmatprep.subr.bf16.mxu1 %v3721_v26  ;;  %v3534_v26 = vld [vmem:[#allocation8 + $0x40] sm:$0xff] }
 0xae2   :  { %4194 = vmatpush1.bf16.msra.mxu0 %v3712_v29  ;;  %v3564_v29 = vld [vmem:[#allocation8 + $0x130] sm:$0xff] }
 0xae3   :  { %4195 = vmatprep.subr.bf16.mxu0 %v3723_v61  ;;  %v3575_v61 = vld [vmem:[#allocation8 + $0x188] sm:$0xff] }
 0xae4   :  { %4114 = vmatpush1.bf16.msra.mxu1 %v3720_v0  ;;  %v3843_v0 = vld [vmem:[#allocation8 + $0x9e8] sm:$0xff] }
 0xae5   :  { %4115 = vmatprep.subr.bf16.mxu1 %v3731_v1  ;;  %v3544_v1 = vld [vmem:[#allocation8 + $0x90] sm:$0xff] }
 0xae6   :  { %4196 = vmatpush1.bf16.msra.mxu0 %v3722_v8  ;;  %v3595_v8 = vld [vmem:[#allocation8 + $0x228] sm:$0xff] }
 0xae7   :  { %4197 = vmatprep.subr.bf16.mxu0 %v3733_v56  ;;  %v3594_v56 = vld [vmem:[#allocation8 + $0x220] sm:$0xff] }
 0xae8   :  { %4116 = vmatpush1.bf16.msra.mxu1 %v3730_v36  ;;  %v3554_v36 = vld [vmem:[#allocation8 + $0xe0] sm:$0xff] }
 0xae9   :  { %4117 = vmatprep.subr.bf16.mxu1 %v3741_v60  ;;  %v3565_v60 = vld [vmem:[#allocation8 + $0x138] sm:$0xff] }
 0xaea   :  { %4198 = vmatpush1.bf16.msra.mxu0 %v3732_v13  ;;  %v3615_v13 = vld [vmem:[#allocation8 + $0x2c8] sm:$0xff] }
 0xaeb   :  { %4199 = vmatprep.subr.bf16.mxu0 %v3743_v46  ;;  %v3614_v46 = vld [vmem:[#allocation8 + $0x2c0] sm:$0xff] }
 0xaec   :  { %4118 = vmatpush1.bf16.msra.mxu1 %v3740_v55  ;;  %v3585_v55 = vld [vmem:[#allocation8 + $0x1d8] sm:$0xff] }
 0xaed   :  { %4119 = vmatprep.subr.bf16.mxu1 %v3751_v44  ;;  %v3584_v44 = vld [vmem:[#allocation8 + $0x1d0] sm:$0xff] }
 0xaee   :  { %4200 = vmatpush1.bf16.msra.mxu0 %v3742_v38  ;;  %v3635_v38 = vld [vmem:[#allocation8 + $0x368] sm:$0xff] }
 0xaef   :  { %4201 = vmatprep.subr.bf16.mxu0 %v3753_v32  ;;  %v3634_v32 = vld [vmem:[#allocation8 + $0x360] sm:$0xff] }
 0xaf0   :  { %4120 = vmatpush1.bf16.msra.mxu1 %v3750_v42  ;;  %v3605_v42 = vld [vmem:[#allocation8 + $0x278] sm:$0xff] }
 0xaf1   :  { %4121 = vmatprep.subr.bf16.mxu1 %v3761_v11  ;;  %v3604_v11 = vld [vmem:[#allocation8 + $0x270] sm:$0xff] }
 0xaf2   :  { %4202 = vmatpush1.bf16.msra.mxu0 %v3752_v27  ;;  %v3655_v27 = vld [vmem:[#allocation8 + $0x408] sm:$0xff] }
 0xaf3   :  { %4203 = vmatprep.subr.bf16.mxu0 %v3763_v57  ;;  %v3654_v57 = vld [vmem:[#allocation8 + $0x400] sm:$0xff] }
 0xaf4   :  { %4122 = vmatpush1.bf16.msra.mxu1 %v3760_v3  ;;  %v3625_v3 = vld [vmem:[#allocation8 + $0x318] sm:$0xff] }
 0xaf5   :  { %4123 = vmatprep.subr.bf16.mxu1 %v3771_v45  ;;  %v3624_v45 = vld [vmem:[#allocation8 + $0x310] sm:$0xff] }
 0xaf6   :  { %4204 = vmatpush1.bf16.msra.mxu0 %v3762_v19  ;;  %v3675_v19 = vld [vmem:[#allocation8 + $0x4a8] sm:$0xff] }
 0xaf7   :  { %4205 = vmatprep.subr.bf16.mxu0 %v3773_v21  ;;  %v3674_v21 = vld [vmem:[#allocation8 + $0x4a0] sm:$0xff] }
 0xaf8   :  { %4124 = vmatpush1.bf16.msra.mxu1 %v3770_v30  ;;  %v3645_v30 = vld [vmem:[#allocation8 + $0x3b8] sm:$0xff] }
 0xaf9   :  { %4125 = vmatprep.subr.bf16.mxu1 %v3781_v14  ;;  %v3644_v14 = vld [vmem:[#allocation8 + $0x3b0] sm:$0xff] }
 0xafa   :  { %4206 = vmatpush1.bf16.msra.mxu0 %v3772_v35  ;;  %v3695_v35 = vld [vmem:[#allocation8 + $0x548] sm:$0xff] }
 0xafb   :  { %4207 = vmatprep.subr.bf16.mxu0 %v3783_v62  ;;  %v3694_v62 = vld [vmem:[#allocation8 + $0x540] sm:$0xff] }
 0xafc   :  { %4126 = vmatpush1.bf16.msra.mxu1 %v3780_v53  ;;  %v3665_v53 = vld [vmem:[#allocation8 + $0x458] sm:$0xff] }
 0xafd   :  { %4127 = vmatprep.subr.bf16.mxu1 %v3791_v59  ;;  %v3664_v59 = vld [vmem:[#allocation8 + $0x450] sm:$0xff] }
 0xafe   :  { %4208 = vmatpush1.bf16.msra.mxu0 %v3782_v9  ;;  %v3715_v9 = vld [vmem:[#allocation8 + $0x5e8] sm:$0xff] }
 0xaff   :  { %4209 = vmatprep.subr.bf16.mxu0 %v3793_v18  ;;  %v3714_v18 = vld [vmem:[#allocation8 + $0x5e0] sm:$0xff] }
 0xb00   :  { %4128 = vmatpush1.bf16.msra.mxu1 %v3790_v12  ;;  %v3685_v12 = vld [vmem:[#allocation8 + $0x4f8] sm:$0xff] }
 0xb01   :  { %4129 = vmatprep.subr.bf16.mxu1 %v3801_v4  ;;  %v3684_v4 = vld [vmem:[#allocation8 + $0x4f0] sm:$0xff] }
 0xb02   :  { %4210 = vmatpush1.bf16.msra.mxu0 %v3792_v37  ;;  %v3735_v37 = vld [vmem:[#allocation8 + $0x688] sm:$0xff] }
 0xb03   :  { %4211 = vmatprep.subr.bf16.mxu0 %v3803_v48  ;;  %v6239_v48 = vld [vmem:[#allocation14 + $0x32] sm:$0xff] }
 0xb04   :  { %4130 = vmatpush1.bf16.msra.mxu1 %v3800_v7  ;;  %v3705_v7 = vld [vmem:[#allocation8 + $0x598] sm:$0xff] }
 0xb05   :  { %4131 = vmatprep.subr.bf16.mxu1 %v3811_v54  ;;  %v3704_v54 = vld [vmem:[#allocation8 + $0x590] sm:$0xff] }
 0xb06   :  { %4212 = vmatpush1.bf16.msra.mxu0 %v3802_v40  ;;  %v3744_v40 = vld [vmem:[#allocation8 + $0x6d0] sm:$0xff] }
 0xb07   :  { %4213 = vmatprep.subr.bf16.mxu0 %v3813_v17 }
 0xb08   :  { %4132 = vmatpush1.bf16.msra.mxu1 %v3810_v52  ;;  %v3725_v52 = vld [vmem:[#allocation8 + $0x638] sm:$0xff] }
 0xb09   :  { %4133 = vmatprep.subr.bf16.mxu1 %v3821_v63  ;;  %v3724_v63 = vld [vmem:[#allocation8 + $0x630] sm:$0xff] }
 0xb0a   :  { %4214 = vmatpush1.bf16.msra.mxu0 %v3812_v51 }
 0xb0b   :  { %4215 = vmatprep.subr.bf16.mxu0 %v3823_v49 }
 0xb0c   :  { %4134 = vmatpush1.bf16.msra.mxu1 %v3820_v43  ;;  %v3734_v43 = vld [vmem:[#allocation8 + $0x680] sm:$0xff] }
 0xb0d   :  { %4135 = vmatprep.subr.bf16.mxu1 %v3831_v16  ;;  %v3859_v16 = vrot.slane %v6239_v48, %v5984_v31 }
 0xb0e   :  { %4216 = vmatpush1.bf16.msra.mxu0 %v3822_v50  ;;  %v3754_v50 = vld [vmem:[#allocation8 + $0x720] sm:$0xff] }
 0xb0f   :  { %4217 = vmatprep.subr.bf16.mxu0 %v3833_v47  ;;  %v3765_v47 = vld [vmem:[#allocation8 + $0x778] sm:$0xff] }
 0xb10   :  { %4136 = vmatpush1.bf16.msra.mxu1 %v3830_v34  ;;  %v3755_v34 = vld [vmem:[#allocation8 + $0x728] sm:$0xff] }
 0xb11   :  { %4137 = vmatprep.subr.bf16.mxu1 %v3841_v6 }
 0xb12   :  { %4218 = vmatpush1.bf16.msra.mxu0 %v3832_v23  ;;  %v3775_v23 = vld [vmem:[#allocation8 + $0x7c8] sm:$0xff] }
 0xb13   :  { %4219 = vmatprep.subr.bf16.mxu0 %v3843_v0  ;;  %v3867_v0 = vrot.slane %v6239_v48, %v6020_v58  ;;  %v3805_v58 = vld [vmem:[#allocation8 + $0x8b8] sm:$0xff] }
 0xb14   :  { %4138 = vmatpush1.bf16.msra.mxu1 %v3840_v2 }
 0xb15   :  { %4230 = vmatprep.subr.bf16.mxu1 %v3535_v33 }
 0xb16   :  { %4220 = vmatpush1.bf16.msra.mxu0 %v3842_v28 }
 0xb17   :  { %4140 = vmatmul.mubr.bf16.vlgmr.msra.gmra.mrb[68].mxu1 %v6224_v20 }
 0xb18   :  { %4231 = vmatpush1.bf16.msra.mxu1 %v3534_v26  ;;  %4262 = vmatprep.mubr.bf16.mxu1 %v6206_v22  ;;  %v3574_v22 = vld [vmem:[#allocation8 + $0x180] sm:$0xff]  ;;  %v3764_v26 = vld [vmem:[#allocation8 + $0x770] sm:$0xff] }
 0xb19   :  { %4232 = vmatprep.subr.bf16.mxu1 %v3545_v10  ;;  %4222 = vmatmul.mubr.bf16.vlgmr.msra.gmra.mrb[80].mxu0 %v6224_v20  ;;  %v3863_v10 = vrot.slane %v6239_v48, %v6017_v39  ;;  %v3795_v39 = vld [vmem:[#allocation8 + $0x868] sm:$0xff] }
 0xb1c   :  { %4233 = vmatpush1.bf16.msra.mxu1 %v3544_v1 }
 0xb1d   :  { %4234 = vmatprep.subr.bf16.mxu1 %v3555_v41  ;;  %v3774_v41 = vld [vmem:[#allocation8 + $0x7c0] sm:$0xff] }
 0xb20   :  { %4235 = vmatpush1.bf16.msra.mxu1 %v3554_v36 }
 0xb21   :  { %4236 = vmatprep.subr.bf16.mxu1 %v3565_v60  ;;  %v3785_v60 = vld [vmem:[#allocation8 + $0x818] sm:$0xff] }
 0xb24   :  { %4237 = vmatpush1.bf16.msra.mxu1 %v3564_v29 }
 0xb25   :  { %4238 = vmatprep.subr.bf16.mxu1 %v3575_v61 }
 0xb28   :  { %4239 = vmatpush1.bf16.msra.mxu1 %v3574_v22 }
 0xb29   :  { %4240 = vmatprep.subr.bf16.mxu1 %v3585_v55  ;;  %v3784_v55 = vld [vmem:[#allocation8 + $0x810] sm:$0xff] }
 0xb2c   :  { %4241 = vmatpush1.bf16.msra.mxu1 %v3584_v44  ;;  %v3794_v44 = vld [vmem:[#allocation8 + $0x860] sm:$0xff] }
 0xb2d   :  { %4242 = vmatprep.subr.bf16.mxu1 %v3595_v8  ;;  %v3804_v8 = vld [vmem:[#allocation8 + $0x8b0] sm:$0xff] }
 0xb30   :  { %4243 = vmatpush1.bf16.msra.mxu1 %v3594_v56  ;;  %v3815_v56 = vld [vmem:[#allocation8 + $0x908] sm:$0xff] }
 0xb31   :  { %4244 = vmatprep.subr.bf16.mxu1 %v3605_v42  ;;  %v3814_v42 = vld [vmem:[#allocation8 + $0x900] sm:$0xff] }
 0xb34   :  { %4245 = vmatpush1.bf16.msra.mxu1 %v3604_v11  ;;  %v3825_v11 = vld [vmem:[#allocation8 + $0x958] sm:$0xff] }
 0xb35   :  { %4246 = vmatprep.subr.bf16.mxu1 %v3615_v13  ;;  %v3824_v13 = vld [vmem:[#allocation8 + $0x950] sm:$0xff] }
 0xb38   :  { %4247 = vmatpush1.bf16.msra.mxu1 %v3614_v46  ;;  %v3835_v46 = vld [vmem:[#allocation8 + $0x9a8] sm:$0xff] }
 0xb39   :  { %4248 = vmatprep.subr.bf16.mxu1 %v3625_v3  ;;  %v3834_v3 = vld [vmem:[#allocation8 + $0x9a0] sm:$0xff] }
 0xb3c   :  { %4249 = vmatpush1.bf16.msra.mxu1 %v3624_v45  ;;  %v3845_v45 = vld [vmem:[#allocation8 + $0x9f8] sm:$0xff] }
 0xb3d   :  { %4250 = vmatprep.subr.bf16.mxu1 %v3635_v38  ;;  %v3844_v38 = vld [vmem:[#allocation8 + $0x9f0] sm:$0xff] }
 0xb40   :  { %4251 = vmatpush1.bf16.msra.mxu1 %v3634_v32  ;;  %v3870_v32 = vsub.s32 4, %v5974_v15 }
 0xb41   :  { %4252 = vmatprep.subr.bf16.mxu1 %v3645_v30  ;;  %v3874_v30 = vsub.s32 5, %v5974_v15 }
 0xb44   :  { %4253 = vmatpush1.bf16.msra.mxu1 %v3644_v14  ;;  %v3871_v14 = vrot.slane %v6239_v48, %v3870_v32 }
 0xb45   :  { %4254 = vmatprep.subr.bf16.mxu1 %v3655_v27  ;;  %v3875_v27 = vrot.slane %v6239_v48, %v3874_v30 }
 0xb48   :  { %4255 = vmatpush1.bf16.msra.mxu1 %v3654_v57 }
 0xb49   :  { %4256 = vmatprep.subr.bf16.mxu1 %v3665_v53 }
 0xb4c   :  { %4257 = vmatpush1.bf16.msra.mxu1 %v3664_v59 }
 0xb4d   :  { %4258 = vmatprep.subr.bf16.mxu1 %v3675_v19 }
 0xb50   :  { %4259 = vmatpush1.bf16.msra.mxu1 %v3674_v21 }
 0xb51   :  { %4260 = vmatprep.subr.bf16.mxu1 %v3685_v12 }
 0xb54   :  { %4261 = vmatpush1.bf16.msra.mxu1 %v3684_v4  ;;  %v3878_v4 = vsub.s32 6, %v5974_v15 }
 0xb55   :  { %4271 = vmatprep.subr.bf16.mxu1 %v3695_v35 }
 0xb57   :  { %4263 = vmatmul.mubr.bf16.vlgmr.msra.gmra.mrb[72].mxu1 %v6212_v5  ;;  %v3745_v5 = vld [vmem:[#allocation8 + $0x6d8] sm:$0xff] }
 0xb58   :  { %4272 = vmatpush1.bf16.msra.mxu1 %v3694_v62  ;;  %4303 = vmatprep.mubr.bf16.mxu1 %v6216_v24  ;;  %v3855_v24 = vrot.slane %v6239_v48, %v5979_v25 }
 0xb59   :  { %4273 = vmatprep.subr.bf16.mxu1 %v3705_v7 }
 0xb5c   :  { %4274 = vmatpush1.bf16.msra.mxu1 %v3704_v54 }
 0xb5d   :  { %4275 = vmatprep.subr.bf16.mxu1 %v3715_v9 }
 0xb60   :  { %4276 = vmatpush1.bf16.msra.mxu1 %v3714_v18 }
 0xb61   :  { %4277 = vmatprep.subr.bf16.mxu1 %v3725_v52 }
 0xb64   :  { %4278 = vmatpush1.bf16.msra.mxu1 %v3724_v63 }
 0xb65   :  { %4279 = vmatprep.subr.bf16.mxu1 %v3735_v37 }
 0xb68   :  { %4280 = vmatpush1.bf16.msra.mxu1 %v3734_v43 }
 0xb69   :  { %4281 = vmatprep.subr.bf16.mxu1 %v3745_v5 }
 0xb6a   :  { %v3977_v17 = vpop.f32.mrb[64].mxu1 }
 0xb6b   :  { %v4421_v6 = vadd.f32 %v3977_v17, %v3855_v24  ;;  %v3979_v51 = vpop.f32.mrb[65].mxu1 }
 0xb6c   :  { %v4422_v49 = vadd.f32 %v3979_v51, %v3859_v16  ;;  %v3981_v2 = vpop.f32.mrb[66].mxu1  ;;  %4282 = vmatpush1.bf16.msra.mxu1 %v3744_v40  ;;  %v4059_v1 = vpop.f32.mrb[76].mxu0 }
 0xb6d   :  { %4312 = vst [vmem:[#allocation17] sm:$0xff] %v4421_v6  ;;  %v3982_v33 = vpop.f32.mrb[67].mxu1  ;;  %4283 = vmatprep.subr.bf16.mxu1 %v3755_v34  ;;  %v4423_v28 = vadd.f32 %v4059_v1, %v3863_v10  ;;  %v4061_v36 = vpop.f32.mrb[77].mxu0 }
 0xb6e   :  { %4313 = vst [vmem:[#allocation17 + $0x8] sm:$0xff] %v4422_v49  ;;  %v4424_v29 = vadd.f32 %v4061_v36, %v3867_v0  ;;  %v4063_v61 = vpop.f32.mrb[78].mxu0 }
 0xb6f   :  { %4314 = vst [vmem:[#allocation17 + $0x10] sm:$0xff] %v4423_v28  ;;  %v4064_v22 = vpop.f32.mrb[79].mxu0 }
 0xb70   :  { %4284 = vmatpush1.bf16.msra.mxu1 %v3754_v50  ;;  %4315 = vst [vmem:[#allocation17 + $0x18] sm:$0xff] %v4424_v29 }
 0xb71   :  { %4285 = vmatprep.subr.bf16.mxu1 %v3765_v47 }
 0xb74   :  { %4286 = vmatpush1.bf16.msra.mxu1 %v3764_v26 }
 0xb75   :  { %4287 = vmatprep.subr.bf16.mxu1 %v3775_v23 }
 0xb78   :  { %4288 = vmatpush1.bf16.msra.mxu1 %v3774_v41 }
 0xb79   :  { %4289 = vmatprep.subr.bf16.mxu1 %v3785_v60 }
 0xb7c   :  { %4290 = vmatpush1.bf16.msra.mxu1 %v3784_v55 }
 0xb7d   :  { %4291 = vmatprep.subr.bf16.mxu1 %v3795_v39 }
 0xb80   :  { %4292 = vmatpush1.bf16.msra.mxu1 %v3794_v44 }
 0xb81   :  { %4293 = vmatprep.subr.bf16.mxu1 %v3805_v58 }
 0xb84   :  { %4294 = vmatpush1.bf16.msra.mxu1 %v3804_v8 }
 0xb85   :  { %4295 = vmatprep.subr.bf16.mxu1 %v3815_v56 }
 0xb88   :  { %4296 = vmatpush1.bf16.msra.mxu1 %v3814_v42 }
 0xb89   :  { %4297 = vmatprep.subr.bf16.mxu1 %v3825_v11 }
 0xb8c   :  { %4298 = vmatpush1.bf16.msra.mxu1 %v3824_v13 }
 0xb8d   :  { %4299 = vmatprep.subr.bf16.mxu1 %v3835_v46 }
 0xb90   :  { %4300 = vmatpush1.bf16.msra.mxu1 %v3834_v3 }
 0xb91   :  { %4301 = vmatprep.subr.bf16.mxu1 %v3845_v45 }
 0xb94   :  { %4302 = vmatpush1.bf16.msra.mxu1 %v3844_v38 }
 0xb97   :  { %4304 = vmatmul.mubr.bf16.vlgmr.msra.gmra.mrb[72].mxu1 %v6224_v20  ;;  %v3882_v20 = vsub.s32 7, %v5974_v15 }
 0xbea   :  { %v4141_v57 = vpop.f32.mrb[68].mxu1 }
 0xbeb   :  { %v4425_v53 = vadd.f32 %v4141_v57, %v3871_v14  ;;  %v4143_v59 = vpop.f32.mrb[69].mxu1 }
 0xbec   :  { %v4426_v19 = vadd.f32 %v4143_v59, %v3875_v27  ;;  %v4145_v21 = vpop.f32.mrb[70].mxu1 }
 0xbed   :  { %4316 = vst [vmem:[#allocation17 + $0x20] sm:$0xff] %v4425_v53  ;;  %v4146_v12 = vpop.f32.mrb[71].mxu1 }
 0xbee   :  { %4317 = vst [vmem:[#allocation17 + $0x28] sm:$0xff] %v4426_v19 }
 0xbef   :  { %4616 = shalt.err (!%p4613_p6)
}
 0xbf0   :  { %s4617_s21 = scalar_lea.hbm %s6294_s10, 256 }
 0xbf1   :  { %p4618_p7 = scmp.ne.s32.totalorder %s6294_s10, %s4617_s21  ;;  %p4621_p8 = scmp.lt.u32.totalorder %s4617_s21, %s6294_s10 }
 0xbf3   :  { %p4623_p9 = pnand %p4621_p8, %p4618_p7 }
 0xbf5   :  { %4626 = shalt.err (!%p4623_p9)
}
 0xbf6   :  { %4331 = dma.vmem_to_hbm [thread:$0]  %s4329_s26, 256, %s6294_s10, [#allocation13]   ;;  %v3879_v15 = vrot.slane %v6239_v48, %v3878_v4  ;;  %v3883_v35 = vrot.slane %v6239_v48, %v3882_v20  ;;  %v4223_v62 = vpop.f32.mrb[80].mxu0  ;;  %v3525_v63 = vld [vmem:[#allocation14 + $0x3a] sm:$0x3] }
 0xbf7   :  { %v4225_v54 = vpop.f32.mrb[81].mxu0  ;;  %v3887_v37 = vrot.slane %v3525_v63, %v5979_v25  ;;  %v3891_v43 = vrot.slane %v3525_v63, %v5984_v31  ;;  %s4708_s30 = smov [#allocation17]  }
 0xbf8   :  { %v4427_v7 = vadd.f32 %v4223_v62, %v3879_v15  ;;  %v4428_v9 = vadd.f32 %v4225_v54, %v3883_v35  ;;  %v4227_v18 = vpop.f32.mrb[82].mxu0  ;;  %s4338_s7 = sshll.u32 %s4708_s30, 4  ;;  %s4339_s7 = int_to_ptr.vmem [resolvable:$true] %s4338_s7 }
 0xbf9   :  { %v4228_v52 = vpop.f32.mrb[83].mxu0  ;;  %s4627_s10 = scalar_lea.vmem %s4339_s7, 1280  ;;  %p4632_p11 = scmp.lt.s32.totalorder %s4339_s7, %s4339_s7 }
 0xbfa   :  { %4318 = vst [vmem:[#allocation17 + $0x30] sm:$0xff] %v4427_v7  ;;  %4319 = vst [vmem:[#allocation17 + $0x38] sm:$0xff] %v4428_v9  ;;  %p4628_p10 = scmp.ne.s32.totalorder %s4339_s7, %s4627_s10  ;;  %p4633_p12 = scmp.lt.s32.totalorder %s4627_s10, %s4627_s10 }
 0xbfc   :  { %p4634_p13 = por %p4633_p12, %p4632_p11 }
 0xbfe   :  { %p4635_p0 = pnand %p4634_p13, %p4628_p10 }
 0xc6a   :  { %v4305_v5 = vpop.f32.mrb[72].mxu1 }
 0xc6b   :  { %v4429_v24 = vadd.f32 %v4305_v5, %v3887_v37  ;;  %v4307_v16 = vpop.f32.mrb[73].mxu1 }
 0xc6c   :  { %v4430_v40 = vadd.f32 %v4307_v16, %v3891_v43  ;;  %v4309_v48 = vpop.f32.mrb[74].mxu1 }
 0xc6d   :  { %4320 = vst [vmem:[#allocation17 + $0x40] sm:$0xff] %v4429_v24  ;;  %v4310_v17 = vpop.f32.mrb[75].mxu1 }
 0xc6e   :  { %4321 = vst [vmem:[#allocation17 + $0x48] sm:$0xff] %v4430_v40 }
 0xc6f   :  { %4638 = shalt.err (!%p4635_p0)
}
 0xc70   :  { %s4639_s14 = scalar_lea.hbm %s6295_s11, 1280 }
 0xc71   :  { %p4640_p1 = scmp.ne.s32.totalorder %s6295_s11, %s4639_s14  ;;  %p4643_p2 = scmp.lt.u32.totalorder %s4639_s14, %s6295_s11 }
 0xc73   :  { %p4645_p3 = pnand %p4643_p2, %p4640_p1 }
 0xc75   :  { %4648 = shalt.err (!%p4645_p3)
}
 0xc76   :  { %4341 = dma.vmem_to_hbm [thread:$0]  %s4339_s7, 1280, %s6295_s11, [#allocation18]  }
 0xc77   :  { %4667 = dma.done.wait [#allocation13], 256  }
 0xc78   :  { %4668 = vsyncadd [#allocation13], 4294967040 }
 0xc79   :  { %4669 = dma.done.wait [#allocation18], 1280  }
 0xc7a   :  { %4670 = vsyncadd [#allocation18], 4294966016 }
 0xc7b   :  { %4348 = vsyncpa [#allocation12], 1 }
 0xc7c   :  { %4349 = vsyncpa [#allocation15], 1 }
 0xc7d   :  { %4350 = vsyncpa [#allocation13], 1 }
 0xc7e   :  { %4351 = vsyncpa [#allocation18], 1 }
 0xc7f   :  { %4352 = vsyncmov [#allocation9] }
 0xc82   :  { %s4353_s5 = vpop.sfrf %4352 }
 0xc83   :  { %p4414_p4 = scmp.ne.s32.totalorder %s4353_s5, 0 }
 0xc85   :  { %4357 = shalt.err (%p4414_p4)  }
 0xc86   :  { %4359 = vsyncmov [#allocation9 + $0x1] }
 0xc89   :  { %s4360_s17 = vpop.sfrf %4359 }
 0xc8a   :  { %p4415_p5 = scmp.ne.s32.totalorder %s4360_s17, 0 }
 0xc8c   :  { %4364 = shalt.err (%p4415_p5)  }
 0xc8d   :  { %4366 = vsyncmov [#allocation9 + $0x2] }
 0xc90   :  { %s4367_s19 = vpop.sfrf %4366 }
 0xc91   :  { %p4416_p6 = scmp.ne.s32.totalorder %s4367_s19, 0 }
 0xc93   :  { %4371 = shalt.err (%p4416_p6)  }
 0xc94   :  { %4373 = vsyncmov [#allocation9 + $0x3] }
 0xc97   :  { %s4374_s11 = vpop.sfrf %4373 }
 0xc98   :  { %p4417_p7 = scmp.ne.s32.totalorder %s4374_s11, 0 }
 0xc9a   :  { %4378 = shalt.err (%p4417_p7)  }
 0xc9b   :  { %4380 = vsyncmov [#allocation9 + $0x4] }
 0xc9e   :  { %s4381_s9 = vpop.sfrf %4380 }
 0xc9f   :  { %p4418_p8 = scmp.ne.s32.totalorder %s4381_s9, 0 }
 0xca1   :  { %4385 = shalt.err (%p4418_p8)  }
 0xca2   :  { %4387 = vsyncmov [#allocation9 + $0x5] }
 0xca5   :  { %s4388_s24 = vpop.sfrf %4387 }
 0xca6   :  { %p4419_p9 = scmp.ne.s32.totalorder %s4388_s24, 0 }
 0xca8   :  { %4392 = shalt.err (%p4419_p9)  }
 0xca9   :  { %4394 = vsyncmov [#allocation9 + $0x6] }
 0xcac   :  { %s4395_s25 = vpop.sfrf %4394 }
 0xcad   :  { %p4420_p10 = scmp.ne.s32.totalorder %s4395_s25, 0 }
 0xcaf   :  { %4399 = shalt.err (%p4420_p10)  }

</bundles_post_ra>
